<compile_context>
chip_gen: v7x
topology: tpu7x:2x2x1
jax: 0.10.0
libtpu: 0.0.40
codegen_flags: <defaults>
</compile_context>

<pallas_src>
import functools
import numpy as np
import jax
import jax.numpy as jnp
from jax.experimental import pallas as pl
from jax.experimental.pallas import tpu as pltpu

EPS = 1e-5
LANE = 128


def round_up(n, m):
    return ((n + m - 1) // m) * m


def pick_row_block(ho, wo):
    """Largest divisor of `ho` with rows*wo <= 128, so each f32 accumulator
    tile is <= 64 KiB and stays vreg-resident (no spill/fill around the dots)."""
    cap = max(1, 128 // max(wo, 1))
    mt = min(cap, ho)
    while ho % mt:
        mt -= 1
    return max(mt, 1)


def _vmem_limit_bytes():
    """Chip-aware VMEM budget: ~3/4 of physical, capped at 96 MiB.
    -> 96 MiB on v5e/v6e (128 MiB physical), 48 MiB on v7x (64 MiB physical)."""
    cap = 64 * 1024 * 1024
    try:
        cap = int(pltpu.get_tpu_info().vmem_capacity_bytes) or cap
    except Exception:
        pass
    return int(min(96 * 1024 * 1024, (cap * 3) // 4))


# ----------------------------- Pallas kernel --------------------------------

def make_stage_kernel(H, W, stride, g1d, cin_data, cin_p, p_p, shortcut_mode):
    """Fused stage: BN+ReLU -> 3x3 conv (width-im2col strip, K=3*cin_p MXU
    matmuls) -> bias -> separable 3x3 gaussian blur [-> + shortcut].
    One image per grid step; all intermediates stay in VMEM."""
    Ho = (H - 1) // stride + 1
    Wo = (W - 1) // stride + 1
    Hp = H + 2
    g1 = [float(v) for v in np.asarray(g1d, dtype=np.float64)]
    Mt = pick_row_block(Ho, Wo)          # output rows per matmul/blur block
    nblk = Ho // Mt
    K3 = 3 * cin_p

    def kernel(*refs):
        if shortcut_mode == "proj":
            (x_ref, s_ref, t_ref, w_ref, b_ref,
             xs_ref, ws_ref, bs_ref, o_ref, hpad_ref, strip_ref, cpad_ref) = refs
        elif shortcut_mode == "identity":
            (x_ref, s_ref, t_ref, w_ref, b_ref,
             xs_ref, o_ref, hpad_ref, strip_ref, cpad_ref) = refs
        else:
            (x_ref, s_ref, t_ref, w_ref, b_ref,
             o_ref, hpad_ref, strip_ref, cpad_ref) = refs

        Wh = hpad_ref.shape[1]
        Wcp = cpad_ref.shape[1]

        # --- (1) zero ONLY the border ring of the padded conv-input scratch
        #         (the interior is fully overwritten below every step). ---
        zrow = jnp.zeros((1, Wh, cin_p), jnp.bfloat16)
        zcol = jnp.zeros((Hp, 1, cin_p), jnp.bfloat16)
        hpad_ref[0:1, :, :] = zrow
        hpad_ref[Hp - 1:Hp, :, :] = zrow
        hpad_ref[:, 0:1, :] = zcol
        hpad_ref[:, W + 1:W + 2, :] = zcol

        # --- (2) BN + ReLU on the UNPADDED channel count straight from HBM,
        #         lane-pad in registers, single interior store. ---
        xin = x_ref[0]                                           # (H, W, cin_data)
        h = jnp.maximum(
            xin.astype(jnp.float32) * s_ref[...].reshape(1, 1, cin_data)
            + t_ref[...].reshape(1, 1, cin_data), 0.0).astype(jnp.bfloat16)
        if cin_data < cin_p:
            h = jnp.concatenate(
                [h, jnp.zeros((H, W, cin_p - cin_data), jnp.bfloat16)], axis=-1)
        hpad_ref[1:H + 1, 1:W + 1, :] = h

        # --- (3) width-im2col strip: 3 shifted copies (one per kx) instead of
        #         9 misaligned per-tap relayouts; enables K = 3*cin_p matmuls. ---
        for kx in range(3):
            if stride == 1:
                src = hpad_ref[:, kx:kx + Wo, :]
            else:
                # TODO(synk): stride != 1 path (strided pl.ds reads) is untested here.
                src = hpad_ref[:, pl.ds(kx, Wo, stride), :]
            strip_ref[:, :, kx * cin_p:(kx + 1) * cin_p] = src

        # --- (4) zero ONLY the border ring of the padded conv-output scratch. ---
        zrc = jnp.zeros((1, Wcp, p_p), jnp.float32)
        zcc = jnp.zeros((Ho + 2, 1, p_p), jnp.float32)
        cpad_ref[0:1, :, :] = zrc
        cpad_ref[Ho + 1:Ho + 2, :, :] = zrc
        cpad_ref[:, 0:1, :] = zcc
        cpad_ref[:, Wo + 1:Wo + 2, :] = zcc

        bias = b_ref[...]                                        # (1, p_p) f32

        # --- (5) 3x3 conv: per row block, 3 deep (K=3*cin_p) bf16 MXU matmuls
        #         with an f32 vreg-resident accumulator; bias added BEFORE blur. ---
        for blk in range(nblk):
            m = blk * Mt
            acc = jnp.zeros((Mt * Wo, p_p), jnp.float32)
            for ky in range(3):
                if stride == 1:
                    lhs = strip_ref[m + ky:m + ky + Mt, :, :]
                else:
                    lhs = strip_ref[pl.ds(m * stride + ky, Mt, stride), :, :]
                acc = acc + jnp.dot(lhs.reshape(Mt * Wo, K3), w_ref[ky],
                                    preferred_element_type=jnp.float32)
            acc = acc + bias
            cpad_ref[1 + m:1 + m + Mt, 1:Wo + 1, :] = acc.reshape(Mt, Wo, p_p)

        # --- (6) separable depthwise 3x3 gaussian blur (vertical then
        #         horizontal 3-tap) + fused shortcut epilogue + store. ---
        for blk in range(nblk):
            m = blk * Mt
            v = (g1[0] * cpad_ref[m:m + Mt, 0:Wo + 2, :]
                 + g1[1] * cpad_ref[m + 1:m + 1 + Mt, 0:Wo + 2, :]
                 + g1[2] * cpad_ref[m + 2:m + 2 + Mt, 0:Wo + 2, :])
            g = (g1[0] * v[:, 0:Wo, :]
                 + g1[1] * v[:, 1:Wo + 1, :]
                 + g1[2] * v[:, 2:Wo + 2, :])

            if shortcut_mode == "proj":
                kp = ws_ref.shape[0]
                cs = xs_ref.shape[3]
                xsb = xs_ref[0:1, m:m + Mt, :, :].reshape(Mt, Wo, cs)
                xsb = xsb.astype(jnp.bfloat16)
                if cs < kp:
                    xsb = jnp.concatenate(
                        [xsb, jnp.zeros((Mt, Wo, kp - cs), jnp.bfloat16)], axis=-1)
                sc = jnp.dot(xsb.reshape(Mt * Wo, kp), ws_ref[...],
                             preferred_element_type=jnp.float32) + bs_ref[...]
                g = g + sc.reshape(Mt, Wo, p_p)
            elif shortcut_mode == "identity":
                cs = xs_ref.shape[3]
                xsb = xs_ref[0:1, m:m + Mt, :, :].reshape(Mt, Wo, cs)
                xsb = xsb.astype(jnp.float32)
                if cs < p_p:
                    xsb = jnp.concatenate(
                        [xsb, jnp.zeros((Mt, Wo, p_p - cs), jnp.float32)], axis=-1)
                g = g + xsb

            o_ref[0:1, m:m + Mt, :, :] = g.reshape(1, Mt, Wo, p_p).astype(o_ref.dtype)

    return kernel


def pallas_stage(x, scale, shift, w_k, bias, g1d, stride, cin_p, p_p,
                 out_dtype, shortcut=None):
    """x: (N,H,W,Cin_data) f32/bf16 (UNPADDED channels OK),
    w_k: (3, 3*cin_p, p_p) bf16, scale/shift: (Cin_data,), bias: (p_p,).
    shortcut: None | ("proj", xs, ws_bf16, bs) | ("identity", xs)."""
    N, H, W, cin_data = x.shape
    Ho = (H - 1) // stride + 1
    Wo = (W - 1) // stride + 1
    mode = shortcut[0] if shortcut is not None else "none"

    in_specs = [
        pl.BlockSpec((1, H, W, cin_data), lambda n: (n, 0, 0, 0)),
        pl.BlockSpec((1, cin_data), lambda n: (0, 0)),
        pl.BlockSpec((1, cin_data), lambda n: (0, 0)),
        pl.BlockSpec((3, 3 * cin_p, p_p), lambda n: (0, 0, 0)),
        pl.BlockSpec((1, p_p), lambda n: (0, 0)),
    ]
    args = [x, scale.reshape(1, cin_data), shift.reshape(1, cin_data),
            w_k, bias.reshape(1, p_p)]
    if mode == "proj":
        _, xs, ws, bs = shortcut
        in_specs += [pl.BlockSpec((1, Ho, Wo, xs.shape[3]), lambda n: (n, 0, 0, 0)),
                     pl.BlockSpec(ws.shape, lambda n: (0, 0)),
                     pl.BlockSpec((1, p_p), lambda n: (0, 0))]
        args += [xs, ws, bs.reshape(1, p_p)]
    elif mode == "identity":
        _, xs = shortcut
        in_specs += [pl.BlockSpec((1, Ho, Wo, xs.shape[3]), lambda n: (n, 0, 0, 0))]
        args += [xs]

    Wh = round_up(W + 2, 16)      # bf16 sublane-aligned row stride
    Wcp = round_up(Wo + 2, 8)     # f32 sublane-aligned row stride
    kernel = make_stage_kernel(H, W, stride, g1d, cin_data, cin_p, p_p, mode)
    return pl.pallas_call(
        kernel,
        out_shape=jax.ShapeDtypeStruct((N, Ho, Wo, p_p), out_dtype),
        grid=(N,),
        in_specs=in_specs,
        out_specs=pl.BlockSpec((1, Ho, Wo, p_p), lambda n: (n, 0, 0, 0)),
        scratch_shapes=[
            pltpu.VMEM((H + 2, Wh, cin_p), jnp.bfloat16),       # padded BN/ReLU input
            pltpu.VMEM((H + 2, Wo, 3 * cin_p), jnp.bfloat16),   # width-im2col strip
            pltpu.VMEM((Ho + 2, Wcp, p_p), jnp.float32),        # padded conv output
        ],
        compiler_params=pltpu.CompilerParams(
            dimension_semantics=("parallel",),        # batch over megacore TCs
            vmem_limit_bytes=_vmem_limit_bytes()),
    )(*args)


# ------------------------------ JAX glue -------------------------------------

def fold_bn(gamma, beta, mean, var):
    scale = gamma / jnp.sqrt(var + EPS)
    shift = beta - mean * scale
    return scale, shift


def pad_last(a, n):
    pads = [(0, 0)] * (a.ndim - 1) + [(0, n - a.shape[-1])]
    return jnp.pad(a, pads)


def conv3x3_kpack(w_oihw, cin_p, cout_p):
    # (Cout, Cin, 3, 3) -> (3, 3*cin_p, cout_p) bf16; index [ky, kx*cin_p + c, o]
    Cout, Cin, Kh, Kw = w_oihw.shape
    t = jnp.transpose(w_oihw, (2, 3, 1, 0))                      # (ky, kx, Cin, Cout)
    t = jnp.pad(t, ((0, 0), (0, 0), (0, cin_p - Cin), (0, cout_p - Cout)))
    return t.reshape(Kh, Kw * cin_p, cout_p).astype(jnp.bfloat16)


def conv1x1_mat(w_oihw, cin_p, cout_p):
    # (Cout, Cin, 1, 1) -> (cin_p, cout_p) bf16
    Cout, Cin = w_oihw.shape[0], w_oihw.shape[1]
    m = jnp.transpose(w_oihw.reshape(Cout, Cin), (1, 0))
    m = jnp.pad(m, ((0, cin_p - Cin), (0, cout_p - Cout)))
    return m.astype(jnp.bfloat16)


def gaussian_kernel_1d(ksize, sigma):
    ax = np.arange(ksize, dtype=np.float64) - (ksize - 1) / 2.0
    g = np.exp(-(ax ** 2) / (2.0 * sigma ** 2))
    return (g / g.sum()).astype(np.float32)


# ------------------------------ wide_basic -----------------------------------

def wide_basic_forward(x_nchw, p, g1d, stride):
    x = jnp.transpose(x_nchw, (0, 2, 3, 1)).astype(jnp.float32)   # NHWC, UNPADDED channels
    N, H, W, Cin = x.shape
    planes = p["w1"].shape[0]
    cin_p = round_up(Cin, LANE)
    p_p = round_up(planes, LANE)

    # --- stage 1: blur1(conv1(relu(bn1(x)))), emitted as bf16 / lane-padded ---
    s1, t1 = fold_bn(p["bn1_g"], p["bn1_b"], p["bn1_m"], p["bn1_v"])
    h1 = pallas_stage(
        x, s1, t1,
        conv3x3_kpack(p["w1"], cin_p, p_p), pad_last(p["b1"], p_p),
        g1d, stride=1, cin_p=cin_p, p_p=p_p, out_dtype=jnp.bfloat16)
    # TODO(synk): dropout is identity (p=0.0 / eval mode); training-mode dropout
    # would fold a pltpu.prng_seed + pltpu.prng_random_bits mask into this stage.

    # --- stage 2: blur2(conv2(relu(bn2(h1)))) + shortcut(x), fully fused ---
    s2, t2 = fold_bn(p["bn2_g"], p["bn2_b"], p["bn2_m"], p["bn2_v"])
    xs = x[:, ::stride, ::stride, :]                  # unpadded; == x when stride == 1
    if stride != 1 or Cin != planes:
        shortcut = ("proj", xs, conv1x1_mat(p["ws"], cin_p, p_p), pad_last(p["bs"], p_p))
    else:
        shortcut = ("identity", xs)
    out = pallas_stage(
        h1, pad_last(s2, p_p), pad_last(t2, p_p),
        conv3x3_kpack(p["w2"], p_p, p_p), pad_last(p["b2"], p_p),
        g1d, stride=stride, cin_p=p_p, p_p=p_p, out_dtype=jnp.float32,
        shortcut=shortcut)

    out = out[:, :, :, :planes]
    return jnp.transpose(out, (0, 3, 1, 2))   # back to NCHW


# ------------------------------ pure-JAX reference ---------------------------

def ref_forward(x, p, gk, stride, planes):
    def bn(x, g, b, m, v):
        return (x - m[None, :, None, None]) / jnp.sqrt(v[None, :, None, None] + EPS) \
            * g[None, :, None, None] + b[None, :, None, None]

    def conv(x, w, b, s, pad, groups=1):
        y = jax.lax.conv_general_dilated(
            x, w, (s, s), ((pad, pad), (pad, pad)),
            dimension_numbers=("NCHW", "OIHW", "NCHW"),
            feature_group_count=groups,
            precision=jax.lax.Precision.HIGHEST)
        return y if b is None else y + b[None, :, None, None]

    gk_dw = jnp.asarray(np.tile(gk[None, None], (planes, 1, 1, 1)))  # (C,1,3,3)

    h = jax.nn.relu(bn(x, p["bn1_g"], p["bn1_b"], p["bn1_m"], p["bn1_v"]))
    h = conv(h, p["w1"], p["b1"], 1, 1)
    h = conv(h, gk_dw, None, 1, 1, groups=planes)
    h = jax.nn.relu(bn(h, p["bn2_g"], p["bn2_b"], p["bn2_m"], p["bn2_v"]))
    h = conv(h, p["w2"], p["b2"], stride, 1)
    h = conv(h, gk_dw, None, 1, 1, groups=planes)
    sc = conv(x, p["ws"], p["bs"], stride, 0)
    return h + sc


# --------------------------------- main ---------------------------------------

if __name__ == "__main__":
    in_planes, planes, stride = 4, 8, 1
    N, H, W = 2, 16, 16
    dropout_rate = 0.0  # dropout acts as identity

    key = jax.random.PRNGKey(0)
    ks = jax.random.split(key, 16)

    p = {
        "w1": 0.1 * jax.random.normal(ks[0], (planes, in_planes, 3, 3), jnp.float32),
        "b1": 0.05 * jax.random.normal(ks[1], (planes,), jnp.float32),
        "w2": 0.1 * jax.random.normal(ks[2], (planes, planes, 3, 3), jnp.float32),
        "b2": 0.05 * jax.random.normal(ks[3], (planes,), jnp.float32),
        "ws": 0.1 * jax.random.normal(ks[4], (planes, in_planes, 1, 1), jnp.float32),
        "bs": 0.05 * jax.random.normal(ks[5], (planes,), jnp.float32),
        "bn1_g": 1.0 + 0.1 * jax.random.normal(ks[6], (in_planes,), jnp.float32),
        "bn1_b": 0.1 * jax.random.normal(ks[7], (in_planes,), jnp.float32),
        "bn1_m": 0.1 * jax.random.normal(ks[8], (in_planes,), jnp.float32),
        "bn1_v": 0.5 + jax.random.uniform(ks[9], (in_planes,), jnp.float32),
        "bn2_g": 1.0 + 0.1 * jax.random.normal(ks[10], (planes,), jnp.float32),
        "bn2_b": 0.1 * jax.random.normal(ks[11], (planes,), jnp.float32),
        "bn2_m": 0.1 * jax.random.normal(ks[12], (planes,), jnp.float32),
        "bn2_v": 0.5 + jax.random.uniform(ks[13], (planes,), jnp.float32),
    }
    gk1 = gaussian_kernel_1d(3, 1.0)                       # separable 1-D factor
    gk2d = np.outer(gk1, gk1).astype(np.float32)           # 2-D kernel for the reference

    x = jax.random.normal(ks[14], (N, in_planes, H, W), jnp.float32)

    fwd = jax.jit(functools.partial(wide_basic_forward, g1d=gk1, stride=stride))
    out = jax.block_until_ready(fwd(x, p))
    ref = jax.block_until_ready(ref_forward(x, p, gk2d, stride, planes))

    assert out.shape == (N, planes, H // stride, W // stride), out.shape
    # bf16 MXU inputs + bf16 inter-stage tensor (f32 accumulation) vs an f32
    # HIGHEST reference -> ~1e-2 level diffs; tolerated per design.
    np.testing.assert_allclose(np.asarray(out), np.asarray(ref), atol=3e-2, rtol=3e-2)

    print("KERNEL_OK")
</pallas_src>

<mosaic_0001>
module attributes {stable_mosaic.version = 11 : i64} {
  func.func @kernel(%arg0: i32, %arg1: memref<1x16x16x4xf32, #tpu.memory_space<vmem>>, %arg2: memref<1x4xf32, #tpu.memory_space<vmem>>, %arg3: memref<1x4xf32, #tpu.memory_space<vmem>>, %arg4: memref<3x384x128xbf16, #tpu.memory_space<vmem>>, %arg5: memref<1x128xf32, #tpu.memory_space<vmem>>, %arg6: memref<1x16x16x128xbf16, #tpu.memory_space<vmem>>, %arg7: memref<18x32x128xbf16, #tpu.memory_space<vmem>>, %arg8: memref<18x16x384xbf16, #tpu.memory_space<vmem>>, %arg9: memref<18x24x128xf32, #tpu.memory_space<vmem>>) attributes {dimension_semantics = [#tpu.dimension_semantics<parallel>], iteration_bounds = array<i64: 2>, scalar_prefetch = 0 : i64, scratch_operands = 3 : i64, tpu.core_type = #tpu.core_type<tc>, window_params = [{transform_indices = @transform_0, window_bounds = array<i64: 1, 16, 16, 4>}, {pipeline_mode = #tpu.pipeline_mode<synchronous>, transform_indices = @transform_1, window_bounds = array<i64: 1, 4>}, {pipeline_mode = #tpu.pipeline_mode<synchronous>, transform_indices = @transform_2, window_bounds = array<i64: 1, 4>}, {pipeline_mode = #tpu.pipeline_mode<synchronous>, transform_indices = @transform_3, window_bounds = array<i64: 3, 384, 128>}, {pipeline_mode = #tpu.pipeline_mode<synchronous>, transform_indices = @transform_4, window_bounds = array<i64: 1, 128>}, {transform_indices = @transform_5, window_bounds = array<i64: 1, 16, 16, 128>}]} {
    %cst = arith.constant 0.000000e+00 : bf16
    %0 = vector.broadcast %cst : bf16 to vector<1x32x128xbf16>
    %cst_0 = arith.constant 0.000000e+00 : bf16
    %1 = vector.broadcast %cst_0 : bf16 to vector<18x1x128xbf16>
    %c0 = arith.constant 0 : index
    %c0_1 = arith.constant 0 : index
    %c0_2 = arith.constant 0 : index
    %2 = vector.load %arg7[%c0, %c0_1, %c0_2] : memref<18x32x128xbf16, #tpu.memory_space<vmem>>, vector<1x32x128xbf16>
    tpu.vector_store %arg7[%c0, %c0_1, %c0_2], %0 {strides = array<i32>} : memref<18x32x128xbf16, #tpu.memory_space<vmem>>, vector<1x32x128xbf16>,
    %c17 = arith.constant 17 : index
    %c0_3 = arith.constant 0 : index
    %c0_4 = arith.constant 0 : index
    %3 = vector.load %arg7[%c17, %c0_3, %c0_4] : memref<18x32x128xbf16, #tpu.memory_space<vmem>>, vector<1x32x128xbf16>
    tpu.vector_store %arg7[%c17, %c0_3, %c0_4], %0 {strides = array<i32>} : memref<18x32x128xbf16, #tpu.memory_space<vmem>>, vector<1x32x128xbf16>,
    %c0_5 = arith.constant 0 : index
    %c0_6 = arith.constant 0 : index
    %c0_7 = arith.constant 0 : index
    %4 = vector.load %arg7[%c0_5, %c0_6, %c0_7] : memref<18x32x128xbf16, #tpu.memory_space<vmem>>, vector<18x1x128xbf16>
    tpu.vector_store %arg7[%c0_5, %c0_6, %c0_7], %1 {strides = array<i32>} : memref<18x32x128xbf16, #tpu.memory_space<vmem>>, vector<18x1x128xbf16>,
    %c0_8 = arith.constant 0 : index
    %c17_9 = arith.constant 17 : index
    %c0_10 = arith.constant 0 : index
    %5 = vector.load %arg7[%c0_8, %c17_9, %c0_10] : memref<18x32x128xbf16, #tpu.memory_space<vmem>>, vector<18x1x128xbf16>
    tpu.vector_store %arg7[%c0_8, %c17_9, %c0_10], %1 {strides = array<i32>} : memref<18x32x128xbf16, #tpu.memory_space<vmem>>, vector<18x1x128xbf16>,
    %c0_11 = arith.constant 0 : index
    %c0_12 = arith.constant 0 : index
    %c0_13 = arith.constant 0 : index
    %c0_14 = arith.constant 0 : index
    %6 = vector.load %arg1[%c0_11, %c0_12, %c0_13, %c0_14] : memref<1x16x16x4xf32, #tpu.memory_space<vmem>>, vector<1x16x16x4xf32>
    %7 = vector.shape_cast %6 : vector<1x16x16x4xf32> to vector<16x16x4xf32>
    %c0_15 = arith.constant 0 : index
    %c0_16 = arith.constant 0 : index
    %8 = vector.load %arg2[%c0_15, %c0_16] : memref<1x4xf32, #tpu.memory_space<vmem>>, vector<1x4xf32>
    %9 = vector.shape_cast %8 : vector<1x4xf32> to vector<1x1x4xf32>
    %10 = vector.broadcast %9 : vector<1x1x4xf32> to vector<16x16x4xf32>
    %11 = arith.mulf %7, %10 : vector<16x16x4xf32>
    %c0_17 = arith.constant 0 : index
    %c0_18 = arith.constant 0 : index
    %12 = vector.load %arg3[%c0_17, %c0_18] : memref<1x4xf32, #tpu.memory_space<vmem>>, vector<1x4xf32>
    %13 = vector.shape_cast %12 : vector<1x4xf32> to vector<1x1x4xf32>
    %14 = vector.broadcast %13 : vector<1x1x4xf32> to vector<16x16x4xf32>
    %15 = arith.addf %11, %14 : vector<16x16x4xf32>
    %cst_19 = arith.constant 0.000000e+00 : f32
    %16 = vector.broadcast %cst_19 : f32 to vector<16x16x4xf32>
    %17 = arith.maximumf %15, %16 : vector<16x16x4xf32>
    %18 = arith.truncf %17 : vector<16x16x4xf32> to vector<16x16x4xbf16>
    %cst_20 = arith.constant 0.000000e+00 : bf16
    %19 = vector.broadcast %cst_20 : bf16 to vector<16x16x124xbf16>
    %20 = tpu.concatenate %18, %19 in 2 : vector<16x16x4xbf16>, vector<16x16x124xbf16> -> vector<16x16x128xbf16>
    %c1 = arith.constant 1 : index
    %c1_21 = arith.constant 1 : index
    %c0_22 = arith.constant 0 : index
    %21 = vector.load %arg7[%c1, %c1_21, %c0_22] : memref<18x32x128xbf16, #tpu.memory_space<vmem>>, vector<16x16x128xbf16>
    tpu.vector_store %arg7[%c1, %c1_21, %c0_22], %20 {strides = array<i32>} : memref<18x32x128xbf16, #tpu.memory_space<vmem>>, vector<16x16x128xbf16>,
    %c0_23 = arith.constant 0 : index
    %c0_24 = arith.constant 0 : index
    %c0_25 = arith.constant 0 : index
    %22 = vector.load %arg7[%c0_23, %c0_24, %c0_25] : memref<18x32x128xbf16, #tpu.memory_space<vmem>>, vector<18x16x128xbf16>
    %c0_26 = arith.constant 0 : index
    %c0_27 = arith.constant 0 : index
    %c0_28 = arith.constant 0 : index
    %23 = vector.load %arg8[%c0_26, %c0_27, %c0_28] : memref<18x16x384xbf16, #tpu.memory_space<vmem>>, vector<18x16x128xbf16>
    tpu.vector_store %arg8[%c0_26, %c0_27, %c0_28], %22 {strides = array<i32>} : memref<18x16x384xbf16, #tpu.memory_space<vmem>>, vector<18x16x128xbf16>,
    %c0_29 = arith.constant 0 : index
    %c1_30 = arith.constant 1 : index
    %c0_31 = arith.constant 0 : index
    %24 = vector.load %arg7[%c0_29, %c1_30, %c0_31] : memref<18x32x128xbf16, #tpu.memory_space<vmem>>, vector<18x16x128xbf16>
    %c0_32 = arith.constant 0 : index
    %c0_33 = arith.constant 0 : index
    %c128 = arith.constant 128 : index
    %25 = vector.load %arg8[%c0_32, %c0_33, %c128] : memref<18x16x384xbf16, #tpu.memory_space<vmem>>, vector<18x16x128xbf16>
    tpu.vector_store %arg8[%c0_32, %c0_33, %c128], %24 {strides = array<i32>} : memref<18x16x384xbf16, #tpu.memory_space<vmem>>, vector<18x16x128xbf16>,
    %c0_34 = arith.constant 0 : index
    %c2 = arith.constant 2 : index
    %c0_35 = arith.constant 0 : index
    %26 = vector.load %arg7[%c0_34, %c2, %c0_35] : memref<18x32x128xbf16, #tpu.memory_space<vmem>>, vector<18x16x128xbf16>
    %c0_36 = arith.constant 0 : index
    %c0_37 = arith.constant 0 : index
    %c256 = arith.constant 256 : index
    %27 = vector.load %arg8[%c0_36, %c0_37, %c256] : memref<18x16x384xbf16, #tpu.memory_space<vmem>>, vector<18x16x128xbf16>
    tpu.vector_store %arg8[%c0_36, %c0_37, %c256], %26 {strides = array<i32>} : memref<18x16x384xbf16, #tpu.memory_space<vmem>>, vector<18x16x128xbf16>,
    %cst_38 = arith.constant 0.000000e+00 : f32
    %28 = vector.broadcast %cst_38 : f32 to vector<1x24x128xf32>
    %cst_39 = arith.constant 0.000000e+00 : f32
    %29 = vector.broadcast %cst_39 : f32 to vector<18x1x128xf32>
    %c0_40 = arith.constant 0 : index
    %c0_41 = arith.constant 0 : index
    %c0_42 = arith.constant 0 : index
    %30 = vector.load %arg9[%c0_40, %c0_41, %c0_42] : memref<18x24x128xf32, #tpu.memory_space<vmem>>, vector<1x24x128xf32>
    tpu.vector_store %arg9[%c0_40, %c0_41, %c0_42], %28 {strides = array<i32>} : memref<18x24x128xf32, #tpu.memory_space<vmem>>, vector<1x24x128xf32>,
    %c17_43 = arith.constant 17 : index
    %c0_44 = arith.constant 0 : index
    %c0_45 = arith.constant 0 : index
    %31 = vector.load %arg9[%c17_43, %c0_44, %c0_45] : memref<18x24x128xf32, #tpu.memory_space<vmem>>, vector<1x24x128xf32>
    tpu.vector_store %arg9[%c17_43, %c0_44, %c0_45], %28 {strides = array<i32>} : memref<18x24x128xf32, #tpu.memory_space<vmem>>, vector<1x24x128xf32>,
    %c0_46 = arith.constant 0 : index
    %c0_47 = arith.constant 0 : index
    %c0_48 = arith.constant 0 : index
    %32 = vector.load %arg9[%c0_46, %c0_47, %c0_48] : memref<18x24x128xf32, #tpu.memory_space<vmem>>, vector<18x1x128xf32>
    tpu.vector_store %arg9[%c0_46, %c0_47, %c0_48], %29 {strides = array<i32>} : memref<18x24x128xf32, #tpu.memory_space<vmem>>, vector<18x1x128xf32>,
    %c0_49 = arith.constant 0 : index
    %c17_50 = arith.constant 17 : index
    %c0_51 = arith.constant 0 : index
    %33 = vector.load %arg9[%c0_49, %c17_50, %c0_51] : memref<18x24x128xf32, #tpu.memory_space<vmem>>, vector<18x1x128xf32>
    tpu.vector_store %arg9[%c0_49, %c17_50, %c0_51], %29 {strides = array<i32>} : memref<18x24x128xf32, #tpu.memory_space<vmem>>, vector<18x1x128xf32>,
    %c0_52 = arith.constant 0 : index
    %c0_53 = arith.constant 0 : index
    %34 = vector.load %arg5[%c0_52, %c0_53] : memref<1x128xf32, #tpu.memory_space<vmem>>, vector<1x128xf32>
    %cst_54 = arith.constant 0.000000e+00 : f32
    %35 = vector.broadcast %cst_54 : f32 to vector<128x128xf32>
    %c0_55 = arith.constant 0 : index
    %c0_56 = arith.constant 0 : index
    %c0_57 = arith.constant 0 : index
    %36 = vector.load %arg8[%c0_55, %c0_56, %c0_57] : memref<18x16x384xbf16, #tpu.memory_space<vmem>>, vector<8x16x384xbf16>
    %37 = vector.shape_cast %36 : vector<8x16x384xbf16> to vector<128x384xbf16>
    %c0_58 = arith.constant 0 : index
    %c0_59 = arith.constant 0 : index
    %c0_60 = arith.constant 0 : index
    %38 = vector.load %arg4[%c0_58, %c0_59, %c0_60] : memref<3x384x128xbf16, #tpu.memory_space<vmem>>, vector<1x384x128xbf16>
    %39 = vector.shape_cast %38 : vector<1x384x128xbf16> to vector<384x128xbf16>
    %cst_61 = arith.constant dense<0.000000e+00> : vector<128x128xf32>
    %40 = tpu.matmul %37, %39, %cst_61 {dimension_numbers = #tpu.dot_dimension_numbers<[1], [0], [0], [1], [0, 0, 1, 1], [], []>} : vector<128x384xbf16>, vector<384x128xbf16>, vector<128x128xf32> -> vector<128x128xf32>
    %41 = arith.addf %35, %40 : vector<128x128xf32>
    %c1_62 = arith.constant 1 : index
    %c0_63 = arith.constant 0 : index
    %c0_64 = arith.constant 0 : index
    %42 = vector.load %arg8[%c1_62, %c0_63, %c0_64] : memref<18x16x384xbf16, #tpu.memory_space<vmem>>, vector<8x16x384xbf16>
    %43 = vector.shape_cast %42 : vector<8x16x384xbf16> to vector<128x384xbf16>
    %c1_65 = arith.constant 1 : index
    %c0_66 = arith.constant 0 : index
    %c0_67 = arith.constant 0 : index
    %44 = vector.load %arg4[%c1_65, %c0_66, %c0_67] : memref<3x384x128xbf16, #tpu.memory_space<vmem>>, vector<1x384x128xbf16>
    %45 = vector.shape_cast %44 : vector<1x384x128xbf16> to vector<384x128xbf16>
    %cst_68 = arith.constant dense<0.000000e+00> : vector<128x128xf32>
    %46 = tpu.matmul %43, %45, %cst_68 {dimension_numbers = #tpu.dot_dimension_numbers<[1], [0], [0], [1], [0, 0, 1, 1], [], []>} : vector<128x384xbf16>, vector<384x128xbf16>, vector<128x128xf32> -> vector<128x128xf32>
    %47 = arith.addf %41, %46 : vector<128x128xf32>
    %c2_69 = arith.constant 2 : index
    %c0_70 = arith.constant 0 : index
    %c0_71 = arith.constant 0 : index
    %48 = vector.load %arg8[%c2_69, %c0_70, %c0_71] : memref<18x16x384xbf16, #tpu.memory_space<vmem>>, vector<8x16x384xbf16>
    %49 = vector.shape_cast %48 : vector<8x16x384xbf16> to vector<128x384xbf16>
    %c2_72 = arith.constant 2 : index
    %c0_73 = arith.constant 0 : index
    %c0_74 = arith.constant 0 : index
    %50 = vector.load %arg4[%c2_72, %c0_73, %c0_74] : memref<3x384x128xbf16, #tpu.memory_space<vmem>>, vector<1x384x128xbf16>
    %51 = vector.shape_cast %50 : vector<1x384x128xbf16> to vector<384x128xbf16>
    %cst_75 = arith.constant dense<0.000000e+00> : vector<128x128xf32>
    %52 = tpu.matmul %49, %51, %cst_75 {dimension_numbers = #tpu.dot_dimension_numbers<[1], [0], [0], [1], [0, 0, 1, 1], [], []>} : vector<128x384xbf16>, vector<384x128xbf16>, vector<128x128xf32> -> vector<128x128xf32>
    %53 = arith.addf %47, %52 : vector<128x128xf32>
    %54 = vector.broadcast %34 : vector<1x128xf32> to vector<128x128xf32>
    %55 = arith.addf %53, %54 : vector<128x128xf32>
    %56 = vector.shape_cast %55 : vector<128x128xf32> to vector<8x16x128xf32>
    %c1_76 = arith.constant 1 : index
    %c1_77 = arith.constant 1 : index
    %c0_78 = arith.constant 0 : index
    %57 = vector.load %arg9[%c1_76, %c1_77, %c0_78] : memref<18x24x128xf32, #tpu.memory_space<vmem>>, vector<8x16x128xf32>
    tpu.vector_store %arg9[%c1_76, %c1_77, %c0_78], %56 {strides = array<i32>} : memref<18x24x128xf32, #tpu.memory_space<vmem>>, vector<8x16x128xf32>,
    %cst_79 = arith.constant 0.000000e+00 : f32
    %58 = vector.broadcast %cst_79 : f32 to vector<128x128xf32>
    %c8 = arith.constant 8 : index
    %c0_80 = arith.constant 0 : index
    %c0_81 = arith.constant 0 : index
    %59 = vector.load %arg8[%c8, %c0_80, %c0_81] : memref<18x16x384xbf16, #tpu.memory_space<vmem>>, vector<8x16x384xbf16>
    %60 = vector.shape_cast %59 : vector<8x16x384xbf16> to vector<128x384xbf16>
    %c0_82 = arith.constant 0 : index
    %c0_83 = arith.constant 0 : index
    %c0_84 = arith.constant 0 : index
    %61 = vector.load %arg4[%c0_82, %c0_83, %c0_84] : memref<3x384x128xbf16, #tpu.memory_space<vmem>>, vector<1x384x128xbf16>
    %62 = vector.shape_cast %61 : vector<1x384x128xbf16> to vector<384x128xbf16>
    %cst_85 = arith.constant dense<0.000000e+00> : vector<128x128xf32>
    %63 = tpu.matmul %60, %62, %cst_85 {dimension_numbers = #tpu.dot_dimension_numbers<[1], [0], [0], [1], [0, 0, 1, 1], [], []>} : vector<128x384xbf16>, vector<384x128xbf16>, vector<128x128xf32> -> vector<128x128xf32>
    %64 = arith.addf %58, %63 : vector<128x128xf32>
    %c9 = arith.constant 9 : index
    %c0_86 = arith.constant 0 : index
    %c0_87 = arith.constant 0 : index
    %65 = vector.load %arg8[%c9, %c0_86, %c0_87] : memref<18x16x384xbf16, #tpu.memory_space<vmem>>, vector<8x16x384xbf16>
    %66 = vector.shape_cast %65 : vector<8x16x384xbf16> to vector<128x384xbf16>
    %c1_88 = arith.constant 1 : index
    %c0_89 = arith.constant 0 : index
    %c0_90 = arith.constant 0 : index
    %67 = vector.load %arg4[%c1_88, %c0_89, %c0_90] : memref<3x384x128xbf16, #tpu.memory_space<vmem>>, vector<1x384x128xbf16>
    %68 = vector.shape_cast %67 : vector<1x384x128xbf16> to vector<384x128xbf16>
    %cst_91 = arith.constant dense<0.000000e+00> : vector<128x128xf32>
    %69 = tpu.matmul %66, %68, %cst_91 {dimension_numbers = #tpu.dot_dimension_numbers<[1], [0], [0], [1], [0, 0, 1, 1], [], []>} : vector<128x384xbf16>, vector<384x128xbf16>, vector<128x128xf32> -> vector<128x128xf32>
    %70 = arith.addf %64, %69 : vector<128x128xf32>
    %c10 = arith.constant 10 : index
    %c0_92 = arith.constant 0 : index
    %c0_93 = arith.constant 0 : index
    %71 = vector.load %arg8[%c10, %c0_92, %c0_93] : memref<18x16x384xbf16, #tpu.memory_space<vmem>>, vector<8x16x384xbf16>
    %72 = vector.shape_cast %71 : vector<8x16x384xbf16> to vector<128x384xbf16>
    %c2_94 = arith.constant 2 : index
    %c0_95 = arith.constant 0 : index
    %c0_96 = arith.constant 0 : index
    %73 = vector.load %arg4[%c2_94, %c0_95, %c0_96] : memref<3x384x128xbf16, #tpu.memory_space<vmem>>, vector<1x384x128xbf16>
    %74 = vector.shape_cast %73 : vector<1x384x128xbf16> to vector<384x128xbf16>
    %cst_97 = arith.constant dense<0.000000e+00> : vector<128x128xf32>
    %75 = tpu.matmul %72, %74, %cst_97 {dimension_numbers = #tpu.dot_dimension_numbers<[1], [0], [0], [1], [0, 0, 1, 1], [], []>} : vector<128x384xbf16>, vector<384x128xbf16>, vector<128x128xf32> -> vector<128x128xf32>
    %76 = arith.addf %70, %75 : vector<128x128xf32>
    %77 = vector.broadcast %34 : vector<1x128xf32> to vector<128x128xf32>
    %78 = arith.addf %76, %77 : vector<128x128xf32>
    %79 = vector.shape_cast %78 : vector<128x128xf32> to vector<8x16x128xf32>
    %c9_98 = arith.constant 9 : index
    %c1_99 = arith.constant 1 : index
    %c0_100 = arith.constant 0 : index
    %80 = vector.load %arg9[%c9_98, %c1_99, %c0_100] : memref<18x24x128xf32, #tpu.memory_space<vmem>>, vector<8x16x128xf32>
    tpu.vector_store %arg9[%c9_98, %c1_99, %c0_100], %79 {strides = array<i32>} : memref<18x24x128xf32, #tpu.memory_space<vmem>>, vector<8x16x128xf32>,
    %c0_101 = arith.constant 0 : index
    %c0_102 = arith.constant 0 : index
    %c0_103 = arith.constant 0 : index
    %81 = vector.load %arg9[%c0_101, %c0_102, %c0_103] : memref<18x24x128xf32, #tpu.memory_space<vmem>>, vector<8x18x128xf32>
    %cst_104 = arith.constant 0.274068624 : f32
    %82 = vector.broadcast %cst_104 : f32 to vector<8x18x128xf32>
    %83 = arith.mulf %82, %81 : vector<8x18x128xf32>
    %c1_105 = arith.constant 1 : index
    %c0_106 = arith.constant 0 : index
    %c0_107 = arith.constant 0 : index
    %84 = vector.load %arg9[%c1_105, %c0_106, %c0_107] : memref<18x24x128xf32, #tpu.memory_space<vmem>>, vector<8x18x128xf32>
    %cst_108 = arith.constant 0.451862752 : f32
    %85 = vector.broadcast %cst_108 : f32 to vector<8x18x128xf32>
    %86 = arith.mulf %85, %84 : vector<8x18x128xf32>
    %87 = arith.addf %83, %86 : vector<8x18x128xf32>
    %c2_109 = arith.constant 2 : index
    %c0_110 = arith.constant 0 : index
    %c0_111 = arith.constant 0 : index
    %88 = vector.load %arg9[%c2_109, %c0_110, %c0_111] : memref<18x24x128xf32, #tpu.memory_space<vmem>>, vector<8x18x128xf32>
    %cst_112 = arith.constant 0.274068624 : f32
    %89 = vector.broadcast %cst_112 : f32 to vector<8x18x128xf32>
    %90 = arith.mulf %89, %88 : vector<8x18x128xf32>
    %91 = arith.addf %87, %90 : vector<8x18x128xf32>
    %92 = vector.extract_strided_slice %91 {offsets = [0, 0, 0], sizes = [8, 16, 128], strides = [1, 1, 1]} : vector<8x18x128xf32> to vector<8x16x128xf32>
    %cst_113 = arith.constant 0.274068624 : f32
    %93 = vector.broadcast %cst_113 : f32 to vector<8x16x128xf32>
    %94 = arith.mulf %93, %92 : vector<8x16x128xf32>
    %95 = vector.extract_strided_slice %91 {offsets = [0, 1, 0], sizes = [8, 16, 128], strides = [1, 1, 1]} : vector<8x18x128xf32> to vector<8x16x128xf32>
    %cst_114 = arith.constant 0.451862752 : f32
    %96 = vector.broadcast %cst_114 : f32 to vector<8x16x128xf32>
    %97 = arith.mulf %96, %95 : vector<8x16x128xf32>
    %98 = arith.addf %94, %97 : vector<8x16x128xf32>
    %99 = vector.extract_strided_slice %91 {offsets = [0, 2, 0], sizes = [8, 16, 128], strides = [1, 1, 1]} : vector<8x18x128xf32> to vector<8x16x128xf32>
    %cst_115 = arith.constant 0.274068624 : f32
    %100 = vector.broadcast %cst_115 : f32 to vector<8x16x128xf32>
    %101 = arith.mulf %100, %99 : vector<8x16x128xf32>
    %102 = arith.addf %98, %101 : vector<8x16x128xf32>
    %103 = vector.shape_cast %102 : vector<8x16x128xf32> to vector<1x8x16x128xf32>
    %104 = arith.truncf %103 : vector<1x8x16x128xf32> to vector<1x8x16x128xbf16>
    %c0_116 = arith.constant 0 : index
    %c0_117 = arith.constant 0 : index
    %c0_118 = arith.constant 0 : index
    %c0_119 = arith.constant 0 : index
    %105 = vector.load %arg6[%c0_116, %c0_117, %c0_118, %c0_119] : memref<1x16x16x128xbf16, #tpu.memory_space<vmem>>, vector<1x8x16x128xbf16>
    tpu.vector_store %arg6[%c0_116, %c0_117, %c0_118, %c0_119], %104 {strides = array<i32>} : memref<1x16x16x128xbf16, #tpu.memory_space<vmem>>, vector<1x8x16x128xbf16>,
    %c8_120 = arith.constant 8 : index
    %c0_121 = arith.constant 0 : index
    %c0_122 = arith.constant 0 : index
    %106 = vector.load %arg9[%c8_120, %c0_121, %c0_122] : memref<18x24x128xf32, #tpu.memory_space<vmem>>, vector<8x18x128xf32>
    %cst_123 = arith.constant 0.274068624 : f32
    %107 = vector.broadcast %cst_123 : f32 to vector<8x18x128xf32>
    %108 = arith.mulf %107, %106 : vector<8x18x128xf32>
    %c9_124 = arith.constant 9 : index
    %c0_125 = arith.constant 0 : index
    %c0_126 = arith.constant 0 : index
    %109 = vector.load %arg9[%c9_124, %c0_125, %c0_126] : memref<18x24x128xf32, #tpu.memory_space<vmem>>, vector<8x18x128xf32>
    %cst_127 = arith.constant 0.451862752 : f32
    %110 = vector.broadcast %cst_127 : f32 to vector<8x18x128xf32>
    %111 = arith.mulf %110, %109 : vector<8x18x128xf32>
    %112 = arith.addf %108, %111 : vector<8x18x128xf32>
    %c10_128 = arith.constant 10 : index
    %c0_129 = arith.constant 0 : index
    %c0_130 = arith.constant 0 : index
    %113 = vector.load %arg9[%c10_128, %c0_129, %c0_130] : memref<18x24x128xf32, #tpu.memory_space<vmem>>, vector<8x18x128xf32>
    %cst_131 = arith.constant 0.274068624 : f32
    %114 = vector.broadcast %cst_131 : f32 to vector<8x18x128xf32>
    %115 = arith.mulf %114, %113 : vector<8x18x128xf32>
    %116 = arith.addf %112, %115 : vector<8x18x128xf32>
    %117 = vector.extract_strided_slice %116 {offsets = [0, 0, 0], sizes = [8, 16, 128], strides = [1, 1, 1]} : vector<8x18x128xf32> to vector<8x16x128xf32>
    %cst_132 = arith.constant 0.274068624 : f32
    %118 = vector.broadcast %cst_132 : f32 to vector<8x16x128xf32>
    %119 = arith.mulf %118, %117 : vector<8x16x128xf32>
    %120 = vector.extract_strided_slice %116 {offsets = [0, 1, 0], sizes = [8, 16, 128], strides = [1, 1, 1]} : vector<8x18x128xf32> to vector<8x16x128xf32>
    %cst_133 = arith.constant 0.451862752 : f32
    %121 = vector.broadcast %cst_133 : f32 to vector<8x16x128xf32>
    %122 = arith.mulf %121, %120 : vector<8x16x128xf32>
    %123 = arith.addf %119, %122 : vector<8x16x128xf32>
    %124 = vector.extract_strided_slice %116 {offsets = [0, 2, 0], sizes = [8, 16, 128], strides = [1, 1, 1]} : vector<8x18x128xf32> to vector<8x16x128xf32>
    %cst_134 = arith.constant 0.274068624 : f32
    %125 = vector.broadcast %cst_134 : f32 to vector<8x16x128xf32>
    %126 = arith.mulf %125, %124 : vector<8x16x128xf32>
    %127 = arith.addf %123, %126 : vector<8x16x128xf32>
    %128 = vector.shape_cast %127 : vector<8x16x128xf32> to vector<1x8x16x128xf32>
    %129 = arith.truncf %128 : vector<1x8x16x128xf32> to vector<1x8x16x128xbf16>
    %c0_135 = arith.constant 0 : index
    %c8_136 = arith.constant 8 : index
    %c0_137 = arith.constant 0 : index
    %c0_138 = arith.constant 0 : index
    %130 = vector.load %arg6[%c0_135, %c8_136, %c0_137, %c0_138] : memref<1x16x16x128xbf16, #tpu.memory_space<vmem>>, vector<1x8x16x128xbf16>
    tpu.vector_store %arg6[%c0_135, %c8_136, %c0_137, %c0_138], %129 {strides = array<i32>} : memref<1x16x16x128xbf16, #tpu.memory_space<vmem>>, vector<1x8x16x128xbf16>,
    return
  }
  func.func @transform_0(%arg0: i32) -> (i32, i32, i32, i32) {
    %c0_i32 = arith.constant 0 : i32
    %c0_i32_0 = arith.constant 0 : i32
    %c0_i32_1 = arith.constant 0 : i32
    %c0_i32_2 = arith.constant 0 : i32
    return %arg0, %c0_i32, %c0_i32_0, %c0_i32_1 : i32, i32, i32, i32
  }
  func.func @transform_1(%arg0: i32) -> (i32, i32) {
    %c0_i32 = arith.constant 0 : i32
    %c0_i32_0 = arith.constant 0 : i32
    %c0_i32_1 = arith.constant 0 : i32
    return %c0_i32, %c0_i32_0 : i32, i32
  }
  func.func @transform_2(%arg0: i32) -> (i32, i32) {
    %c0_i32 = arith.constant 0 : i32
    %c0_i32_0 = arith.constant 0 : i32
    %c0_i32_1 = arith.constant 0 : i32
    return %c0_i32, %c0_i32_0 : i32, i32
  }
  func.func @transform_3(%arg0: i32) -> (i32, i32, i32) {
    %c0_i32 = arith.constant 0 : i32
    %c0_i32_0 = arith.constant 0 : i32
    %c0_i32_1 = arith.constant 0 : i32
    %c0_i32_2 = arith.constant 0 : i32
    return %c0_i32, %c0_i32_0, %c0_i32_1 : i32, i32, i32
  }
  func.func @transform_4(%arg0: i32) -> (i32, i32) {
    %c0_i32 = arith.constant 0 : i32
    %c0_i32_0 = arith.constant 0 : i32
    %c0_i32_1 = arith.constant 0 : i32
    return %c0_i32, %c0_i32_0 : i32, i32
  }
  func.func @transform_5(%arg0: i32) -> (i32, i32, i32, i32) {
    %c0_i32 = arith.constant 0 : i32
    %c0_i32_0 = arith.constant 0 : i32
    %c0_i32_1 = arith.constant 0 : i32
    %c0_i32_2 = arith.constant 0 : i32
    return %arg0, %c0_i32, %c0_i32_0, %c0_i32_1 : i32, i32, i32, i32
  }
}

module attributes {stable_mosaic.version = 11 : i64} {
  func.func @kernel(%arg0: i32, %arg1: memref<1x16x16x128xbf16, #tpu.memory_space<vmem>>, %arg2: memref<1x128xf32, #tpu.memory_space<vmem>>, %arg3: memref<1x128xf32, #tpu.memory_space<vmem>>, %arg4: memref<3x384x128xbf16, #tpu.memory_space<vmem>>, %arg5: memref<1x128xf32, #tpu.memory_space<vmem>>, %arg6: memref<1x16x16x4xf32, #tpu.memory_space<vmem>>, %arg7: memref<128x128xbf16, #tpu.memory_space<vmem>>, %arg8: memref<1x128xf32, #tpu.memory_space<vmem>>, %arg9: memref<1x16x16x128xf32, #tpu.memory_space<vmem>>, %arg10: memref<18x32x128xbf16, #tpu.memory_space<vmem>>, %arg11: memref<18x16x384xbf16, #tpu.memory_space<vmem>>, %arg12: memref<18x24x128xf32, #tpu.memory_space<vmem>>) attributes {dimension_semantics = [#tpu.dimension_semantics<parallel>], iteration_bounds = array<i64: 2>, scalar_prefetch = 0 : i64, scratch_operands = 3 : i64, tpu.core_type = #tpu.core_type<tc>, window_params = [{transform_indices = @transform_0, window_bounds = array<i64: 1, 16, 16, 128>}, {pipeline_mode = #tpu.pipeline_mode<synchronous>, transform_indices = @transform_1, window_bounds = array<i64: 1, 128>}, {pipeline_mode = #tpu.pipeline_mode<synchronous>, transform_indices = @transform_2, window_bounds = array<i64: 1, 128>}, {pipeline_mode = #tpu.pipeline_mode<synchronous>, transform_indices = @transform_3, window_bounds = array<i64: 3, 384, 128>}, {pipeline_mode = #tpu.pipeline_mode<synchronous>, transform_indices = @transform_4, window_bounds = array<i64: 1, 128>}, {transform_indices = @transform_5, window_bounds = array<i64: 1, 16, 16, 4>}, {pipeline_mode = #tpu.pipeline_mode<synchronous>, transform_indices = @transform_6, window_bounds = array<i64: 128, 128>}, {pipeline_mode = #tpu.pipeline_mode<synchronous>, transform_indices = @transform_7, window_bounds = array<i64: 1, 128>}, {transform_indices = @transform_8, window_bounds = array<i64: 1, 16, 16, 128>}]} {
    %cst = arith.constant 0.000000e+00 : bf16
    %0 = vector.broadcast %cst : bf16 to vector<1x32x128xbf16>
    %cst_0 = arith.constant 0.000000e+00 : bf16
    %1 = vector.broadcast %cst_0 : bf16 to vector<18x1x128xbf16>
    %c0 = arith.constant 0 : index
    %c0_1 = arith.constant 0 : index
    %c0_2 = arith.constant 0 : index
    %2 = vector.load %arg10[%c0, %c0_1, %c0_2] : memref<18x32x128xbf16, #tpu.memory_space<vmem>>, vector<1x32x128xbf16>
    tpu.vector_store %arg10[%c0, %c0_1, %c0_2], %0 {strides = array<i32>} : memref<18x32x128xbf16, #tpu.memory_space<vmem>>, vector<1x32x128xbf16>,
    %c17 = arith.constant 17 : index
    %c0_3 = arith.constant 0 : index
    %c0_4 = arith.constant 0 : index
    %3 = vector.load %arg10[%c17, %c0_3, %c0_4] : memref<18x32x128xbf16, #tpu.memory_space<vmem>>, vector<1x32x128xbf16>
    tpu.vector_store %arg10[%c17, %c0_3, %c0_4], %0 {strides = array<i32>} : memref<18x32x128xbf16, #tpu.memory_space<vmem>>, vector<1x32x128xbf16>,
    %c0_5 = arith.constant 0 : index
    %c0_6 = arith.constant 0 : index
    %c0_7 = arith.constant 0 : index
    %4 = vector.load %arg10[%c0_5, %c0_6, %c0_7] : memref<18x32x128xbf16, #tpu.memory_space<vmem>>, vector<18x1x128xbf16>
    tpu.vector_store %arg10[%c0_5, %c0_6, %c0_7], %1 {strides = array<i32>} : memref<18x32x128xbf16, #tpu.memory_space<vmem>>, vector<18x1x128xbf16>,
    %c0_8 = arith.constant 0 : index
    %c17_9 = arith.constant 17 : index
    %c0_10 = arith.constant 0 : index
    %5 = vector.load %arg10[%c0_8, %c17_9, %c0_10] : memref<18x32x128xbf16, #tpu.memory_space<vmem>>, vector<18x1x128xbf16>
    tpu.vector_store %arg10[%c0_8, %c17_9, %c0_10], %1 {strides = array<i32>} : memref<18x32x128xbf16, #tpu.memory_space<vmem>>, vector<18x1x128xbf16>,
    %c0_11 = arith.constant 0 : index
    %c0_12 = arith.constant 0 : index
    %c0_13 = arith.constant 0 : index
    %c0_14 = arith.constant 0 : index
    %6 = vector.load %arg1[%c0_11, %c0_12, %c0_13, %c0_14] : memref<1x16x16x128xbf16, #tpu.memory_space<vmem>>, vector<1x16x16x128xbf16>
    %7 = vector.shape_cast %6 : vector<1x16x16x128xbf16> to vector<16x16x128xbf16>
    %8 = arith.extf %7 : vector<16x16x128xbf16> to vector<16x16x128xf32>
    %c0_15 = arith.constant 0 : index
    %c0_16 = arith.constant 0 : index
    %9 = vector.load %arg2[%c0_15, %c0_16] : memref<1x128xf32, #tpu.memory_space<vmem>>, vector<1x128xf32>
    %10 = vector.shape_cast %9 : vector<1x128xf32> to vector<1x1x128xf32>
    %11 = vector.broadcast %10 : vector<1x1x128xf32> to vector<16x16x128xf32>
    %12 = arith.mulf %8, %11 : vector<16x16x128xf32>
    %c0_17 = arith.constant 0 : index
    %c0_18 = arith.constant 0 : index
    %13 = vector.load %arg3[%c0_17, %c0_18] : memref<1x128xf32, #tpu.memory_space<vmem>>, vector<1x128xf32>
    %14 = vector.shape_cast %13 : vector<1x128xf32> to vector<1x1x128xf32>
    %15 = vector.broadcast %14 : vector<1x1x128xf32> to vector<16x16x128xf32>
    %16 = arith.addf %12, %15 : vector<16x16x128xf32>
    %cst_19 = arith.constant 0.000000e+00 : f32
    %17 = vector.broadcast %cst_19 : f32 to vector<16x16x128xf32>
    %18 = arith.maximumf %16, %17 : vector<16x16x128xf32>
    %19 = arith.truncf %18 : vector<16x16x128xf32> to vector<16x16x128xbf16>
    %c1 = arith.constant 1 : index
    %c1_20 = arith.constant 1 : index
    %c0_21 = arith.constant 0 : index
    %20 = vector.load %arg10[%c1, %c1_20, %c0_21] : memref<18x32x128xbf16, #tpu.memory_space<vmem>>, vector<16x16x128xbf16>
    tpu.vector_store %arg10[%c1, %c1_20, %c0_21], %19 {strides = array<i32>} : memref<18x32x128xbf16, #tpu.memory_space<vmem>>, vector<16x16x128xbf16>,
    %c0_22 = arith.constant 0 : index
    %c0_23 = arith.constant 0 : index
    %c0_24 = arith.constant 0 : index
    %21 = vector.load %arg10[%c0_22, %c0_23, %c0_24] : memref<18x32x128xbf16, #tpu.memory_space<vmem>>, vector<18x16x128xbf16>
    %c0_25 = arith.constant 0 : index
    %c0_26 = arith.constant 0 : index
    %c0_27 = arith.constant 0 : index
    %22 = vector.load %arg11[%c0_25, %c0_26, %c0_27] : memref<18x16x384xbf16, #tpu.memory_space<vmem>>, vector<18x16x128xbf16>
    tpu.vector_store %arg11[%c0_25, %c0_26, %c0_27], %21 {strides = array<i32>} : memref<18x16x384xbf16, #tpu.memory_space<vmem>>, vector<18x16x128xbf16>,
    %c0_28 = arith.constant 0 : index
    %c1_29 = arith.constant 1 : index
    %c0_30 = arith.constant 0 : index
    %23 = vector.load %arg10[%c0_28, %c1_29, %c0_30] : memref<18x32x128xbf16, #tpu.memory_space<vmem>>, vector<18x16x128xbf16>
    %c0_31 = arith.constant 0 : index
    %c0_32 = arith.constant 0 : index
    %c128 = arith.constant 128 : index
    %24 = vector.load %arg11[%c0_31, %c0_32, %c128] : memref<18x16x384xbf16, #tpu.memory_space<vmem>>, vector<18x16x128xbf16>
    tpu.vector_store %arg11[%c0_31, %c0_32, %c128], %23 {strides = array<i32>} : memref<18x16x384xbf16, #tpu.memory_space<vmem>>, vector<18x16x128xbf16>,
    %c0_33 = arith.constant 0 : index
    %c2 = arith.constant 2 : index
    %c0_34 = arith.constant 0 : index
    %25 = vector.load %arg10[%c0_33, %c2, %c0_34] : memref<18x32x128xbf16, #tpu.memory_space<vmem>>, vector<18x16x128xbf16>
    %c0_35 = arith.constant 0 : index
    %c0_36 = arith.constant 0 : index
    %c256 = arith.constant 256 : index
    %26 = vector.load %arg11[%c0_35, %c0_36, %c256] : memref<18x16x384xbf16, #tpu.memory_space<vmem>>, vector<18x16x128xbf16>
    tpu.vector_store %arg11[%c0_35, %c0_36, %c256], %25 {strides = array<i32>} : memref<18x16x384xbf16, #tpu.memory_space<vmem>>, vector<18x16x128xbf16>,
    %cst_37 = arith.constant 0.000000e+00 : f32
    %27 = vector.broadcast %cst_37 : f32 to vector<1x24x128xf32>
    %cst_38 = arith.constant 0.000000e+00 : f32
    %28 = vector.broadcast %cst_38 : f32 to vector<18x1x128xf32>
    %c0_39 = arith.constant 0 : index
    %c0_40 = arith.constant 0 : index
    %c0_41 = arith.constant 0 : index
    %29 = vector.load %arg12[%c0_39, %c0_40, %c0_41] : memref<18x24x128xf32, #tpu.memory_space<vmem>>, vector<1x24x128xf32>
    tpu.vector_store %arg12[%c0_39, %c0_40, %c0_41], %27 {strides = array<i32>} : memref<18x24x128xf32, #tpu.memory_space<vmem>>, vector<1x24x128xf32>,
    %c17_42 = arith.constant 17 : index
    %c0_43 = arith.constant 0 : index
    %c0_44 = arith.constant 0 : index
    %30 = vector.load %arg12[%c17_42, %c0_43, %c0_44] : memref<18x24x128xf32, #tpu.memory_space<vmem>>, vector<1x24x128xf32>
    tpu.vector_store %arg12[%c17_42, %c0_43, %c0_44], %27 {strides = array<i32>} : memref<18x24x128xf32, #tpu.memory_space<vmem>>, vector<1x24x128xf32>,
    %c0_45 = arith.constant 0 : index
    %c0_46 = arith.constant 0 : index
    %c0_47 = arith.constant 0 : index
    %31 = vector.load %arg12[%c0_45, %c0_46, %c0_47] : memref<18x24x128xf32, #tpu.memory_space<vmem>>, vector<18x1x128xf32>
    tpu.vector_store %arg12[%c0_45, %c0_46, %c0_47], %28 {strides = array<i32>} : memref<18x24x128xf32, #tpu.memory_space<vmem>>, vector<18x1x128xf32>,
    %c0_48 = arith.constant 0 : index
    %c17_49 = arith.constant 17 : index
    %c0_50 = arith.constant 0 : index
    %32 = vector.load %arg12[%c0_48, %c17_49, %c0_50] : memref<18x24x128xf32, #tpu.memory_space<vmem>>, vector<18x1x128xf32>
    tpu.vector_store %arg12[%c0_48, %c17_49, %c0_50], %28 {strides = array<i32>} : memref<18x24x128xf32, #tpu.memory_space<vmem>>, vector<18x1x128xf32>,
    %c0_51 = arith.constant 0 : index
    %c0_52 = arith.constant 0 : index
    %33 = vector.load %arg5[%c0_51, %c0_52] : memref<1x128xf32, #tpu.memory_space<vmem>>, vector<1x128xf32>
    %cst_53 = arith.constant 0.000000e+00 : f32
    %34 = vector.broadcast %cst_53 : f32 to vector<128x128xf32>
    %c0_54 = arith.constant 0 : index
    %c0_55 = arith.constant 0 : index
    %c0_56 = arith.constant 0 : index
    %35 = vector.load %arg11[%c0_54, %c0_55, %c0_56] : memref<18x16x384xbf16, #tpu.memory_space<vmem>>, vector<8x16x384xbf16>
    %36 = vector.shape_cast %35 : vector<8x16x384xbf16> to vector<128x384xbf16>
    %c0_57 = arith.constant 0 : index
    %c0_58 = arith.constant 0 : index
    %c0_59 = arith.constant 0 : index
    %37 = vector.load %arg4[%c0_57, %c0_58, %c0_59] : memref<3x384x128xbf16, #tpu.memory_space<vmem>>, vector<1x384x128xbf16>
    %38 = vector.shape_cast %37 : vector<1x384x128xbf16> to vector<384x128xbf16>
    %cst_60 = arith.constant dense<0.000000e+00> : vector<128x128xf32>
    %39 = tpu.matmul %36, %38, %cst_60 {dimension_numbers = #tpu.dot_dimension_numbers<[1], [0], [0], [1], [0, 0, 1, 1], [], []>} : vector<128x384xbf16>, vector<384x128xbf16>, vector<128x128xf32> -> vector<128x128xf32>
    %40 = arith.addf %34, %39 : vector<128x128xf32>
    %c1_61 = arith.constant 1 : index
    %c0_62 = arith.constant 0 : index
    %c0_63 = arith.constant 0 : index
    %41 = vector.load %arg11[%c1_61, %c0_62, %c0_63] : memref<18x16x384xbf16, #tpu.memory_space<vmem>>, vector<8x16x384xbf16>
    %42 = vector.shape_cast %41 : vector<8x16x384xbf16> to vector<128x384xbf16>
    %c1_64 = arith.constant 1 : index
    %c0_65 = arith.constant 0 : index
    %c0_66 = arith.constant 0 : index
    %43 = vector.load %arg4[%c1_64, %c0_65, %c0_66] : memref<3x384x128xbf16, #tpu.memory_space<vmem>>, vector<1x384x128xbf16>
    %44 = vector.shape_cast %43 : vector<1x384x128xbf16> to vector<384x128xbf16>
    %cst_67 = arith.constant dense<0.000000e+00> : vector<128x128xf32>
    %45 = tpu.matmul %42, %44, %cst_67 {dimension_numbers = #tpu.dot_dimension_numbers<[1], [0], [0], [1], [0, 0, 1, 1], [], []>} : vector<128x384xbf16>, vector<384x128xbf16>, vector<128x128xf32> -> vector<128x128xf32>
    %46 = arith.addf %40, %45 : vector<128x128xf32>
    %c2_68 = arith.constant 2 : index
    %c0_69 = arith.constant 0 : index
    %c0_70 = arith.constant 0 : index
    %47 = vector.load %arg11[%c2_68, %c0_69, %c0_70] : memref<18x16x384xbf16, #tpu.memory_space<vmem>>, vector<8x16x384xbf16>
    %48 = vector.shape_cast %47 : vector<8x16x384xbf16> to vector<128x384xbf16>
    %c2_71 = arith.constant 2 : index
    %c0_72 = arith.constant 0 : index
    %c0_73 = arith.constant 0 : index
    %49 = vector.load %arg4[%c2_71, %c0_72, %c0_73] : memref<3x384x128xbf16, #tpu.memory_space<vmem>>, vector<1x384x128xbf16>
    %50 = vector.shape_cast %49 : vector<1x384x128xbf16> to vector<384x128xbf16>
    %cst_74 = arith.constant dense<0.000000e+00> : vector<128x128xf32>
    %51 = tpu.matmul %48, %50, %cst_74 {dimension_numbers = #tpu.dot_dimension_numbers<[1], [0], [0], [1], [0, 0, 1, 1], [], []>} : vector<128x384xbf16>, vector<384x128xbf16>, vector<128x128xf32> -> vector<128x128xf32>
    %52 = arith.addf %46, %51 : vector<128x128xf32>
    %53 = vector.broadcast %33 : vector<1x128xf32> to vector<128x128xf32>
    %54 = arith.addf %52, %53 : vector<128x128xf32>
    %55 = vector.shape_cast %54 : vector<128x128xf32> to vector<8x16x128xf32>
    %c1_75 = arith.constant 1 : index
    %c1_76 = arith.constant 1 : index
    %c0_77 = arith.constant 0 : index
    %56 = vector.load %arg12[%c1_75, %c1_76, %c0_77] : memref<18x24x128xf32, #tpu.memory_space<vmem>>, vector<8x16x128xf32>
    tpu.vector_store %arg12[%c1_75, %c1_76, %c0_77], %55 {strides = array<i32>} : memref<18x24x128xf32, #tpu.memory_space<vmem>>, vector<8x16x128xf32>,
    %cst_78 = arith.constant 0.000000e+00 : f32
    %57 = vector.broadcast %cst_78 : f32 to vector<128x128xf32>
    %c8 = arith.constant 8 : index
    %c0_79 = arith.constant 0 : index
    %c0_80 = arith.constant 0 : index
    %58 = vector.load %arg11[%c8, %c0_79, %c0_80] : memref<18x16x384xbf16, #tpu.memory_space<vmem>>, vector<8x16x384xbf16>
    %59 = vector.shape_cast %58 : vector<8x16x384xbf16> to vector<128x384xbf16>
    %c0_81 = arith.constant 0 : index
    %c0_82 = arith.constant 0 : index
    %c0_83 = arith.constant 0 : index
    %60 = vector.load %arg4[%c0_81, %c0_82, %c0_83] : memref<3x384x128xbf16, #tpu.memory_space<vmem>>, vector<1x384x128xbf16>
    %61 = vector.shape_cast %60 : vector<1x384x128xbf16> to vector<384x128xbf16>
    %cst_84 = arith.constant dense<0.000000e+00> : vector<128x128xf32>
    %62 = tpu.matmul %59, %61, %cst_84 {dimension_numbers = #tpu.dot_dimension_numbers<[1], [0], [0], [1], [0, 0, 1, 1], [], []>} : vector<128x384xbf16>, vector<384x128xbf16>, vector<128x128xf32> -> vector<128x128xf32>
    %63 = arith.addf %57, %62 : vector<128x128xf32>
    %c9 = arith.constant 9 : index
    %c0_85 = arith.constant 0 : index
    %c0_86 = arith.constant 0 : index
    %64 = vector.load %arg11[%c9, %c0_85, %c0_86] : memref<18x16x384xbf16, #tpu.memory_space<vmem>>, vector<8x16x384xbf16>
    %65 = vector.shape_cast %64 : vector<8x16x384xbf16> to vector<128x384xbf16>
    %c1_87 = arith.constant 1 : index
    %c0_88 = arith.constant 0 : index
    %c0_89 = arith.constant 0 : index
    %66 = vector.load %arg4[%c1_87, %c0_88, %c0_89] : memref<3x384x128xbf16, #tpu.memory_space<vmem>>, vector<1x384x128xbf16>
    %67 = vector.shape_cast %66 : vector<1x384x128xbf16> to vector<384x128xbf16>
    %cst_90 = arith.constant dense<0.000000e+00> : vector<128x128xf32>
    %68 = tpu.matmul %65, %67, %cst_90 {dimension_numbers = #tpu.dot_dimension_numbers<[1], [0], [0], [1], [0, 0, 1, 1], [], []>} : vector<128x384xbf16>, vector<384x128xbf16>, vector<128x128xf32> -> vector<128x128xf32>
    %69 = arith.addf %63, %68 : vector<128x128xf32>
    %c10 = arith.constant 10 : index
    %c0_91 = arith.constant 0 : index
    %c0_92 = arith.constant 0 : index
    %70 = vector.load %arg11[%c10, %c0_91, %c0_92] : memref<18x16x384xbf16, #tpu.memory_space<vmem>>, vector<8x16x384xbf16>
    %71 = vector.shape_cast %70 : vector<8x16x384xbf16> to vector<128x384xbf16>
    %c2_93 = arith.constant 2 : index
    %c0_94 = arith.constant 0 : index
    %c0_95 = arith.constant 0 : index
    %72 = vector.load %arg4[%c2_93, %c0_94, %c0_95] : memref<3x384x128xbf16, #tpu.memory_space<vmem>>, vector<1x384x128xbf16>
    %73 = vector.shape_cast %72 : vector<1x384x128xbf16> to vector<384x128xbf16>
    %cst_96 = arith.constant dense<0.000000e+00> : vector<128x128xf32>
    %74 = tpu.matmul %71, %73, %cst_96 {dimension_numbers = #tpu.dot_dimension_numbers<[1], [0], [0], [1], [0, 0, 1, 1], [], []>} : vector<128x384xbf16>, vector<384x128xbf16>, vector<128x128xf32> -> vector<128x128xf32>
    %75 = arith.addf %69, %74 : vector<128x128xf32>
    %76 = vector.broadcast %33 : vector<1x128xf32> to vector<128x128xf32>
    %77 = arith.addf %75, %76 : vector<128x128xf32>
    %78 = vector.shape_cast %77 : vector<128x128xf32> to vector<8x16x128xf32>
    %c9_97 = arith.constant 9 : index
    %c1_98 = arith.constant 1 : index
    %c0_99 = arith.constant 0 : index
    %79 = vector.load %arg12[%c9_97, %c1_98, %c0_99] : memref<18x24x128xf32, #tpu.memory_space<vmem>>, vector<8x16x128xf32>
    tpu.vector_store %arg12[%c9_97, %c1_98, %c0_99], %78 {strides = array<i32>} : memref<18x24x128xf32, #tpu.memory_space<vmem>>, vector<8x16x128xf32>,
    %c0_100 = arith.constant 0 : index
    %c0_101 = arith.constant 0 : index
    %c0_102 = arith.constant 0 : index
    %80 = vector.load %arg12[%c0_100, %c0_101, %c0_102] : memref<18x24x128xf32, #tpu.memory_space<vmem>>, vector<8x18x128xf32>
    %cst_103 = arith.constant 0.274068624 : f32
    %81 = vector.broadcast %cst_103 : f32 to vector<8x18x128xf32>
    %82 = arith.mulf %81, %80 : vector<8x18x128xf32>
    %c1_104 = arith.constant 1 : index
    %c0_105 = arith.constant 0 : index
    %c0_106 = arith.constant 0 : index
    %83 = vector.load %arg12[%c1_104, %c0_105, %c0_106] : memref<18x24x128xf32, #tpu.memory_space<vmem>>, vector<8x18x128xf32>
    %cst_107 = arith.constant 0.451862752 : f32
    %84 = vector.broadcast %cst_107 : f32 to vector<8x18x128xf32>
    %85 = arith.mulf %84, %83 : vector<8x18x128xf32>
    %86 = arith.addf %82, %85 : vector<8x18x128xf32>
    %c2_108 = arith.constant 2 : index
    %c0_109 = arith.constant 0 : index
    %c0_110 = arith.constant 0 : index
    %87 = vector.load %arg12[%c2_108, %c0_109, %c0_110] : memref<18x24x128xf32, #tpu.memory_space<vmem>>, vector<8x18x128xf32>
    %cst_111 = arith.constant 0.274068624 : f32
    %88 = vector.broadcast %cst_111 : f32 to vector<8x18x128xf32>
    %89 = arith.mulf %88, %87 : vector<8x18x128xf32>
    %90 = arith.addf %86, %89 : vector<8x18x128xf32>
    %91 = vector.extract_strided_slice %90 {offsets = [0, 0, 0], sizes = [8, 16, 128], strides = [1, 1, 1]} : vector<8x18x128xf32> to vector<8x16x128xf32>
    %cst_112 = arith.constant 0.274068624 : f32
    %92 = vector.broadcast %cst_112 : f32 to vector<8x16x128xf32>
    %93 = arith.mulf %92, %91 : vector<8x16x128xf32>
    %94 = vector.extract_strided_slice %90 {offsets = [0, 1, 0], sizes = [8, 16, 128], strides = [1, 1, 1]} : vector<8x18x128xf32> to vector<8x16x128xf32>
    %cst_113 = arith.constant 0.451862752 : f32
    %95 = vector.broadcast %cst_113 : f32 to vector<8x16x128xf32>
    %96 = arith.mulf %95, %94 : vector<8x16x128xf32>
    %97 = arith.addf %93, %96 : vector<8x16x128xf32>
    %98 = vector.extract_strided_slice %90 {offsets = [0, 2, 0], sizes = [8, 16, 128], strides = [1, 1, 1]} : vector<8x18x128xf32> to vector<8x16x128xf32>
    %cst_114 = arith.constant 0.274068624 : f32
    %99 = vector.broadcast %cst_114 : f32 to vector<8x16x128xf32>
    %100 = arith.mulf %99, %98 : vector<8x16x128xf32>
    %101 = arith.addf %97, %100 : vector<8x16x128xf32>
    %c0_115 = arith.constant 0 : index
    %c0_116 = arith.constant 0 : index
    %c0_117 = arith.constant 0 : index
    %c0_118 = arith.constant 0 : index
    %102 = vector.load %arg6[%c0_115, %c0_116, %c0_117, %c0_118] : memref<1x16x16x4xf32, #tpu.memory_space<vmem>>, vector<1x8x16x4xf32>
    %103 = vector.shape_cast %102 : vector<1x8x16x4xf32> to vector<8x16x4xf32>
    %104 = arith.truncf %103 : vector<8x16x4xf32> to vector<8x16x4xbf16>
    %cst_119 = arith.constant 0.000000e+00 : bf16
    %105 = vector.broadcast %cst_119 : bf16 to vector<8x16x124xbf16>
    %106 = tpu.concatenate %104, %105 in 2 : vector<8x16x4xbf16>, vector<8x16x124xbf16> -> vector<8x16x128xbf16>
    %107 = vector.shape_cast %106 : vector<8x16x128xbf16> to vector<128x128xbf16>
    %c0_120 = arith.constant 0 : index
    %c0_121 = arith.constant 0 : index
    %108 = vector.load %arg7[%c0_120, %c0_121] : memref<128x128xbf16, #tpu.memory_space<vmem>>, vector<128x128xbf16>
    %cst_122 = arith.constant dense<0.000000e+00> : vector<128x128xf32>
    %109 = tpu.matmul %107, %108, %cst_122 {dimension_numbers = #tpu.dot_dimension_numbers<[1], [0], [0], [1], [0, 0, 1, 1], [], []>} : vector<128x128xbf16>, vector<128x128xbf16>, vector<128x128xf32> -> vector<128x128xf32>
    %c0_123 = arith.constant 0 : index
    %c0_124 = arith.constant 0 : index
    %110 = vector.load %arg8[%c0_123, %c0_124] : memref<1x128xf32, #tpu.memory_space<vmem>>, vector<1x128xf32>
    %111 = vector.broadcast %110 : vector<1x128xf32> to vector<128x128xf32>
    %112 = arith.addf %109, %111 : vector<128x128xf32>
    %113 = vector.shape_cast %112 : vector<128x128xf32> to vector<8x16x128xf32>
    %114 = arith.addf %101, %113 : vector<8x16x128xf32>
    %115 = vector.shape_cast %114 : vector<8x16x128xf32> to vector<1x8x16x128xf32>
    %c0_125 = arith.constant 0 : index
    %c0_126 = arith.constant 0 : index
    %c0_127 = arith.constant 0 : index
    %c0_128 = arith.constant 0 : index
    %116 = vector.load %arg9[%c0_125, %c0_126, %c0_127, %c0_128] : memref<1x16x16x128xf32, #tpu.memory_space<vmem>>, vector<1x8x16x128xf32>
    tpu.vector_store %arg9[%c0_125, %c0_126, %c0_127, %c0_128], %115 {strides = array<i32>} : memref<1x16x16x128xf32, #tpu.memory_space<vmem>>, vector<1x8x16x128xf32>,
    %c8_129 = arith.constant 8 : index
    %c0_130 = arith.constant 0 : index
    %c0_131 = arith.constant 0 : index
    %117 = vector.load %arg12[%c8_129, %c0_130, %c0_131] : memref<18x24x128xf32, #tpu.memory_space<vmem>>, vector<8x18x128xf32>
    %cst_132 = arith.constant 0.274068624 : f32
    %118 = vector.broadcast %cst_132 : f32 to vector<8x18x128xf32>
    %119 = arith.mulf %118, %117 : vector<8x18x128xf32>
    %c9_133 = arith.constant 9 : index
    %c0_134 = arith.constant 0 : index
    %c0_135 = arith.constant 0 : index
    %120 = vector.load %arg12[%c9_133, %c0_134, %c0_135] : memref<18x24x128xf32, #tpu.memory_space<vmem>>, vector<8x18x128xf32>
    %cst_136 = arith.constant 0.451862752 : f32
    %121 = vector.broadcast %cst_136 : f32 to vector<8x18x128xf32>
    %122 = arith.mulf %121, %120 : vector<8x18x128xf32>
    %123 = arith.addf %119, %122 : vector<8x18x128xf32>
    %c10_137 = arith.constant 10 : index
    %c0_138 = arith.constant 0 : index
    %c0_139 = arith.constant 0 : index
    %124 = vector.load %arg12[%c10_137, %c0_138, %c0_139] : memref<18x24x128xf32, #tpu.memory_space<vmem>>, vector<8x18x128xf32>
    %cst_140 = arith.constant 0.274068624 : f32
    %125 = vector.broadcast %cst_140 : f32 to vector<8x18x128xf32>
    %126 = arith.mulf %125, %124 : vector<8x18x128xf32>
    %127 = arith.addf %123, %126 : vector<8x18x128xf32>
    %128 = vector.extract_strided_slice %127 {offsets = [0, 0, 0], sizes = [8, 16, 128], strides = [1, 1, 1]} : vector<8x18x128xf32> to vector<8x16x128xf32>
    %cst_141 = arith.constant 0.274068624 : f32
    %129 = vector.broadcast %cst_141 : f32 to vector<8x16x128xf32>
    %130 = arith.mulf %129, %128 : vector<8x16x128xf32>
    %131 = vector.extract_strided_slice %127 {offsets = [0, 1, 0], sizes = [8, 16, 128], strides = [1, 1, 1]} : vector<8x18x128xf32> to vector<8x16x128xf32>
    %cst_142 = arith.constant 0.451862752 : f32
    %132 = vector.broadcast %cst_142 : f32 to vector<8x16x128xf32>
    %133 = arith.mulf %132, %131 : vector<8x16x128xf32>
    %134 = arith.addf %130, %133 : vector<8x16x128xf32>
    %135 = vector.extract_strided_slice %127 {offsets = [0, 2, 0], sizes = [8, 16, 128], strides = [1, 1, 1]} : vector<8x18x128xf32> to vector<8x16x128xf32>
    %cst_143 = arith.constant 0.274068624 : f32
    %136 = vector.broadcast %cst_143 : f32 to vector<8x16x128xf32>
    %137 = arith.mulf %136, %135 : vector<8x16x128xf32>
    %138 = arith.addf %134, %137 : vector<8x16x128xf32>
    %c0_144 = arith.constant 0 : index
    %c8_145 = arith.constant 8 : index
    %c0_146 = arith.constant 0 : index
    %c0_147 = arith.constant 0 : index
    %139 = vector.load %arg6[%c0_144, %c8_145, %c0_146, %c0_147] : memref<1x16x16x4xf32, #tpu.memory_space<vmem>>, vector<1x8x16x4xf32>
    %140 = vector.shape_cast %139 : vector<1x8x16x4xf32> to vector<8x16x4xf32>
    %141 = arith.truncf %140 : vector<8x16x4xf32> to vector<8x16x4xbf16>
    %cst_148 = arith.constant 0.000000e+00 : bf16
    %142 = vector.broadcast %cst_148 : bf16 to vector<8x16x124xbf16>
    %143 = tpu.concatenate %141, %142 in 2 : vector<8x16x4xbf16>, vector<8x16x124xbf16> -> vector<8x16x128xbf16>
    %144 = vector.shape_cast %143 : vector<8x16x128xbf16> to vector<128x128xbf16>
    %c0_149 = arith.constant 0 : index
    %c0_150 = arith.constant 0 : index
    %145 = vector.load %arg7[%c0_149, %c0_150] : memref<128x128xbf16, #tpu.memory_space<vmem>>, vector<128x128xbf16>
    %cst_151 = arith.constant dense<0.000000e+00> : vector<128x128xf32>
    %146 = tpu.matmul %144, %145, %cst_151 {dimension_numbers = #tpu.dot_dimension_numbers<[1], [0], [0], [1], [0, 0, 1, 1], [], []>} : vector<128x128xbf16>, vector<128x128xbf16>, vector<128x128xf32> -> vector<128x128xf32>
    %c0_152 = arith.constant 0 : index
    %c0_153 = arith.constant 0 : index
    %147 = vector.load %arg8[%c0_152, %c0_153] : memref<1x128xf32, #tpu.memory_space<vmem>>, vector<1x128xf32>
    %148 = vector.broadcast %147 : vector<1x128xf32> to vector<128x128xf32>
    %149 = arith.addf %146, %148 : vector<128x128xf32>
    %150 = vector.shape_cast %149 : vector<128x128xf32> to vector<8x16x128xf32>
    %151 = arith.addf %138, %150 : vector<8x16x128xf32>
    %152 = vector.shape_cast %151 : vector<8x16x128xf32> to vector<1x8x16x128xf32>
    %c0_154 = arith.constant 0 : index
    %c8_155 = arith.constant 8 : index
    %c0_156 = arith.constant 0 : index
    %c0_157 = arith.constant 0 : index
    %153 = vector.load %arg9[%c0_154, %c8_155, %c0_156, %c0_157] : memref<1x16x16x128xf32, #tpu.memory_space<vmem>>, vector<1x8x16x128xf32>
    tpu.vector_store %arg9[%c0_154, %c8_155, %c0_156, %c0_157], %152 {strides = array<i32>} : memref<1x16x16x128xf32, #tpu.memory_space<vmem>>, vector<1x8x16x128xf32>,
    return
  }
  func.func @transform_0(%arg0: i32) -> (i32, i32, i32, i32) {
    %c0_i32 = arith.constant 0 : i32
    %c0_i32_0 = arith.constant 0 : i32
    %c0_i32_1 = arith.constant 0 : i32
    %c0_i32_2 = arith.constant 0 : i32
    return %arg0, %c0_i32, %c0_i32_0, %c0_i32_1 : i32, i32, i32, i32
  }
  func.func @transform_1(%arg0: i32) -> (i32, i32) {
    %c0_i32 = arith.constant 0 : i32
    %c0_i32_0 = arith.constant 0 : i32
    %c0_i32_1 = arith.constant 0 : i32
    return %c0_i32, %c0_i32_0 : i32, i32
  }
  func.func @transform_2(%arg0: i32) -> (i32, i32) {
    %c0_i32 = arith.constant 0 : i32
    %c0_i32_0 = arith.constant 0 : i32
    %c0_i32_1 = arith.constant 0 : i32
    return %c0_i32, %c0_i32_0 : i32, i32
  }
  func.func @transform_3(%arg0: i32) -> (i32, i32, i32) {
    %c0_i32 = arith.constant 0 : i32
    %c0_i32_0 = arith.constant 0 : i32
    %c0_i32_1 = arith.constant 0 : i32
    %c0_i32_2 = arith.constant 0 : i32
    return %c0_i32, %c0_i32_0, %c0_i32_1 : i32, i32, i32
  }
  func.func @transform_4(%arg0: i32) -> (i32, i32) {
    %c0_i32 = arith.constant 0 : i32
    %c0_i32_0 = arith.constant 0 : i32
    %c0_i32_1 = arith.constant 0 : i32
    return %c0_i32, %c0_i32_0 : i32, i32
  }
  func.func @transform_5(%arg0: i32) -> (i32, i32, i32, i32) {
    %c0_i32 = arith.constant 0 : i32
    %c0_i32_0 = arith.constant 0 : i32
    %c0_i32_1 = arith.constant 0 : i32
    %c0_i32_2 = arith.constant 0 : i32
    return %arg0, %c0_i32, %c0_i32_0, %c0_i32_1 : i32, i32, i32, i32
  }
  func.func @transform_6(%arg0: i32) -> (i32, i32) {
    %c0_i32 = arith.constant 0 : i32
    %c0_i32_0 = arith.constant 0 : i32
    %c0_i32_1 = arith.constant 0 : i32
    return %c0_i32, %c0_i32_0 : i32, i32
  }
  func.func @transform_7(%arg0: i32) -> (i32, i32) {
    %c0_i32 = arith.constant 0 : i32
    %c0_i32_0 = arith.constant 0 : i32
    %c0_i32_1 = arith.constant 0 : i32
    return %c0_i32, %c0_i32_0 : i32, i32
  }
  func.func @transform_8(%arg0: i32) -> (i32, i32, i32, i32) {
    %c0_i32 = arith.constant 0 : i32
    %c0_i32_0 = arith.constant 0 : i32
    %c0_i32_1 = arith.constant 0 : i32
    %c0_i32_2 = arith.constant 0 : i32
    return %arg0, %c0_i32, %c0_i32_0, %c0_i32_1 : i32, i32, i32, i32
  }
}

</mosaic_0001>

<bundles_post_ra>
// kernel: wide_basic_forward.2
= control target key start
LH: loop header
LB: loop body
LE: loop exit
PB: predicated region body
PF: predicated region fallthrough
CT: control target
= control target key end

     0   :  { %s6522_s18 = smov 0   ;;  %s8225_s0 = inlined_call_operand.vmem [shape: f32[2,16,16,4], index: 0, kind: input, shape index: {}]   ;;  %s8226_s1 = inlined_call_operand.vmem [shape: f32[1,4], index: 1, kind: input, shape index: {}]   ;;  %s8227_s2 = inlined_call_operand.vmem [shape: f32[1,4], index: 2, kind: input, shape index: {}]   ;;  %s8228_s3 = inlined_call_operand.vmem [shape: bf16[3,384,128], index: 3, kind: input, shape index: {}]   ;;  %s8229_s4 = inlined_call_operand.vmem [shape: f32[1,128], index: 4, kind: input, shape index: {}]   ;;  %s8230_s5 = inlined_call_operand.vmem [shape: bf16[2,16,16,128], index: 5, kind: output, shape index: {}]  }
   0x1 LB: > { %s4951_s19 = sadd.s32 4294967295, %s6488_s18   ;;  %p4955_p0 = scmp.ge.s32.totalorder %s6488_s18, 1  ;;  %s6488_s18 = sphi %s6522_s18, %s15_s18  }
   0x2   : > { %p187_p1 = scmp.lt.s32.totalorder %s6488_s18, 3 }
   0x4   : > { %p188_p2 = pnand %p4955_p0, %p187_p1 }
   0x6   : > { %191 = sbr.rel (%p188_p2) target bundleno = 623 (0x26f), region = 40 }
   0xd   : > { %v6320_v0 = vld [vmem:[%s8228_s3 + $0x40] sm:$0xff]   ;;  %v6490_v2 = vmov 0   ;;  %v6324_v5 = vld [vmem:[%s8228_s3 + $0x48] sm:$0xff]   ;;  %v6328_v9 = vld [vmem:[%s8228_s3 + $0x50] sm:$0xff]   ;;  %p215_p3 = scmp.lt.s32.totalorder %s4951_s19, 1  ;;  %vm231_vm0 = vcmask 1040384  }
   0xe   : > { %v6321_v1 = vld [vmem:[%s8228_s3] sm:$0xff]   ;;  %226 = vst [vmem:[#allocation2] sm:$0xff] %v6490_v2  ;;  %227 = vst [vmem:[#allocation2 + $0x8] sm:$0xff] %v6490_v2  ;;  %5558 = vmatprep.subr.bf16.mxu1 %v6320_v0  ;;  %v6325_v6 = vld [vmem:[%s8228_s3 + $0x8] sm:$0xff]   ;;  %vm232_vm1 = vsmask.f32 256 }
   0xf   : > { %229 = vst [vmem:[#allocation2 + $0x110] sm:$0xff] %v6490_v2  ;;  %230 = vst [vmem:[#allocation2 + $0x118] sm:$0xff] %v6490_v2  ;;  %v6322_v3 = vld [vmem:[%s8228_s3 + $0x100] sm:$0xff]   ;;  %5559 = vmatpush3.bf16.msra.mxu1 %v6321_v1  ;;  %v6326_v7 = vld [vmem:[%s8228_s3 + $0x108] sm:$0xff]   ;;  %s8241_s19 = smov (!%p215_p3, %s4951_s19), 1  ;;  %vm502_vm5 = vcmask 31744  }
  0x10   : > { %v6323_v4 = vld [vmem:[%s8228_s3 + $0xc0] sm:$0xff]   ;;  %5478 = vmatprep.subr.bf16.mxu0 %v6322_v3  ;;  %5560 = vmatprep.subr.bf16.mxu1 %v6324_v5  ;;  %v6327_v8 = vld [vmem:[%s8228_s3 + $0xc8] sm:$0xff]   ;;  %v6329_v10 = vld [vmem:[%s8228_s3 + $0x10] sm:$0xff]   ;;  %s5349_s7 = sshll.u32 %s8241_s19, 8  ;;  %vm288_vm2 = vsmask.f32 7938 }
  0x11   : > { %5479 = vmatpush3.bf16.msra.mxu0 %v6323_v4  ;;  %v6330_v11 = vld [vmem:[%s8228_s3 + $0x110] sm:$0xff]   ;;  %v6332_v13 = vld [vmem:[%s8228_s3 + $0x58] sm:$0xff]   ;;  %v6336_v17 = vld [vmem:[%s8228_s3 + $0x60] sm:$0xff]   ;;  %s6633_s14 = scalar_lea.vmem %s8225_s0, %s5349_s7  ;;  %vm665_vm6 = vcmask 1047552   ;;  %vm835_vm7 = vsmask.f32 7424 }
  0x12   : > { %5480 = vmatprep.subr.bf16.mxu0 %v6326_v7  ;;  %v6331_v12 = vld [vmem:[%s8228_s3 + $0xd0] sm:$0xff]   ;;  %v6333_v14 = vld [vmem:[%s8228_s3 + $0x18] sm:$0xff]   ;;  %v6337_v18 = vld [vmem:[%s8228_s3 + $0x20] sm:$0xff]   ;;  %vm1160_vm9 = vcmask 1046528   ;;  %vm4228_vm10 = vcmask 1045504   ;;  %s5350_s27 = sshll.u32 %s8241_s19, 7 }
  0x13   : > { %5561 = vmatpush3.bf16.msra.mxu1 %v6325_v6  ;;  %v6334_v15 = vld [vmem:[%s8228_s3 + $0x118] sm:$0xff]   ;;  %v6338_v19 = vld [vmem:[%s8228_s3 + $0x120] sm:$0xff]   ;;  %v6340_v21 = vld [vmem:[%s8228_s3 + $0x68] sm:$0xff]   ;;  %s7789_s19 = scalar_lea.vmem %s8230_s5, %s5350_s27 }
  0x14   : > { %5562 = vmatprep.subr.bf16.mxu1 %v6328_v9  ;;  %v6335_v16 = vld [vmem:[%s8228_s3 + $0xd8] sm:$0xff]   ;;  %v6339_v20 = vld [vmem:[%s8228_s3 + $0xe0] sm:$0xff]   ;;  %v6341_v22 = vld [vmem:[%s8228_s3 + $0x28] sm:$0xff]  }
  0x15   : > { %5481 = vmatpush3.bf16.msra.mxu0 %v6327_v8  ;;  %v6342_v23 = vld [vmem:[%s8228_s3 + $0x128] sm:$0xff]   ;;  %v6344_v25 = vld [vmem:[%s8228_s3 + $0x70] sm:$0xff]   ;;  %v6348_v29 = vld [vmem:[%s8228_s3 + $0x78] sm:$0xff]  }
  0x16   : > { %5482 = vmatprep.subr.bf16.mxu0 %v6330_v11  ;;  %v6343_v24 = vld [vmem:[%s8228_s3 + $0xe8] sm:$0xff]   ;;  %v6345_v26 = vld [vmem:[%s8228_s3 + $0x30] sm:$0xff]   ;;  %v6349_v30 = vld [vmem:[%s8228_s3 + $0x38] sm:$0xff]  }
  0x17   : > { %5563 = vmatpush3.bf16.msra.mxu1 %v6329_v10  ;;  %v6346_v27 = vld [vmem:[%s8228_s3 + $0x130] sm:$0xff]   ;;  %v6350_v31 = vld [vmem:[%s8228_s3 + $0x138] sm:$0xff]   ;;  %v234_v32 = vld [vmem:[#allocation2] sm:$0x1] }
  0x18   : > { %5564 = vmatprep.subr.bf16.mxu1 %v6332_v13  ;;  %v6347_v28 = vld [vmem:[%s8228_s3 + $0xf0] sm:$0xff]   ;;  %vm6635_vm3 = vmand %vm231_vm0, %vm232_vm1  ;;  %v290_v34 = vld [vmem:[#allocation2 + $0x8] sm:$0x1] }
  0x19   : > { %5483 = vmatpush3.bf16.msra.mxu0 %v6331_v12  ;;  %v235_v35 = vsel %vm6635_vm3, 0, %v234_v32  ;;  %vm6642_vm4 = vmand %vm231_vm0, %vm288_vm2  ;;  %v6351_v37 = vld [vmem:[%s8228_s3 + $0xf8] sm:$0xff]   ;;  %v237_v39 = vld [vmem:[#allocation2 + $0x10] sm:$0x1] }
  0x1a   : > { %5484 = vmatprep.subr.bf16.mxu0 %v6334_v15  ;;  %236 = vst [vmem:[#allocation2] sm:$0x1] %v235_v35  ;;  %v291_v38 = vsel %vm6642_vm4, 0, %v290_v34  ;;  %v293_v40 = vld [vmem:[#allocation2 + $0x18] sm:$0x1]  ;;  %v344_v41 = vld [vmem:[%s6633_s14] sm:$0xff]  ;;  %vm6705_vm8 = vmand %vm665_vm6, %vm288_vm2 }
  0x1b   : > { %5565 = vmatpush3.bf16.msra.mxu1 %v6333_v14  ;;  %292 = vst [vmem:[#allocation2 + $0x8] sm:$0x1] %v291_v38  ;;  %v238_v42 = vsel %vm6635_vm3, 0, %v237_v39  ;;  %v294_v43 = vsel %vm6642_vm4, 0, %v293_v40  ;;  %v345_v44 = vld [vmem:[%s6633_s14 + $0x8] sm:$0xff]  ;;  %v6672_v49 = vld [vmem:[%s8228_s3 + $0x140] sm:$0xff]  }
  0x1c   : > { %5566 = vmatprep.subr.bf16.mxu1 %v6336_v17  ;;  %v6660_v45 = vld [vmem:[%s8226_s1] ss:$0 sm:$0xff]  ;;  %239 = vst [vmem:[#allocation2 + $0x10] sm:$0x1] %v238_v42  ;;  %295 = vst [vmem:[#allocation2 + $0x18] sm:$0x1] %v294_v43 }
  0x1d   : > { %5485 = vmatpush3.bf16.msra.mxu0 %v6335_v16  ;;  %v383_v46 = vmul.f32 %v6660_v45, %v344_v41  ;;  %v384_v47 = vmul.f32 %v6660_v45, %v345_v44  ;;  %v6667_v48 = vld [vmem:[%s8227_s2] ss:$0 sm:$0xff]  ;;  %v296_v54 = vld [vmem:[#allocation2 + $0x28] sm:$0x1]  ;;  %v346_v57 = vld [vmem:[%s6633_s14 + $0x10] sm:$0xff] }
  0x1e   : > { %5486 = vmatprep.subr.bf16.mxu0 %v6338_v19  ;;  %v6679_v52 = vld [vmem:[%s8228_s3 + $0x80] sm:$0xff]   ;;  %v297_v56 = vsel %vm6642_vm4, 0, %v296_v54  ;;  %v347_v58 = vld [vmem:[%s6633_s14 + $0x18] sm:$0xff]  ;;  %v385_v61 = vmul.f32 %v6660_v45, %v346_v57  ;;  %v243_v5 = vld [vmem:[#allocation2 + $0x30] sm:$0x1] }
  0x1f   : > { %5567 = vmatpush3.bf16.msra.mxu1 %v6337_v18  ;;  %v422_v50 = vadd.f32 %v6667_v48, %v383_v46  ;;  %v423_v51 = vadd.f32 %v6667_v48, %v384_v47  ;;  %v240_v53 = vld [vmem:[#allocation2 + $0x20] sm:$0x1]  ;;  %298 = vst [vmem:[#allocation2 + $0x28] sm:$0x1] %v297_v56  ;;  %v386_v62 = vmul.f32 %v6660_v45, %v347_v58  ;;  %v244_v8 = vsel %vm6635_vm3, 0, %v243_v5  ;;  %v349_v15 = vld [vmem:[%s6633_s14 + $0x28] sm:$0xff] }
  0x20   : > { %5568 = vmatprep.subr.bf16.mxu1 %v6340_v21  ;;  %v241_v55 = vsel %vm6635_vm3, 0, %v240_v53  ;;  %v424_v4 = vadd.f32 %v6667_v48, %v385_v61  ;;  %v348_v9 = vld [vmem:[%s6633_s14 + $0x20] sm:$0xff]  ;;  %245 = vst [vmem:[#allocation2 + $0x30] sm:$0x1] %v244_v8  ;;  %v299_v14 = vld [vmem:[#allocation2 + $0x38] sm:$0x1] }
  0x21   : > { %5487 = vmatpush3.bf16.msra.mxu0 %v6339_v20  ;;  %v454_v59 = vmax.f32 %v422_v50, 0.0  ;;  %v455_v60 = vmax.f32 %v423_v51, 0.0  ;;  %242 = vst [vmem:[#allocation2 + $0x20] sm:$0x1] %v241_v55  ;;  %v799_v63 = vld [vmem:[#allocation2] sm:$0xff]  ;;  %v425_v7 = vadd.f32 %v6667_v48, %v386_v62  ;;  %v387_v16 = vmul.f32 %v6660_v45, %v348_v9  ;;  %v350_v41 = vld [vmem:[%s6633_s14 + $0x30] sm:$0xff] }
  0x22   : > { %5488 = vmatprep.subr.bf16.mxu0 %v6342_v23  ;;  %v800_v0 = vld [vmem:[#allocation2 + $0x8] sm:$0x1]  ;;  %v837_v1 = vshrl.u32 %v799_v63, 16  ;;  %v839_v2 = vshll.u32 %v799_v63, 16  ;;  %v456_v13 = vmax.f32 %v424_v4, 0.0  ;;  %v388_v23 = vmul.f32 %v6660_v45, %v349_v15  ;;  %v351_v42 = vld [vmem:[%s6633_s14 + $0x38] sm:$0xff] }
  0x23   : > { %5569 = vmatpush3.bf16.msra.mxu1 %v6341_v22  ;;  %v486_v3 = vpack.c.bf16 %v455_v60, %v454_v59  ;;  %v844_v6 = vshll.u32 %v800_v0, 16  ;;  %v670_v12 = vld [vmem:[#allocation2 + $0x18] sm:$0x1]  ;;  %v457_v20 = vmax.f32 %v425_v7, 0.0  ;;  %v300_v22 = vsel %vm6642_vm4, 0, %v299_v14  ;;  %v6357_v58 = vld [vmem:[%s8228_s3 + $0x90] sm:$0xff]  }
  0x24   : > { %5570 = vmatprep.subr.bf16.mxu1 %v6344_v25  ;;  %v841_v10 = vrot.slane %v839_v2, 1  ;;  %301 = vst [vmem:[#allocation2 + $0x38] sm:$0x1] %v300_v22  ;;  %v246_v34 = vld [vmem:[#allocation2 + $0x40] sm:$0x1]  ;;  %v389_v53 = vmul.f32 %v6660_v45, %v350_v41  ;;  %v390_v54 = vmul.f32 %v6660_v45, %v351_v42  ;;  %v6744_v5 = vld [vmem:[%s8228_s3 + $0x98] sm:$0xff]  }
  0x25   : > { %5489 = vmatpush3.bf16.msra.mxu0 %v6343_v24  ;;  %v505_v11 = vsel %vm502_vm5, %v486_v3, 0  ;;  %v846_v17 = vrot.slane %v844_v6, 1  ;;  %v426_v24 = vadd.f32 %v6667_v48, %v387_v16  ;;  %v302_v35 = vld [vmem:[#allocation2 + $0x48] sm:$0x1]  ;;  %v247_v40 = vsel %vm6635_vm3, 0, %v246_v34  ;;  %v352_v6 = vld [vmem:[%s6633_s14 + $0x40] sm:$0xff] }
  0x26   : > { %5490 = vmatprep.subr.bf16.mxu0 %v6346_v27  ;;  %v536_v18 = vshrl.u32 %v505_v11, 16  ;;  %v539_v19 = vshll.u32 %v505_v11, 16  ;;  %v842_v21 = vor.u32 %v841_v10, %v837_v1  ;;  %v487_v27 = vpack.c.bf16 %v457_v20, %v456_v13  ;;  %248 = vst [vmem:[#allocation2 + $0x40] sm:$0x1] %v247_v40  ;;  %v676_v51 = vld [vmem:[#allocation2 + $0x28] sm:$0x1] }
  0x27   : > { %5571 = vmatpush3.bf16.msra.mxu1 %v6345_v26  ;;  %v458_v32 = vmax.f32 %v426_v24, 0.0  ;;  %v303_v47 = vsel %vm6642_vm4, 0, %v302_v35  ;;  %v428_v60 = vadd.f32 %v6667_v48, %v389_v53  ;;  %v429_v61 = vadd.f32 %v6667_v48, %v390_v54  ;;  %v249_v62 = vld [vmem:[#allocation2 + $0x50] sm:$0x1]  ;;  %v353_v7 = vld [vmem:[%s6633_s14 + $0x48] sm:$0xff] }
  0x28   : > { %5572 = vmatprep.subr.bf16.mxu1 %v6348_v29  ;;  %v538_v25 = vrot.slane %v536_v18, 7  ;;  %v847_v29 = vsel %vm835_vm7, %v842_v21, %v846_v17  ;;  %v507_v39 = vsel %vm502_vm5, %v487_v27, 0  ;;  %304 = vst [vmem:[#allocation2 + $0x48] sm:$0x1] %v303_v47  ;;  %v673_v59 = vld [vmem:[#allocation2 + $0x20] sm:$0xff]  ;;  %v250_v13 = vsel %vm6635_vm3, 0, %v249_v62 }
  0x29   : > { %5491 = vmatpush3.bf16.msra.mxu0 %v6347_v28  ;;  %v6355_v28 = vld [vmem:[%s8228_s3 + $0x88] sm:$0xff]   ;;  %1955 = vmatprep.mubr.bf16.mxu1 %v847_v29  ;;  %v542_v43 = vshrl.u32 %v507_v39, 16  ;;  %v545_v44 = vshll.u32 %v507_v39, 16  ;;  %v460_v10 = vmax.f32 %v428_v60, 0.0  ;;  %v461_v11 = vmax.f32 %v429_v61, 0.0  ;;  %v679_v22 = vld [vmem:[#allocation2 + $0x30] sm:$0xff] }
  0x2a   : > { %5492 = vmatprep.subr.bf16.mxu0 %v6350_v31  ;;  %v427_v31 = vadd.f32 %v6667_v48, %v388_v23  ;;  %v671_v38 = vsel %vm6635_vm3, %v538_v25, %v670_v12  ;;  %251 = vst [vmem:[#allocation2 + $0x50] sm:$0x1] %v250_v13  ;;  %v391_v23 = vmul.f32 %v6660_v45, %v352_v6  ;;  %v6767_v34 = vld [vmem:[%s8228_s3 + $0x148] sm:$0xff]   ;;  %v6774_v39 = vld [vmem:[%s8228_s3 + $0xa0] sm:$0xff]   ;;  %v354_v41 = vld [vmem:[%s6633_s14 + $0x50] sm:$0xff] }
  0x2b   : > { %5573 = vmatpush3.bf16.msra.mxu1 %v6349_v30  ;;  %v667_v30 = vld [vmem:[#allocation2 + $0x10] sm:$0xff]  ;;  %672 = vst [vmem:[#allocation2 + $0x18] sm:$0x1] %v671_v38  ;;  %v544_v56 = vrot.slane %v542_v43, 7  ;;  %v682_v4 = vld [vmem:[#allocation2 + $0x38] sm:$0x1]  ;;  %v392_v24 = vmul.f32 %v6660_v45, %v353_v7 }
  0x2c   : > { %5990 = vmatprep.subr.bf16.mxu1 %v6679_v52  ;;  %v459_v46 = vmax.f32 %v427_v31, 0.0  ;;  %v252_v31 = vld [vmem:[#allocation2 + $0x60] sm:$0x1]  ;;  %v430_v38 = vadd.f32 %v6667_v48, %v391_v23  ;;  %v308_v40 = vld [vmem:[#allocation2 + $0x68] sm:$0x1]  ;;  %v6430_v33 = vld [vmem:[%s8228_s3 + $0x1d0] sm:$0xff]  }
  0x2d   : > { %5493 = vmatpush3.bf16.msra.mxu0 %v6351_v37  ;;  %v541_v37 = vor.u32 %v539_v19, %v538_v25  ;;  %v547_v1 = vor.u32 %v545_v44, %v544_v56  ;;  %v677_v2 = vsel %vm6635_vm3, %v544_v56, %v676_v51  ;;  %v489_v19 = vpack.c.bf16 %v461_v11, %v460_v10  ;;  %v685_v44 = vld [vmem:[#allocation2 + $0x40] sm:$0xff]  ;;  %v355_v51 = vld [vmem:[%s6633_s14 + $0x58] sm:$0xff]  ;;  %v6808_v6 = vld [vmem:[%s8228_s3 + $0xa8] sm:$0xff]  }
  0x2e   : > { %5958 = vmatprep.subr.bf16.mxu0 %v6672_v49  ;;  %1956 = vmatmul.mubr.bf16.vlgmr.msra.gmra.mrb[0].mxu1 %v799_v63  ;;  %v488_v57 = vpack.c.bf16 %v459_v46, %v458_v32  ;;  %v305_v63 = vld [vmem:[#allocation2 + $0x58] sm:$0x1]  ;;  %678 = vst [vmem:[#allocation2 + $0x28] sm:$0x1] %v677_v2  ;;  %v431_v46 = vadd.f32 %v6667_v48, %v392_v24  ;;  %v253_v47 = vsel %vm6635_vm3, 0, %v252_v31  ;;  %v309_v61 = vsel %vm6642_vm4, 0, %v308_v40 }
  0x2f   : > { %v6725_v50 = vsel %vm6705_vm8, %v541_v37, %v667_v30  ;;  %5991 = vmatpush3.bf16.msra.mxu1 %v6679_v52  ;;  %v6750_v12 = vsel %vm6705_vm8, %v547_v1, %v673_v59  ;;  %v306_v14 = vsel %vm6642_vm4, 0, %v305_v63  ;;  %v511_v29 = vsel %vm502_vm5, %v489_v19, 0  ;;  %v688_v30 = vld [vmem:[#allocation2 + $0x48] sm:$0x1]  ;;  %254 = vst [vmem:[#allocation2 + $0x60] sm:$0x1] %v253_v47 }
  0x30   : > { %669 = vst [vmem:[#allocation2 + $0x10] sm:$0xff] %v6725_v50  ;;  %v851_v55 = vshll.u32 %v6725_v50, 16  ;;  %5992 = vmatprep.subr.bf16.mxu1 %v6355_v28  ;;  %v849_v52 = vshrl.u32 %v6725_v50, 16  ;;  %v509_v3 = vsel %vm502_vm5, %v488_v57, 0  ;;  %675 = vst [vmem:[#allocation2 + $0x20] sm:$0xff] %v6750_v12  ;;  %v861_v16 = vshrl.u32 %v6750_v12, 16 }
  0x31   : > { %v548_v8 = vshrl.u32 %v509_v3, 16  ;;  %v551_v9 = vshll.u32 %v509_v3, 16  ;;  %v863_v17 = vshll.u32 %v6750_v12, 16  ;;  %307 = vst [vmem:[#allocation2 + $0x58] sm:$0x1] %v306_v14  ;;  %v554_v35 = vshrl.u32 %v511_v29, 16 }
  0x32   : > { %v853_v0 = vrot.slane %v851_v55, 1  ;;  %v802_v15 = vld [vmem:[#allocation2 + $0x18] sm:$0x1]  ;;  %v557_v37 = vshll.u32 %v511_v29, 16  ;;  %v462_v59 = vmax.f32 %v430_v38, 0.0  ;;  %v463_v60 = vmax.f32 %v431_v46, 0.0 }
  0x33   : > { %5993 = vmatpush3.bf16.msra.mxu1 %v6355_v28  ;;  %v550_v18 = vrot.slane %v548_v8, 7  ;;  %v856_v21 = vshll.u32 %v802_v15, 16  ;;  %v865_v25 = vrot.slane %v863_v17, 1  ;;  %v556_v57 = vrot.slane %v554_v35, 7  ;;  %v6797_v63 = vld [vmem:[%s8228_s3 + $0x150] sm:$0xff]   ;;  %v357_v13 = vld [vmem:[%s6633_s14 + $0x68] sm:$0xff] }
  0x34   : > { %5994 = vmatprep.subr.bf16.mxu1 %v6357_v58  ;;  %v854_v20 = vor.u32 %v853_v0, %v849_v52  ;;  %310 = vst [vmem:[#allocation2 + $0x68] sm:$0x1] %v309_v61  ;;  %v393_v2 = vmul.f32 %v6660_v45, %v354_v41  ;;  %v255_v7 = vld [vmem:[#allocation2 + $0x70] sm:$0x1]  ;;  %v311_v8 = vld [vmem:[#allocation2 + $0x78] sm:$0x1]  ;;  %v396_v29 = vmul.f32 %v6660_v45, %v357_v13 }
  0x35   : > { %v553_v27 = vor.u32 %v551_v9, %v550_v18  ;;  %v683_v28 = vsel %vm6635_vm3, %v550_v18, %v682_v4  ;;  %v858_v32 = vrot.slane %v856_v21, 1  ;;  %v866_v42 = vor.u32 %v865_v25, %v861_v16  ;;  %v804_v54 = vld [vmem:[#allocation2 + $0x28] sm:$0x1]  ;;  %v358_v24 = vld [vmem:[%s6633_s14 + $0x70] sm:$0xff]  ;;  %v6358_v31 = vld [vmem:[%s8228_s3 + $0x158] sm:$0xff]  }
  0x36   : > { %684 = vst [vmem:[#allocation2 + $0x38] sm:$0x1] %v683_v28  ;;  %v868_v52 = vshll.u32 %v804_v54, 16  ;;  %v559_v0 = vor.u32 %v557_v37, %v556_v57  ;;  %v689_v1 = vsel %vm6635_vm3, %v556_v57, %v688_v30  ;;  %v394_v4 = vmul.f32 %v6660_v45, %v355_v51  ;;  %v258_v37 = vld [vmem:[#allocation2 + $0x80] sm:$0x1]  ;;  %v6367_v13 = vld [vmem:[%s8228_s3 + $0xb8] sm:$0xff]  }
  0x37   : > { %5995 = vmatpush3.bf16.msra.mxu1 %v6357_v58  ;;  %v6779_v43 = vsel %vm6705_vm8, %v553_v27, %v679_v22  ;;  %v859_v53 = vsel %vm835_vm7, %v854_v20, %v858_v32  ;;  %v356_v58 = vld [vmem:[%s6633_s14 + $0x60] sm:$0xff]  ;;  %690 = vst [vmem:[#allocation2 + $0x48] sm:$0x1] %v689_v1  ;;  %v256_v11 = vsel %vm6635_vm3, 0, %v255_v7  ;;  %v312_v28 = vsel %vm6642_vm4, 0, %v311_v8 }
  0x38   : > { %5996 = vmatprep.subr.bf16.mxu1 %v6744_v5  ;;  %681 = vst [vmem:[#allocation2 + $0x30] sm:$0xff] %v6779_v43  ;;  %v873_v55 = vshrl.u32 %v6779_v43, 16  ;;  %v875_v56 = vshll.u32 %v6779_v43, 16  ;;  %1617 = vmatprep.mubr.bf16.mxu0 %v859_v53  ;;  %v870_v3 = vrot.slane %v868_v52, 1  ;;  %v395_v9 = vmul.f32 %v6660_v45, %v356_v58  ;;  %v694_v19 = vld [vmem:[#allocation2 + $0x58] sm:$0x1] }
  0x39   : > { %1963 = vmatprep.mubr.bf16.mxu1 %v859_v53  ;;  %1618 = vmatmul.mubr.bf16.vlgmr.msra.gmra.mrb[0].mxu0 %v6725_v50  ;;  %v6814_v10 = vsel %vm6705_vm8, %v559_v0, %v685_v44  ;;  %257 = vst [vmem:[#allocation2 + $0x70] sm:$0x1] %v256_v11  ;;  %v433_v23 = vadd.f32 %v6667_v48, %v394_v4  ;;  %313 = vst [vmem:[#allocation2 + $0x78] sm:$0x1] %v312_v28  ;;  %v259_v41 = vsel %vm6635_vm3, 0, %v258_v37  ;;  %v359_v44 = vld [vmem:[%s6633_s14 + $0x78] sm:$0xff] }
  0x3a   : > { %1964 = vmatmul.mubr.bf16.gmra.mrb[4].mxu1 %v6725_v50  ;;  %v877_v62 = vrot.slane %v875_v56, 1  ;;  %5959 = vmatpush3.bf16.msra.mxu0 %v6672_v49  ;;  %v490_v50 = vpack.c.bf16 %v463_v60, %v462_v59  ;;  %v6822_v14 = vsel %vm835_vm7, %v866_v42, %v870_v3  ;;  %687 = vst [vmem:[#allocation2 + $0x40] sm:$0xff] %v6814_v10  ;;  %v885_v16 = vshrl.u32 %v6814_v10, 16  ;;  %v314_v42 = vld [vmem:[#allocation2 + $0x88] sm:$0x1]  ;;  %v6365_v56 = vld [vmem:[%s8228_s3 + $0xb0] sm:$0xff]  }
  0x3b   : > { %5997 = vmatpush3.bf16.msra.mxu1 %v6744_v5  ;;  %5960 = vmatprep.subr.bf16.mxu0 %v6767_v34  ;;  %v432_v5 = vadd.f32 %v6667_v48, %v393_v2  ;;  %v887_v17 = vshll.u32 %v6814_v10, 16  ;;  %v465_v35 = vmax.f32 %v433_v23, 0.0  ;;  %v435_v40 = vadd.f32 %v6667_v48, %v396_v29  ;;  %260 = vst [vmem:[#allocation2 + $0x80] sm:$0x1] %v259_v41  ;;  %v6360_v60 = vld [vmem:[%s8228_s3 + $0x160] sm:$0xff]  }
  0x3c   : > { %v878_v49 = vor.u32 %v877_v62, %v873_v55  ;;  %5998 = vmatprep.subr.bf16.mxu1 %v6774_v39  ;;  %v513_v18 = vsel %vm502_vm5, %v490_v50, 0  ;;  %1625 = vmatprep.mubr.bf16.mxu0 %v6822_v14  ;;  %v397_v46 = vmul.f32 %v6660_v45, %v358_v24  ;;  %v315_v52 = vsel %vm6642_vm4, 0, %v314_v42  ;;  %v700_v8 = vld [vmem:[#allocation2 + $0x68] sm:$0x1] }
  0x3d   : > { %v806_v15 = vld [vmem:[#allocation2 + $0x38] sm:$0x1]  ;;  %1971 = vmatprep.mubr.bf16.mxu1 %v6822_v14  ;;  %v560_v21 = vshrl.u32 %v513_v18, 16  ;;  %v563_v22 = vshll.u32 %v513_v18, 16  ;;  %v889_v25 = vrot.slane %v887_v17, 1  ;;  %v464_v27 = vmax.f32 %v432_v5, 0.0 }
  0x3e   : > { %v880_v20 = vshll.u32 %v806_v15, 16  ;;  %5961 = vmatpush3.bf16.msra.mxu0 %v6767_v34  ;;  %v434_v34 = vadd.f32 %v6667_v48, %v395_v9  ;;  %v808_v51 = vld [vmem:[#allocation2 + $0x48] sm:$0x1]  ;;  %v467_v58 = vmax.f32 %v435_v40, 0.0  ;;  %316 = vst [vmem:[#allocation2 + $0x88] sm:$0x1] %v315_v52  ;;  %v398_v61 = vmul.f32 %v6660_v45, %v359_v44 }
  0x3f   : > { %5999 = vmatpush3.bf16.msra.mxu1 %v6774_v39  ;;  %5962 = vmatprep.subr.bf16.mxu0 %v6797_v63  ;;  %v562_v32 = vrot.slane %v560_v21, 7  ;;  %v890_v38 = vor.u32 %v889_v25, %v885_v16  ;;  %v691_v39 = vld [vmem:[#allocation2 + $0x50] sm:$0xff]  ;;  %v892_v57 = vshll.u32 %v808_v51, 16  ;;  %v436_v62 = vadd.f32 %v6667_v48, %v397_v46  ;;  %v697_v15 = vld [vmem:[#allocation2 + $0x60] sm:$0xff]  ;;  %v6366_v51 = vld [vmem:[%s8228_s3 + $0x178] sm:$0xff]  }
  0x40   : > { %v882_v30 = vrot.slane %v880_v20, 1  ;;  %6000 = vmatprep.subr.bf16.mxu1 %v6808_v6  ;;  %v466_v55 = vmax.f32 %v434_v34, 0.0  ;;  %v437_v4 = vadd.f32 %v6667_v48, %v398_v61  ;;  %v6362_v48 = vld [vmem:[%s8228_s3 + $0x168] sm:$0xff]   ;;  %v706_v25 = vld [vmem:[#allocation2 + $0x78] sm:$0x1]  ;;  %v703_v28 = vld [vmem:[#allocation2 + $0x70] sm:$0xff] }
  0x41   : > { %1626 = vmatmul.mubr.bf16.gmra.mrb[4].mxu0 %v6750_v12  ;;  %v565_v53 = vor.u32 %v563_v22, %v562_v32  ;;  %v695_v54 = vsel %vm6635_vm3, %v562_v32, %v694_v19  ;;  %v468_v9 = vmax.f32 %v436_v62, 0.0  ;;  %v6895_v22 = vld [vmem:[%s8228_s3 + $0x200] sm:$0xff]  }
  0x42   : > { %1972 = vmatmul.mubr.bf16.gmra.mrb[8].mxu1 %v6750_v12  ;;  %v6851_v47 = vsel %vm835_vm7, %v878_v49, %v882_v30  ;;  %5963 = vmatpush3.bf16.msra.mxu0 %v6797_v63  ;;  %696 = vst [vmem:[#allocation2 + $0x58] sm:$0x1] %v695_v54  ;;  %v491_v12 = vpack.c.bf16 %v465_v35, %v464_v27  ;;  %v894_v63 = vrot.slane %v892_v57, 1  ;;  %v6364_v35 = vld [vmem:[%s8228_s3 + $0x170] sm:$0xff]  }
  0x43   : > { %1633 = vmatprep.mubr.bf16.mxu0 %v6851_v47  ;;  %1979 = vmatprep.mubr.bf16.mxu1 %v6851_v47  ;;  %v6865_v59 = vsel %vm6705_vm8, %v565_v53, %v691_v39  ;;  %v492_v50 = vpack.c.bf16 %v467_v58, %v466_v55  ;;  %v709_v53 = vld [vmem:[#allocation2 + $0x80] sm:$0xff] }
  0x44   : > { %5964 = vmatprep.subr.bf16.mxu0 %v6358_v31  ;;  %693 = vst [vmem:[#allocation2 + $0x50] sm:$0xff] %v6865_v59  ;;  %v899_v0 = vshll.u32 %v6865_v59, 16  ;;  %v515_v1 = vsel %vm502_vm5, %v491_v12, 0  ;;  %6001 = vmatpush3.bf16.msra.mxu1 %v6808_v6  ;;  %v6878_v7 = vsel %vm835_vm7, %v890_v38, %v894_v63  ;;  %v897_v45 = vshrl.u32 %v6865_v59, 16 }
  0x45   : > { %v566_v2 = vshrl.u32 %v515_v1, 16  ;;  %v569_v3 = vshll.u32 %v515_v1, 16  ;;  %6002 = vmatprep.subr.bf16.mxu1 %v6365_v56  ;;  %v517_v11 = vsel %vm502_vm5, %v492_v50, 0  ;;  %v469_v6 = vmax.f32 %v437_v4, 0.0  ;;  %v712_v40 = vld [vmem:[#allocation2 + $0x88] sm:$0x1] }
  0x46   : > { %5965 = vmatpush3.bf16.msra.mxu0 %v6358_v31  ;;  %v901_v49 = vrot.slane %v899_v0, 1  ;;  %v572_v16 = vshrl.u32 %v517_v11, 16  ;;  %v575_v17 = vshll.u32 %v517_v11, 16 }
  0x47   : > { %5966 = vmatprep.subr.bf16.mxu0 %v6360_v60  ;;  %v568_v5 = vrot.slane %v566_v2, 7  ;;  %v493_v21 = vpack.c.bf16 %v469_v6, %v468_v9  ;;  %v1089_v9 = vld [vmem:[#allocation2 + $0x8] sm:$0x1] }
  0x48   : > { %6003 = vmatpush3.bf16.msra.mxu1 %v6365_v56  ;;  %v574_v24 = vrot.slane %v572_v16, 7  ;;  %v1091_v16 = vld [vmem:[#allocation2 + $0x18] sm:$0x1] }
  0x49   : > { %1634 = vmatmul.mubr.bf16.gmra.mrb[8].mxu0 %v6779_v43  ;;  %v810_v18 = vld [vmem:[#allocation2 + $0x58] sm:$0x1]  ;;  %v571_v19 = vor.u32 %v569_v3, %v568_v5  ;;  %v701_v20 = vsel %vm6635_vm3, %v568_v5, %v700_v8  ;;  %v519_v29 = vsel %vm502_vm5, %v493_v21, 0  ;;  %6004 = vmatprep.subr.bf16.mxu1 %v6367_v13 }
  0x4a   : > { %1980 = vmatmul.mubr.bf16.gmra.mrb[12].mxu1 %v6779_v43  ;;  %1641 = vmatprep.mubr.bf16.mxu0 %v6878_v7  ;;  %v904_v23 = vshll.u32 %v810_v18, 16  ;;  %702 = vst [vmem:[#allocation2 + $0x68] sm:$0x1] %v701_v20  ;;  %v902_v43 = vor.u32 %v901_v49, %v897_v45  ;;  %v577_v32 = vor.u32 %v575_v17, %v574_v24  ;;  %v578_v37 = vshrl.u32 %v519_v29, 16  ;;  %v1088_v45 = vld [vmem:[#allocation2] sm:$0xfe] }
  0x4b   : > { %1987 = vmatprep.mubr.bf16.mxu1 %v6878_v7  ;;  %5967 = vmatpush3.bf16.msra.mxu0 %v6360_v60  ;;  %v6901_v27 = vsel %vm6705_vm8, %v571_v19, %v697_v15  ;;  %v707_v34 = vsel %vm6635_vm3, %v574_v24, %v706_v25  ;;  %v581_v38 = vshll.u32 %v519_v29, 16  ;;  %v1162_v15 = vrot.slane %v1089_v9, 1  ;;  %v1092_v19 = vld [vmem:[#allocation2 + $0x20] sm:$0xfe]  ;;  %v1093_v20 = vld [vmem:[#allocation2 + $0x28] sm:$0x1] }
  0x4c   : > { %v906_v30 = vrot.slane %v904_v23, 1  ;;  %699 = vst [vmem:[#allocation2 + $0x60] sm:$0xff] %v6901_v27  ;;  %v911_v31 = vshll.u32 %v6901_v27, 16  ;;  %5968 = vmatprep.subr.bf16.mxu0 %v6362_v48  ;;  %6005 = vmatpush3.bf16.msra.mxu1 %v6367_v13  ;;  %v6914_v39 = vsel %vm6705_vm8, %v577_v32, %v703_v28  ;;  %708 = vst [vmem:[#allocation2 + $0x78] sm:$0x1] %v707_v34  ;;  %v909_v42 = vshrl.u32 %v6901_v27, 16 }
  0x4d   : > { %6022 = vmatprep.subr.bf16.mxu1 %v6895_v22  ;;  %705 = vst [vmem:[#allocation2 + $0x70] sm:$0xff] %v6914_v39  ;;  %v580_v46 = vrot.slane %v578_v37, 7  ;;  %v923_v12 = vshll.u32 %v6914_v39, 16  ;;  %v921_v62 = vshrl.u32 %v6914_v39, 16  ;;  %v1165_v23 = vrot.slane %v1091_v16, 1  ;;  %v6374_v34 = vld [vmem:[%s8228_s3 + $0x210] sm:$0xff]  }
  0x4e   : > { %v6917_v41 = vsel %vm835_vm7, %v902_v43, %v906_v30  ;;  %v913_v44 = vrot.slane %v911_v31, 1  ;;  %v1167_v24 = vrot.slane %v1092_v19, 1  ;;  %v1168_v25 = vrot.slane %v1093_v20, 1  ;;  %v1094_v43 = vld [vmem:[#allocation2 + $0x30] sm:$0xfe] }
  0x4f   : > { %5969 = vmatpush3.bf16.msra.mxu0 %v6362_v48  ;;  %v583_v55 = vor.u32 %v581_v38, %v580_v46  ;;  %v713_v56 = vsel %vm6635_vm3, %v580_v46, %v712_v40  ;;  %v925_v0 = vrot.slane %v923_v12, 1  ;;  %v1090_v48 = vld [vmem:[#allocation2 + $0x10] sm:$0xfe]  ;;  %v1095_v28 = vld [vmem:[#allocation2 + $0x38] sm:$0x1]  ;;  %v1170_v32 = vrot.slane %v1094_v43, 1 }
  0x50   : > { %5970 = vmatprep.subr.bf16.mxu0 %v6364_v35  ;;  %714 = vst [vmem:[#allocation2 + $0x88] sm:$0x1] %v713_v56  ;;  %v914_v58 = vor.u32 %v913_v44, %v909_v42  ;;  %v1164_v21 = vrot.slane %v1090_v48, 1  ;;  %v1096_v30 = vld [vmem:[#allocation2 + $0x40] sm:$0xfe]  ;;  %v6967_v37 = vsel %vm1160_vm9, %v1167_v24, %v1168_v25  ;;  %v362_v20 = vld [vmem:[%s6633_s14 + $0x90] sm:$0xff] }
  0x51   : > { %1642 = vmatmul.mubr.bf16.gmra.mrb[12].mxu0 %v6814_v10  ;;  %v812_v54 = vld [vmem:[#allocation2 + $0x68] sm:$0x1]  ;;  %v710_v52 = vsel %vm6705_vm8, %v583_v55, %v709_v53  ;;  %v926_v2 = vor.u32 %v925_v0, %v921_v62  ;;  %v1173_v38 = vrot.slane %v1096_v30, 1  ;;  %v1098_v40 = vld [vmem:[#allocation2 + $0x50] sm:$0xfe]  ;;  %v6370_v42 = vld [vmem:[%s8228_s3 + $0x180] sm:$0xff]  }
  0x52   : > { %1988 = vmatmul.mubr.bf16.gmra.mrb[16].mxu1 %v6814_v10  ;;  %1649 = vmatprep.mubr.bf16.mxu0 %v6917_v41  ;;  %v916_v57 = vshll.u32 %v812_v54, 16  ;;  %711 = vst [vmem:[#allocation2 + $0x80] sm:$0xff] %v710_v52  ;;  %v6369_v10 = vld [vmem:[%s8228_s3 + $0x1c0] sm:$0xff]   ;;  %v935_v50 = vshll.u32 %v710_v52, 16  ;;  %v933_v8 = vshrl.u32 %v710_v52, 16  ;;  %v1166_v29 = vsel %vm1160_vm9, %v1164_v21, %v1165_v23  ;;  %v6377_v53 = vld [vmem:[%s8228_s3 + $0x218] sm:$0xff]  }
  0x53   : > { %1995 = vmatprep.mubr.bf16.mxu1 %v6917_v41  ;;  %5971 = vmatpush3.bf16.msra.mxu0 %v6364_v35  ;;  %v814_v61 = vld [vmem:[#allocation2 + $0x78] sm:$0x1]  ;;  %v1097_v31 = vld [vmem:[#allocation2 + $0x48] sm:$0x1]  ;;  %v1171_v35 = vrot.slane %v1095_v28, 1 }
  0x54   : > { %v918_v60 = vrot.slane %v916_v57, 1  ;;  %5972 = vmatprep.subr.bf16.mxu0 %v6366_v51  ;;  %v928_v1 = vshll.u32 %v814_v61, 16  ;;  %v937_v5 = vrot.slane %v935_v50, 1  ;;  %v1099_v44 = vld [vmem:[#allocation2 + $0x58] sm:$0x1]  ;;  %v6383_v30 = vld [vmem:[%s8228_s3 + $0x228] sm:$0xff]  }
  0x55   : > { %v6976_v46 = vld [vmem:[#allocation2 + $0x60] sm:$0xfe]  ;;  %v6984_v54 = vld [vmem:[#allocation2 + $0x68] sm:$0x1]  ;;  %v261_v55 = vld [vmem:[#allocation2 + $0x90] sm:$0x1] }
  0x56   : > { %v6938_v63 = vsel %vm835_vm7, %v914_v58, %v918_v60  ;;  %v930_v3 = vrot.slane %v928_v1, 1  ;;  %v938_v6 = vor.u32 %v937_v5, %v933_v8  ;;  %v317_v56 = vld [vmem:[#allocation2 + $0x98] sm:$0x1]  ;;  %v262_v57 = vsel %vm6635_vm3, 0, %v261_v55  ;;  %v360_v58 = vld [vmem:[%s6633_s14 + $0x80] sm:$0xff]  ;;  %v6373_v60 = vld [vmem:[%s8228_s3 + $0x188] sm:$0xff]  }
  0x57   : > { %5973 = vmatpush3.bf16.msra.mxu0 %v6366_v51  ;;  %v816_v4 = vld [vmem:[#allocation2 + $0x88] sm:$0x1]  ;;  %v6979_v51 = vsel %vm1160_vm9, %v1170_v32, %v1171_v35  ;;  %v318_v12 = vsel %vm6642_vm4, 0, %v317_v56  ;;  %v1177_v61 = vrot.slane %v1099_v44, 1  ;;  %263 = vst [vmem:[#allocation2 + $0x90] sm:$0x1] %v262_v57 }
  0x58   : > { %5638 = vmatprep.subr.bf16.mxu0 %v6369_v10  ;;  %v6945_v49 = vsel %vm835_vm7, %v926_v2, %v930_v3  ;;  %v940_v11 = vshll.u32 %v816_v4, 16  ;;  %v1176_v10 = vrot.slane %v1098_v40, 1  ;;  %319 = vst [vmem:[#allocation2 + $0x98] sm:$0x1] %v318_v12  ;;  %v6998_v62 = vld [vmem:[%s8226_s1] ss:$0 sm:$0xff] }
  0x59   : > { %1650 = vmatmul.mubr.bf16.gmra.mrb[16].mxu0 %v6865_v59  ;;  %v399_v0 = vmul.f32 %v6998_v62, %v360_v58  ;;  %v6375_v2 = vld [vmem:[%s8228_s3 + $0x1d0] sm:$0xff]   ;;  %v6380_v3 = vld [vmem:[%s8228_s3 + $0x220] sm:$0xff]   ;;  %v1179_v50 = vrot.slane %v6976_v46, 1  ;;  %v1180_v4 = vrot.slane %v6984_v54, 1  ;;  %v1103_v8 = vld [vmem:[#allocation2 + $0x78] sm:$0x1]  ;;  %v401_v24 = vmul.f32 %v6998_v62, %v362_v20 }
  0x5a   : > { %1996 = vmatmul.mubr.bf16.gmra.mrb[20].mxu1 %v6865_v59  ;;  %1657 = vmatprep.mubr.bf16.mxu0 %v6938_v63  ;;  %v1161_v59 = vrot.slane %v1088_v45, 1  ;;  %v942_v13 = vrot.slane %v940_v11, 1  ;;  %v1102_v45 = vld [vmem:[#allocation2 + $0x70] sm:$0xfe]  ;;  %v7015_v9 = vld [vmem:[%s8227_s2] ss:$0 sm:$0xff]  ;;  %v7037_v25 = vsel %vm1160_vm9, %v1176_v10, %v1177_v61 }
  0x5b   : > { %2003 = vmatprep.mubr.bf16.mxu1 %v6938_v63  ;;  %v438_v5 = vadd.f32 %v7015_v9, %v399_v0  ;;  %v320_v19 = vld [vmem:[#allocation2 + $0xa8] sm:$0x1]  ;;  %v363_v23 = vld [vmem:[%s6633_s14 + $0x98] sm:$0xff]  ;;  %v1183_v32 = vrot.slane %v1103_v8, 1  ;;  %v440_v35 = vadd.f32 %v7015_v9, %v401_v24  ;;  %v6381_v44 = vld [vmem:[%s8228_s3 + $0x1e0] sm:$0xff]   ;;  %v7067_v56 = vsel %vm1160_vm9, %v1179_v50, %v1180_v4 }
  0x5c   : > { %v6952_v17 = vsel %vm835_vm7, %v938_v6, %v942_v13  ;;  %v1163_v18 = vsel %vm1160_vm9, %v1161_v59, %v1162_v15  ;;  %v7023_v6 = vld [vmem:[#allocation2 + $0x80] sm:$0xfe]  ;;  %v264_v13 = vld [vmem:[#allocation2 + $0xa0] sm:$0x1]  ;;  %v6376_v15 = vld [vmem:[%s8228_s3 + $0x190] sm:$0xff]   ;;  %v321_v21 = vsel %vm6642_vm4, 0, %v320_v19  ;;  %v402_v28 = vmul.f32 %v6998_v62, %v363_v23 }
  0x5d   : > { %v470_v48 = vmax.f32 %v438_v5, 0.0  ;;  %v7039_v43 = vld [vmem:[#allocation2 + $0x88] sm:$0x1]  ;;  %322 = vst [vmem:[#allocation2 + $0xa8] sm:$0x1] %v321_v21  ;;  %v472_v55 = vmax.f32 %v440_v35, 0.0 }
  0x5e   : > { %v1186_v46 = vrot.slane %v7039_v43, 1  ;;  %v267_v12 = vld [vmem:[#allocation2 + $0xb0] sm:$0x1]  ;;  %v364_v58 = vld [vmem:[%s6633_s14 + $0xa0] sm:$0xff]  ;;  %v323_v61 = vld [vmem:[#allocation2 + $0xb8] sm:$0x1] }
  0x5f   : > { %v718_v40 = vld [vmem:[#allocation2 + $0x98] sm:$0x1]  ;;  %v268_v10 = vsel %vm6635_vm3, 0, %v267_v12  ;;  %v365_v0 = vld [vmem:[%s6633_s14 + $0xa8] sm:$0xff]  ;;  %v715_v50 = vld [vmem:[#allocation2 + $0x90] sm:$0xff] }
  0x60   : > { %269 = vst [vmem:[#allocation2 + $0xb0] sm:$0x1] %v268_v10  ;;  %v404_v8 = vmul.f32 %v6998_v62, %v365_v0  ;;  %v270_v5 = vld [vmem:[#allocation2 + $0xc0] sm:$0x1]  ;;  %v367_v20 = vld [vmem:[%s6633_s14 + $0xb8] sm:$0xff] }
  0x61   : > { %1658 = vmatmul.mubr.bf16.gmra.mrb[20].mxu0 %v6901_v27  ;;  %v271_v19 = vsel %vm6635_vm3, 0, %v270_v5  ;;  %v276_v5 = vld [vmem:[#allocation2 + $0xe0] sm:$0x1] }
  0x62   : > { %2004 = vmatmul.mubr.bf16.gmra.mrb[24].mxu1 %v6901_v27  ;;  %1665 = vmatprep.mubr.bf16.mxu0 %v6945_v49  ;;  %v6371_v27 = vld [vmem:[%s8228_s3 + $0x208] sm:$0xff]   ;;  %v443_v24 = vadd.f32 %v7015_v9, %v404_v8  ;;  %272 = vst [vmem:[#allocation2 + $0xc0] sm:$0x1] %v271_v19  ;;  %v277_v43 = vsel %vm6635_vm3, 0, %v276_v5 }
  0x63   : > { %2011 = vmatprep.mubr.bf16.mxu1 %v6945_v49  ;;  %278 = vst [vmem:[#allocation2 + $0xe0] sm:$0x1] %v277_v43  ;;  %v6466_v43 = vld [vmem:[#allocation2 + $0x20] sm:$0xff] }
  0x64   : > { %v724_v23 = vld [vmem:[#allocation2 + $0xa8] sm:$0x1] }
  0x69   : > { %1666 = vmatmul.mubr.bf16.gmra.mrb[24].mxu0 %v6914_v39 }
  0x6a   : > { %2012 = vmatmul.mubr.bf16.gmra.mrb[28].mxu1 %v6914_v39  ;;  %1673 = vmatprep.mubr.bf16.mxu0 %v6952_v17  ;;  %v1174_v39 = vrot.slane %v1097_v31, 1  ;;  %v1182_v31 = vrot.slane %v1102_v45, 1  ;;  %v324_v45 = vsel %vm6642_vm4, 0, %v323_v61  ;;  %v6392_v61 = vld [vmem:[%s8228_s3 + $0x140] sm:$0xff]  }
  0x6b   : > { %6006 = vmatprep.mubr.bf16.mxu1 %v1163_v18  ;;  %v265_v18 = vsel %vm6635_vm3, 0, %v264_v13  ;;  %325 = vst [vmem:[#allocation2 + $0xb8] sm:$0x1] %v324_v45 }
  0x6c   : > { %v7021_v59 = vsel %vm1160_vm9, %v1173_v38, %v1174_v39  ;;  %266 = vst [vmem:[#allocation2 + $0xa0] sm:$0x1] %v265_v18  ;;  %v1185_v38 = vrot.slane %v7023_v6, 1 }
  0x6e   : > { %v7154_v19 = vsel %vm1160_vm9, %v1185_v38, %v1186_v46 }
  0x71   : > { %1674 = vmatmul.mubr.bf16.gmra.mrb[28].mxu0 %v710_v52  ;;  %v361_v52 = vld [vmem:[%s6633_s14 + $0x88] sm:$0xff] }
  0x72   : > { %6007 = vmatmul.mubr.bf16.vlgmr.msra.gmra.mrb[32].mxu1 %v1166_v29  ;;  %5974 = vmatprep.mubr.bf16.mxu0 %v1166_v29  ;;  %v400_v1 = vmul.f32 %v6998_v62, %v361_v52  ;;  %v6378_v29 = vld [vmem:[%s8228_s3 + $0x1d8] sm:$0xff]   ;;  %v7072_v52 = vsel %vm1160_vm9, %v1182_v31, %v1183_v32 }
  0x73   : > { %6023 = vmatpush3.bf16.msra.mxu1 %v6895_v22  ;;  %6010 = vmatprep.mubr.bf16.mxu1 %v6967_v37  ;;  %v6372_v22 = vld [vmem:[%s8228_s3 + $0x1c8] sm:$0xff]  }
  0x74   : > { %6024 = vmatprep.subr.bf16.mxu1 %v6371_v27  ;;  %v439_v11 = vadd.f32 %v7015_v9, %v400_v1  ;;  %v403_v1 = vmul.f32 %v6998_v62, %v364_v58 }
  0x76   : > { %v471_v16 = vmax.f32 %v439_v11, 0.0  ;;  %v326_v11 = vld [vmem:[#allocation2 + $0xc8] sm:$0x1]  ;;  %v442_v18 = vadd.f32 %v7015_v9, %v403_v1 }
  0x77   : > { %6025 = vmatpush3.bf16.msra.mxu1 %v6371_v27 }
  0x78   : > { %6026 = vmatprep.subr.bf16.mxu1 %v6374_v34  ;;  %v494_v27 = vpack.c.bf16 %v471_v16, %v470_v48  ;;  %v474_v35 = vmax.f32 %v442_v18, 0.0  ;;  %v370_v18 = vld [vmem:[%s6633_s14 + $0xd0] sm:$0xff] }
  0x79   : > { %5975 = vmatmul.mubr.bf16.vlgmr.msra.gmra.mrb[32].mxu0 %v6967_v37 }
  0x7a   : > { %6011 = vmatmul.mubr.bf16.gmra.mrb[36].mxu1 %v6979_v51  ;;  %5639 = vmatpush3.bf16.msra.mxu0 %v6370_v42  ;;  %v521_v39 = vsel %vm502_vm5, %v494_v27, 0  ;;  %v441_v42 = vadd.f32 %v7015_v9, %v402_v28  ;;  %v327_v27 = vsel %vm6642_vm4, 0, %v326_v11  ;;  %v406_v28 = vmul.f32 %v6998_v62, %v367_v20  ;;  %v6388_v11 = vld [vmem:[%s8228_s3 + $0x1b0] sm:$0xff]   ;;  %v6395_v20 = vld [vmem:[%s8228_s3 + $0x148] sm:$0xff]  }
  0x7b   : > { %6027 = vmatpush3.bf16.msra.mxu1 %v6374_v34  ;;  %5640 = vmatprep.subr.bf16.mxu0 %v6372_v22  ;;  %v6379_v34 = vld [vmem:[%s8228_s3 + $0x198] sm:$0xff]   ;;  %v7063_v22 = vld [vmem:[%s8228_s3 + $0x230] sm:$0xff]   ;;  %v587_v54 = vshll.u32 %v521_v39, 16  ;;  %328 = vst [vmem:[#allocation2 + $0xc8] sm:$0x1] %v327_v27 }
  0x7c   : > { %5978 = vmatprep.mubr.bf16.mxu0 %v6979_v51  ;;  %6028 = vmatprep.subr.bf16.mxu1 %v6377_v53  ;;  %v473_v57 = vmax.f32 %v441_v42, 0.0  ;;  %v371_v27 = vld [vmem:[%s6633_s14 + $0xd8] sm:$0xff] }
  0x7d   : > { %6014 = vmatprep.mubr.bf16.mxu1 %v7021_v59 }
  0x7e   : > { %5641 = vmatpush3.bf16.msra.mxu0 %v6373_v60  ;;  %v495_v4 = vpack.c.bf16 %v473_v57, %v472_v55  ;;  %v368_v55 = vld [vmem:[%s6633_s14 + $0xc0] sm:$0xff] }
  0x7f   : > { %6029 = vmatpush3.bf16.msra.mxu1 %v6377_v53  ;;  %5642 = vmatprep.subr.bf16.mxu0 %v6375_v2  ;;  %v584_v53 = vshrl.u32 %v521_v39, 16  ;;  %v366_v2 = vld [vmem:[%s6633_s14 + $0xb0] sm:$0xff]  ;;  %v721_v39 = vld [vmem:[#allocation2 + $0xa0] sm:$0xff]  ;;  %v407_v10 = vmul.f32 %v6998_v62, %v368_v55 }
  0x80   : > { %6030 = vmatprep.subr.bf16.mxu1 %v6380_v3  ;;  %v405_v13 = vmul.f32 %v6998_v62, %v366_v2  ;;  %v523_v21 = vsel %vm502_vm5, %v495_v4, 0  ;;  %v329_v2 = vld [vmem:[#allocation2 + $0xd8] sm:$0x1] }
  0x81   : > { %5979 = vmatmul.mubr.bf16.gmra.mrb[36].mxu0 %v7021_v59  ;;  %v586_v60 = vrot.slane %v584_v53, 7  ;;  %v590_v31 = vshrl.u32 %v523_v21, 16  ;;  %v593_v32 = vshll.u32 %v523_v21, 16  ;;  %v6387_v53 = vld [vmem:[%s8228_s3 + $0x1f0] sm:$0xff]   ;;  %v330_v45 = vsel %vm6642_vm4, 0, %v329_v2  ;;  %v6397_v2 = vld [vmem:[%s8228_s3 + $0x108] sm:$0xff]  }
  0x82   : > { %6015 = vmatmul.mubr.bf16.gmra.mrb[40].mxu1 %v7037_v25  ;;  %5643 = vmatpush3.bf16.msra.mxu0 %v6376_v15  ;;  %v6384_v15 = vld [vmem:[%s8228_s3 + $0x1e8] sm:$0xff]   ;;  %v444_v42 = vadd.f32 %v7015_v9, %v405_v13  ;;  %v6390_v13 = vld [vmem:[%s8228_s3 + $0x1f8] sm:$0xff]   ;;  %331 = vst [vmem:[#allocation2 + $0xd8] sm:$0x1] %v330_v45 }
  0x83   : > { %6031 = vmatpush3.bf16.msra.mxu1 %v6380_v3  ;;  %5644 = vmatprep.subr.bf16.mxu0 %v6378_v29  ;;  %v6382_v3 = vld [vmem:[%s8228_s3 + $0x1a0] sm:$0xff]   ;;  %v589_v48 = vor.u32 %v587_v54, %v586_v60  ;;  %v719_v16 = vsel %vm6635_vm3, %v586_v60, %v718_v40  ;;  %v6389_v29 = vld [vmem:[%s8228_s3 + $0x238] sm:$0xff]   ;;  %v475_v40 = vmax.f32 %v443_v24, 0.0  ;;  %v592_v54 = vrot.slane %v590_v31, 7  ;;  %v273_v60 = vld [vmem:[#allocation2 + $0xd0] sm:$0x1] }
  0x84   : > { %5982 = vmatprep.mubr.bf16.mxu0 %v7037_v25  ;;  %6032 = vmatprep.subr.bf16.mxu1 %v6383_v30  ;;  %720 = vst [vmem:[#allocation2 + $0x98] sm:$0x1] %v719_v16  ;;  %v476_v12 = vmax.f32 %v444_v42, 0.0  ;;  %v446_v16 = vadd.f32 %v7015_v9, %v407_v10  ;;  %v730_v21 = vld [vmem:[#allocation2 + $0xb8] sm:$0x1]  ;;  %v727_v31 = vld [vmem:[#allocation2 + $0xb0] sm:$0xff] }
  0x85   : > { %6018 = vmatprep.mubr.bf16.mxu1 %v7067_v56  ;;  %v496_v57 = vpack.c.bf16 %v475_v40, %v474_v35  ;;  %v595_v0 = vor.u32 %v593_v32, %v592_v54  ;;  %v725_v1 = vsel %vm6635_vm3, %v592_v54, %v724_v23  ;;  %v332_v35 = vld [vmem:[#allocation2 + $0xe8] sm:$0x1]  ;;  %v6391_v40 = vld [vmem:[%s8228_s3 + $0x1b8] sm:$0xff]   ;;  %v733_v54 = vld [vmem:[#allocation2 + $0xc0] sm:$0xff] }
  0x86   : > { %5645 = vmatpush3.bf16.msra.mxu0 %v6379_v34  ;;  %v6385_v34 = vld [vmem:[%s8228_s3 + $0x1a8] sm:$0xff]   ;;  %726 = vst [vmem:[#allocation2 + $0xa8] sm:$0x1] %v725_v1  ;;  %v333_v55 = vsel %vm6642_vm4, 0, %v332_v35 }
  0x87   : > { %6033 = vmatpush3.bf16.msra.mxu1 %v6383_v30  ;;  %5646 = vmatprep.subr.bf16.mxu0 %v6381_v44  ;;  %v7107_v30 = vsel %vm6705_vm8, %v589_v48, %v715_v50  ;;  %v445_v44 = vadd.f32 %v7015_v9, %v406_v28  ;;  %v525_v50 = vsel %vm502_vm5, %v496_v57, 0  ;;  %v736_v28 = vld [vmem:[#allocation2 + $0xc8] sm:$0x1]  ;;  %334 = vst [vmem:[#allocation2 + $0xe8] sm:$0x1] %v333_v55 }
  0x88   : > { %6034 = vmatprep.subr.bf16.mxu1 %v7063_v22  ;;  %717 = vst [vmem:[#allocation2 + $0x90] sm:$0xff] %v7107_v30  ;;  %v599_v48 = vshll.u32 %v525_v50, 16 }
  0x89   : > { %5983 = vmatmul.mubr.bf16.gmra.mrb[40].mxu0 %v7067_v56  ;;  %v477_v58 = vmax.f32 %v445_v44, 0.0 }
  0x8a   : > { %6019 = vmatmul.mubr.bf16.gmra.mrb[44].mxu1 %v7072_v52  ;;  %5647 = vmatpush3.bf16.msra.mxu0 %v6382_v3  ;;  %v369_v3 = vld [vmem:[%s6633_s14 + $0xc8] sm:$0xff] }
  0x8b   : > { %6035 = vmatpush3.bf16.msra.mxu1 %v7063_v22  ;;  %5648 = vmatprep.subr.bf16.mxu0 %v6384_v15  ;;  %v274_v22 = vsel %vm6635_vm3, 0, %v273_v60  ;;  %v497_v4 = vpack.c.bf16 %v477_v58, %v476_v12  ;;  %v408_v8 = vmul.f32 %v6998_v62, %v369_v3  ;;  %v596_v15 = vshrl.u32 %v525_v50, 16  ;;  %v6396_v58 = vld [vmem:[%s8228_s3 + $0x150] sm:$0xff]  }
  0x8c   : > { %5986 = vmatprep.mubr.bf16.mxu0 %v7072_v52  ;;  %6036 = vmatprep.subr.bf16.mxu1 %v6389_v29  ;;  %275 = vst [vmem:[#allocation2 + $0xd0] sm:$0x1] %v274_v22  ;;  %v6394_v22 = vld [vmem:[%s8228_s3 + $0xc0] sm:$0xff]  }
  0x8d   : > { %6038 = vmatprep.mubr.bf16.mxu1 %v6967_v37  ;;  %v7145_v37 = vsel %vm6705_vm8, %v595_v0, %v721_v39  ;;  %v527_v23 = vsel %vm502_vm5, %v497_v4, 0  ;;  %v447_v24 = vadd.f32 %v7015_v9, %v408_v8  ;;  %v598_v6 = vrot.slane %v596_v15, 7  ;;  %v6399_v4 = vld [vmem:[%s8228_s3 + $0x158] sm:$0xff]  }
  0x8e   : > { %5649 = vmatpush3.bf16.msra.mxu0 %v6385_v34  ;;  %723 = vst [vmem:[#allocation2 + $0xa0] sm:$0xff] %v7145_v37  ;;  %v602_v38 = vshrl.u32 %v527_v23, 16  ;;  %v605_v46 = vshll.u32 %v527_v23, 16  ;;  %v409_v34 = vmul.f32 %v6998_v62, %v370_v18  ;;  %v410_v39 = vmul.f32 %v6998_v62, %v371_v27  ;;  %v742_v8 = vld [vmem:[#allocation2 + $0xd8] sm:$0x1]  ;;  %v6398_v27 = vld [vmem:[%s8228_s3 + $0xc8] sm:$0xff]  }
  0x8f   : > { %6037 = vmatpush3.bf16.msra.mxu1 %v6389_v29  ;;  %5650 = vmatprep.subr.bf16.mxu0 %v6387_v53  ;;  %v478_v29 = vmax.f32 %v446_v16, 0.0  ;;  %v479_v32 = vmax.f32 %v447_v24, 0.0  ;;  %v601_v42 = vor.u32 %v599_v48, %v598_v6  ;;  %v731_v44 = vsel %vm6635_vm3, %v598_v6, %v730_v21  ;;  %v335_v15 = vld [vmem:[#allocation2 + $0xf8] sm:$0x1]  ;;  %v372_v48 = vld [vmem:[%s6633_s14 + $0xe0] sm:$0xff]  ;;  %v373_v21 = vld [vmem:[%s6633_s14 + $0xe8] sm:$0xff] }
  0x90   : > { %6054 = vmatprep.subr.bf16.mxu1 %v6392_v61  ;;  %v604_v53 = vrot.slane %v602_v38, 7  ;;  %732 = vst [vmem:[#allocation2 + $0xb8] sm:$0x1] %v731_v44  ;;  %v448_v12 = vadd.f32 %v7015_v9, %v409_v34  ;;  %v449_v0 = vadd.f32 %v7015_v9, %v410_v39  ;;  %v282_v23 = vld [vmem:[#allocation2 + $0x100] sm:$0x1]  ;;  %v374_v24 = vld [vmem:[%s6633_s14 + $0xf0] sm:$0xff] }
  0x91   : > { %5987 = vmatmul.mubr.bf16.gmra.mrb[44].mxu0 %v7154_v19  ;;  %v498_v57 = vpack.c.bf16 %v479_v32, %v478_v29  ;;  %v7186_v60 = vsel %vm6705_vm8, %v601_v42, %v727_v31  ;;  %v412_v29 = vmul.f32 %v6998_v62, %v373_v21  ;;  %v338_v31 = vld [vmem:[#allocation2 + $0x108] sm:$0x1]  ;;  %v375_v32 = vld [vmem:[%s6633_s14 + $0xf8] sm:$0xff]  ;;  %v413_v35 = vmul.f32 %v6998_v62, %v374_v24  ;;  %v6400_v34 = vld [vmem:[%s8228_s3 + $0x160] sm:$0xff]  }
  0x92   : > { %6039 = vmatmul.mubr.bf16.vlgmr.msra.gmra.mrb[32].mxu1 %v6979_v51  ;;  %5651 = vmatpush3.bf16.msra.mxu0 %v6388_v11  ;;  %v6393_v51 = vld [vmem:[%s8228_s3 + $0x100] sm:$0xff]   ;;  %v607_v10 = vor.u32 %v605_v46, %v604_v53  ;;  %729 = vst [vmem:[#allocation2 + $0xb0] sm:$0xff] %v7186_v60  ;;  %v480_v1 = vmax.f32 %v448_v12, 0.0  ;;  %v481_v5 = vmax.f32 %v449_v0, 0.0  ;;  %v411_v46 = vmul.f32 %v6998_v62, %v372_v48  ;;  %v6401_v39 = vld [vmem:[%s8228_s3 + $0x110] sm:$0xff]   ;;  %v6407_v21 = vld [vmem:[%s8228_s3 + $0x178] sm:$0xff]  }
  0x93   : > { %6055 = vmatpush3.bf16.msra.mxu1 %v6392_v61  ;;  %5652 = vmatprep.subr.bf16.mxu0 %v6390_v13  ;;  %v737_v61 = vsel %vm6635_vm3, %v604_v53, %v736_v28  ;;  %v739_v45 = vld [vmem:[#allocation2 + $0xd0] sm:$0xff]  ;;  %v283_v28 = vsel %vm6635_vm3, 0, %v282_v23  ;;  %v339_v55 = vsel %vm6642_vm4, 0, %v338_v31  ;;  %v1107_v12 = vld [vmem:[#allocation2 + $0x98] sm:$0x1] }
  0x94   : > { %2367 = vmatprep.mubr.bf16.mxu0 %v6822_v14  ;;  %6056 = vmatprep.subr.bf16.mxu1 %v6395_v20  ;;  %738 = vst [vmem:[#allocation2 + $0xc8] sm:$0x1] %v737_v61  ;;  %v529_v14 = vsel %vm502_vm5, %v498_v57, 0  ;;  %v279_v13 = vld [vmem:[#allocation2 + $0xf0] sm:$0x1]  ;;  %v499_v16 = vpack.c.bf16 %v481_v5, %v480_v1  ;;  %v450_v53 = vadd.f32 %v7015_v9, %v411_v46  ;;  %v6403_v1 = vld [vmem:[%s8228_s3 + $0x168] sm:$0xff]  }
  0x95   : > { %6042 = vmatprep.mubr.bf16.mxu1 %v7021_v59  ;;  %v7202_v59 = vsel %vm6705_vm8, %v607_v10, %v733_v54  ;;  %v608_v3 = vshrl.u32 %v529_v14, 16  ;;  %v611_v50 = vshll.u32 %v529_v14, 16  ;;  %v280_v18 = vsel %vm6635_vm3, 0, %v279_v13  ;;  %284 = vst [vmem:[#allocation2 + $0x100] sm:$0x1] %v283_v28  ;;  %v6402_v57 = vld [vmem:[%s8228_s3 + $0xd0] sm:$0xff]  }
  0x96   : > { %5653 = vmatpush3.bf16.msra.mxu0 %v6391_v40  ;;  %735 = vst [vmem:[#allocation2 + $0xc0] sm:$0xff] %v7202_v59  ;;  %281 = vst [vmem:[#allocation2 + $0xf0] sm:$0x1] %v280_v18  ;;  %v451_v54 = vadd.f32 %v7015_v9, %v412_v29  ;;  %v414_v10 = vmul.f32 %v6998_v62, %v375_v32  ;;  %v1106_v61 = vld [vmem:[#allocation2 + $0x90] sm:$0xfe]  ;;  %v745_v14 = vld [vmem:[#allocation2 + $0xe0] sm:$0xff] }
  0x97   : > { %6057 = vmatpush3.bf16.msra.mxu1 %v6395_v20  ;;  %5718 = vmatprep.subr.bf16.mxu0 %v6393_v51  ;;  %v610_v11 = vrot.slane %v608_v3, 7  ;;  %v336_v20 = vsel %vm6642_vm4, 0, %v335_v15  ;;  %340 = vst [vmem:[#allocation2 + $0x108] sm:$0x1] %v339_v55  ;;  %v6406_v15 = vld [vmem:[%s8228_s3 + $0xd8] sm:$0xff]  }
  0x98   : > { %6058 = vmatprep.subr.bf16.mxu1 %v6396_v58  ;;  %337 = vst [vmem:[#allocation2 + $0xf8] sm:$0x1] %v336_v20  ;;  %v483_v0 = vmax.f32 %v451_v54, 0.0  ;;  %v453_v3 = vadd.f32 %v7015_v9, %v414_v10  ;;  %v1108_v23 = vld [vmem:[#allocation2 + $0xa0] sm:$0xfe] }
  0x99   : > { %2368 = vmatmul.mubr.bf16.vlgmr.msra.gmra.mrb[48].mxu0 %v6466_v43  ;;  %v613_v6 = vor.u32 %v611_v50, %v610_v11  ;;  %v743_v38 = vsel %vm6635_vm3, %v610_v11, %v742_v8  ;;  %v6405_v50 = vld [vmem:[%s8228_s3 + $0x118] sm:$0xff]   ;;  %v1189_v11 = vrot.slane %v1107_v12, 1  ;;  %v1109_v24 = vld [vmem:[#allocation2 + $0xa8] sm:$0x1]  ;;  %v1191_v55 = vrot.slane %v1108_v23, 1 }
  0x9a   : > { %6043 = vmatmul.mubr.bf16.gmra.mrb[36].mxu1 %v7037_v25  ;;  %5719 = vmatpush3.bf16.msra.mxu0 %v6394_v22  ;;  %744 = vst [vmem:[#allocation2 + $0xd8] sm:$0x1] %v743_v38  ;;  %v531_v25 = vsel %vm502_vm5, %v499_v16, 0  ;;  %v485_v5 = vmax.f32 %v453_v3, 0.0  ;;  %v6410_v38 = vld [vmem:[%s8228_s3 + $0xe0] sm:$0xff]   ;;  %v6418_v3 = vld [vmem:[%s8228_s3 + $0xf0] sm:$0xff]  }
  0x9b   : > { %6059 = vmatpush3.bf16.msra.mxu1 %v6396_v58  ;;  %2375 = vmatprep.mubr.bf16.mxu0 %v6851_v47  ;;  %v7237_v40 = vsel %vm6705_vm8, %v613_v6, %v739_v45  ;;  %v614_v42 = vshrl.u32 %v531_v25, 16  ;;  %v617_v44 = vshll.u32 %v531_v25, 16  ;;  %v748_v47 = vld [vmem:[#allocation2 + $0xe8] sm:$0x1]  ;;  %v482_v58 = vmax.f32 %v450_v53, 0.0  ;;  %v6467_v45 = vld [vmem:[#allocation2 + $0x30] sm:$0xff] }
  0x9c   : > { %5720 = vmatprep.subr.bf16.mxu0 %v6397_v2  ;;  %6060 = vmatprep.subr.bf16.mxu1 %v6399_v4  ;;  %741 = vst [vmem:[#allocation2 + $0xd0] sm:$0xff] %v7237_v40  ;;  %v1111_v29 = vld [vmem:[#allocation2 + $0xb8] sm:$0x1]  ;;  %v6408_v53 = vld [vmem:[%s8228_s3 + $0x80] sm:$0xff]  }
  0x9d   : > { %6046 = vmatprep.mubr.bf16.mxu1 %v7067_v56  ;;  %v616_v51 = vrot.slane %v614_v42, 7  ;;  %v452_v56 = vadd.f32 %v7015_v9, %v413_v35  ;;  %v1188_v9 = vrot.slane %v1106_v61, 1  ;;  %v751_v46 = vld [vmem:[#allocation2 + $0xf0] sm:$0xff]  ;;  %v757_v54 = vld [vmem:[#allocation2 + $0x100] sm:$0xff]  ;;  %v6411_v61 = vld [vmem:[%s8228_s3 + $0x88] sm:$0xff]  }
  0x9e   : > { %5721 = vmatpush3.bf16.msra.mxu0 %v6398_v27  ;;  %v760_v35 = vld [vmem:[#allocation2 + $0x108] sm:$0x1]  ;;  %v1112_v26 = vld [vmem:[#allocation2 + $0xc0] sm:$0xfe]  ;;  %v818_v23 = vld [vmem:[#allocation2 + $0x98] sm:$0x1] }
  0x9f   : > { %6061 = vmatpush3.bf16.msra.mxu1 %v6399_v4  ;;  %5722 = vmatprep.subr.bf16.mxu0 %v6401_v39  ;;  %v619_v22 = vor.u32 %v617_v44, %v616_v51  ;;  %v749_v2 = vsel %vm6635_vm3, %v616_v51, %v748_v47  ;;  %v484_v62 = vmax.f32 %v452_v56, 0.0  ;;  %v500_v4 = vpack.c.bf16 %v483_v0, %v482_v58  ;;  %v754_v20 = vld [vmem:[#allocation2 + $0xf8] sm:$0x1]  ;;  %v6413_v39 = vld [vmem:[%s8228_s3 + $0x128] sm:$0xff]   ;;  %v6468_v44 = vld [vmem:[#allocation2 + $0x40] sm:$0xff] }
  0xa0   : > { %6062 = vmatprep.subr.bf16.mxu1 %v6400_v34  ;;  %750 = vst [vmem:[#allocation2 + $0xe8] sm:$0x1] %v749_v2  ;;  %v7282_v6 = vsel %vm1160_vm9, %v1188_v9, %v1189_v11  ;;  %v6414_v58 = vld [vmem:[%s8228_s3 + $0xe8] sm:$0xff]   ;;  %v1195_v56 = vrot.slane %v1111_v29, 1  ;;  %v6412_v9 = vld [vmem:[%s8228_s3 + $0x90] sm:$0xff]  }
  0xa1   : > { %2376 = vmatmul.mubr.bf16.gmra.mrb[52].mxu0 %v6467_v45  ;;  %v7262_v8 = vsel %vm6705_vm8, %v619_v22, %v745_v14  ;;  %v533_v13 = vsel %vm502_vm5, %v500_v4, 0  ;;  %v501_v18 = vpack.c.bf16 %v485_v5, %v484_v62  ;;  %v1113_v0 = vld [vmem:[#allocation2 + $0xc8] sm:$0x1]  ;;  %v1115_v2 = vld [vmem:[#allocation2 + $0xd8] sm:$0x1]  ;;  %v6469_v62 = vld [vmem:[#allocation2 + $0x50] sm:$0xff] }
  0xa2   : > { %6047 = vmatmul.mubr.bf16.gmra.mrb[40].mxu1 %v7072_v52  ;;  %2383 = vmatprep.mubr.bf16.mxu0 %v6878_v7  ;;  %747 = vst [vmem:[#allocation2 + $0xe0] sm:$0xff] %v7262_v8  ;;  %v6404_v52 = vld [vmem:[%s8228_s3 + $0x170] sm:$0xff]   ;;  %v620_v48 = vshrl.u32 %v533_v13, 16  ;;  %v623_v16 = vshll.u32 %v533_v13, 16  ;;  %v6409_v7 = vld [vmem:[%s8228_s3 + $0x120] sm:$0xff]   ;;  %v1197_v4 = vrot.slane %v1112_v26, 1 }
  0xa3   : > { %6063 = vmatpush3.bf16.msra.mxu1 %v6400_v34  ;;  %5723 = vmatpush3.bf16.msra.mxu0 %v6402_v57  ;;  %v535_v27 = vsel %vm502_vm5, %v501_v18, 0  ;;  %v1110_v34 = vld [vmem:[#allocation2 + $0xb0] sm:$0xfe]  ;;  %v1192_v57 = vrot.slane %v1109_v24, 1  ;;  %v1198_v45 = vrot.slane %v1113_v0, 1  ;;  %v6421_v5 = vld [vmem:[%s8228_s3 + $0x138] sm:$0xff]  }
  0xa4   : > { %6064 = vmatprep.subr.bf16.mxu1 %v6403_v1  ;;  %6050 = vmatprep.mubr.bf16.mxu1 %v7154_v19  ;;  %v622_v43 = vrot.slane %v620_v48, 7  ;;  %v626_v28 = vshrl.u32 %v535_v27, 16  ;;  %v629_v25 = vshll.u32 %v535_v27, 16  ;;  %v1194_v10 = vrot.slane %v1110_v34, 1  ;;  %v6470_v24 = vld [vmem:[#allocation2 + $0x60] sm:$0xff] }
  0xa5   : > { %5724 = vmatprep.subr.bf16.mxu0 %v6405_v50  ;;  %v7317_v14 = vsel %vm1160_vm9, %v1191_v55, %v1192_v57  ;;  %v1114_v50 = vld [vmem:[#allocation2 + $0xd0] sm:$0xfe]  ;;  %v1201_v13 = vrot.slane %v1115_v2, 1  ;;  %v959_v0 = vshll.u32 %v7145_v37, 16  ;;  %v820_v26 = vld [vmem:[#allocation2 + $0xa8] sm:$0x1] }
  0xa6   : > { %v625_v31 = vor.u32 %v623_v16, %v622_v43  ;;  %v755_v32 = vsel %vm6635_vm3, %v622_v43, %v754_v20  ;;  %v628_v42 = vrot.slane %v626_v28, 7  ;;  %v7323_v22 = vsel %vm1160_vm9, %v1194_v10, %v1195_v56  ;;  %v6422_v16 = vld [vmem:[%s8228_s3 + $0xf8] sm:$0xff]   ;;  %v6426_v20 = vld [vmem:[%s8228_s3 + $0x40] sm:$0xff]   ;;  %v6420_v55 = vld [vmem:[%s8228_s3 + $0xb0] sm:$0xff]  }
  0xa7   : > { %6065 = vmatpush3.bf16.msra.mxu1 %v6403_v1  ;;  %5725 = vmatpush3.bf16.msra.mxu0 %v6406_v15  ;;  %756 = vst [vmem:[#allocation2 + $0xf8] sm:$0x1] %v755_v32  ;;  %v6417_v1 = vld [vmem:[%s8228_s3 + $0x130] sm:$0xff]   ;;  %v1200_v11 = vrot.slane %v1114_v50, 1  ;;  %v7342_v15 = vsel %vm1160_vm9, %v1197_v4, %v1198_v45  ;;  %v1117_v48 = vld [vmem:[#allocation2 + $0xe8] sm:$0x1] }
  0xa8   : > { %6066 = vmatprep.subr.bf16.mxu1 %v6404_v52  ;;  %5726 = vmatprep.subr.bf16.mxu0 %v6409_v7  ;;  %v7298_v47 = vsel %vm6705_vm8, %v625_v31, %v751_v46  ;;  %v631_v12 = vor.u32 %v629_v25, %v628_v42  ;;  %v761_v51 = vsel %vm6635_vm3, %v628_v42, %v760_v35  ;;  %v6416_v46 = vld [vmem:[%s8228_s3 + $0xa0] sm:$0xff]   ;;  %v945_v28 = vshrl.u32 %v7107_v30, 16  ;;  %v6419_v31 = vld [vmem:[%s8228_s3 + $0xa8] sm:$0xff]   ;;  %v6423_v10 = vld [vmem:[%s8228_s3 + $0xb8] sm:$0xff]  }
  0xa9   : > { %2384 = vmatmul.mubr.bf16.gmra.mrb[56].mxu0 %v6468_v44  ;;  %753 = vst [vmem:[#allocation2 + $0xf0] sm:$0xff] %v7298_v47  ;;  %762 = vst [vmem:[#allocation2 + $0x108] sm:$0x1] %v761_v51  ;;  %v1116_v18 = vld [vmem:[#allocation2 + $0xe0] sm:$0xfe]  ;;  %v6471_v44 = vld [vmem:[#allocation2 + $0x70] sm:$0xff] }
  0xaa   : > { %6051 = vmatmul.mubr.bf16.gmra.mrb[44].mxu1 %v7282_v6  ;;  %2391 = vmatprep.mubr.bf16.mxu0 %v6917_v41  ;;  %v7310_v41 = vsel %vm6705_vm8, %v631_v12, %v757_v54  ;;  %v1203_v27 = vrot.slane %v1116_v18, 1  ;;  %v7384_v56 = vld [vmem:[#allocation2 + $0x80] sm:$0xff]  ;;  %v6428_v2 = vld [vmem:[%s8228_s3 + $0x1c8] sm:$0xff]   ;;  %v285_v50 = vld [vmem:[#allocation2 + $0x110] sm:$0x1] }
  0xab   : > { %6067 = vmatpush3.bf16.msra.mxu1 %v6404_v52  ;;  %6070 = vmatprep.mubr.bf16.mxu1 %v7282_v6  ;;  %759 = vst [vmem:[#allocation2 + $0x100] sm:$0xff] %v7310_v41  ;;  %v947_v52 = vshll.u32 %v7107_v30, 16  ;;  %v341_v4 = vld [vmem:[#allocation2 + $0x118] sm:$0x1]  ;;  %v286_v45 = vsel %vm6635_vm3, 0, %v285_v50  ;;  %v6449_v50 = vld [vmem:[%s8228_s3 + $0x20] sm:$0xff]  }
  0xac   : > { %6068 = vmatprep.subr.bf16.mxu1 %v6407_v21  ;;  %5727 = vmatpush3.bf16.msra.mxu0 %v6410_v38  ;;  %v1204_v38 = vrot.slane %v1117_v48, 1  ;;  %287 = vst [vmem:[#allocation2 + $0x110] sm:$0x1] %v286_v45  ;;  %v6432_v48 = vld [vmem:[%s8228_s3 + $0x48] sm:$0xff]   ;;  %v6447_v45 = vld [vmem:[%s8228_s3 + $0x1b8] sm:$0xff]  }
  0xad   : > { %5728 = vmatprep.subr.bf16.mxu0 %v6413_v39  ;;  %v949_v32 = vrot.slane %v947_v52, 1  ;;  %v6431_v52 = vld [vmem:[%s8228_s3 + $0x190] sm:$0xff]  }
  0xae   : > { %v1119_v7 = vld [vmem:[#allocation2 + $0xf8] sm:$0x1]  ;;  %v7364_v35 = vsel %vm1160_vm9, %v1203_v27, %v1204_v38  ;;  %v6436_v27 = vld [vmem:[%s8228_s3 + $0x1e0] sm:$0xff]  }
  0xaf   : > { %6069 = vmatpush3.bf16.msra.mxu1 %v6407_v21  ;;  %v7351_v21 = vsel %vm1160_vm9, %v1200_v11, %v1201_v13  ;;  %v1207_v29 = vrot.slane %v1119_v7, 1  ;;  %v950_v57 = vor.u32 %v949_v32, %v945_v28  ;;  %v822_v13 = vld [vmem:[#allocation2 + $0xb8] sm:$0x1]  ;;  %v983_v28 = vshll.u32 %v7202_v59, 16  ;;  %v6439_v32 = vld [vmem:[%s8228_s3 + $0x10] sm:$0xff]  }
  0xb0   : > { %6086 = vmatprep.subr.bf16.mxu1 %v6408_v53  ;;  %5729 = vmatpush3.bf16.msra.mxu0 %v6414_v58  ;;  %v1118_v43 = vld [vmem:[#allocation2 + $0xf0] sm:$0xfe]  ;;  %v1121_v34 = vld [vmem:[#allocation2 + $0x108] sm:$0x1]  ;;  %v976_v7 = vshll.u32 %v822_v13, 16  ;;  %v6491_v13 = vmov 0.0  }
  0xb1   : > { %2392 = vmatmul.mubr.bf16.gmra.mrb[60].mxu0 %v6469_v62  ;;  %5730 = vmatprep.subr.bf16.mxu0 %v6417_v1  ;;  %v1206_v25 = vrot.slane %v1118_v43, 1  ;;  %v1210_v54 = vrot.slane %v1121_v34, 1  ;;  %v6425_v1 = vld [vmem:[%s8228_s3 + $0x180] sm:$0xff]   ;;  %v964_v62 = vshll.u32 %v820_v26, 16  ;;  %v6435_v43 = vld [vmem:[%s8228_s3 + $0x198] sm:$0xff]   ;;  %v981_v34 = vshrl.u32 %v7202_v59, 16 }
  0xb2   : > { %6071 = vmatmul.mubr.bf16.vlgmr.msra.gmra.mrb[48].mxu1 %v7317_v14  ;;  %2399 = vmatprep.mubr.bf16.mxu0 %v6938_v63  ;;  %v6415_v63 = vld [vmem:[%s8228_s3 + $0x98] sm:$0xff]   ;;  %v1120_v39 = vld [vmem:[#allocation2 + $0x100] sm:$0xfe]  ;;  %v978_v38 = vrot.slane %v976_v7, 1  ;;  %1251 = vst [vmem:[#allocation4] sm:$0xff] %v6491_v13  ;;  %1252 = vst [vmem:[#allocation4 + $0x8] sm:$0xff] %v6491_v13 }
  0xb3   : > { %6087 = vmatpush3.bf16.msra.mxu1 %v6408_v53  ;;  %6074 = vmatprep.mubr.bf16.mxu1 %v7323_v22  ;;  %v7367_v42 = vsel %vm1160_vm9, %v1206_v25, %v1207_v29  ;;  %v1209_v53 = vrot.slane %v1120_v39, 1  ;;  %v966_v11 = vrot.slane %v964_v62, 1  ;;  %v824_v25 = vld [vmem:[#allocation2 + $0xc8] sm:$0x1]  ;;  %v6437_v29 = vld [vmem:[%s8228_s3 + $0x1a0] sm:$0xff]   ;;  %v985_v39 = vrot.slane %v983_v28, 1 }
  0xb4   : > { %6088 = vmatprep.subr.bf16.mxu1 %v6411_v61  ;;  %5731 = vmatpush3.bf16.msra.mxu0 %v6418_v3  ;;  %v957_v3 = vshrl.u32 %v7145_v37, 16  ;;  %1259 = vst [vmem:[#allocation4 + $0x18] sm:$0x1] %v6491_v13  ;;  %1253 = vst [vmem:[#allocation4 + $0x10] sm:$0xff] %v6491_v13  ;;  %v6453_v7 = vld [vmem:[%s8228_s3 + $0x208] sm:$0xff]   ;;  %v6458_v28 = vld [vmem:[%s8228_s3 + $0x38] sm:$0xff]  }
  0xb5   : > { %5732 = vmatprep.subr.bf16.mxu0 %v6421_v5  ;;  %v7376_v51 = vsel %vm1160_vm9, %v1209_v53, %v1210_v54  ;;  %v342_v5 = vsel %vm6642_vm4, 0, %v341_v4  ;;  %v6444_v53 = vld [vmem:[%s8228_s3 + $0x58] sm:$0xff]   ;;  %v6441_v54 = vld [vmem:[%s8228_s3 + $0x1a8] sm:$0xff]   ;;  %1255 = vst [vmem:[#allocation4 + $0x198] sm:$0xff] %v6491_v13  ;;  %1257 = vst [vmem:[#allocation4 + $0x1a8] sm:$0xff] %v6491_v13 }
  0xb6   : > { %343 = vst [vmem:[#allocation2 + $0x118] sm:$0x1] %v342_v5  ;;  %v6451_v4 = vld [vmem:[%s8228_s3 + $0x68] sm:$0xff]   ;;  %1260 = vst [vmem:[#allocation4 + $0x30] sm:$0x1] %v6491_v13 }
  0xb7   : > { %6089 = vmatpush3.bf16.msra.mxu1 %v6411_v61  ;;  %v6424_v61 = vld [vmem:[%s8228_s3 + $0x1c0] sm:$0xff]   ;;  %1261 = vst [vmem:[#allocation4 + $0x48] sm:$0x1] %v6491_v13  ;;  %1262 = vst [vmem:[#allocation4 + $0x60] sm:$0x1] %v6491_v13 }
  0xb8   : > { %6090 = vmatprep.subr.bf16.mxu1 %v6412_v9  ;;  %5733 = vmatpush3.bf16.msra.mxu0 %v6422_v16  ;;  %v969_v16 = vshrl.u32 %v7186_v60, 16  ;;  %1263 = vst [vmem:[#allocation4 + $0x78] sm:$0x1] %v6491_v13  ;;  %1264 = vst [vmem:[#allocation4 + $0x90] sm:$0x1] %v6491_v13 }
  0xb9   : > { %2400 = vmatmul.mubr.bf16.gmra.mrb[64].mxu0 %v6470_v24  ;;  %5798 = vmatprep.subr.bf16.mxu0 %v6426_v20  ;;  %v6433_v24 = vld [vmem:[%s8228_s3 + $0x8] sm:$0xff]   ;;  %1265 = vst [vmem:[#allocation4 + $0xa8] sm:$0x1] %v6491_v13  ;;  %1266 = vst [vmem:[#allocation4 + $0xc0] sm:$0x1] %v6491_v13 }
  0xba   : > { %6075 = vmatmul.mubr.bf16.gmra.mrb[52].mxu1 %v7342_v15  ;;  %2407 = vmatprep.mubr.bf16.mxu0 %v6945_v49  ;;  %v952_v49 = vshll.u32 %v818_v23, 16  ;;  %v6434_v23 = vld [vmem:[%s8228_s3 + $0x1d8] sm:$0xff]   ;;  %1267 = vst [vmem:[#allocation4 + $0xd8] sm:$0x1] %v6491_v13  ;;  %1268 = vst [vmem:[#allocation4 + $0xf0] sm:$0x1] %v6491_v13 }
  0xbb   : > { %6091 = vmatpush3.bf16.msra.mxu1 %v6412_v9  ;;  %6078 = vmatprep.mubr.bf16.mxu1 %v7351_v21  ;;  %v6429_v9 = vld [vmem:[%s8228_s3 + $0x188] sm:$0xff]   ;;  %1269 = vst [vmem:[#allocation4 + $0x108] sm:$0x1] %v6491_v13  ;;  %1270 = vst [vmem:[#allocation4 + $0x120] sm:$0x1] %v6491_v13 }
  0xbc   : > { %6092 = vmatprep.subr.bf16.mxu1 %v6415_v63  ;;  %v954_v12 = vrot.slane %v952_v49, 1  ;;  %v6440_v49 = vld [vmem:[%s8228_s3 + $0x1e8] sm:$0xff]   ;;  %1271 = vst [vmem:[#allocation4 + $0x138] sm:$0x1] %v6491_v13  ;;  %1272 = vst [vmem:[#allocation4 + $0x150] sm:$0x1] %v6491_v13 }
  0xbd   : > { %1273 = vst [vmem:[#allocation4 + $0x168] sm:$0x1] %v6491_v13  ;;  %1274 = vst [vmem:[#allocation4 + $0x180] sm:$0x1] %v6491_v13 }
  0xbe   : > { %v7379_v58 = vsel %vm835_vm7, %v950_v57, %v954_v12  ;;  %v986_v57 = vor.u32 %v985_v39, %v981_v34  ;;  %1277 = vst [vmem:[#allocation4 + $0x29] sm:$0x1] %v6491_v13  ;;  %1278 = vst [vmem:[#allocation4 + $0x41] sm:$0x1] %v6491_v13  ;;  %v6459_v34 = vld [vmem:[%s8228_s3 + $0x218] sm:$0xff]  }
  0xbf   : > { %6093 = vmatpush3.bf16.msra.mxu1 %v6415_v63  ;;  %v6427_v63 = vld [vmem:[%s8228_s3] sm:$0xff]   ;;  %1279 = vst [vmem:[#allocation4 + $0x59] sm:$0x1] %v6491_v13  ;;  %1280 = vst [vmem:[#allocation4 + $0x71] sm:$0x1] %v6491_v13 }
  0xc0   : > { %6094 = vmatprep.subr.bf16.mxu1 %v6416_v46  ;;  %1281 = vst [vmem:[#allocation4 + $0x89] sm:$0x1] %v6491_v13  ;;  %1282 = vst [vmem:[#allocation4 + $0xa1] sm:$0x1] %v6491_v13 }
  0xc1   : > { %2408 = vmatmul.mubr.bf16.gmra.mrb[68].mxu0 %v6471_v44  ;;  %v988_v44 = vshll.u32 %v824_v25, 16  ;;  %1283 = vst [vmem:[#allocation4 + $0xb9] sm:$0x1] %v6491_v13  ;;  %1284 = vst [vmem:[#allocation4 + $0xd1] sm:$0x1] %v6491_v13 }
  0xc2   : > { %6079 = vmatmul.mubr.bf16.gmra.mrb[56].mxu1 %v7364_v35  ;;  %2415 = vmatprep.mubr.bf16.mxu0 %v6952_v17  ;;  %1285 = vst [vmem:[#allocation4 + $0xe9] sm:$0x1] %v6491_v13  ;;  %1286 = vst [vmem:[#allocation4 + $0x101] sm:$0x1] %v6491_v13 }
  0xc3   : > { %6095 = vmatpush3.bf16.msra.mxu1 %v6416_v46  ;;  %6082 = vmatprep.mubr.bf16.mxu1 %v7367_v42  ;;  %v6438_v46 = vld [vmem:[%s8228_s3 + $0x50] sm:$0xff]   ;;  %v990_v12 = vrot.slane %v988_v44, 1  ;;  %1287 = vst [vmem:[#allocation4 + $0x119] sm:$0x1] %v6491_v13  ;;  %1288 = vst [vmem:[#allocation4 + $0x131] sm:$0x1] %v6491_v13 }
  0xc4   : > { %6096 = vmatprep.subr.bf16.mxu1 %v6419_v31  ;;  %1289 = vst [vmem:[#allocation4 + $0x149] sm:$0x1] %v6491_v13  ;;  %1290 = vst [vmem:[#allocation4 + $0x161] sm:$0x1] %v6491_v13 }
  0xc5   : > { %v7486_v26 = vsel %vm835_vm7, %v986_v57, %v990_v12  ;;  %1291 = vst [vmem:[#allocation4 + $0x179] sm:$0x1] %v6491_v13  ;;  %1292 = vst [vmem:[#allocation4 + $0x191] sm:$0x1] %v6491_v13 }
  0xc6   : > { %1258 = vst [vmem:[#allocation4] sm:$0x1] %v6491_v13  ;;  %1275 = vst [vmem:[#allocation4 + $0x198] sm:$0x1] %v6491_v13 }
  0xc7   : > { %6097 = vmatpush3.bf16.msra.mxu1 %v6419_v31  ;;  %1276 = vst [vmem:[#allocation4 + $0x11] sm:$0x1] %v6491_v13  ;;  %1293 = vst [vmem:[#allocation4 + $0x1a9] sm:$0x1] %v6491_v13 }
  0xc8   : > { %6098 = vmatprep.subr.bf16.mxu1 %v6420_v55 }
  0xc9   : > { %2416 = vmatmul.mubr.bf16.gmra.mrb[72].mxu0 %v7384_v56 }
  0xca   : > { %6083 = vmatmul.mubr.bf16.gmra.mrb[60].mxu1 %v7376_v51  ;;  %2423 = vmatprep.mubr.bf16.mxu0 %v7379_v58 }
  0xcb   : > { %6099 = vmatpush3.bf16.msra.mxu1 %v6420_v55  ;;  %6102 = vmatprep.mubr.bf16.mxu1 %v7154_v19  ;;  %v961_v19 = vrot.slane %v959_v0, 1  ;;  %v6442_v55 = vld [vmem:[%s8228_s3 + $0x1f0] sm:$0xff]   ;;  %v6448_v0 = vld [vmem:[%s8228_s3 + $0x60] sm:$0xff]  }
  0xcc   : > { %6100 = vmatprep.subr.bf16.mxu1 %v6423_v10 }
  0xcd   : > { %v962_v36 = vor.u32 %v961_v19, %v957_v3  ;;  %v993_v3 = vshrl.u32 %v7237_v40, 16 }
  0xcf   : > { %6101 = vmatpush3.bf16.msra.mxu1 %v6423_v10  ;;  %v7427_v20 = vsel %vm835_vm7, %v962_v36, %v966_v11  ;;  %v995_v10 = vshll.u32 %v7237_v40, 16  ;;  %v7511_v36 = vld [vmem:[#allocation2 + $0xe8] sm:$0x1] }
  0xd0   : > { %5878 = vmatprep.subr.bf16.mxu1 %v6424_v61  ;;  %v826_v61 = vld [vmem:[#allocation2 + $0xd8] sm:$0x1]  ;;  %v6452_v11 = vld [vmem:[%s8228_s3 + $0x28] sm:$0xff]  }
  0xd1   : > { %2424 = vmatmul.mubr.bf16.gmra.mrb[76].mxu0 %v7107_v30  ;;  %v997_v19 = vrot.slane %v995_v10, 1  ;;  %v1000_v62 = vshll.u32 %v826_v61, 16 }
  0xd2   : > { %6103 = vmatmul.mubr.bf16.vlgmr.msra.gmra.mrb[48].mxu1 %v7282_v6  ;;  %2906 = vmatprep.mubr.bf16.mxu0 %v7379_v58  ;;  %v971_v6 = vshll.u32 %v7186_v60, 16 }
  0xd3   : > { %5879 = vmatpush3.bf16.msra.mxu1 %v6425_v1  ;;  %6106 = vmatprep.mubr.bf16.mxu1 %v7317_v14  ;;  %v6443_v1 = vld [vmem:[%s8228_s3 + $0x1b0] sm:$0xff]   ;;  %v998_v5 = vor.u32 %v997_v19, %v993_v3  ;;  %v7573_v3 = vld [vmem:[#allocation2 + $0xc0] sm:$0xff] }
  0xd4   : > { %5880 = vmatprep.subr.bf16.mxu1 %v6428_v2  ;;  %v973_v18 = vrot.slane %v971_v6, 1  ;;  %v6446_v2 = vld [vmem:[%s8228_s3 + $0x1f8] sm:$0xff]   ;;  %v1007_v6 = vshll.u32 %v7262_v8, 16 }
  0xd7   : > { %5881 = vmatpush3.bf16.msra.mxu1 %v6429_v9  ;;  %v1002_v9 = vrot.slane %v1000_v62, 1 }
  0xd8   : > { %5882 = vmatprep.subr.bf16.mxu1 %v6430_v33  ;;  %v7508_v33 = vld [vmem:[%s8228_s3 + $0x200] sm:$0xff]  }
  0xd9   : > { %2907 = vmatmul.mubr.bf16.vlgmr.msra.gmra.mrb[80].mxu0 %v7107_v30  ;;  %v974_v30 = vor.u32 %v973_v18, %v969_v16  ;;  %v1012_v16 = vshll.u32 %v7511_v36, 16  ;;  %v6454_v18 = vld [vmem:[%s8228_s3 + $0x70] sm:$0xff]  }
  0xda   : > { %6107 = vmatmul.mubr.bf16.gmra.mrb[52].mxu1 %v7323_v22  ;;  %5799 = vmatpush3.bf16.msra.mxu0 %v6427_v63  ;;  %v7517_v63 = vsel %vm835_vm7, %v998_v5, %v1002_v9  ;;  %v6463_v9 = vld [vmem:[%s8228_s3 + $0x238] sm:$0xff]  }
  0xdb   : > { %5883 = vmatpush3.bf16.msra.mxu1 %v6431_v52  ;;  %2914 = vmatprep.mubr.bf16.mxu0 %v7427_v20  ;;  %v7453_v31 = vsel %vm835_vm7, %v974_v30, %v978_v38  ;;  %v1005_v52 = vshrl.u32 %v7262_v8, 16  ;;  %v1014_v30 = vrot.slane %v1012_v16, 1  ;;  %v1019_v38 = vshll.u32 %v7298_v47, 16 }
  0xdc   : > { %5800 = vmatprep.subr.bf16.mxu0 %v6432_v48  ;;  %5884 = vmatprep.subr.bf16.mxu1 %v6434_v23  ;;  %v1009_v48 = vrot.slane %v1007_v6, 1  ;;  %v6455_v23 = vld [vmem:[%s8228_s3 + $0x30] sm:$0xff]  }
  0xdd   : > { %6110 = vmatprep.mubr.bf16.mxu1 %v7342_v15 }
  0xde   : > { %5801 = vmatpush3.bf16.msra.mxu0 %v6433_v24  ;;  %v7532_v24 = vld [vmem:[#allocation2 + $0xa0] sm:$0xff] }
  0xdf   : > { %5885 = vmatpush3.bf16.msra.mxu1 %v6435_v43  ;;  %5802 = vmatprep.subr.bf16.mxu0 %v6438_v46  ;;  %v6457_v43 = vld [vmem:[%s8228_s3 + $0x78] sm:$0xff]   ;;  %v6456_v46 = vld [vmem:[%s8228_s3 + $0x210] sm:$0xff]  }
  0xe0   : > { %5886 = vmatprep.subr.bf16.mxu1 %v6436_v27  ;;  %v1010_v27 = vor.u32 %v1009_v48, %v1005_v52 }
  0xe1   : > { %2915 = vmatmul.mubr.bf16.gmra.mrb[84].mxu0 %v7145_v37  ;;  %v6445_v37 = vld [vmem:[%s8228_s3 + $0x18] sm:$0xff]  }
  0xe2   : > { %6111 = vmatmul.mubr.bf16.gmra.mrb[56].mxu1 %v7351_v21  ;;  %2922 = vmatprep.mubr.bf16.mxu0 %v7453_v31  ;;  %v7549_v25 = vsel %vm835_vm7, %v1010_v27, %v1014_v30 }
  0xe3   : > { %5887 = vmatpush3.bf16.msra.mxu1 %v6437_v29  ;;  %5803 = vmatpush3.bf16.msra.mxu0 %v6439_v32  ;;  %v1017_v29 = vshrl.u32 %v7298_v47, 16  ;;  %v1021_v32 = vrot.slane %v1019_v38, 1 }
  0xe4   : > { %5888 = vmatprep.subr.bf16.mxu1 %v6440_v49  ;;  %6114 = vmatprep.mubr.bf16.mxu1 %v7364_v35 }
  0xe5   : > { %5804 = vmatprep.subr.bf16.mxu0 %v6444_v53  ;;  %v1022_v39 = vor.u32 %v1021_v32, %v1017_v29  ;;  %v1031_v53 = vshll.u32 %v7310_v41, 16 }
  0xe7   : > { %5889 = vmatpush3.bf16.msra.mxu1 %v6441_v54  ;;  %5805 = vmatpush3.bf16.msra.mxu0 %v6445_v37  ;;  %v832_v54 = vld [vmem:[#allocation2 + $0x108] sm:$0x1]  ;;  %v1029_v37 = vshrl.u32 %v7310_v41, 16  ;;  %v1033_v10 = vrot.slane %v1031_v53, 1 }
  0xe8   : > { %5890 = vmatprep.subr.bf16.mxu1 %v6442_v55  ;;  %5806 = vmatprep.subr.bf16.mxu0 %v6448_v0  ;;  %v6460_v55 = vld [vmem:[%s8228_s3 + $0x220] sm:$0xff]   ;;  %v1036_v61 = vshll.u32 %v832_v54, 16 }
  0xe9   : > { %2923 = vmatmul.mubr.bf16.gmra.mrb[88].mxu0 %v7186_v60 }
  0xea   : > { %6115 = vmatmul.mubr.bf16.gmra.mrb[60].mxu1 %v7367_v42  ;;  %2930 = vmatprep.mubr.bf16.mxu0 %v7486_v26 }
  0xeb   : > { %5891 = vmatpush3.bf16.msra.mxu1 %v6443_v1  ;;  %3655 = vmatprep.mubr.bf16.mxu1 %v7427_v20 }
  0xec   : > { %5892 = vmatprep.subr.bf16.mxu1 %v6446_v2  ;;  %5807 = vmatpush3.bf16.msra.mxu0 %v6449_v50  ;;  %v6461_v2 = vld [vmem:[%s8228_s3 + $0x228] sm:$0xff]   ;;  %v1034_v50 = vor.u32 %v1033_v10, %v1029_v37 }
  0xed   : > { %5808 = vmatprep.subr.bf16.mxu0 %v6451_v4  ;;  %v1038_v4 = vrot.slane %v1036_v61, 1 }
  0xef   : > { %5893 = vmatpush3.bf16.msra.mxu1 %v6447_v45  ;;  %v6462_v45 = vld [vmem:[%s8228_s3 + $0x230] sm:$0xff]   ;;  %v1039_v5 = vsel %vm835_vm7, %v1034_v50, %v1038_v4 }
  0xf0   : > { %6118 = vmatprep.subr.bf16.mxu1 %v7508_v33  ;;  %5809 = vmatpush3.bf16.msra.mxu0 %v6452_v11 }
  0xf1   : > { %2931 = vmatmul.mubr.bf16.gmra.mrb[92].mxu0 %v7202_v59  ;;  %5810 = vmatprep.subr.bf16.mxu0 %v6454_v18  ;;  %v830_v59 = vld [vmem:[#allocation2 + $0xf8] sm:$0x1] }
  0xf2   : > { %3656 = vmatmul.mubr.bf16.vlgmr.msra.gmra.mrb[64].mxu1 %v7532_v24  ;;  %2938 = vmatprep.mubr.bf16.mxu0 %v7517_v63  ;;  %v1024_v49 = vshll.u32 %v830_v59, 16  ;;  %v834_v59 = vld [vmem:[#allocation2 + $0x118] sm:$0x1] }
  0xf3   : > { %3663 = vmatprep.mubr.bf16.mxu1 %v7453_v31  ;;  %6119 = vmatpush3.bf16.msra.mxu1 %v7508_v33  ;;  %v1048_v54 = vshll.u32 %v834_v59, 16 }
  0xf4   : > { %6120 = vmatprep.subr.bf16.mxu1 %v6453_v7  ;;  %5811 = vmatpush3.bf16.msra.mxu0 %v6455_v23  ;;  %v1026_v44 = vrot.slane %v1024_v49, 1 }
  0xf5   : > { %5812 = vmatprep.subr.bf16.mxu0 %v6457_v43  ;;  %v833_v43 = vld [vmem:[#allocation2 + $0x110] sm:$0xff] }
  0xf6   : > { %v7564_v12 = vsel %vm835_vm7, %v1022_v39, %v1026_v44  ;;  %v1043_v27 = vshll.u32 %v833_v43, 16  ;;  %v1041_v53 = vshrl.u32 %v833_v43, 16 }
  0xf7   : > { %6121 = vmatpush3.bf16.msra.mxu1 %v6453_v7 }
  0xf8   : > { %6122 = vmatprep.subr.bf16.mxu1 %v6456_v46  ;;  %5813 = vmatpush3.bf16.msra.mxu0 %v6458_v28 }
  0xf9   : > { %2939 = vmatmul.mubr.bf16.gmra.mrb[96].mxu0 %v7237_v40 }
  0xfa   : > { %3664 = vmatmul.mubr.bf16.gmra.mrb[68].mxu1 %v7186_v60  ;;  %2946 = vmatprep.mubr.bf16.mxu0 %v7549_v25 }
  0xfb   : > { %3671 = vmatprep.mubr.bf16.mxu1 %v7486_v26  ;;  %6123 = vmatpush3.bf16.msra.mxu1 %v6456_v46 }
  0xfc   : > { %6124 = vmatprep.subr.bf16.mxu1 %v6459_v34 }
  0xff   : > { %6125 = vmatpush3.bf16.msra.mxu1 %v6459_v34 }
 0x100   : > { %6126 = vmatprep.subr.bf16.mxu1 %v6460_v55 }
 0x101   : > { %v5574_v57 = vpop.f32.mrb[0].mxu1  ;;  %2947 = vmatmul.mubr.bf16.gmra.mrb[100].mxu0 %v7262_v8 }
 0x102   : > { %v5575_v60 = vpop.f32.mrb[1].mxu1  ;;  %3672 = vmatmul.mubr.bf16.gmra.mrb[72].mxu1 %v7573_v3  ;;  %2954 = vmatprep.mubr.bf16.mxu0 %v7564_v12 }
 0x103   : > { %v7567_v0 = vadd.f32 %v5575_v60, %v5574_v57  ;;  %v5577_v1 = vpop.f32.mrb[2].mxu1  ;;  %3679 = vmatprep.mubr.bf16.mxu1 %v7517_v63  ;;  %6127 = vmatpush3.bf16.msra.mxu1 %v6460_v55  ;;  %v1050_v60 = vrot.slane %v1048_v54, 1 }
 0x104   : > { %v5578_v19 = vpop.f32.mrb[3].mxu1  ;;  %6128 = vmatprep.subr.bf16.mxu1 %v6461_v2 }
 0x105   : > { %v7578_v62 = vadd.f32 %v5578_v19, %v5577_v1 }
 0x107   : > { %6129 = vmatpush3.bf16.msra.mxu1 %v6461_v2 }
 0x108   : > { %6130 = vmatprep.subr.bf16.mxu1 %v6462_v45 }
 0x109   : > { %2955 = vmatmul.mubr.bf16.gmra.mrb[104].mxu0 %v7298_v47 }
 0x10a   : > { %3680 = vmatmul.mubr.bf16.gmra.mrb[76].mxu1 %v7237_v40  ;;  %2962 = vmatprep.mubr.bf16.mxu0 %v1039_v5 }
 0x10b   : > { %3687 = vmatprep.mubr.bf16.mxu1 %v7549_v25  ;;  %6131 = vmatpush3.bf16.msra.mxu1 %v6462_v45 }
 0x10c   : > { %v5494_v33 = vpop.f32.mrb[0].mxu0  ;;  %6132 = vmatprep.subr.bf16.mxu1 %v6463_v9 }
 0x10d   : > { %v5580_v6 = vpop.f32.mrb[4].mxu1  ;;  %v5495_v36 = vpop.f32.mrb[1].mxu0 }
 0x10e   : > { %v5581_v11 = vpop.f32.mrb[5].mxu1  ;;  %v7590_v13 = vadd.f32 %v5495_v36, %v5494_v33  ;;  %v5497_v52 = vpop.f32.mrb[2].mxu0 }
 0x10f   : > { %v7592_v48 = vadd.f32 %v5581_v11, %v5580_v6  ;;  %v5583_v16 = vpop.f32.mrb[6].mxu1  ;;  %v5498_v18 = vpop.f32.mrb[3].mxu0  ;;  %6133 = vmatpush3.bf16.msra.mxu1 %v6463_v9 }
 0x110   : > { %v5584_v7 = vpop.f32.mrb[7].mxu1  ;;  %v7594_v23 = vadd.f32 %v5498_v18, %v5497_v52 }
 0x111   : > { %v7596_v40 = vadd.f32 %v5584_v7, %v5583_v16  ;;  %2963 = vmatmul.mubr.bf16.gmra.mrb[108].mxu0 %v7310_v41 }
 0x112   : > { %3688 = vmatmul.mubr.bf16.gmra.mrb[80].mxu1 %v7262_v8  ;;  %3244 = vmatprep.mubr.bf16.mxu0 %v6952_v17  ;;  %v1045_v8 = vrot.slane %v1043_v27, 1 }
 0x113   : > { %3695 = vmatprep.mubr.bf16.mxu1 %v7564_v12 }
 0x114   : > { %v5500_v30 = vpop.f32.mrb[4].mxu0  ;;  %v1046_v57 = vor.u32 %v1045_v8, %v1041_v53 }
 0x115   : > { %v5586_v38 = vpop.f32.mrb[8].mxu1  ;;  %v5501_v46 = vpop.f32.mrb[5].mxu0 }
 0x116   : > { %v5587_v28 = vpop.f32.mrb[9].mxu1  ;;  %v7602_v29 = vadd.f32 %v5501_v46, %v5500_v30  ;;  %v5503_v32 = vpop.f32.mrb[6].mxu0 }
 0x117   : > { %v7604_v49 = vadd.f32 %v5587_v28, %v5586_v38  ;;  %v5589_v34 = vpop.f32.mrb[10].mxu1  ;;  %v5504_v39 = vpop.f32.mrb[7].mxu0 }
 0x118   : > { %v5590_v44 = vpop.f32.mrb[11].mxu1  ;;  %v7606_v17 = vadd.f32 %v5504_v39, %v5503_v32 }
 0x119   : > { %v7608_v55 = vadd.f32 %v5590_v44, %v5589_v34  ;;  %3245 = vmatmul.mubr.bf16.vlgmr.msra.gmra.mrb[112].mxu0 %v7384_v56  ;;  %v1051_v56 = vsel %vm835_vm7, %v1046_v57, %v1050_v60 }
 0x11a   : > { %3696 = vmatmul.mubr.bf16.gmra.mrb[84].mxu1 %v7298_v47  ;;  %3252 = vmatprep.mubr.bf16.mxu0 %v7379_v58 }
 0x11b   : > { %3703 = vmatprep.mubr.bf16.mxu1 %v1039_v5  ;;  %v6475_v5 = vld [vmem:[#allocation2 + $0x90] sm:$0xff] }
 0x11c   : > { %v5506_v37 = vpop.f32.mrb[8].mxu0 }
 0x11d   : > { %v5592_v10 = vpop.f32.mrb[12].mxu1  ;;  %v5507_v61 = vpop.f32.mrb[9].mxu0 }
 0x11e   : > { %v5593_v1 = vpop.f32.mrb[13].mxu1  ;;  %v7613_v2 = vadd.f32 %v5507_v61, %v5506_v37  ;;  %v5509_v19 = vpop.f32.mrb[10].mxu0 }
 0x11f   : > { %v7615_v50 = vadd.f32 %v5593_v1, %v5592_v10  ;;  %v5595_v4 = vpop.f32.mrb[14].mxu1  ;;  %v5510_v45 = vpop.f32.mrb[11].mxu0 }
 0x120   : > { %v5596_v9 = vpop.f32.mrb[15].mxu1  ;;  %v7618_v47 = vadd.f32 %v5510_v45, %v5509_v19 }
 0x121   : > { %v7620_v58 = vadd.f32 %v5596_v9, %v5595_v4  ;;  %3253 = vmatmul.mubr.bf16.gmra.mrb[116].mxu0 %v6475_v5 }
 0x122   : > { %3704 = vmatmul.mubr.bf16.gmra.mrb[88].mxu1 %v7310_v41  ;;  %3260 = vmatprep.mubr.bf16.mxu0 %v7427_v20 }
 0x123   : > { %3711 = vmatprep.mubr.bf16.mxu1 %v1051_v56 }
 0x124   : > { %v5512_v33 = vpop.f32.mrb[12].mxu0 }
 0x125   : > { %v5598_v6 = vpop.f32.mrb[16].mxu1  ;;  %v5513_v36 = vpop.f32.mrb[13].mxu0 }
 0x126   : > { %v5599_v11 = vpop.f32.mrb[17].mxu1  ;;  %v7624_v52 = vadd.f32 %v5513_v36, %v5512_v33  ;;  %v5515_v16 = vpop.f32.mrb[14].mxu0 }
 0x127   : > { %v7626_v18 = vadd.f32 %v5599_v11, %v5598_v6  ;;  %v5601_v7 = vpop.f32.mrb[18].mxu1  ;;  %v5516_v27 = vpop.f32.mrb[15].mxu0 }
 0x128   : > { %v5602_v30 = vpop.f32.mrb[19].mxu1  ;;  %v7628_v38 = vadd.f32 %v5516_v27, %v5515_v16 }
 0x129   : > { %v7630_v59 = vadd.f32 %v5602_v30, %v5601_v7  ;;  %3261 = vmatmul.mubr.bf16.gmra.mrb[120].mxu0 %v7532_v24  ;;  %v1122_v7 = vld [vmem:[#allocation2 + $0x110] sm:$0xfe] }
 0x12a   : > { %3712 = vmatmul.mubr.bf16.gmra.mrb[92].mxu1 %v833_v43  ;;  %3268 = vmatprep.mubr.bf16.mxu0 %v7453_v31  ;;  %v6476_v43 = vld [vmem:[#allocation2 + $0xb0] sm:$0xff] }
 0x12b   : > { %6134 = vmatprep.mubr.bf16.mxu1 %v7317_v14 }
 0x12c   : > { %v5518_v41 = vpop.f32.mrb[16].mxu0 }
 0x12d   : > { %v5604_v20 = vpop.f32.mrb[20].mxu1  ;;  %v5519_v46 = vpop.f32.mrb[17].mxu0 }
 0x12e   : > { %v5605_v28 = vpop.f32.mrb[21].mxu1  ;;  %v7635_v32 = vadd.f32 %v5519_v46, %v5518_v41  ;;  %v5521_v34 = vpop.f32.mrb[18].mxu0 }
 0x12f   : > { %v7637_v39 = vadd.f32 %v5605_v28, %v5604_v20  ;;  %v5607_v44 = vpop.f32.mrb[22].mxu1  ;;  %v5522_v53 = vpop.f32.mrb[19].mxu0 }
 0x130   : > { %v5608_v8 = vpop.f32.mrb[23].mxu1  ;;  %v7639_v54 = vadd.f32 %v5522_v53, %v5521_v34 }
 0x131   : > { %v7641_v24 = vadd.f32 %v5608_v8, %v5607_v44  ;;  %3269 = vmatmul.mubr.bf16.gmra.mrb[124].mxu0 %v6476_v43  ;;  %v6478_v8 = vld [vmem:[#allocation2 + $0xe0] sm:$0xff] }
 0x132   : > { %6135 = vmatmul.mubr.bf16.vlgmr.msra.gmra.mrb[48].mxu1 %v7323_v22  ;;  %3276 = vmatprep.mubr.bf16.mxu0 %v7486_v26 }
 0x133   : > { %6138 = vmatprep.mubr.bf16.mxu1 %v7342_v15 }
 0x134   : > { %v5524_v14 = vpop.f32.mrb[20].mxu0 }
 0x135   : > { %v5610_v31 = vpop.f32.mrb[24].mxu1  ;;  %v5525_v57 = vpop.f32.mrb[21].mxu0 }
 0x136   : > { %v5611_v60 = vpop.f32.mrb[25].mxu1  ;;  %v7646_v37 = vadd.f32 %v5525_v57, %v5524_v14  ;;  %v5527_v10 = vpop.f32.mrb[22].mxu0 }
 0x137   : > { %v7648_v61 = vadd.f32 %v5611_v60, %v5610_v31  ;;  %v5613_v1 = vpop.f32.mrb[26].mxu1  ;;  %v5528_v19 = vpop.f32.mrb[23].mxu0 }
 0x138   : > { %v5614_v4 = vpop.f32.mrb[27].mxu1  ;;  %v7650_v45 = vadd.f32 %v5528_v19, %v5527_v10 }
 0x139   : > { %v7652_v9 = vadd.f32 %v5614_v4, %v5613_v1  ;;  %3277 = vmatmul.mubr.bf16.gmra.mrb[128].mxu0 %v7573_v3  ;;  %v1123_v3 = vld [vmem:[#allocation2 + $0x118] sm:$0x1] }
 0x13a   : > { %6139 = vmatmul.mubr.bf16.gmra.mrb[52].mxu1 %v7351_v21  ;;  %3284 = vmatprep.mubr.bf16.mxu0 %v7517_v63  ;;  %v6477_v63 = vld [vmem:[#allocation2 + $0xd0] sm:$0xff]  ;;  %v1213_v30 = vrot.slane %v1123_v3, 1 }
 0x13b   : > { %6142 = vmatprep.mubr.bf16.mxu1 %v7364_v35  ;;  %v1212_v35 = vrot.slane %v1122_v7, 1 }
 0x13c   : > { %v5530_v22 = vpop.f32.mrb[24].mxu0 }
 0x13d   : > { %v5616_v15 = vpop.f32.mrb[28].mxu1  ;;  %v5531_v26 = vpop.f32.mrb[25].mxu0  ;;  %v1214_v34 = vsel %vm1160_vm9, %v1212_v35, %v1213_v30 }
 0x13e   : > { %v5617_v56 = vpop.f32.mrb[29].mxu1  ;;  %v7658_v5 = vadd.f32 %v5531_v26, %v5530_v22  ;;  %v5533_v33 = vpop.f32.mrb[26].mxu0 }
 0x13f   : > { %v7660_v6 = vadd.f32 %v5617_v56, %v5616_v15  ;;  %v5619_v36 = vpop.f32.mrb[30].mxu1  ;;  %v5534_v11 = vpop.f32.mrb[27].mxu0 }
 0x140   : > { %v5620_v16 = vpop.f32.mrb[31].mxu1  ;;  %v7662_v27 = vadd.f32 %v5534_v11, %v5533_v33 }
 0x141   : > { %v7664_v21 = vadd.f32 %v5620_v16, %v5619_v36  ;;  %3285 = vmatmul.mubr.bf16.gmra.mrb[132].mxu0 %v6477_v63 }
 0x142   : > { %6143 = vmatmul.mubr.bf16.gmra.mrb[56].mxu1 %v7367_v42  ;;  %3292 = vmatprep.mubr.bf16.mxu0 %v7549_v25 }
 0x143   : > { %6146 = vmatprep.mubr.bf16.mxu1 %v7376_v51 }
 0x144   : > { %v5536_v41 = vpop.f32.mrb[28].mxu0 }
 0x145   : > { %v5537_v20 = vpop.f32.mrb[29].mxu0 }
 0x146   : > { %v5538_v46 = vadd.f32 %v5537_v20, %v5536_v41  ;;  %v5539_v28 = vpop.f32.mrb[30].mxu0 }
 0x147   : > { %v5540_v44 = vpop.f32.mrb[31].mxu0 }
 0x148   : > { %v5541_v53 = vadd.f32 %v5540_v44, %v5539_v28 }
 0x149   : > { %3293 = vmatmul.mubr.bf16.gmra.mrb[136].mxu0 %v6478_v8 }
 0x14a   : > { %6147 = vmatmul.mubr.bf16.gmra.mrb[60].mxu1 %v1214_v34  ;;  %3300 = vmatprep.mubr.bf16.mxu0 %v7564_v12  ;;  %v6479_v12 = vld [vmem:[#allocation2 + $0xf0] sm:$0xff] }
 0x14c   : > { %v5976_v42 = vpop.f32.mrb[32].mxu0 }
 0x14d   : > { %v1725_v25 = vadd.f32 %v5976_v42, %v7602_v29  ;;  %v1716_v43 = vpop.f32.mrb[33].mxu0 }
 0x14e   : > { %v1717_v51 = vadd.f32 %v7590_v13, %v1716_v43  ;;  %v5977_v14 = vpop.f32.mrb[34].mxu0 }
 0x14f   : > { %v7674_v31 = vadd.f32 %v7592_v48, %v1725_v25  ;;  %v1728_v57 = vadd.f32 %v5977_v14, %v7606_v17  ;;  %v1719_v60 = vpop.f32.mrb[35].mxu0 }
 0x150   : > { %v1958_v10 = vadd.f32 %v7567_v0, %v1717_v51  ;;  %v1720_v1 = vadd.f32 %v7594_v23, %v1719_v60 }
 0x151   : > { %v7680_v19 = vadd.f32 %v7596_v40, %v1728_v57  ;;  %3301 = vmatmul.mubr.bf16.gmra.mrb[140].mxu0 %v6479_v12 }
 0x152   : > { %v1961_v29 = vadd.f32 %v7578_v62, %v1720_v1 }
 0x154   : > { %v5980_v4 = vpop.f32.mrb[36].mxu0 }
 0x155   : > { %v1741_v13 = vadd.f32 %v5980_v4, %v7624_v52  ;;  %v1732_v22 = vpop.f32.mrb[37].mxu0 }
 0x156   : > { %v1733_v48 = vadd.f32 %v7613_v2, %v1732_v22  ;;  %v5981_v15 = vpop.f32.mrb[38].mxu0 }
 0x157   : > { %v7686_v17 = vadd.f32 %v7615_v50, %v1741_v13  ;;  %v1744_v0 = vadd.f32 %v5981_v15, %v7628_v38  ;;  %v1735_v23 = vpop.f32.mrb[39].mxu0 }
 0x158   : > { %v7690_v40 = vadd.f32 %v7604_v49, %v1733_v48  ;;  %v1736_v26 = vadd.f32 %v7618_v47, %v1735_v23 }
 0x159   : > { %v7694_v62 = vadd.f32 %v7620_v58, %v1744_v0 }
 0x15a   : > { %v7697_v52 = vadd.f32 %v7608_v55, %v1736_v26 }
 0x15c   : > { %v5984_v56 = vpop.f32.mrb[40].mxu0 }
 0x15d   : > { %v1757_v2 = vadd.f32 %v5984_v56, %v7646_v37  ;;  %v1748_v33 = vpop.f32.mrb[41].mxu0 }
 0x15e   : > { %v1749_v50 = vadd.f32 %v7635_v32, %v1748_v33  ;;  %v5985_v36 = vpop.f32.mrb[42].mxu0 }
 0x15f   : > { %v7702_v38 = vadd.f32 %v7637_v39, %v1757_v2  ;;  %v1760_v49 = vadd.f32 %v5985_v36, %v7650_v45  ;;  %v1751_v11 = vpop.f32.mrb[43].mxu0 }
 0x160   : > { %v7706_v47 = vadd.f32 %v7626_v18, %v1749_v50  ;;  %v1752_v58 = vadd.f32 %v7639_v54, %v1751_v11  ;;  %v3866_v11 = vld [vmem:[#allocation4] sm:$0xff] }
 0x161   : > { %v7710_v55 = vadd.f32 %v7641_v24, %v1760_v49 }
 0x162   : > { %v7713_v37 = vadd.f32 %v7630_v59, %v1752_v58 }
 0x164   : > { %v5988_v16 = vpop.f32.mrb[44].mxu0 }
 0x165   : > { %v6040_v32 = vpop.f32.mrb[32].mxu1  ;;  %v1773_v7 = vadd.f32 %v5988_v16, %v5538_v46  ;;  %v1764_v3 = vpop.f32.mrb[45].mxu0 }
 0x166   : > { %v2466_v39 = vpop.f32.mrb[33].mxu1  ;;  %v1765_v63 = vadd.f32 %v7658_v5, %v1764_v3  ;;  %v5989_v45 = vpop.f32.mrb[46].mxu0 }
 0x167   : > { %v6041_v35 = vpop.f32.mrb[34].mxu1  ;;  %v7717_v18 = vadd.f32 %v7660_v6, %v1773_v7  ;;  %v1776_v30 = vadd.f32 %v5989_v45, %v5541_v53  ;;  %v1767_v54 = vpop.f32.mrb[47].mxu0 }
 0x168   : > { %v2469_v41 = vpop.f32.mrb[35].mxu1  ;;  %v7720_v24 = vadd.f32 %v7648_v61, %v1765_v63  ;;  %v1768_v59 = vadd.f32 %v7662_v27, %v1767_v54  ;;  %v7736_v27 = vld [vmem:[%s8229_s4] ss:$0 sm:$0xff]  ;;  %v3868_v54 = vld [vmem:[#allocation4 + $0x10] sm:$0x3] }
 0x169   : > { %v7724_v20 = vadd.f32 %v7664_v21, %v1776_v30 }
 0x16a   : > { %v7727_v46 = vadd.f32 %v7652_v9, %v1768_v59 }
 0x16c   : > { %v5654_v5 = vpop.f32.mrb[48].mxu0 }
 0x16d   : > { %v7729_v28 = vpop.f32.mrb[36].mxu1  ;;  %v5655_v34 = vpop.f32.mrb[49].mxu0 }
 0x16e   : > { %v2482_v6 = vpop.f32.mrb[37].mxu1  ;;  %v5656_v44 = vadd.f32 %v5655_v34, %v5654_v5  ;;  %v5657_v53 = vpop.f32.mrb[50].mxu0 }
 0x16f   : > { %v7731_v8 = vpop.f32.mrb[38].mxu1  ;;  %v5658_v42 = vpop.f32.mrb[51].mxu0 }
 0x170   : > { %v2485_v61 = vpop.f32.mrb[39].mxu1  ;;  %v6156_v25 = vadd.f32 %v5656_v44, %v1958_v10  ;;  %v5659_v43 = vadd.f32 %v5658_v42, %v5657_v53  ;;  %v3892_v53 = vmul.f32 0.27406862, %v3868_v54 }
 0x172   : > { %v6157_v9 = vadd.f32 %v6156_v25, %v2466_v39  ;;  %v6164_v21 = vadd.f32 %v5659_v43, %v1961_v29 }
 0x174   : > { %v2551_v51 = vadd.f32 %v6157_v9, %v7736_v27  ;;  %v6165_v14 = vadd.f32 %v6164_v21, %v2469_v41  ;;  %v5660_v57 = vpop.f32.mrb[52].mxu0 }
 0x175   : > { %v7739_v60 = vpop.f32.mrb[40].mxu1  ;;  %v5661_v1 = vpop.f32.mrb[53].mxu0 }
 0x176   : > { %v7741_v12 = vpop.f32.mrb[41].mxu1  ;;  %2568 = vst [vmem:[#allocation4 + $0x19] sm:$0xff] %v2551_v51  ;;  %v2552_v10 = vadd.f32 %v6165_v14, %v7736_v27  ;;  %v5662_v4 = vadd.f32 %v5661_v1, %v5660_v57  ;;  %v5663_v13 = vpop.f32.mrb[54].mxu0 }
 0x177   : > { %v7744_v22 = vpop.f32.mrb[42].mxu1  ;;  %v5664_v48 = vpop.f32.mrb[55].mxu0 }
 0x178   : > { %v7746_v15 = vpop.f32.mrb[43].mxu1  ;;  %2569 = vst [vmem:[#allocation4 + $0x21] sm:$0xff] %v2552_v10  ;;  %v6152_v29 = vadd.f32 %v5662_v4, %v7674_v31  ;;  %v5665_v0 = vadd.f32 %v5664_v48, %v5663_v13 }
 0x17a   : > { %v6153_v23 = vadd.f32 %v6152_v29, %v6040_v32  ;;  %v6160_v26 = vadd.f32 %v5665_v0, %v7680_v19  ;;  %v3890_v19 = vmul.f32 0.27406862, %v3866_v11 }
 0x17c   : > { %v2553_v56 = vadd.f32 %v6153_v23, %v7736_v27  ;;  %v6161_v2 = vadd.f32 %v6160_v26, %v6041_v35  ;;  %v5666_v33 = vpop.f32.mrb[56].mxu0 }
 0x17d   : > { %v7751_v50 = vpop.f32.mrb[44].mxu1  ;;  %v5667_v36 = vpop.f32.mrb[57].mxu0  ;;  %v3869_v32 = vld [vmem:[#allocation4 + $0x18] sm:$0xff] }
 0x17e   : > { %v7753_v49 = vpop.f32.mrb[45].mxu1  ;;  %2570 = vst [vmem:[#allocation4 + $0x31] sm:$0xff] %v2553_v56  ;;  %v2554_v58 = vadd.f32 %v6161_v2, %v7736_v27  ;;  %v5668_v16 = vadd.f32 %v5667_v36, %v5666_v33  ;;  %v5669_v7 = vpop.f32.mrb[58].mxu0  ;;  %v3938_v30 = vmul.f32 0.45186275, %v3869_v32 }
 0x17f   : > { %v7756_v31 = vpop.f32.mrb[46].mxu1  ;;  %v5670_v3 = vpop.f32.mrb[59].mxu0  ;;  %v3870_v39 = vld [vmem:[#allocation4 + $0x20] sm:$0xff]  ;;  %v3916_v41 = vld [vmem:[#allocation4 + $0x28] sm:$0x3] }
 0x180   : > { %2571 = vst [vmem:[#allocation4 + $0x39] sm:$0xff] %v2554_v58  ;;  %v6172_v63 = vadd.f32 %v5668_v16, %v7690_v40  ;;  %v5671_v45 = vadd.f32 %v5670_v3, %v5669_v7  ;;  %v7759_v35 = vpop.f32.mrb[47].mxu1  ;;  %v3939_v34 = vmul.f32 0.45186275, %v3870_v39  ;;  %v3940_v42 = vmul.f32 0.45186275, %v3916_v41 }
 0x181   : > { %v3962_v51 = vadd.f32 %v3938_v30, %v3890_v19  ;;  %v3893_v1 = vmul.f32 0.27406862, %v3869_v32  ;;  %v3871_v4 = vld [vmem:[#allocation4 + $0x28] sm:$0x3] }
 0x182   : > { %v6173_v59 = vadd.f32 %v6172_v63, %v2482_v6  ;;  %v6180_v5 = vadd.f32 %v5671_v45, %v7697_v52  ;;  %v3964_v0 = vadd.f32 %v3940_v42, %v3892_v53  ;;  %v3895_v11 = vmul.f32 0.27406862, %v3871_v4 }
 0x184   : > { %v5672_v44 = vpop.f32.mrb[60].mxu0  ;;  %v2555_v43 = vadd.f32 %v6173_v59, %v7736_v27  ;;  %v6181_v9 = vadd.f32 %v6180_v5, %v2485_v61  ;;  %v3894_v61 = vmul.f32 0.27406862, %v3870_v39 }
 0x185   : > { %v3872_v25 = vld [vmem:[#allocation4 + $0x30] sm:$0xff]  ;;  %v5673_v21 = vpop.f32.mrb[61].mxu0 }
 0x186   : > { %v7763_v40 = vmul.f32 0.27406862, %v3872_v25  ;;  %v5674_v14 = vadd.f32 %v5673_v21, %v5672_v44  ;;  %v5675_v57 = vpop.f32.mrb[62].mxu0  ;;  %2572 = vst [vmem:[#allocation4 + $0x49] sm:$0xff] %v2555_v43  ;;  %v2556_v52 = vadd.f32 %v6181_v9, %v7736_v27  ;;  %v3941_v56 = vmul.f32 0.45186275, %v3872_v25 }
 0x187   : > { %v3873_v10 = vld [vmem:[#allocation4 + $0x38] sm:$0xff]  ;;  %v5676_v6 = vpop.f32.mrb[63].mxu0  ;;  %v3989_v29 = vld [vmem:[#allocation4 + $0x40] sm:$0x3] }
 0x188   : > { %v4035_v13 = vadd.f32 %v3962_v51, %v7763_v40  ;;  %v7767_v48 = vmul.f32 0.27406862, %v3873_v10  ;;  %v4013_v23 = vmul.f32 0.27406862, %v3989_v29  ;;  %2573 = vst [vmem:[#allocation4 + $0x51] sm:$0xff] %v2556_v52  ;;  %v6168_v26 = vadd.f32 %v5674_v14, %v7686_v17 }
 0x189   : > { %v5677_v36 = vadd.f32 %v5676_v6, %v5675_v57  ;;  %v3919_v58 = vld [vmem:[#allocation4 + $0x40] sm:$0x3]  ;;  %v3942_v16 = vmul.f32 0.45186275, %v3873_v10  ;;  %v3965_v41 = vadd.f32 %v3941_v56, %v3893_v1 }
 0x18a   : > { %v4075_v2 = vmul.f32 0.45186275, %v4035_v13  ;;  %v4036_v33 = vadd.f32 %v3939_v34, %v7767_v48  ;;  %v4037_v7 = vadd.f32 %v4013_v23, %v3964_v0  ;;  %v6169_v32 = vadd.f32 %v6168_v26, %v7729_v28 }
 0x18b   : > { %v4059_v3 = vmul.f32 0.27406862, %v4035_v13  ;;  %v6176_v17 = vadd.f32 %v5677_v36, %v7694_v62  ;;  %v3943_v42 = vmul.f32 0.45186275, %v3919_v58  ;;  %v3966_v1 = vadd.f32 %v3942_v16, %v3894_v61 }
 0x18c   : > { %v4060_v19 = vmul.f32 0.27406862, %v4036_v33  ;;  %v4076_v63 = vmul.f32 0.45186275, %v4036_v33  ;;  %v4077_v39 = vmul.f32 0.45186275, %v4037_v7  ;;  %v2557_v30 = vadd.f32 %v6169_v32, %v7736_v27 }
 0x18d   : > { %v4196_v45 = vmul.f32 0.27406862, %v4037_v7  ;;  %v5678_v54 = vpop.f32.mrb[64].mxu0  ;;  %v4124_v59 = vrot.slane %v4075_v2, 1  ;;  %v3875_v44 = vld [vmem:[#allocation4 + $0x48] sm:$0xff]  ;;  %v4229_v9 = vrot.slane %v4059_v3, 2  ;;  %v6177_v62 = vadd.f32 %v6176_v17, %v7731_v8 }
 0x18e   : > { %v4125_v5 = vrot.slane %v4076_v63, 1  ;;  %v4230_v34 = vrot.slane %v4060_v19, 2  ;;  %v5679_v53 = vpop.f32.mrb[65].mxu0  ;;  %v4127_v25 = vrot.slane %v4077_v39, 1  ;;  %v7774_v43 = vmul.f32 0.27406862, %v3875_v44 }
 0x18f   : > { %v4232_v28 = vrot.slane %v4196_v45, 2  ;;  %2574 = vst [vmem:[#allocation4 + $0x61] sm:$0xff] %v2557_v30  ;;  %v3876_v51 = vld [vmem:[#allocation4 + $0x50] sm:$0xff]  ;;  %v5680_v14 = vadd.f32 %v5679_v53, %v5678_v54  ;;  %v5681_v57 = vpop.f32.mrb[66].mxu0  ;;  %v3944_v6 = vmul.f32 0.45186275, %v3875_v44  ;;  %v3967_v56 = vadd.f32 %v3943_v42, %v3895_v11 }
 0x190   : > { %v4126_v21 = vsel %vm1160_vm9, %v4124_v59, %v4125_v5  ;;  %v4128_v10 = vsel %vm1160_vm9, %v4125_v5, %v4127_v25  ;;  %v3992_v4 = vld [vmem:[#allocation4 + $0x58] sm:$0x3]  ;;  %v5682_v13 = vpop.f32.mrb[67].mxu0  ;;  %v4231_v0 = vsel %vm4228_vm10, %v4229_v9, %v4230_v34  ;;  %v4038_v23 = vadd.f32 %v3965_v41, %v7774_v43 }
 0x191   : > { %v4180_v52 = vadd.f32 %v4126_v21, %v4059_v3  ;;  %v4181_v29 = vadd.f32 %v4128_v10, %v4060_v19  ;;  %v7782_v26 = vmul.f32 0.27406862, %v3876_v51  ;;  %v4233_v8 = vsel %vm4228_vm10, %v4230_v34, %v4232_v28  ;;  %v3922_v39 = vld [vmem:[#allocation4 + $0x58] sm:$0x3] }
 0x192   : > { %v4016_v33 = vmul.f32 0.27406862, %v3992_v4  ;;  %v4078_v36 = vmul.f32 0.45186275, %v4038_v23  ;;  %v2558_v32 = vadd.f32 %v6177_v62, %v7736_v27  ;;  %v3968_v19 = vadd.f32 %v3944_v6, %v7763_v40  ;;  %v3874_v6 = vld [vmem:[#allocation4 + $0x40] sm:$0x3] }
 0x193   : > { %v4285_v2 = vadd.f32 %v4231_v0, %v4180_v52  ;;  %v4286_v61 = vadd.f32 %v4233_v8, %v4181_v29  ;;  %v4039_v58 = vadd.f32 %v3966_v1, %v7782_v26  ;;  %v4061_v63 = vmul.f32 0.27406862, %v4038_v23 }
 0x194   : > { %v5684_v16 = vpop.f32.mrb[68].mxu0  ;;  %v4040_v7 = vadd.f32 %v4016_v33, %v3967_v56  ;;  %2575 = vst [vmem:[#allocation4 + $0x69] sm:$0xff] %v2558_v32  ;;  %v6188_v5 = vadd.f32 %v5680_v14, %v7706_v47  ;;  %v4129_v34 = vrot.slane %v4078_v36, 1  ;;  %v5683_v42 = vadd.f32 %v5682_v13, %v5681_v57 }
 0x195   : > { %v5685_v3 = vpop.f32.mrb[69].mxu0  ;;  %v5386_v11 = vpack.c.bf16 %v4286_v61, %v4285_v2  ;;  %v4062_v45 = vmul.f32 0.27406862, %v4039_v58  ;;  %v4079_v54 = vmul.f32 0.45186275, %v4039_v58  ;;  %v4234_v62 = vrot.slane %v4061_v63, 2 }
 0x196   : > { %v3878_v30 = vld [vmem:[#allocation4 + $0x60] sm:$0xff]  ;;  %v5687_v17 = vpop.f32.mrb[70].mxu0  ;;  %v4080_v41 = vmul.f32 0.45186275, %v4040_v7  ;;  %v4197_v59 = vmul.f32 0.27406862, %v4040_v7  ;;  %v6189_v21 = vadd.f32 %v6188_v5, %v7741_v12  ;;  %v6196_v52 = vadd.f32 %v5683_v42, %v7713_v37 }
 0x197   : > { %5387 = vst [vmem:[%s7789_s19] sm:$0xff] %v5386_v11   ;;  %v4235_v44 = vrot.slane %v4062_v45, 2  ;;  %v7795_v53 = vmul.f32 0.27406862, %v3878_v30  ;;  %v5688_v25 = vpop.f32.mrb[71].mxu0  ;;  %v4130_v28 = vrot.slane %v4079_v54, 1  ;;  %v5686_v37 = vadd.f32 %v5685_v3, %v5684_v16 }
 0x198   : > { %v4132_v40 = vrot.slane %v4080_v41, 1  ;;  %v4237_v9 = vrot.slane %v4197_v59, 2  ;;  %v3945_v1 = vmul.f32 0.45186275, %v3876_v51  ;;  %v3946_v47 = vmul.f32 0.45186275, %v3922_v39 }
 0x199   : > { %v4041_v10 = vadd.f32 %v3968_v19, %v7795_v53  ;;  %v4131_v14 = vsel %vm1160_vm9, %v4129_v34, %v4130_v28  ;;  %v2559_v57 = vadd.f32 %v6189_v21, %v7736_v27  ;;  %v4236_v0 = vsel %vm4228_vm10, %v4234_v62, %v4235_v44 }
 0x19a   : > { %v4133_v4 = vsel %vm1160_vm9, %v4130_v28, %v4132_v40  ;;  %v4182_v13 = vadd.f32 %v4131_v14, %v4061_v63  ;;  %v3947_v23 = vmul.f32 0.45186275, %v3878_v30  ;;  %v4238_v51 = vsel %vm4228_vm10, %v4235_v44, %v4237_v9  ;;  %v3877_v40 = vld [vmem:[#allocation4 + $0x58] sm:$0x3] }
 0x19b   : > { %v4183_v29 = vadd.f32 %v4133_v4, %v4062_v45  ;;  %2576 = vst [vmem:[#allocation4 + $0x79] sm:$0xff] %v2559_v57  ;;  %v6197_v56 = vadd.f32 %v6196_v52, %v7746_v15  ;;  %v5689_v8 = vadd.f32 %v5688_v25, %v5687_v17  ;;  %v3898_v33 = vmul.f32 0.27406862, %v3874_v6  ;;  %v3879_v7 = vld [vmem:[#allocation4 + $0x68] sm:$0xff]  ;;  %v3995_v3 = vld [vmem:[#allocation4 + $0x70] sm:$0x3] }
 0x19c   : > { %v5690_v12 = vpop.f32.mrb[72].mxu0  ;;  %v4287_v61 = vadd.f32 %v4236_v0, %v4182_v13  ;;  %v4081_v58 = vmul.f32 0.45186275, %v4041_v10  ;;  %v3969_v11 = vadd.f32 %v3945_v1, %v7767_v48  ;;  %v7807_v19 = vmul.f32 0.27406862, %v3879_v7 }
 0x19d   : > { %v5691_v2 = vpop.f32.mrb[73].mxu0  ;;  %v4288_v36 = vadd.f32 %v4238_v51, %v4183_v29  ;;  %v2560_v63 = vadd.f32 %v6197_v56, %v7736_v27  ;;  %v6184_v39 = vadd.f32 %v5686_v37, %v7702_v38  ;;  %v3970_v45 = vadd.f32 %v3946_v47, %v3898_v33  ;;  %v3925_v42 = vld [vmem:[#allocation4 + $0x70] sm:$0x3] }
 0x19e   : > { %v5693_v32 = vpop.f32.mrb[74].mxu0  ;;  %v3971_v16 = vadd.f32 %v3947_v23, %v7774_v43  ;;  %v6192_v30 = vadd.f32 %v5689_v8, %v7710_v55  ;;  %v4019_v17 = vmul.f32 0.27406862, %v3995_v3  ;;  %v4042_v54 = vadd.f32 %v3969_v11, %v7807_v19 }
 0x19f   : > { %v5391_v15 = vpack.c.bf16 %v4288_v36, %v4287_v61  ;;  %2577 = vst [vmem:[#allocation4 + $0x81] sm:$0xff] %v2560_v63  ;;  %v6185_v41 = vadd.f32 %v6184_v39, %v7739_v60  ;;  %v5692_v48 = vadd.f32 %v5691_v2, %v5690_v12  ;;  %v5694_v59 = vpop.f32.mrb[75].mxu0  ;;  %v4063_v5 = vmul.f32 0.27406862, %v4041_v10 }
 0x1a0   : > { %v4134_v34 = vrot.slane %v4081_v58, 1  ;;  %v6193_v38 = vadd.f32 %v6192_v30, %v7744_v22  ;;  %v5695_v44 = vadd.f32 %v5694_v59, %v5693_v32  ;;  %v4043_v25 = vadd.f32 %v4019_v17, %v3970_v45 }
 0x1a1   : > { %5463 = vst [vmem:[%s7789_s19 + $0x8] sm:$0xff] %v5391_v15   ;;  %v4064_v43 = vmul.f32 0.27406862, %v4042_v54  ;;  %v4082_v28 = vmul.f32 0.45186275, %v4042_v54  ;;  %v2561_v55 = vadd.f32 %v6185_v41, %v7736_v27  ;;  %v6204_v60 = vadd.f32 %v5692_v48, %v7720_v24 }
 0x1a2   : > { %v3948_v9 = vmul.f32 0.45186275, %v3879_v7  ;;  %v3881_v21 = vld [vmem:[#allocation4 + $0x78] sm:$0xff]  ;;  %v2562_v62 = vadd.f32 %v6193_v38, %v7736_v27  ;;  %v6212_v1 = vadd.f32 %v5695_v44, %v7727_v46  ;;  %v4083_v52 = vmul.f32 0.45186275, %v4043_v25 }
 0x1a3   : > { %v4135_v6 = vrot.slane %v4082_v28, 1  ;;  %v4198_v22 = vmul.f32 0.27406862, %v4043_v25  ;;  %v4240_v47 = vrot.slane %v4064_v43, 2  ;;  %2578 = vst [vmem:[#allocation4 + $0x91] sm:$0xff] %v2561_v55  ;;  %v6205_v57 = vadd.f32 %v6204_v60, %v7753_v49 }
 0x1a4   : > { %v5696_v10 = vpop.f32.mrb[76].mxu0  ;;  %v3949_v14 = vmul.f32 0.45186275, %v3925_v42  ;;  %v7821_v4 = vmul.f32 0.27406862, %v3881_v21  ;;  %2579 = vst [vmem:[#allocation4 + $0x99] sm:$0xff] %v2562_v62  ;;  %v6213_v13 = vadd.f32 %v6212_v1, %v7759_v35  ;;  %v3972_v49 = vadd.f32 %v3948_v9, %v7782_v26 }
 0x1a5   : > { %v5697_v29 = vpop.f32.mrb[77].mxu0  ;;  %v4239_v0 = vrot.slane %v4063_v5, 2  ;;  %v4136_v24 = vsel %vm1160_vm9, %v4134_v34, %v4135_v6  ;;  %v4137_v23 = vrot.slane %v4083_v52, 1  ;;  %v4242_v46 = vrot.slane %v4198_v22, 2  ;;  %v3880_v26 = vld [vmem:[#allocation4 + $0x70] sm:$0x3] }
 0x1a6   : > { %v7826_v12 = vpop.f32.mrb[78].mxu0  ;;  %v3901_v51 = vmul.f32 0.27406862, %v3877_v40  ;;  %v4184_v56 = vadd.f32 %v4136_v24, %v4063_v5  ;;  %v4044_v37 = vadd.f32 %v3971_v16, %v7821_v4  ;;  %v3882_v8 = vld [vmem:[#allocation4 + $0x80] sm:$0xff]  ;;  %v2563_v2 = vadd.f32 %v6205_v57, %v7736_v27  ;;  %v3998_v58 = vld [vmem:[#allocation4 + $0x88] sm:$0x3] }
 0x1a7   : > { %v7830_v33 = vpop.f32.mrb[79].mxu0  ;;  %v4138_v35 = vsel %vm1160_vm9, %v4135_v6, %v4137_v23  ;;  %v4241_v61 = vsel %vm4228_vm10, %v4239_v0, %v4240_v47  ;;  %v7835_v36 = vmul.f32 0.27406862, %v3882_v8  ;;  %v3950_v63 = vmul.f32 0.45186275, %v3881_v21 }
 0x1a8   : > { %v3973_v7 = vadd.f32 %v3949_v14, %v3901_v51  ;;  %v4185_v32 = vadd.f32 %v4138_v35, %v4064_v43  ;;  %v4289_v11 = vadd.f32 %v4241_v61, %v4184_v56  ;;  %v3928_v39 = vld [vmem:[#allocation4 + $0x88] sm:$0x3]  ;;  %2580 = vst [vmem:[#allocation4 + $0xa9] sm:$0xff] %v2563_v2  ;;  %v4243_v45 = vsel %vm4228_vm10, %v4240_v47, %v4242_v46 }
 0x1a9   : > { %v4084_v15 = vmul.f32 0.45186275, %v4044_v37  ;;  %v4022_v16 = vmul.f32 0.27406862, %v3998_v58  ;;  %v4045_v3 = vadd.f32 %v3972_v49, %v7835_v36  ;;  %v4065_v17 = vmul.f32 0.27406862, %v4044_v37 }
 0x1aa   : > { %v4290_v30 = vadd.f32 %v4243_v45, %v4185_v32  ;;  %v3951_v54 = vmul.f32 0.45186275, %v3882_v8  ;;  %v3884_v41 = vld [vmem:[#allocation4 + $0x90] sm:$0xff]  ;;  %v2564_v48 = vadd.f32 %v6213_v13, %v7736_v27  ;;  %v3883_v5 = vld [vmem:[#allocation4 + $0x88] sm:$0x3]  ;;  %v3974_v43 = vadd.f32 %v3950_v63, %v7795_v53 }
 0x1ab   : > { %v3952_v34 = vmul.f32 0.45186275, %v3928_v39  ;;  %v4046_v38 = vadd.f32 %v4022_v16, %v3973_v7  ;;  %v4066_v44 = vmul.f32 0.27406862, %v4045_v3  ;;  %v4085_v28 = vmul.f32 0.45186275, %v4045_v3 }
 0x1ac   : > { %v7840_v59 = vpop.f32.mrb[80].mxu0  ;;  %v5396_v25 = vpack.c.bf16 %v4290_v30, %v4289_v11  ;;  %v7845_v55 = vmul.f32 0.27406862, %v3884_v41  ;;  %v3885_v40 = vld [vmem:[#allocation4 + $0x98] sm:$0xff]  ;;  %2581 = vst [vmem:[#allocation4 + $0xb1] sm:$0xff] %v2564_v48  ;;  %v4139_v9 = vrot.slane %v4084_v15, 1  ;;  %v7847_v60 = vadd.f32 %v5697_v29, %v5696_v10 }
 0x1ad   : > { %v7842_v42 = vpop.f32.mrb[81].mxu0  ;;  %v4086_v21 = vmul.f32 0.45186275, %v4046_v38  ;;  %v4199_v62 = vmul.f32 0.27406862, %v4046_v38  ;;  %v4140_v52 = vrot.slane %v4085_v28, 1  ;;  %v3975_v46 = vadd.f32 %v3951_v54, %v7807_v19 }
 0x1ae   : > { %v7849_v1 = vpop.f32.mrb[82].mxu0  ;;  %5464 = vst [vmem:[%s7789_s19 + $0x10] sm:$0xff] %v5396_v25   ;;  %v4245_v6 = vrot.slane %v4066_v44, 2  ;;  %v3953_v22 = vmul.f32 0.45186275, %v3884_v41  ;;  %v4047_v47 = vadd.f32 %v3974_v43, %v7845_v55  ;;  %v4244_v24 = vrot.slane %v4065_v17, 2 }
 0x1af   : > { %v7853_v14 = vpop.f32.mrb[83].mxu0  ;;  %v3904_v53 = vmul.f32 0.27406862, %v3880_v26  ;;  %v4142_v57 = vrot.slane %v4086_v21, 1  ;;  %v4247_v13 = vrot.slane %v4199_v62, 2  ;;  %v4141_v10 = vsel %vm1160_vm9, %v4139_v9, %v4140_v52  ;;  %v7860_v8 = vld [vmem:[#allocation4 + $0xa8] sm:$0xff] }
 0x1b0   : > { %v7855_v0 = vmul.f32 0.27406862, %v3885_v40  ;;  %v3907_v23 = vmul.f32 0.27406862, %v3883_v5  ;;  %v4001_v29 = vld [vmem:[#allocation4 + $0xa0] sm:$0x3]  ;;  %v4186_v37 = vadd.f32 %v4141_v10, %v4065_v17  ;;  %v4246_v49 = vsel %vm4228_vm10, %v4244_v24, %v4245_v6 }
 0x1b1   : > { %v3976_v51 = vadd.f32 %v3952_v34, %v3904_v53  ;;  %v4143_v56 = vsel %vm1160_vm9, %v4140_v52, %v4142_v57  ;;  %v3977_v35 = vadd.f32 %v3953_v22, %v7821_v4  ;;  %v4087_v61 = vmul.f32 0.45186275, %v4047_v47  ;;  %v3931_v58 = vld [vmem:[#allocation4 + $0xa0] sm:$0x3] }
 0x1b2   : > { %v4187_v2 = vadd.f32 %v4143_v56, %v4066_v44  ;;  %v4248_v32 = vsel %vm4228_vm10, %v4245_v6, %v4247_v13  ;;  %v4291_v11 = vadd.f32 %v4246_v49, %v4186_v37  ;;  %v4025_v63 = vmul.f32 0.27406862, %v4001_v29 }
 0x1b3   : > { %v4048_v19 = vadd.f32 %v3975_v46, %v7855_v0  ;;  %v7868_v39 = vld [vmem:[#allocation4 + $0xb0] sm:$0xff]  ;;  %v4067_v16 = vmul.f32 0.27406862, %v4047_v47  ;;  %v3954_v3 = vmul.f32 0.45186275, %v3885_v40  ;;  %v4144_v48 = vrot.slane %v4087_v61, 1 }
 0x1b4   : > { %v7864_v7 = vpop.f32.mrb[84].mxu0  ;;  %v4292_v15 = vadd.f32 %v4248_v32, %v4187_v2  ;;  %v7871_v26 = vmul.f32 0.27406862, %v7860_v8  ;;  %v3955_v4 = vmul.f32 0.45186275, %v3931_v58  ;;  %v4049_v30 = vadd.f32 %v4025_v63, %v3976_v51 }
 0x1b5   : > { %v5741_v45 = vpop.f32.mrb[85].mxu0  ;;  %v4068_v17 = vmul.f32 0.27406862, %v4048_v19  ;;  %v4088_v54 = vmul.f32 0.45186275, %v4048_v19  ;;  %v4249_v28 = vrot.slane %v4067_v16, 2  ;;  %v3978_v40 = vadd.f32 %v3954_v3, %v7835_v36 }
 0x1b6   : > { %v5401_v41 = vpack.c.bf16 %v4292_v15, %v4291_v11  ;;  %v4050_v5 = vadd.f32 %v3977_v35, %v7871_v26  ;;  %v7875_v34 = vmul.f32 0.27406862, %v7868_v39  ;;  %v4089_v38 = vmul.f32 0.45186275, %v4049_v30  ;;  %v4004_v21 = vld [vmem:[#allocation4 + $0xb8] sm:$0x3] }
 0x1b7   : > { %v4145_v44 = vrot.slane %v4088_v54, 1  ;;  %v4200_v25 = vmul.f32 0.27406862, %v4049_v30  ;;  %v4250_v43 = vrot.slane %v4068_v17, 2  ;;  %v3979_v62 = vadd.f32 %v3955_v4, %v3907_v23  ;;  %v5743_v47 = vpop.f32.mrb[86].mxu0 }
 0x1b8   : > { %5465 = vst [vmem:[%s7789_s19 + $0x18] sm:$0xff] %v5401_v41   ;;  %v4090_v9 = vmul.f32 0.45186275, %v4050_v5  ;;  %v4147_v6 = vrot.slane %v4089_v38, 1  ;;  %v4069_v13 = vmul.f32 0.27406862, %v4050_v5  ;;  %v4051_v36 = vadd.f32 %v3978_v40, %v7875_v34 }
 0x1b9   : > { %v4146_v52 = vsel %vm1160_vm9, %v4144_v48, %v4145_v44  ;;  %v4252_v22 = vrot.slane %v4200_v25, 2  ;;  %v4251_v57 = vsel %vm4228_vm10, %v4249_v28, %v4250_v43  ;;  %v5744_v10 = vpop.f32.mrb[87].mxu0  ;;  %v4028_v51 = vmul.f32 0.27406862, %v4004_v21 }
 0x1ba   : > { %v4188_v53 = vadd.f32 %v4146_v52, %v4067_v16  ;;  %v4149_v24 = vrot.slane %v4090_v9, 1  ;;  %v4148_v29 = vsel %vm1160_vm9, %v4145_v44, %v4147_v6  ;;  %v6200_v2 = vadd.f32 %v7847_v60, %v7717_v18 }
 0x1bb   : > { %v4253_v46 = vsel %vm4228_vm10, %v4250_v43, %v4252_v22  ;;  %v4189_v23 = vadd.f32 %v4148_v29, %v4068_v17  ;;  %v5701_v49 = vadd.f32 %v7830_v33, %v7826_v12  ;;  %v4052_v61 = vadd.f32 %v4028_v51, %v3979_v62 }
 0x1bc   : > { %v5746_v56 = vpop.f32.mrb[88].mxu0  ;;  %v4293_v37 = vadd.f32 %v4251_v57, %v4188_v53  ;;  %v4070_v58 = vmul.f32 0.27406862, %v4051_v36  ;;  %v4091_v32 = vmul.f32 0.45186275, %v4051_v36  ;;  %v7890_v11 = vadd.f32 %v7842_v42, %v7840_v59 }
 0x1bd   : > { %v5747_v35 = vpop.f32.mrb[89].mxu0  ;;  %v4294_v19 = vadd.f32 %v4253_v46, %v4189_v23  ;;  %v6201_v15 = vadd.f32 %v6200_v2, %v7751_v50  ;;  %v6208_v16 = vadd.f32 %v5701_v49, %v7724_v20  ;;  %v7896_v18 = vadd.f32 %v7853_v14, %v7849_v1  ;;  %v3934_v53 = vld [vmem:[#allocation4 + $0xb8] sm:$0x3] }
 0x1be   : > { %v5749_v63 = vpop.f32.mrb[90].mxu0  ;;  %v4092_v33 = vmul.f32 0.45186275, %v4052_v61  ;;  %v4150_v60 = vrot.slane %v4091_v32, 1  ;;  %v4201_v3 = vmul.f32 0.27406862, %v4052_v61  ;;  %v7901_v17 = vadd.f32 %v5741_v45, %v7864_v7 }
 0x1bf   : > { %v5750_v12 = vpop.f32.mrb[91].mxu0  ;;  %v4255_v4 = vrot.slane %v4070_v58, 2  ;;  %v5406_v30 = vpack.c.bf16 %v4294_v19, %v4293_v37  ;;  %v2565_v59 = vadd.f32 %v6201_v15, %v7736_v27  ;;  %v6209_v42 = vadd.f32 %v6208_v16, %v7756_v31 }
 0x1c0   : > { %v4254_v50 = vrot.slane %v4069_v13, 2  ;;  %v4151_v20 = vsel %vm1160_vm9, %v4149_v24, %v4150_v60  ;;  %v4152_v54 = vrot.slane %v4092_v33, 1  ;;  %v4257_v41 = vrot.slane %v4201_v3, 2 }
 0x1c1   : > { %5466 = vst [vmem:[%s7789_s19 + $0x20] sm:$0xff] %v5406_v30   ;;  %v4190_v1 = vadd.f32 %v4151_v20, %v4069_v13  ;;  %2582 = vst [vmem:[#allocation4 + $0xc1] sm:$0xff] %v2565_v59  ;;  %v2566_v14 = vadd.f32 %v6209_v42, %v7736_v27  ;;  %v7906_v48 = vadd.f32 %v5744_v10, %v5743_v47  ;;  %v3956_v47 = vmul.f32 0.45186275, %v7860_v8  ;;  %v3886_v10 = vld [vmem:[#allocation4 + $0xa0] sm:$0x3] }
 0x1c2   : > { %v7908_v5 = vadd.f32 %v5747_v35, %v5746_v56  ;;  %v4153_v31 = vsel %vm1160_vm9, %v4150_v60, %v4152_v54  ;;  %v4256_v7 = vsel %vm4228_vm10, %v4254_v50, %v4255_v4  ;;  %v7912_v45 = vadd.f32 %v5750_v12, %v5749_v63 }
 0x1c3   : > { %v4191_v28 = vadd.f32 %v4153_v31, %v4070_v58  ;;  %v4295_v40 = vadd.f32 %v4256_v7, %v4190_v1  ;;  %2583 = vst [vmem:[#allocation4 + $0xc9] sm:$0xff] %v2566_v14  ;;  %v4258_v52 = vsel %vm4228_vm10, %v4255_v4, %v4257_v41  ;;  %v3957_v29 = vmul.f32 0.45186275, %v7868_v39 }
 0x1c4   : > { %v5752_v38 = vpop.f32.mrb[92].mxu0  ;;  %v3958_v51 = vmul.f32 0.45186275, %v3934_v53  ;;  %v3980_v56 = vadd.f32 %v3956_v47, %v7845_v55  ;;  %v3910_v49 = vmul.f32 0.27406862, %v3886_v10 }
 0x1c5   : > { %v5894_v44 = vpop.f32.mrb[64].mxu1  ;;  %v5753_v25 = vpop.f32.mrb[93].mxu0  ;;  %v4296_v57 = vadd.f32 %v4258_v52, %v4191_v28  ;;  %v3981_v32 = vadd.f32 %v3957_v29, %v7855_v0 }
 0x1c6   : > { %v5895_v43 = vpop.f32.mrb[65].mxu1  ;;  %v7914_v9 = vadd.f32 %v5753_v25, %v5752_v38  ;;  %v5755_v27 = vpop.f32.mrb[94].mxu0  ;;  %v3982_v15 = vadd.f32 %v3958_v51, %v3910_v49 }
 0x1c7   : > { %v7916_v21 = vadd.f32 %v5895_v43, %v5894_v44  ;;  %v5897_v62 = vpop.f32.mrb[66].mxu1  ;;  %v5756_v6 = vpop.f32.mrb[95].mxu0  ;;  %v5411_v46 = vpack.c.bf16 %v4296_v57, %v4295_v40 }
 0x1c8   : > { %v5898_v22 = vpop.f32.mrb[67].mxu1  ;;  %v7920_v13 = vadd.f32 %v5756_v6, %v5755_v27  ;;  %v3935_v36 = vld [vmem:[#allocation4 + $0xc0] sm:$0xff] }
 0x1c9   : > { %v7922_v24 = vadd.f32 %v5898_v22, %v5897_v62  ;;  %5467 = vst [vmem:[%s7789_s19 + $0x28] sm:$0xff] %v5411_v46   ;;  %v3959_v23 = vmul.f32 0.45186275, %v3935_v36  ;;  %v7927_v37 = vmul.f32 0.27406862, %v3935_v36 }
 0x1ca   : > { %v3936_v35 = vld [vmem:[#allocation4 + $0xc8] sm:$0xff]  ;;  %v4007_v61 = vld [vmem:[#allocation4 + $0xd0] sm:$0x3] }
 0x1cb   : > { %v4053_v63 = vadd.f32 %v7927_v37, %v3980_v56  ;;  %v3960_v39 = vmul.f32 0.45186275, %v3936_v35  ;;  %v7931_v19 = vmul.f32 0.27406862, %v3936_v35  ;;  %v4031_v16 = vmul.f32 0.27406862, %v4007_v61 }
 0x1cc   : > { %v5758_v2 = vpop.f32.mrb[96].mxu0  ;;  %v7936_v60 = vadd.f32 %v3959_v23, %v7871_v26 }
 0x1cd   : > { %v5900_v8 = vpop.f32.mrb[68].mxu1  ;;  %v5759_v58 = vpop.f32.mrb[97].mxu0  ;;  %v4093_v3 = vmul.f32 0.45186275, %v4053_v63  ;;  %v4054_v4 = vadd.f32 %v7931_v19, %v3981_v32  ;;  %v4055_v42 = vadd.f32 %v4031_v16, %v3982_v15  ;;  %v7944_v54 = vadd.f32 %v3960_v39, %v7875_v34 }
 0x1ce   : > { %v7933_v55 = vadd.f32 %v5759_v58, %v5758_v2  ;;  %v5761_v12 = vpop.f32.mrb[98].mxu0  ;;  %v5901_v33 = vpop.f32.mrb[69].mxu1  ;;  %v4071_v41 = vmul.f32 0.27406862, %v4053_v63 }
 0x1cf   : > { %v5762_v30 = vpop.f32.mrb[99].mxu0  ;;  %v7939_v59 = vadd.f32 %v5901_v33, %v5900_v8  ;;  %v5903_v0 = vpop.f32.mrb[70].mxu1  ;;  %v4072_v1 = vmul.f32 0.27406862, %v4054_v4  ;;  %v4094_v14 = vmul.f32 0.45186275, %v4054_v4 }
 0x1d0   : > { %v7941_v50 = vadd.f32 %v5762_v30, %v5761_v12  ;;  %v5904_v20 = vpop.f32.mrb[71].mxu1  ;;  %v4095_v38 = vmul.f32 0.45186275, %v4055_v42  ;;  %v4202_v26 = vmul.f32 0.27406862, %v4055_v42  ;;  %v4154_v31 = vrot.slane %v4093_v3, 1 }
 0x1d1   : > { %v7946_v44 = vadd.f32 %v5904_v20, %v5903_v0  ;;  %v4155_v7 = vrot.slane %v4094_v14, 1  ;;  %v4260_v25 = vrot.slane %v4072_v1, 2  ;;  %v4259_v6 = vrot.slane %v4071_v41, 2 }
 0x1d2   : > { %v4157_v40 = vrot.slane %v4095_v38, 1  ;;  %v4262_v27 = vrot.slane %v4202_v26, 2 }
 0x1d3   : > { %v4156_v34 = vsel %vm1160_vm9, %v4154_v31, %v4155_v7  ;;  %v4261_v56 = vsel %vm4228_vm10, %v4259_v6, %v4260_v25 }
 0x1d4   : > { %v5764_v43 = vpop.f32.mrb[100].mxu0  ;;  %v4158_v10 = vsel %vm1160_vm9, %v4155_v7, %v4157_v40  ;;  %v4192_v29 = vadd.f32 %v4156_v34, %v4071_v41  ;;  %v4263_v8 = vsel %vm4228_vm10, %v4260_v25, %v4262_v27 }
 0x1d5   : > { %v5906_v28 = vpop.f32.mrb[72].mxu1  ;;  %v5765_v62 = vpop.f32.mrb[101].mxu0  ;;  %v4193_v36 = vadd.f32 %v4158_v10, %v4072_v1 }
 0x1d6   : > { %v5907_v52 = vpop.f32.mrb[73].mxu1  ;;  %v7949_v22 = vadd.f32 %v5765_v62, %v5764_v43  ;;  %v5767_v47 = vpop.f32.mrb[102].mxu0  ;;  %v4297_v49 = vadd.f32 %v4261_v56, %v4192_v29 }
 0x1d7   : > { %v7951_v53 = vadd.f32 %v5907_v52, %v5906_v28  ;;  %v5909_v57 = vpop.f32.mrb[74].mxu1  ;;  %v5768_v46 = vpop.f32.mrb[103].mxu0  ;;  %v4298_v35 = vadd.f32 %v4263_v8, %v4193_v36 }
 0x1d8   : > { %v5910_v51 = vpop.f32.mrb[75].mxu1  ;;  %v7955_v23 = vadd.f32 %v5768_v46, %v5767_v47 }
 0x1d9   : > { %v7957_v2 = vadd.f32 %v5910_v51, %v5909_v57  ;;  %v5416_v61 = vpack.c.bf16 %v4298_v35, %v4297_v49 }
 0x1db   : > { %5468 = vst [vmem:[%s7789_s19 + $0x30] sm:$0xff] %v5416_v61  }
 0x1dc   : > { %v5770_v58 = vpop.f32.mrb[104].mxu0 }
 0x1dd   : > { %v5912_v32 = vpop.f32.mrb[76].mxu1  ;;  %v5771_v63 = vpop.f32.mrb[105].mxu0 }
 0x1de   : > { %v5913_v39 = vpop.f32.mrb[77].mxu1  ;;  %v7961_v15 = vadd.f32 %v5771_v63, %v5770_v58  ;;  %v5773_v16 = vpop.f32.mrb[106].mxu0 }
 0x1df   : > { %v7963_v12 = vadd.f32 %v5913_v39, %v5912_v32  ;;  %v5915_v33 = vpop.f32.mrb[78].mxu1  ;;  %v5774_v3 = vpop.f32.mrb[107].mxu0 }
 0x1e0   : > { %v5916_v4 = vpop.f32.mrb[79].mxu1  ;;  %v7965_v30 = vadd.f32 %v5774_v3, %v5773_v16 }
 0x1e1   : > { %v7967_v0 = vadd.f32 %v5916_v4, %v5915_v33 }
 0x1e4   : > { %v5776_v42 = vpop.f32.mrb[108].mxu0 }
 0x1e5   : > { %v5918_v20 = vpop.f32.mrb[80].mxu1  ;;  %v5777_v41 = vpop.f32.mrb[109].mxu0 }
 0x1e6   : > { %v5919_v1 = vpop.f32.mrb[81].mxu1  ;;  %v7969_v14 = vadd.f32 %v5777_v41, %v5776_v42  ;;  %v5779_v38 = vpop.f32.mrb[110].mxu0 }
 0x1e7   : > { %v7971_v26 = vadd.f32 %v5919_v1, %v5918_v20  ;;  %v5921_v31 = vpop.f32.mrb[82].mxu1  ;;  %v5780_v7 = vpop.f32.mrb[111].mxu0 }
 0x1e8   : > { %v5922_v25 = vpop.f32.mrb[83].mxu1  ;;  %v7973_v43 = vadd.f32 %v5780_v7, %v5779_v38 }
 0x1e9   : > { %v7975_v28 = vadd.f32 %v5922_v25, %v5921_v31 }
 0x1ec   : > { %v5814_v40 = vpop.f32.mrb[112].mxu0 }
 0x1ed   : > { %v5924_v27 = vpop.f32.mrb[84].mxu1  ;;  %v5815_v62 = vpop.f32.mrb[113].mxu0 }
 0x1ee   : > { %v5925_v52 = vpop.f32.mrb[85].mxu1  ;;  %v5816_v6 = vadd.f32 %v5815_v62, %v5814_v40  ;;  %v5817_v34 = vpop.f32.mrb[114].mxu0 }
 0x1ef   : > { %v7977_v47 = vadd.f32 %v5925_v52, %v5924_v27  ;;  %v5927_v57 = vpop.f32.mrb[86].mxu1  ;;  %v5818_v10 = vpop.f32.mrb[115].mxu0 }
 0x1f0   : > { %v5928_v29 = vpop.f32.mrb[87].mxu1  ;;  %v6217_v46 = vadd.f32 %v5816_v6, %v7890_v11  ;;  %v5819_v51 = vadd.f32 %v5818_v10, %v5817_v34 }
 0x1f1   : > { %v7980_v36 = vadd.f32 %v5928_v29, %v5927_v57 }
 0x1f2   : > { %v6223_v56 = vadd.f32 %v5819_v51, %v7896_v18  ;;  %v6218_v8 = vadd.f32 %v6217_v46, %v7916_v21 }
 0x1f4   : > { %v5820_v49 = vpop.f32.mrb[116].mxu0  ;;  %v6224_v61 = vadd.f32 %v6223_v56, %v7922_v24 }
 0x1f5   : > { %v5930_v35 = vpop.f32.mrb[88].mxu1  ;;  %v5821_v58 = vpop.f32.mrb[117].mxu0 }
 0x1f6   : > { %v5931_v32 = vpop.f32.mrb[89].mxu1  ;;  %v5822_v63 = vadd.f32 %v5821_v58, %v5820_v49  ;;  %v5823_v39 = vpop.f32.mrb[118].mxu0 }
 0x1f7   : > { %v7985_v16 = vadd.f32 %v5931_v32, %v5930_v35  ;;  %v5933_v33 = vpop.f32.mrb[90].mxu1  ;;  %v5824_v3 = vpop.f32.mrb[119].mxu0 }
 0x1f8   : > { %v5934_v11 = vpop.f32.mrb[91].mxu1  ;;  %v6214_v4 = vadd.f32 %v5822_v63, %v7901_v17  ;;  %v5825_v42 = vadd.f32 %v5824_v3, %v5823_v39 }
 0x1f9   : > { %v7988_v20 = vadd.f32 %v5934_v11, %v5933_v33 }
 0x1fa   : > { %v6220_v18 = vadd.f32 %v5825_v42, %v7906_v48  ;;  %v6215_v21 = vadd.f32 %v6214_v4, %v7939_v59 }
 0x1fc   : > { %v5826_v41 = vpop.f32.mrb[120].mxu0  ;;  %v6221_v1 = vadd.f32 %v6220_v18, %v7946_v44 }
 0x1fd   : > { %v5936_v24 = vpop.f32.mrb[92].mxu1  ;;  %v5827_v38 = vpop.f32.mrb[121].mxu0 }
 0x1fe   : > { %v5937_v31 = vpop.f32.mrb[93].mxu1  ;;  %v5828_v7 = vadd.f32 %v5827_v38, %v5826_v41  ;;  %v5829_v25 = vpop.f32.mrb[122].mxu0 }
 0x1ff   : > { %v7993_v40 = vadd.f32 %v5937_v31, %v5936_v24  ;;  %v5939_v27 = vpop.f32.mrb[94].mxu1  ;;  %v5830_v62 = vpop.f32.mrb[123].mxu0 }
 0x200   : > { %v5940_v17 = vpop.f32.mrb[95].mxu1  ;;  %v6229_v52 = vadd.f32 %v5828_v7, %v7908_v5  ;;  %v5831_v6 = vadd.f32 %v5830_v62, %v5829_v25  ;;  %v8004_v5 = vld [vmem:[%s8229_s4] ss:$0 sm:$0xff] }
 0x201   : > { %v7996_v34 = vadd.f32 %v5940_v17, %v5939_v27 }
 0x202   : > { %v6235_v48 = vadd.f32 %v5831_v6, %v7912_v45  ;;  %v6230_v59 = vadd.f32 %v6229_v52, %v7951_v53  ;;  %v4384_v52 = vld [vmem:[#allocation4 + $0xd0] sm:$0x3] }
 0x204   : > { %v5832_v57 = vpop.f32.mrb[124].mxu0  ;;  %v6236_v10 = vadd.f32 %v6235_v48, %v7957_v2 }
 0x205   : > { %v6136_v44 = vpop.f32.mrb[48].mxu1  ;;  %v5833_v29 = vpop.f32.mrb[125].mxu0 }
 0x206   : > { %v6216_v46 = vadd.f32 %v6215_v21, %v6136_v44  ;;  %v3754_v51 = vpop.f32.mrb[49].mxu1  ;;  %v5834_v56 = vadd.f32 %v5833_v29, %v5832_v57  ;;  %v5835_v49 = vpop.f32.mrb[126].mxu0 }
 0x207   : > { %v6219_v35 = vadd.f32 %v6218_v8, %v3754_v51  ;;  %v6137_v58 = vpop.f32.mrb[50].mxu1  ;;  %v5836_v32 = vpop.f32.mrb[127].mxu0 }
 0x208   : > { %v3835_v45 = vadd.f32 %v8004_v5, %v6216_v46  ;;  %v6222_v53 = vadd.f32 %v6221_v1, %v6137_v58  ;;  %v3757_v63 = vpop.f32.mrb[51].mxu1  ;;  %v6226_v39 = vadd.f32 %v5834_v56, %v7914_v9  ;;  %v5837_v2 = vadd.f32 %v5836_v32, %v5835_v49 }
 0x209   : > { %v3833_v33 = vadd.f32 %v8004_v5, %v6219_v35  ;;  %v6225_v3 = vadd.f32 %v6224_v61, %v3757_v63  ;;  %v3889_v61 = vld [vmem:[#allocation4 + $0xb8] sm:$0x3] }
 0x20a   : > { %3852 = vst [vmem:[#allocation4 + $0xf1] sm:$0xff] %v3835_v45  ;;  %v3836_v8 = vadd.f32 %v8004_v5, %v6222_v53  ;;  %v6232_v11 = vadd.f32 %v5837_v2, %v7920_v13  ;;  %v6227_v42 = vadd.f32 %v6226_v39, %v7963_v12  ;;  %v3937_v12 = vld [vmem:[#allocation4 + $0xd0] sm:$0x3]  ;;  %v3913_v29 = vmul.f32 0.27406862, %v3889_v61 }
 0x20b   : > { %3850 = vst [vmem:[#allocation4 + $0xd9] sm:$0xff] %v3833_v33  ;;  %v3834_v4 = vadd.f32 %v8004_v5, %v6225_v3  ;;  %v3961_v32 = vmul.f32 0.45186275, %v3937_v12 }
 0x20c   : > { %3853 = vst [vmem:[#allocation4 + $0xf9] sm:$0xff] %v3836_v8  ;;  %v5838_v18 = vpop.f32.mrb[128].mxu0  ;;  %v6233_v9 = vadd.f32 %v6232_v11, %v7967_v0 }
 0x20d   : > { %3851 = vst [vmem:[#allocation4 + $0xe1] sm:$0xff] %v3834_v4  ;;  %v6140_v21 = vpop.f32.mrb[52].mxu1  ;;  %v5839_v41 = vpop.f32.mrb[129].mxu0 }
 0x20e   : > { %v6228_v24 = vadd.f32 %v6227_v42, %v6140_v21  ;;  %v3770_v1 = vpop.f32.mrb[53].mxu1  ;;  %v5840_v38 = vadd.f32 %v5839_v41, %v5838_v18  ;;  %v5841_v31 = vpop.f32.mrb[130].mxu0 }
 0x20f   : > { %v6231_v7 = vadd.f32 %v6230_v59, %v3770_v1  ;;  %v6141_v25 = vpop.f32.mrb[54].mxu1  ;;  %v5842_v13 = vpop.f32.mrb[131].mxu0 }
 0x210   : > { %v3839_v27 = vadd.f32 %v8004_v5, %v6228_v24  ;;  %v6234_v62 = vadd.f32 %v6233_v9, %v6141_v25  ;;  %v3773_v17 = vpop.f32.mrb[55].mxu1  ;;  %v6241_v48 = vadd.f32 %v5840_v38, %v7933_v55  ;;  %v5843_v57 = vadd.f32 %v5842_v13, %v5841_v31 }
 0x211   : > { %v4388_v6 = vld [vmem:[#allocation4 + $0xf0] sm:$0xff]  ;;  %v3837_v0 = vadd.f32 %v8004_v5, %v6231_v7  ;;  %v6237_v44 = vadd.f32 %v6236_v10, %v3773_v17  ;;  %v4408_v55 = vmul.f32 0.27406862, %v4384_v52 }
 0x212   : > { %v4008_v46 = vld [vmem:[#allocation4 + $0xd8] sm:$0xff]  ;;  %3856 = vst [vmem:[#allocation4 + $0x121] sm:$0xff] %v3839_v27  ;;  %v3840_v59 = vadd.f32 %v8004_v5, %v6234_v62  ;;  %v6247_v35 = vadd.f32 %v5843_v57, %v7941_v50  ;;  %v8020_v45 = vmul.f32 0.27406862, %v4388_v6  ;;  %v8023_v10 = vadd.f32 %v6241_v48, %v7971_v26 }
 0x213   : > { %v4032_v51 = vmul.f32 0.27406862, %v4008_v46  ;;  %v4454_v56 = vmul.f32 0.45186275, %v4008_v46  ;;  %v4389_v49 = vld [vmem:[#allocation4 + $0xf8] sm:$0xff]  ;;  %3854 = vst [vmem:[#allocation4 + $0x109] sm:$0xff] %v3837_v0  ;;  %v3838_v58 = vadd.f32 %v8004_v5, %v6237_v44 }
 0x214   : > { %3857 = vst [vmem:[#allocation4 + $0x129] sm:$0xff] %v3840_v59  ;;  %v4457_v53 = vmul.f32 0.45186275, %v4388_v6  ;;  %v4390_v2 = vld [vmem:[#allocation4 + $0x100] sm:$0x3]  ;;  %v8027_v50 = vpop.f32.mrb[132].mxu0  ;;  %v8032_v4 = vadd.f32 %v6247_v35, %v7975_v28 }
 0x215   : > { %v4056_v63 = vadd.f32 %v4032_v51, %v7936_v60  ;;  %v4478_v39 = vadd.f32 %v4454_v56, %v7927_v37  ;;  %v4009_v33 = vld [vmem:[#allocation4 + $0xe0] sm:$0xff]  ;;  %3855 = vst [vmem:[#allocation4 + $0x111] sm:$0xff] %v3838_v58  ;;  %v8029_v3 = vmul.f32 0.27406862, %v4389_v49  ;;  %v4010_v18 = vld [vmem:[#allocation4 + $0xe8] sm:$0x3]  ;;  %v3985_v60 = vadd.f32 %v3961_v32, %v3913_v29 }
 0x216   : > { %v4435_v8 = vld [vmem:[#allocation4 + $0x100] sm:$0x3]  ;;  %v8034_v21 = vmul.f32 0.27406862, %v4390_v2  ;;  %v8036_v9 = vmul.f32 0.27406862, %v4009_v33  ;;  %v4481_v62 = vadd.f32 %v4457_v53, %v4032_v51 }
 0x217   : > { %v4505_v11 = vld [vmem:[#allocation4 + $0x100] sm:$0x3]  ;;  %v4073_v42 = vmul.f32 0.27406862, %v4056_v63  ;;  %v4096_v26 = vmul.f32 0.45186275, %v4056_v63  ;;  %v4551_v41 = vadd.f32 %v4478_v39, %v8020_v45 }
 0x218   : > { %v4034_v37 = vmul.f32 0.27406862, %v4010_v18  ;;  %v8039_v24 = vmul.f32 0.45186275, %v4389_v49  ;;  %v8041_v1 = vmul.f32 0.45186275, %v4435_v8  ;;  %v4057_v28 = vadd.f32 %v8036_v9, %v7944_v54 }
 0x219   : > { %v4529_v61 = vmul.f32 0.27406862, %v4505_v11  ;;  %v4387_v31 = vld [vmem:[#allocation4 + $0xe8] sm:$0x3]  ;;  %v4455_v25 = vmul.f32 0.45186275, %v4009_v33 }
 0x21a   : > { %v4058_v38 = vadd.f32 %v4034_v37, %v3985_v60  ;;  %v4432_v7 = vld [vmem:[#allocation4 + $0xe8] sm:$0x3]  ;;  %v4159_v13 = vrot.slane %v4096_v26, 1  ;;  %v4264_v27 = vrot.slane %v4073_v42, 2  ;;  %v4074_v52 = vmul.f32 0.27406862, %v4057_v28 }
 0x21b   : > { %v4456_v17 = vmul.f32 0.45186275, %v4432_v7  ;;  %v4391_v12 = vld [vmem:[#allocation4 + $0x108] sm:$0xff]  ;;  %v4097_v6 = vmul.f32 0.45186275, %v4057_v28  ;;  %v4479_v57 = vadd.f32 %v4455_v25, %v7931_v19  ;;  %v8047_v35 = vpop.f32.mrb[133].mxu0 }
 0x21c   : > { %v4098_v48 = vmul.f32 0.45186275, %v4058_v38  ;;  %v4575_v0 = vmul.f32 0.27406862, %v4551_v41  ;;  %v4591_v44 = vmul.f32 0.45186275, %v4551_v41 }
 0x21d   : > { %v4203_v29 = vmul.f32 0.27406862, %v4058_v38  ;;  %v4480_v46 = vadd.f32 %v4456_v17, %v4408_v55  ;;  %v4160_v59 = vrot.slane %v4097_v6, 1  ;;  %v4265_v56 = vrot.slane %v4074_v52, 2  ;;  %v8053_v63 = vpop.f32.mrb[134].mxu0  ;;  %v8058_v18 = vld [vmem:[#allocation4 + $0x120] sm:$0xff] }
 0x21e   : > { %v4162_v54 = vrot.slane %v4098_v48, 1  ;;  %v4552_v49 = vadd.f32 %v4479_v57, %v8029_v3  ;;  %v8049_v51 = vmul.f32 0.27406862, %v4387_v31  ;;  %v8051_v53 = vmul.f32 0.27406862, %v4391_v12  ;;  %v8061_v28 = vpop.f32.mrb[135].mxu0 }
 0x21f   : > { %v4267_v58 = vrot.slane %v4203_v29, 2  ;;  %v4553_v32 = vadd.f32 %v4529_v61, %v4480_v46  ;;  %v4161_v19 = vsel %vm1160_vm9, %v4159_v13, %v4160_v59  ;;  %v4266_v55 = vsel %vm4228_vm10, %v4264_v27, %v4265_v56  ;;  %v8063_v13 = vpop.f32.mrb[56].mxu1  ;;  %v8066_v48 = vpop.f32.mrb[136].mxu0 }
 0x220   : > { %v4163_v39 = vsel %vm1160_vm9, %v4160_v59, %v4162_v54  ;;  %v4576_v2 = vmul.f32 0.27406862, %v4552_v49  ;;  %v4639_v33 = vrot.slane %v4591_v44, 1  ;;  %v4194_v8 = vadd.f32 %v4161_v19, %v4073_v42  ;;  %v3786_v6 = vpop.f32.mrb[57].mxu1  ;;  %v4392_v59 = vld [vmem:[#allocation4 + $0x110] sm:$0xff] }
 0x221   : > { %v4195_v11 = vadd.f32 %v4163_v39, %v4074_v52  ;;  %v4592_v26 = vmul.f32 0.45186275, %v4552_v49  ;;  %v4268_v60 = vsel %vm4228_vm10, %v4265_v56, %v4267_v58  ;;  %v4593_v37 = vmul.f32 0.45186275, %v4553_v32  ;;  %v8075_v54 = vpop.f32.mrb[58].mxu1  ;;  %v8077_v56 = vpop.f32.mrb[137].mxu0 }
 0x222   : > { %v4711_v41 = vmul.f32 0.27406862, %v4553_v32  ;;  %v4744_v61 = vrot.slane %v4576_v2, 2  ;;  %v4299_v38 = vadd.f32 %v4266_v55, %v4194_v8  ;;  %v4460_v25 = vmul.f32 0.45186275, %v4391_v12  ;;  %v8073_v12 = vld [vmem:[#allocation4 + $0x128] sm:$0xff] }
 0x223   : > { %v4300_v31 = vadd.f32 %v4268_v60, %v4195_v11  ;;  %v4640_v7 = vrot.slane %v4592_v26, 1  ;;  %v4743_v27 = vrot.slane %v4575_v0, 2  ;;  %v4642_v17 = vrot.slane %v4593_v37, 1  ;;  %v4511_v32 = vld [vmem:[#allocation4 + $0x130] sm:$0x3]  ;;  %v3789_v19 = vpop.f32.mrb[59].mxu1 }
 0x224   : > { %v4746_v42 = vrot.slane %v4711_v41, 2  ;;  %v4554_v52 = vadd.f32 %v4481_v62, %v8051_v53  ;;  %v8070_v29 = vmul.f32 0.27406862, %v8058_v18  ;;  %v4484_v46 = vadd.f32 %v4460_v25, %v8020_v45  ;;  %v8082_v39 = vpop.f32.mrb[138].mxu0  ;;  %v4438_v11 = vld [vmem:[#allocation4 + $0x118] sm:$0x3] }
 0x225   : > { %v5421_v57 = vpack.c.bf16 %v4300_v31, %v4299_v38  ;;  %v4641_v44 = vsel %vm1160_vm9, %v4639_v33, %v4640_v7  ;;  %v4643_v62 = vsel %vm1160_vm9, %v4640_v7, %v4642_v17  ;;  %v4745_v45 = vsel %vm4228_vm10, %v4743_v27, %v4744_v61  ;;  %v8087_v26 = vpop.f32.mrb[139].mxu0  ;;  %v8089_v60 = vpop.f32.mrb[60].mxu1  ;;  %v4508_v38 = vld [vmem:[#allocation4 + $0x118] sm:$0x3] }
 0x226   : > { %8238 = vst [vmem:[#allocation5_spill] sm:$0xff] %v8070_v29  ;;  %v4695_v49 = vadd.f32 %v4641_v44, %v4575_v0  ;;  %v8080_v58 = vmul.f32 0.27406862, %v4554_v52  ;;  %v4696_v55 = vadd.f32 %v4643_v62, %v4576_v2  ;;  %v4557_v33 = vadd.f32 %v4484_v46, %v8070_v29  ;;  %v8095_v31 = vpop.f32.mrb[61].mxu1 }
 0x227   : > { %5469 = vst [vmem:[%s7789_s19 + $0x38] sm:$0xff] %v5421_v57   ;;  %v4594_v8 = vmul.f32 0.45186275, %v4554_v52  ;;  %v4747_v0 = vsel %vm4228_vm10, %v4744_v61, %v4746_v42  ;;  %v8093_v41 = vmul.f32 0.27406862, %v8073_v12  ;;  %v4482_v2 = vadd.f32 %v8039_v24, %v8036_v9  ;;  %v8099_v17 = vpop.f32.mrb[62].mxu1 }
 0x228   : > { %v4799_v37 = vadd.f32 %v4745_v45, %v4695_v49  ;;  %v4800_v7 = vadd.f32 %v4747_v0, %v4696_v55  ;;  %v4579_v25 = vmul.f32 0.27406862, %v4557_v33  ;;  %v4597_v27 = vmul.f32 0.45186275, %v4557_v33  ;;  %v8106_v45 = vpop.f32.mrb[63].mxu1  ;;  %v8108_v9 = vpop.f32.mrb[140].mxu0 }
 0x229   : > { %v4748_v52 = vrot.slane %v8080_v58, 2  ;;  %v4535_v57 = vmul.f32 0.27406862, %v4511_v32  ;;  %v8102_v61 = vmul.f32 0.27406862, %v4392_v59  ;;  %v5846_v42 = vadd.f32 %v8047_v35, %v8027_v50  ;;  %v5857_v32 = vpop.f32.mrb[141].mxu0 }
 0x22a   : > { %v5426_v44 = vpack.c.bf16 %v4800_v7, %v4799_v37  ;;  %v4644_v46 = vrot.slane %v4594_v8, 1  ;;  %v4649_v62 = vrot.slane %v4597_v27, 1  ;;  %v4461_v49 = vmul.f32 0.45186275, %v4392_v59  ;;  %v5859_v8 = vpop.f32.mrb[142].mxu0 }
 0x22b   : > { %v4483_v24 = vadd.f32 %v8041_v1, %v8049_v51  ;;  %v4753_v55 = vrot.slane %v4579_v25, 2  ;;  %v4462_v33 = vmul.f32 0.45186275, %v4438_v11  ;;  %v4532_v0 = vmul.f32 0.27406862, %v4508_v38  ;;  %v5860_v11 = vpop.f32.mrb[143].mxu0 }
 0x22c   : > { %5470 = vst [vmem:[%s7789_s19 + $0x40] sm:$0xff] %v5426_v44   ;;  %v4485_v29 = vadd.f32 %v4461_v49, %v8029_v3  ;;  %v4555_v50 = vadd.f32 %v4482_v2, %v8102_v61  ;;  %v6238_v35 = vadd.f32 %v5846_v42, %v7949_v22  ;;  %v5849_v59 = vadd.f32 %v8061_v28, %v8053_v63 }
 0x22d   : > { %v4486_v37 = vadd.f32 %v4462_v33, %v8034_v21  ;;  %v4556_v7 = vadd.f32 %v4532_v0, %v4483_v24  ;;  %v6243_v1 = vadd.f32 %v8023_v10, %v3786_v6  ;;  %v6249_v51 = vadd.f32 %v8032_v4, %v3789_v19 }
 0x22e   : > { %v4558_v38 = vadd.f32 %v4485_v29, %v8093_v41  ;;  %v4578_v27 = vmul.f32 0.27406862, %v4555_v50  ;;  %v4595_v3 = vmul.f32 0.45186275, %v4555_v50  ;;  %v6244_v2 = vadd.f32 %v5849_v59, %v7955_v23 }
 0x22f   : > { %v4559_v44 = vadd.f32 %v4535_v57, %v4486_v37  ;;  %v4596_v22 = vmul.f32 0.45186275, %v4556_v7  ;;  %v4712_v42 = vmul.f32 0.27406862, %v4556_v7  ;;  %v6239_v63 = vadd.f32 %v6238_v35, %v7977_v47 }
 0x230   : > { %v4580_v28 = vmul.f32 0.27406862, %v4558_v38  ;;  %v4598_v49 = vmul.f32 0.45186275, %v4558_v38  ;;  %v4645_v21 = vrot.slane %v4595_v3, 1  ;;  %v4749_v24 = vrot.slane %v4578_v27, 2 }
 0x231   : > { %v4599_v33 = vmul.f32 0.45186275, %v4559_v44  ;;  %v4647_v10 = vrot.slane %v4596_v22, 1  ;;  %v4713_v6 = vmul.f32 0.27406862, %v4559_v44  ;;  %v4751_v4 = vrot.slane %v4712_v42, 2 }
 0x232   : > { %v4646_v19 = vsel %vm1160_vm9, %v4644_v46, %v4645_v21  ;;  %v4650_v29 = vrot.slane %v4598_v49, 1  ;;  %v4750_v0 = vsel %vm4228_vm10, %v4748_v52, %v4749_v24  ;;  %v4754_v50 = vrot.slane %v4580_v28, 2 }
 0x233   : > { %v4648_v23 = vsel %vm1160_vm9, %v4645_v21, %v4647_v10  ;;  %v4652_v57 = vrot.slane %v4599_v33, 1  ;;  %v4697_v59 = vadd.f32 %v4646_v19, %v8080_v58  ;;  %v4752_v47 = vsel %vm4228_vm10, %v4749_v24, %v4751_v4 }
 0x234   : > { %v4651_v35 = vsel %vm1160_vm9, %v4649_v62, %v4650_v29  ;;  %v4698_v37 = vadd.f32 %v4648_v23, %v4578_v27  ;;  %v4755_v7 = vsel %vm4228_vm10, %v4753_v55, %v4754_v50  ;;  %v4756_v38 = vrot.slane %v4713_v6, 2  ;;  %v4441_v6 = vld [vmem:[#allocation4 + $0x130] sm:$0x3] }
 0x235   : > { %v4653_v3 = vsel %vm1160_vm9, %v4650_v29, %v4652_v57  ;;  %v4699_v46 = vadd.f32 %v4651_v35, %v4579_v25  ;;  %v4801_v44 = vadd.f32 %v4750_v0, %v4697_v59  ;;  %v6240_v52 = vadd.f32 %v6239_v63, %v8063_v13 }
 0x236   : > { %v4700_v22 = vadd.f32 %v4653_v3, %v4580_v28  ;;  %v4757_v42 = vsel %vm4228_vm10, %v4754_v50, %v4756_v38  ;;  %v4802_v49 = vadd.f32 %v4752_v47, %v4698_v37  ;;  %v3841_v58 = vadd.f32 %v8004_v5, %v6243_v1  ;;  %v4526_v37 = vld [vmem:[#allocation4 + $0x1a8] sm:$0x3] }
 0x237   : > { %v4803_v21 = vadd.f32 %v4755_v7, %v4699_v46  ;;  %v3843_v62 = vadd.f32 %v8004_v5, %v6240_v52  ;;  %v6245_v27 = vadd.f32 %v6244_v2, %v7980_v36  ;;  %v3842_v55 = vadd.f32 %v8004_v5, %v6249_v51 }
 0x238   : > { %v4804_v24 = vadd.f32 %v4757_v42, %v4700_v22  ;;  %v5431_v33 = vpack.c.bf16 %v4802_v49, %v4801_v44  ;;  %3858 = vst [vmem:[#allocation4 + $0x139] sm:$0xff] %v3841_v58  ;;  %v5852_v13 = vadd.f32 %v8077_v56, %v8066_v48  ;;  %v5855_v25 = vadd.f32 %v8087_v26, %v8082_v39  ;;  %v4524_v48 = vld [vmem:[#allocation4 + $0x198] sm:$0xff]  ;;  %v4396_v56 = vld [vmem:[#allocation4 + $0x130] sm:$0x3] }
 0x239   : > { %3860 = vst [vmem:[#allocation4 + $0x151] sm:$0xff] %v3843_v62  ;;  %v6246_v1 = vadd.f32 %v6245_v27, %v8075_v54  ;;  %3859 = vst [vmem:[#allocation4 + $0x141] sm:$0xff] %v3842_v55  ;;  %v5858_v63 = vadd.f32 %v5857_v32, %v8108_v9  ;;  %v5861_v28 = vadd.f32 %v5860_v11, %v5859_v8  ;;  %v4463_v36 = vmul.f32 0.45186275, %v8058_v18  ;;  %v6481_v8 = vld [vmem:[#allocation4 + $0x8] sm:$0xff] }
 0x23a   : > { %5471 = vst [vmem:[%s7789_s19 + $0x48] sm:$0xff] %v5431_v33   ;;  %v5436_v51 = vpack.c.bf16 %v4804_v24, %v4803_v21  ;;  %v6253_v2 = vadd.f32 %v5852_v13, %v7961_v15  ;;  %v6259_v10 = vadd.f32 %v5855_v25, %v7965_v30  ;;  %v8155_v15 = vmul.f32 0.27406862, %v4524_v48 }
 0x23b   : > { %v3844_v39 = vadd.f32 %v8004_v5, %v6246_v1  ;;  %v6250_v26 = vadd.f32 %v5858_v63, %v7969_v14  ;;  %v6256_v54 = vadd.f32 %v5861_v28, %v7973_v43  ;;  %v8158_v11 = vmul.f32 0.27406862, %v6481_v8  ;;  %v4393_v43 = vld [vmem:[#allocation4 + $0x118] sm:$0x3] }
 0x23c   : > { %5472 = vst [vmem:[%s7789_s19 + $0x50] sm:$0xff] %v5436_v51   ;;  %v6254_v9 = vadd.f32 %v6253_v2, %v7985_v16  ;;  %v6260_v18 = vadd.f32 %v6259_v10, %v7988_v20  ;;  %v4487_v14 = vadd.f32 %v4463_v36, %v8051_v53  ;;  %v4420_v4 = vmul.f32 0.27406862, %v4396_v56 }
 0x23d   : > { %3861 = vst [vmem:[#allocation4 + $0x159] sm:$0xff] %v3844_v39  ;;  %v6251_v32 = vadd.f32 %v6250_v26, %v7993_v40  ;;  %v6257_v30 = vadd.f32 %v6256_v54, %v7996_v34  ;;  %v4464_v20 = vmul.f32 0.45186275, %v8073_v12  ;;  %v4465_v29 = vmul.f32 0.45186275, %v4441_v6 }
 0x23e   : > { %v6255_v19 = vadd.f32 %v6254_v9, %v8095_v31  ;;  %v6261_v16 = vadd.f32 %v6260_v18, %v8106_v45  ;;  %v4417_v35 = vmul.f32 0.27406862, %v4393_v43  ;;  %v8181_v1 = vmul.f32 0.27406862, %v4526_v37 }
 0x23f   : > { %v4397_v0 = vld [vmem:[#allocation4 + $0x138] sm:$0xff]  ;;  %v6252_v40 = vadd.f32 %v6251_v32, %v8089_v60  ;;  %v6258_v50 = vadd.f32 %v6257_v30, %v8099_v17  ;;  %v8239_v60 = vld [vmem:[#allocation5_spill] sm:$0xff]  ;;  %v4488_v44 = vadd.f32 %v4464_v20, %v8102_v61 }
 0x240   : > { %v4400_v34 = vld [vmem:[#allocation4 + $0x150] sm:$0xff]  ;;  %v4421_v23 = vmul.f32 0.27406862, %v4397_v0  ;;  %v4466_v57 = vmul.f32 0.45186275, %v4397_v0  ;;  %v4398_v59 = vld [vmem:[#allocation4 + $0x140] sm:$0xff]  ;;  %v3845_v53 = vadd.f32 %v8004_v5, %v6255_v19  ;;  %v3846_v47 = vadd.f32 %v8004_v5, %v6261_v16 }
 0x241   : > { %v8168_v31 = vmul.f32 0.27406862, %v4400_v34  ;;  %v3847_v45 = vadd.f32 %v8004_v5, %v6252_v40  ;;  %v3848_v12 = vadd.f32 %v8004_v5, %v6258_v50  ;;  %v4469_v7 = vmul.f32 0.45186275, %v4400_v34  ;;  %v4444_v46 = vld [vmem:[#allocation4 + $0x148] sm:$0x3] }
 0x242   : > { %v4490_v38 = vadd.f32 %v4466_v57, %v8239_v60  ;;  %v4560_v17 = vadd.f32 %v4487_v14, %v4421_v23  ;;  %v8173_v3 = vmul.f32 0.27406862, %v4398_v59  ;;  %3862 = vst [vmem:[#allocation4 + $0x169] sm:$0xff] %v3845_v53  ;;  %3863 = vst [vmem:[#allocation4 + $0x171] sm:$0xff] %v3846_v47  ;;  %v4399_v52 = vld [vmem:[#allocation4 + $0x148] sm:$0x3]  ;;  %v4489_v2 = vadd.f32 %v4465_v29, %v4417_v35 }
 0x243   : > { %v4467_v22 = vmul.f32 0.45186275, %v4398_v59  ;;  %v4468_v42 = vmul.f32 0.45186275, %v4444_v46  ;;  %3864 = vst [vmem:[#allocation4 + $0x181] sm:$0xff] %v3847_v45  ;;  %3865 = vst [vmem:[#allocation4 + $0x189] sm:$0xff] %v3848_v12  ;;  %v4493_v39 = vadd.f32 %v4469_v7, %v4421_v23 }
 0x244   : > { %v4563_v49 = vadd.f32 %v4490_v38, %v8168_v31  ;;  %v4600_v5 = vmul.f32 0.45186275, %v4560_v17  ;;  %v4401_v58 = vld [vmem:[#allocation4 + $0x158] sm:$0xff]  ;;  %v4514_v21 = vld [vmem:[#allocation4 + $0x148] sm:$0x3]  ;;  %v4561_v33 = vadd.f32 %v4488_v44, %v8173_v3 }
 0x245   : > { %v4581_v62 = vmul.f32 0.27406862, %v4560_v17  ;;  %v4402_v27 = vld [vmem:[#allocation4 + $0x160] sm:$0x3]  ;;  %v8177_v55 = vmul.f32 0.27406862, %v4401_v58  ;;  %v4491_v24 = vadd.f32 %v4467_v22, %v8093_v41  ;;  %v4492_v25 = vadd.f32 %v4468_v42, %v4420_v4 }
 0x246   : > { %v4583_v13 = vmul.f32 0.27406862, %v4563_v49  ;;  %v4423_v61 = vmul.f32 0.27406862, %v4399_v52  ;;  %v4603_v63 = vmul.f32 0.45186275, %v4563_v49 }
 0x247   : > { %v4654_v28 = vrot.slane %v4600_v5, 1  ;;  %v8183_v36 = vmul.f32 0.27406862, %v4402_v27  ;;  %v4564_v51 = vadd.f32 %v4491_v24, %v8177_v55  ;;  %v4470_v10 = vmul.f32 0.45186275, %v4401_v58 }
 0x248   : > { %v4517_v48 = vld [vmem:[#allocation4 + $0x160] sm:$0x3]  ;;  %v4538_v56 = vmul.f32 0.27406862, %v4514_v21  ;;  %v4758_v26 = vrot.slane %v4581_v62, 2  ;;  %v4659_v8 = vrot.slane %v4603_v63, 1 }
 0x249   : > { %v4541_v41 = vmul.f32 0.27406862, %v4517_v48  ;;  %v4582_v54 = vmul.f32 0.27406862, %v4561_v33  ;;  %v4403_v6 = vld [vmem:[#allocation4 + $0x168] sm:$0xff]  ;;  %v4763_v40 = vrot.slane %v4583_v13, 2  ;;  %v4494_v24 = vadd.f32 %v4470_v10, %v8173_v3 }
 0x24a   : > { %v4562_v9 = vadd.f32 %v4538_v56, %v4489_v2  ;;  %v4584_v18 = vmul.f32 0.27406862, %v4564_v51  ;;  %v4601_v32 = vmul.f32 0.45186275, %v4561_v33  ;;  %v4604_v30 = vmul.f32 0.45186275, %v4564_v51 }
 0x24b   : > { %v4447_v14 = vld [vmem:[#allocation4 + $0x160] sm:$0x3]  ;;  %v4565_v4 = vadd.f32 %v4541_v41, %v4492_v25  ;;  %v4759_v43 = vrot.slane %v4582_v54, 2  ;;  %v8186_v19 = vmul.f32 0.27406862, %v4403_v6  ;;  %v4404_v7 = vld [vmem:[#allocation4 + $0x170] sm:$0xff] }
 0x24c   : > { %v4602_v16 = vmul.f32 0.45186275, %v4562_v9  ;;  %v4655_v20 = vrot.slane %v4601_v32, 1  ;;  %v4660_v29 = vrot.slane %v4604_v30, 1  ;;  %v4714_v0 = vmul.f32 0.27406862, %v4562_v9 }
 0x24d   : > { %v4605_v50 = vmul.f32 0.45186275, %v4565_v4  ;;  %v4715_v34 = vmul.f32 0.27406862, %v4565_v4  ;;  %v4764_v23 = vrot.slane %v4584_v18, 2  ;;  %v4760_v38 = vsel %vm4228_vm10, %v4758_v26, %v4759_v43  ;;  %v4451_v48 = vld [vmem:[#allocation4 + $0x180] sm:$0xff] }
 0x24e   : > { %v4656_v57 = vsel %vm1160_vm9, %v4654_v28, %v4655_v20  ;;  %v4657_v59 = vrot.slane %v4602_v16, 1  ;;  %v4661_v53 = vsel %vm1160_vm9, %v4659_v8, %v4660_v29  ;;  %v4761_v47 = vrot.slane %v4714_v0, 2  ;;  %v4520_v49 = vld [vmem:[#allocation4 + $0x178] sm:$0x3]  ;;  %v4452_v10 = vld [vmem:[#allocation4 + $0x188] sm:$0xff] }
 0x24f   : > { %v4471_v35 = vmul.f32 0.45186275, %v4447_v14  ;;  %v4662_v45 = vrot.slane %v4605_v50, 1  ;;  %v4701_v12 = vadd.f32 %v4656_v57, %v4581_v62  ;;  %v4703_v37 = vadd.f32 %v4661_v53, %v4583_v13  ;;  %v4405_v62 = vld [vmem:[#allocation4 + $0x178] sm:$0x3] }
 0x250   : > { %v4658_v60 = vsel %vm1160_vm9, %v4655_v20, %v4657_v59  ;;  %v4765_v17 = vsel %vm4228_vm10, %v4763_v40, %v4764_v23  ;;  %v4766_v46 = vrot.slane %v4715_v34, 2  ;;  %v4762_v22 = vsel %vm4228_vm10, %v4759_v43, %v4761_v47  ;;  %v4450_v32 = vld [vmem:[#allocation4 + $0x178] sm:$0x3]  ;;  %v4453_v30 = vld [vmem:[#allocation4 + $0x190] sm:$0x3] }
 0x251   : > { %v4663_v44 = vsel %vm1160_vm9, %v4660_v29, %v4662_v45  ;;  %v4702_v52 = vadd.f32 %v4658_v60, %v4582_v54  ;;  %v4805_v42 = vadd.f32 %v4760_v38, %v4701_v12  ;;  %v4807_v58 = vadd.f32 %v4765_v17, %v4703_v37  ;;  %v4523_v17 = vld [vmem:[#allocation4 + $0x190] sm:$0x3] }
 0x252   : > { %v4704_v5 = vadd.f32 %v4663_v44, %v4584_v18  ;;  %v4566_v21 = vadd.f32 %v4493_v39, %v8186_v19  ;;  %v4428_v27 = vmul.f32 0.27406862, %v4404_v7  ;;  %v4767_v33 = vsel %vm4228_vm10, %v4764_v23, %v4766_v46 }
 0x253   : > { %v4806_v13 = vadd.f32 %v4762_v22, %v4702_v52  ;;  %v4472_v25 = vmul.f32 0.45186275, %v4403_v6  ;;  %v4495_v63 = vadd.f32 %v4471_v35, %v4423_v61  ;;  %v4544_v2 = vmul.f32 0.27406862, %v4520_v49 }
 0x254   : > { %v4808_v28 = vadd.f32 %v4767_v33, %v4704_v5  ;;  %v4606_v51 = vmul.f32 0.45186275, %v4566_v21  ;;  %v4429_v26 = vmul.f32 0.27406862, %v4405_v62  ;;  %v4473_v41 = vmul.f32 0.45186275, %v4404_v7 }
 0x255   : > { %v5441_v56 = vpack.c.bf16 %v4806_v13, %v4805_v42  ;;  %v4567_v54 = vadd.f32 %v4494_v24, %v4428_v27  ;;  %v4585_v9 = vmul.f32 0.27406862, %v4566_v21  ;;  %v4568_v3 = vadd.f32 %v4544_v2, %v4495_v63 }
 0x256   : > { %v5446_v39 = vpack.c.bf16 %v4808_v28, %v4807_v58  ;;  %v4664_v18 = vrot.slane %v4606_v51, 1  ;;  %v4475_v8 = vmul.f32 0.45186275, %v4451_v48  ;;  %v4496_v14 = vadd.f32 %v4472_v25, %v8168_v31 }
 0x257   : > { %5473 = vst [vmem:[%s7789_s19 + $0x58] sm:$0xff] %v5441_v56   ;;  %v4586_v6 = vmul.f32 0.27406862, %v4567_v54  ;;  %v4607_v61 = vmul.f32 0.45186275, %v4567_v54  ;;  %v4768_v59 = vrot.slane %v4585_v9, 2  ;;  %v4497_v31 = vadd.f32 %v4473_v41, %v8177_v55 }
 0x258   : > { %5474 = vst [vmem:[%s7789_s19 + $0x60] sm:$0xff] %v5446_v39   ;;  %v4608_v4 = vmul.f32 0.45186275, %v4568_v3  ;;  %v4716_v43 = vmul.f32 0.27406862, %v4568_v3  ;;  %v4499_v0 = vadd.f32 %v4475_v8, %v8186_v19 }
 0x259   : > { %v4545_v16 = vmul.f32 0.27406862, %v4451_v48  ;;  %v4665_v20 = vrot.slane %v4607_v61, 1  ;;  %v4769_v29 = vrot.slane %v4586_v6, 2  ;;  %v4476_v40 = vmul.f32 0.45186275, %v4452_v10 }
 0x25a   : > { %v4667_v50 = vrot.slane %v4608_v4, 1  ;;  %v4771_v34 = vrot.slane %v4716_v43, 2  ;;  %v4477_v57 = vmul.f32 0.45186275, %v4453_v30  ;;  %v4474_v53 = vmul.f32 0.45186275, %v4450_v32 }
 0x25b   : > { %v4569_v23 = vadd.f32 %v4545_v16, %v4496_v14  ;;  %v4666_v47 = vsel %vm1160_vm9, %v4664_v18, %v4665_v20  ;;  %v4572_v35 = vadd.f32 %v8155_v15, %v4499_v0  ;;  %v4500_v37 = vadd.f32 %v4476_v40, %v4428_v27 }
 0x25c   : > { %v4668_v45 = vsel %vm1160_vm9, %v4665_v20, %v4667_v50  ;;  %v4705_v12 = vadd.f32 %v4666_v47, %v4585_v9  ;;  %v4770_v19 = vsel %vm4228_vm10, %v4768_v59, %v4769_v29  ;;  %v4772_v46 = vsel %vm4228_vm10, %v4769_v29, %v4771_v34 }
 0x25d   : > { %v4706_v7 = vadd.f32 %v4668_v45, %v4586_v6  ;;  %v4609_v60 = vmul.f32 0.45186275, %v4569_v23  ;;  %v4612_v38 = vmul.f32 0.45186275, %v4572_v35  ;;  %v4501_v52 = vadd.f32 %v4477_v57, %v4429_v26 }
 0x25e   : > { %v4809_v44 = vadd.f32 %v4770_v19, %v4705_v12  ;;  %v4546_v22 = vmul.f32 0.27406862, %v4452_v10  ;;  %v4498_v15 = vadd.f32 %v4474_v53, %v8183_v36  ;;  %v4587_v55 = vmul.f32 0.27406862, %v4569_v23 }
 0x25f   : > { %v4810_v42 = vadd.f32 %v4772_v46, %v4706_v7  ;;  %v4547_v49 = vmul.f32 0.27406862, %v4523_v17  ;;  %v4573_v58 = vadd.f32 %v8158_v11, %v4500_v37  ;;  %v4574_v21 = vadd.f32 %v8181_v1, %v4501_v52 }
 0x260   : > { %v4570_v5 = vadd.f32 %v4546_v22, %v4497_v31  ;;  %v4589_v27 = vmul.f32 0.27406862, %v4572_v35  ;;  %v4669_v24 = vrot.slane %v4609_v60, 1  ;;  %v4674_v33 = vrot.slane %v4612_v38, 1 }
 0x261   : > { %v5451_v62 = vpack.c.bf16 %v4810_v42, %v4809_v44  ;;  %v4571_v13 = vadd.f32 %v4547_v49, %v4498_v15  ;;  %v4590_v63 = vmul.f32 0.27406862, %v4573_v58  ;;  %v4613_v51 = vmul.f32 0.45186275, %v4573_v58 }
 0x262   : > { %v4588_v25 = vmul.f32 0.27406862, %v4570_v5  ;;  %v4610_v28 = vmul.f32 0.45186275, %v4570_v5  ;;  %v4614_v2 = vmul.f32 0.45186275, %v4574_v21 }
 0x263   : > { %5475 = vst [vmem:[%s7789_s19 + $0x68] sm:$0xff] %v5451_v62   ;;  %v4718_v36 = vmul.f32 0.27406862, %v4574_v21  ;;  %v4611_v48 = vmul.f32 0.45186275, %v4571_v13  ;;  %v4675_v54 = vrot.slane %v4613_v51, 1 }
 0x264   : > { %v4670_v56 = vrot.slane %v4610_v28, 1  ;;  %v4717_v26 = vmul.f32 0.27406862, %v4571_v13  ;;  %v4774_v41 = vrot.slane %v4588_v25, 2  ;;  %v4677_v11 = vrot.slane %v4614_v2, 1 }
 0x265   : > { %v4779_v39 = vrot.slane %v4590_v63, 2  ;;  %v4781_v1 = vrot.slane %v4718_v36, 2  ;;  %v4773_v9 = vrot.slane %v4587_v55, 2  ;;  %v4672_v32 = vrot.slane %v4611_v48, 1 }
 0x266   : > { %v4671_v18 = vsel %vm1160_vm9, %v4669_v24, %v4670_v56  ;;  %v4776_v3 = vrot.slane %v4717_v26, 2  ;;  %v4778_v10 = vrot.slane %v4589_v27, 2  ;;  %v4676_v30 = vsel %vm1160_vm9, %v4674_v33, %v4675_v54 }
 0x267   : > { %v4678_v6 = vsel %vm1160_vm9, %v4675_v54, %v4677_v11  ;;  %v4707_v61 = vadd.f32 %v4671_v18, %v4587_v55  ;;  %v4673_v8 = vsel %vm1160_vm9, %v4670_v56, %v4672_v32  ;;  %v4709_v14 = vadd.f32 %v4676_v30, %v4589_v27 }
 0x268   : > { %v4710_v4 = vadd.f32 %v4678_v6, %v4590_v63  ;;  %v4775_v43 = vsel %vm4228_vm10, %v4773_v9, %v4774_v41  ;;  %v4708_v16 = vadd.f32 %v4673_v8, %v4588_v25  ;;  %v4780_v20 = vsel %vm4228_vm10, %v4778_v10, %v4779_v39 }
 0x269   : > { %v4782_v29 = vsel %vm4228_vm10, %v4779_v39, %v4781_v1  ;;  %v4811_v0 = vadd.f32 %v4775_v43, %v4707_v61  ;;  %v4777_v40 = vsel %vm4228_vm10, %v4774_v41, %v4776_v3  ;;  %v4813_v50 = vadd.f32 %v4780_v20, %v4709_v14 }
 0x26a   : > { %v4814_v34 = vadd.f32 %v4782_v29, %v4710_v4  ;;  %v4812_v23 = vadd.f32 %v4777_v40, %v4708_v16 }
 0x26c   : > { %v5461_v57 = vpack.c.bf16 %v4814_v34, %v4813_v50  ;;  %v5456_v59 = vpack.c.bf16 %v4812_v23, %v4811_v0 }
 0x26e   : > { %5477 = vst [vmem:[%s7789_s19 + $0x78] sm:$0xff] %v5461_v57   ;;  %5476 = vst [vmem:[%s7789_s19 + $0x70] sm:$0xff] %v5456_v59  }
 0x26f PF: > { %s15_s18 = sadd.s32 1, %s6488_s18  }
 0x270   : > { %p12_p4 = scmp.ge.s32.totalorder %s15_s18, 4  }
 0x272   :  { %14 = sbr.rel (!%p12_p4) target bundleno = 1 (0x1), region = 86 }

// kernel: wide_basic_forward.3
= control target key start
LH: loop header
LB: loop body
LE: loop exit
PB: predicated region body
PF: predicated region fallthrough
CT: control target
= control target key end

     0   :  { %s7084_s27 = smov 0   ;;  %s9128_s0 = inlined_call_operand.vmem [shape: bf16[2,16,16,128], index: 0, kind: input, shape index: {}]   ;;  %s9129_s1 = inlined_call_operand.vmem [shape: f32[1,128], index: 1, kind: input, shape index: {}]   ;;  %s9130_s2 = inlined_call_operand.vmem [shape: f32[1,128], index: 2, kind: input, shape index: {}]   ;;  %s9131_s3 = inlined_call_operand.vmem [shape: bf16[3,384,128], index: 3, kind: input, shape index: {}]   ;;  %s9132_s4 = inlined_call_operand.vmem [shape: f32[1,128], index: 4, kind: input, shape index: {}]   ;;  %s9133_s5 = inlined_call_operand.vmem [shape: f32[2,16,16,4], index: 5, kind: input, shape index: {}]   ;;  %s9134_s6 = inlined_call_operand.vmem [shape: bf16[128,128], index: 6, kind: input, shape index: {}]   ;;  %s9135_s7 = inlined_call_operand.vmem [shape: f32[1,128], index: 7, kind: input, shape index: {}]   ;;  %s9136_s8 = inlined_call_operand.vmem [shape: f32[2,16,16,128], index: 8, kind: output, shape index: {}]  }
   0x1 LB: > { %s5417_s28 = sadd.s32 4294967295, %s7035_s27   ;;  %p5421_p0 = scmp.ge.s32.totalorder %s7035_s27, 1  ;;  %s7035_s27 = sphi %s7084_s27, %s18_s27  }
   0x2   : > { %p272_p1 = scmp.lt.s32.totalorder %s7035_s27, 3 }
   0x4   : > { %p273_p2 = pnand %p5421_p0, %p272_p1 }
   0x6   : > { %276 = sbr.rel (%p273_p2) target bundleno = 673 (0x2a1), region = 52 }
   0xd   : > { %v6855_v0 = vld [vmem:[%s9131_s3 + $0x140] sm:$0xff]   ;;  %v6856_v1 = vld [vmem:[%s9131_s3 + $0x148] sm:$0xff]   ;;  %v6859_v4 = vld [vmem:[%s9131_s3 + $0x150] sm:$0xff]   ;;  %v7037_v9 = vmov 0   ;;  %p311_p3 = scmp.lt.s32.totalorder %s5417_s28, 1  ;;  %vm332_vm0 = vcmask 1040384  }
   0xe   : > { %6429 = vmatprep.subr.bf16.mxu1 %v6855_v0  ;;  %v6857_v2 = vld [vmem:[%s9131_s3 + $0x100] sm:$0xff]   ;;  %v6860_v5 = vld [vmem:[%s9131_s3 + $0x108] sm:$0xff]   ;;  %v6862_v7 = vld [vmem:[%s9131_s3 + $0x158] sm:$0xff]   ;;  %327 = vst [vmem:[#allocation2] sm:$0xff] %v7037_v9  ;;  %vm333_vm1 = vsmask.f32 256 }
   0xf   : > { %6430 = vmatpush3.bf16.msra.mxu1 %v6855_v0  ;;  %v6858_v3 = vld [vmem:[%s9131_s3 + $0xc0] sm:$0xff]   ;;  %5917 = vmatprep.subr.bf16.mxu0 %v6857_v2  ;;  %v6861_v6 = vld [vmem:[%s9131_s3 + $0xc8] sm:$0xff]   ;;  %v6863_v8 = vld [vmem:[%s9131_s3 + $0x110] sm:$0xff]   ;;  %328 = vst [vmem:[#allocation2 + $0x8] sm:$0xff] %v7037_v9  ;;  %s9156_s28 = smov (!%p311_p3, %s5417_s28), 1  ;;  %vm780_vm5 = vcmask 1047552  }
  0x10   : > { %6431 = vmatprep.subr.bf16.mxu1 %v6856_v1  ;;  %5918 = vmatpush3.bf16.msra.mxu0 %v6858_v3  ;;  %330 = vst [vmem:[#allocation2 + $0x110] sm:$0xff] %v7037_v9  ;;  %331 = vst [vmem:[#allocation2 + $0x118] sm:$0xff] %v7037_v9  ;;  %v6864_v10 = vld [vmem:[%s9131_s3 + $0xd0] sm:$0xff]   ;;  %v6866_v11 = vld [vmem:[%s9131_s3 + $0x118] sm:$0xff]   ;;  %s5835_s19 = sshll.u32 %s9156_s28, 7  ;;  %vm1275_vm7 = vcmask 1046528  }
  0x11   : > { %5919 = vmatprep.subr.bf16.mxu0 %v6860_v5  ;;  %v6865_v12 = vld [vmem:[%s9131_s3 + $0x160] sm:$0xff]   ;;  %v6867_v13 = vld [vmem:[%s9131_s3 + $0xd8] sm:$0xff]   ;;  %v6868_v15 = vld [vmem:[%s9131_s3 + $0x168] sm:$0xff]   ;;  %s7159_s30 = scalar_lea.vmem %s9128_s0, %s5835_s19  ;;  %vm389_vm2 = vsmask.f32 7938  ;;  %s5836_s17 = sshll.u32 %s9156_s28, 8 }
  0x12   : > { %v6869_v14 = vld [vmem:[%s9131_s3 + $0x120] sm:$0xff]   ;;  %v6872_v17 = vld [vmem:[%s9131_s3 + $0x128] sm:$0xff]   ;;  %v6871_v18 = vld [vmem:[%s9131_s3 + $0x170] sm:$0xff]   ;;  %vm950_vm8 = vsmask.f32 7424  ;;  %s8142_s22 = scalar_lea.vmem %s9133_s5, %s5836_s17  ;;  %vm4440_vm9 = vcmask 31744   ;;  %s8676_s16 = scalar_lea.vmem %s9136_s8, %s5836_s17 }
  0x13   : > { %6432 = vmatpush3.bf16.msra.mxu1 %v6856_v1  ;;  %v6870_v16 = vld [vmem:[%s9131_s3 + $0xe0] sm:$0xff]   ;;  %v6873_v19 = vld [vmem:[%s9131_s3 + $0xe8] sm:$0xff]   ;;  %v6875_v20 = vld [vmem:[%s9131_s3 + $0x130] sm:$0xff]   ;;  %vm4343_vm10 = vcmask 1045504  }
  0x14   : > { %6433 = vmatprep.subr.bf16.mxu1 %v6859_v4  ;;  %5920 = vmatpush3.bf16.msra.mxu0 %v6861_v6  ;;  %v6874_v21 = vld [vmem:[%s9131_s3 + $0x178] sm:$0xff]   ;;  %v338_v22 = vld [vmem:[#allocation2 + $0x10] sm:$0x1]  ;;  %vm7167_vm3 = vmand %vm332_vm0, %vm333_vm1 }
  0x15   : > { %5921 = vmatprep.subr.bf16.mxu0 %v6863_v8  ;;  %v394_v24 = vld [vmem:[#allocation2 + $0x18] sm:$0x1]  ;;  %v5839_v25 = vld [vmem:[%s7159_s30] sm:$0xff]   ;;  %v339_v26 = vsel %vm7167_vm3, 0, %v338_v22  ;;  %vm7175_vm4 = vmand %vm332_vm0, %vm389_vm2 }
  0x16   : > { %v5840_v28 = vunpack.c.l.bf16 %v5839_v25  ;;  %v5841_v29 = vunpack.c.h.bf16 %v5839_v25  ;;  %v7182_v30 = vld [vmem:[%s9129_s1] ss:$0 sm:$0xff]  ;;  %v6876_v32 = vld [vmem:[%s9131_s3 + $0xf0] sm:$0xff]   ;;  %340 = vst [vmem:[#allocation2 + $0x10] sm:$0x1] %v339_v26  ;;  %v395_v33 = vsel %vm7175_vm4, 0, %v394_v24  ;;  %vm7223_vm6 = vmand %vm780_vm5, %vm389_vm2 }
  0x17   : > { %6434 = vmatpush3.bf16.msra.mxu1 %v6859_v4  ;;  %v7187_v31 = vld [vmem:[%s9130_s2] ss:$0 sm:$0xff]  ;;  %396 = vst [vmem:[#allocation2 + $0x18] sm:$0x1] %v395_v33  ;;  %v6878_v36 = vld [vmem:[%s9131_s3 + $0x138] sm:$0xff]   ;;  %v5902_v44 = vld [vmem:[%s7159_s30 + $0x8] sm:$0xff]  }
  0x18   : > { %6435 = vmatprep.subr.bf16.mxu1 %v6862_v7  ;;  %5922 = vmatpush3.bf16.msra.mxu0 %v6864_v10  ;;  %v516_v34 = vmul.f32 %v5840_v28, %v7182_v30  ;;  %v517_v35 = vmul.f32 %v5841_v29, %v7182_v30  ;;  %v341_v37 = vld [vmem:[#allocation2 + $0x20] sm:$0x1]  ;;  %v397_v38 = vld [vmem:[#allocation2 + $0x28] sm:$0x1]  ;;  %v5844_v45 = vunpack.c.l.bf16 %v5902_v44  ;;  %v5845_v46 = vunpack.c.h.bf16 %v5902_v44  ;;  %v6880_v49 = vld [vmem:[%s9131_s3 + $0xf8] sm:$0xff]  }
  0x19   : > { %5923 = vmatprep.subr.bf16.mxu0 %v6866_v11  ;;  %v6877_v41 = vld [vmem:[%s9131_s3 + $0x40] sm:$0xff]   ;;  %v342_v42 = vsel %vm7167_vm3, 0, %v341_v37  ;;  %v398_v43 = vsel %vm7175_vm4, 0, %v397_v38  ;;  %v344_v53 = vld [vmem:[#allocation2 + $0x30] sm:$0x1]  ;;  %v5904_v9 = vld [vmem:[%s7159_s30 + $0x18] sm:$0xff]  }
  0x1a   : > { %v555_v39 = vadd.f32 %v7187_v31, %v516_v34  ;;  %v556_v40 = vadd.f32 %v7187_v31, %v517_v35  ;;  %343 = vst [vmem:[#allocation2 + $0x20] sm:$0x1] %v342_v42  ;;  %399 = vst [vmem:[#allocation2 + $0x28] sm:$0x1] %v398_v43  ;;  %v518_v50 = vmul.f32 %v5844_v45, %v7182_v30  ;;  %v345_v57 = vsel %vm7167_vm3, 0, %v344_v53  ;;  %v5903_v59 = vld [vmem:[%s7159_s30 + $0x10] sm:$0xff]  }
  0x1b   : > { %6436 = vmatpush3.bf16.msra.mxu1 %v6862_v7  ;;  %v519_v51 = vmul.f32 %v5845_v46, %v7182_v30  ;;  %v400_v58 = vld [vmem:[#allocation2 + $0x38] sm:$0x1]  ;;  %346 = vst [vmem:[#allocation2 + $0x30] sm:$0x1] %v345_v57  ;;  %v5848_v63 = vunpack.c.l.bf16 %v5903_v59  ;;  %v5849_v2 = vunpack.c.h.bf16 %v5903_v59  ;;  %v347_v3 = vld [vmem:[#allocation2 + $0x40] sm:$0x1] }
  0x1c   : > { %6437 = vmatprep.subr.bf16.mxu1 %v6865_v12  ;;  %5924 = vmatpush3.bf16.msra.mxu0 %v6867_v13  ;;  %v587_v47 = vmax.f32 %v555_v39, 0.0  ;;  %v588_v48 = vmax.f32 %v556_v40, 0.0  ;;  %v557_v55 = vadd.f32 %v7187_v31, %v518_v50  ;;  %v401_v62 = vsel %vm7175_vm4, 0, %v400_v58  ;;  %v350_v29 = vld [vmem:[#allocation2 + $0x50] sm:$0x1]  ;;  %v6944_v5 = vld [vmem:[%s9131_s3 + $0x148] sm:$0xff]  }
  0x1d   : > { %5925 = vmatprep.subr.bf16.mxu0 %v6869_v14  ;;  %v558_v56 = vadd.f32 %v7187_v31, %v519_v51  ;;  %402 = vst [vmem:[#allocation2 + $0x38] sm:$0x1] %v401_v62  ;;  %v782_v6 = vld [vmem:[#allocation2 + $0x10] sm:$0xff]  ;;  %v520_v7 = vmul.f32 %v5848_v63, %v7182_v30  ;;  %v348_v8 = vsel %vm7167_vm3, 0, %v347_v3  ;;  %v521_v11 = vmul.f32 %v5849_v2, %v7182_v30  ;;  %v353_v62 = vld [vmem:[#allocation2 + $0x60] sm:$0x1] }
  0x1e   : > { %v619_v52 = vpack.c.bf16 %v588_v48, %v587_v47  ;;  %v785_v54 = vld [vmem:[#allocation2 + $0x18] sm:$0x1]  ;;  %v589_v0 = vmax.f32 %v557_v55, 0.0  ;;  %349 = vst [vmem:[#allocation2 + $0x40] sm:$0x1] %v348_v8  ;;  %v5852_v13 = vunpack.c.l.bf16 %v5904_v9  ;;  %v5853_v14 = vunpack.c.h.bf16 %v5904_v9  ;;  %v7255_v47 = vld [vmem:[%s7159_s30 + $0x28] sm:$0xff]  }
  0x1f   : > { %6438 = vmatpush3.bf16.msra.mxu1 %v6865_v12  ;;  %v590_v1 = vmax.f32 %v558_v56, 0.0  ;;  %v403_v12 = vld [vmem:[#allocation2 + $0x48] sm:$0x1]  ;;  %v560_v22 = vadd.f32 %v7187_v31, %v521_v11  ;;  %v351_v40 = vsel %vm7167_vm3, 0, %v350_v29  ;;  %v5860_v63 = vunpack.c.l.bf16 %v7255_v47  ;;  %v6957_v23 = vld [vmem:[%s9131_s3 + $0x90] sm:$0xff]  }
  0x20   : > { %6439 = vmatprep.subr.bf16.mxu1 %v6868_v15  ;;  %5926 = vmatpush3.bf16.msra.mxu0 %v6870_v16  ;;  %v636_v60 = vshrl.u32 %v619_v52, 16  ;;  %v639_v61 = vshll.u32 %v619_v52, 16  ;;  %v522_v24 = vmul.f32 %v5852_v13, %v7182_v30  ;;  %v523_v28 = vmul.f32 %v5853_v14, %v7182_v30  ;;  %352 = vst [vmem:[#allocation2 + $0x50] sm:$0x1] %v351_v40 }
  0x21   : > { %5927 = vmatprep.subr.bf16.mxu0 %v6872_v17  ;;  %v620_v10 = vpack.c.bf16 %v590_v1, %v589_v0  ;;  %v559_v17 = vadd.f32 %v7187_v31, %v520_v7  ;;  %v788_v37 = vld [vmem:[#allocation2 + $0x20] sm:$0xff] }
  0x22   : > { %v638_v4 = vrot.slane %v636_v60, 7  ;;  %v561_v38 = vadd.f32 %v7187_v31, %v522_v24  ;;  %v562_v39 = vadd.f32 %v7187_v31, %v523_v28  ;;  %v794_v7 = vld [vmem:[#allocation2 + $0x30] sm:$0xff] }
  0x23   : > { %6440 = vmatpush3.bf16.msra.mxu1 %v6868_v15  ;;  %v591_v26 = vmax.f32 %v559_v17, 0.0 }
  0x24   : > { %6441 = vmatprep.subr.bf16.mxu1 %v6871_v18  ;;  %5928 = vmatpush3.bf16.msra.mxu0 %v6873_v19  ;;  %v641_v15 = vor.u32 %v639_v61, %v638_v4  ;;  %v786_v16 = vsel %vm7167_vm3, %v638_v4, %v785_v54  ;;  %v643_v19 = vshrl.u32 %v620_v10, 16  ;;  %v593_v48 = vmax.f32 %v561_v38, 0.0  ;;  %v797_v56 = vld [vmem:[#allocation2 + $0x38] sm:$0x1] }
  0x25   : > { %5929 = vmatprep.subr.bf16.mxu0 %v6875_v20  ;;  %787 = vst [vmem:[#allocation2 + $0x18] sm:$0x1] %v786_v16  ;;  %v646_v20 = vshll.u32 %v620_v10, 16  ;;  %v800_v28 = vld [vmem:[#allocation2 + $0x40] sm:$0xff] }
  0x26   : > { %v7241_v25 = vsel %vm7223_vm6, %v641_v15, %v782_v6  ;;  %v645_v33 = vrot.slane %v643_v19, 7 }
  0x27   : > { %6442 = vmatpush3.bf16.msra.mxu1 %v6871_v18  ;;  %v404_v18 = vsel %vm7175_vm4, 0, %v403_v12  ;;  %784 = vst [vmem:[#allocation2 + $0x10] sm:$0xff] %v7241_v25  ;;  %v964_v34 = vshrl.u32 %v7241_v25, 16  ;;  %v966_v35 = vshll.u32 %v7241_v25, 16  ;;  %v409_v12 = vld [vmem:[#allocation2 + $0x68] sm:$0x1] }
  0x28   : > { %6443 = vmatprep.subr.bf16.mxu1 %v6874_v21  ;;  %5930 = vmatpush3.bf16.msra.mxu0 %v6876_v32  ;;  %405 = vst [vmem:[#allocation2 + $0x48] sm:$0x1] %v404_v18  ;;  %v5905_v32 = vld [vmem:[%s7159_s30 + $0x20] sm:$0xff]   ;;  %v648_v43 = vor.u32 %v646_v20, %v645_v33 }
  0x29   : > { %5931 = vmatprep.subr.bf16.mxu0 %v6878_v36  ;;  %v592_v36 = vmax.f32 %v560_v22, 0.0  ;;  %v5856_v42 = vunpack.c.l.bf16 %v5905_v32  ;;  %v968_v45 = vrot.slane %v966_v35, 1  ;;  %v5857_v51 = vunpack.c.h.bf16 %v5905_v32 }
  0x2a   : > { %v7261_v52 = vsel %vm7223_vm6, %v648_v43, %v788_v37  ;;  %v354_v32 = vsel %vm7167_vm3, 0, %v353_v62  ;;  %v5861_v43 = vunpack.c.h.bf16 %v7255_v47 }
  0x2b   : > { %6444 = vmatpush3.bf16.msra.mxu1 %v6874_v21  ;;  %v791_v21 = vld [vmem:[#allocation2 + $0x28] sm:$0x1]  ;;  %v621_v46 = vpack.c.bf16 %v592_v36, %v591_v26  ;;  %v969_v53 = vor.u32 %v968_v45, %v964_v34  ;;  %790 = vst [vmem:[#allocation2 + $0x20] sm:$0xff] %v7261_v52  ;;  %v524_v60 = vmul.f32 %v5856_v42, %v7182_v30  ;;  %v976_v4 = vshrl.u32 %v7261_v52, 16  ;;  %v6879_v34 = vld [vmem:[%s9131_s3] sm:$0xff]  }
  0x2c   : > { %5997 = vmatprep.subr.bf16.mxu1 %v6877_v41  ;;  %5932 = vmatpush3.bf16.msra.mxu0 %v6880_v49  ;;  %v406_v41 = vld [vmem:[#allocation2 + $0x58] sm:$0x1]  ;;  %v792_v44 = vsel %vm7167_vm3, %v645_v33, %v791_v21  ;;  %v594_v49 = vmax.f32 %v562_v39, 0.0  ;;  %v525_v61 = vmul.f32 %v5857_v51, %v7182_v30  ;;  %v978_v10 = vshll.u32 %v7261_v52, 16  ;;  %355 = vst [vmem:[#allocation2 + $0x60] sm:$0x1] %v354_v32 }
  0x2d   : > { %793 = vst [vmem:[#allocation2 + $0x28] sm:$0x1] %v792_v44  ;;  %v407_v50 = vsel %vm7175_vm4, 0, %v406_v41  ;;  %v650_v54 = vshrl.u32 %v621_v46, 16  ;;  %v653_v55 = vshll.u32 %v621_v46, 16  ;;  %v563_v11 = vadd.f32 %v7187_v31, %v524_v60  ;;  %v6881_v39 = vld [vmem:[%s9131_s3 + $0x48] sm:$0xff]  }
  0x2e   : > { %408 = vst [vmem:[#allocation2 + $0x58] sm:$0x1] %v407_v50  ;;  %v1206_v57 = vld [vmem:[#allocation2 + $0x18] sm:$0x1]  ;;  %v622_v59 = vpack.c.bf16 %v594_v49, %v593_v48  ;;  %v1205_v6 = vld [vmem:[#allocation2 + $0x10] sm:$0xfe]  ;;  %v564_v19 = vadd.f32 %v7187_v31, %v525_v61  ;;  %v526_v46 = vmul.f32 %v5860_v63, %v7182_v30 }
  0x2f   : > { %v917_v58 = vld [vmem:[#allocation2 + $0x18] sm:$0x1]  ;;  %v1280_v0 = vrot.slane %v1206_v57, 1  ;;  %v652_v2 = vrot.slane %v650_v54, 7  ;;  %v803_v3 = vld [vmem:[#allocation2 + $0x48] sm:$0x1]  ;;  %v527_v54 = vmul.f32 %v5861_v43, %v7182_v30 }
  0x30   : > { %v971_v1 = vshll.u32 %v917_v58, 16  ;;  %v657_v8 = vshrl.u32 %v622_v59, 16  ;;  %v660_v9 = vshll.u32 %v622_v59, 16  ;;  %v1279_v13 = vrot.slane %v1205_v6, 1  ;;  %v356_v49 = vld [vmem:[#allocation2 + $0x70] sm:$0x1] }
  0x31   : > { %v655_v15 = vor.u32 %v653_v55, %v652_v2  ;;  %v798_v16 = vsel %vm7167_vm3, %v652_v2, %v797_v56  ;;  %v980_v18 = vrot.slane %v978_v10, 1  ;;  %v595_v20 = vmax.f32 %v563_v11, 0.0  ;;  %v412_v50 = vld [vmem:[#allocation2 + $0x78] sm:$0x1]  ;;  %v6882_v56 = vld [vmem:[%s9131_s3 + $0x8] sm:$0xff]   ;;  %v5907_v60 = vld [vmem:[%s7159_s30 + $0x30] sm:$0xff]  }
  0x32   : > { %v973_v14 = vrot.slane %v971_v1, 1  ;;  %799 = vst [vmem:[#allocation2 + $0x38] sm:$0x1] %v798_v16  ;;  %v659_v17 = vrot.slane %v657_v8, 7  ;;  %v7274_v21 = vsel %vm1275_vm7, %v1279_v13, %v1280_v0  ;;  %v1207_v38 = vld [vmem:[#allocation2 + $0x20] sm:$0xfe]  ;;  %v565_v57 = vadd.f32 %v7187_v31, %v526_v46 }
  0x33   : > { %v7281_v26 = vsel %vm7223_vm6, %v655_v15, %v794_v7  ;;  %6445 = vmatprep.mubr.bf16.mxu1 %v7274_v21  ;;  %v981_v37 = vor.u32 %v980_v18, %v976_v4  ;;  %v596_v41 = vmax.f32 %v564_v19, 0.0  ;;  %v410_v42 = vsel %vm7175_vm4, 0, %v409_v12  ;;  %v359_v61 = vld [vmem:[#allocation2 + $0x80] sm:$0x1]  ;;  %v6883_v63 = vld [vmem:[%s9131_s3 + $0x50] sm:$0xff]  }
  0x34   : > { %v1208_v22 = vld [vmem:[#allocation2 + $0x28] sm:$0x1]  ;;  %v7277_v24 = vsel %vm950_vm8, %v969_v53, %v973_v14  ;;  %796 = vst [vmem:[#allocation2 + $0x30] sm:$0xff] %v7281_v26  ;;  %v662_v35 = vor.u32 %v660_v9, %v659_v17  ;;  %v804_v36 = vsel %vm7167_vm3, %v659_v17, %v803_v3  ;;  %v1282_v44 = vrot.slane %v1207_v38, 1  ;;  %411 = vst [vmem:[#allocation2 + $0x68] sm:$0x1] %v410_v42 }
  0x35   : > { %v919_v29 = vld [vmem:[#allocation2 + $0x28] sm:$0x1]  ;;  %v1283_v33 = vrot.slane %v1208_v22, 1  ;;  %1732 = vmatprep.mubr.bf16.mxu0 %v7277_v24  ;;  %805 = vst [vmem:[#allocation2 + $0x48] sm:$0x1] %v804_v36  ;;  %v988_v48 = vshrl.u32 %v7281_v26, 16  ;;  %v623_v53 = vpack.c.bf16 %v596_v41, %v595_v20  ;;  %v566_v3 = vadd.f32 %v7187_v31, %v527_v54 }
  0x36   : > { %1733 = vmatmul.mubr.bf16.vlgmr.msra.gmra.mrb[0].mxu0 %v7241_v25  ;;  %v983_v40 = vshll.u32 %v919_v29, 16  ;;  %v7302_v45 = vsel %vm7223_vm6, %v662_v35, %v800_v28  ;;  %v990_v47 = vshll.u32 %v7281_v26, 16  ;;  %v357_v58 = vsel %vm7167_vm3, 0, %v356_v49  ;;  %v809_v7 = vld [vmem:[#allocation2 + $0x58] sm:$0x1]  ;;  %v806_v13 = vld [vmem:[#allocation2 + $0x50] sm:$0xff] }
  0x37   : > { %802 = vst [vmem:[#allocation2 + $0x40] sm:$0xff] %v7302_v45  ;;  %v7310_v55 = vsel %vm1275_vm7, %v1282_v44, %v1283_v33  ;;  %v413_v59 = vsel %vm7175_vm4, 0, %v412_v50  ;;  %v664_v1 = vshrl.u32 %v623_v53, 16  ;;  %v667_v2 = vshll.u32 %v623_v53, 16  ;;  %358 = vst [vmem:[#allocation2 + $0x70] sm:$0x1] %v357_v58 }
  0x38   : > { %v985_v51 = vrot.slane %v983_v40, 1  ;;  %6446 = vmatmul.mubr.bf16.vlgmr.msra.gmra.mrb[0].mxu1 %v7310_v55  ;;  %414 = vst [vmem:[#allocation2 + $0x78] sm:$0x1] %v413_v59  ;;  %v597_v8 = vmax.f32 %v565_v57, 0.0  ;;  %v992_v9 = vrot.slane %v990_v47, 1  ;;  %v598_v14 = vmax.f32 %v566_v3, 0.0 }
  0x39   : > { %v1210_v62 = vld [vmem:[#allocation2 + $0x38] sm:$0x1]  ;;  %5998 = vmatpush3.bf16.msra.mxu1 %v6879_v34  ;;  %v666_v12 = vrot.slane %v664_v1, 7  ;;  %v5864_v15 = vunpack.c.l.bf16 %v5907_v60  ;;  %v5865_v16 = vunpack.c.h.bf16 %v5907_v60  ;;  %v6893_v17 = vld [vmem:[%s9131_s3 + $0x1c0] sm:$0xff]   ;;  %v360_v28 = vsel %vm7167_vm3, 0, %v359_v61  ;;  %v6884_v44 = vld [vmem:[%s9131_s3 + $0x10] sm:$0xff]  }
  0x3a   : > { %v7326_v0 = vsel %vm950_vm8, %v981_v37, %v985_v51  ;;  %v921_v4 = vld [vmem:[#allocation2 + $0x38] sm:$0x1]  ;;  %v1286_v6 = vrot.slane %v1210_v62, 1  ;;  %5999 = vmatprep.subr.bf16.mxu1 %v6881_v39  ;;  %v993_v20 = vor.u32 %v992_v9, %v988_v48  ;;  %v6894_v29 = vld [vmem:[%s9131_s3 + $0x180] sm:$0xff]   ;;  %v624_v35 = vpack.c.bf16 %v598_v14, %v597_v8  ;;  %361 = vst [vmem:[#allocation2 + $0x80] sm:$0x1] %v360_v28 }
  0x3b   : > { %1740 = vmatprep.mubr.bf16.mxu0 %v7326_v0  ;;  %v995_v10 = vshll.u32 %v921_v4, 16  ;;  %v1209_v11 = vld [vmem:[#allocation2 + $0x30] sm:$0xfe]  ;;  %v669_v33 = vor.u32 %v667_v2, %v666_v12  ;;  %v810_v34 = vsel %vm7167_vm3, %v666_v12, %v809_v7  ;;  %v415_v36 = vld [vmem:[#allocation2 + $0x88] sm:$0x1]  ;;  %v5908_v37 = vld [vmem:[%s7159_s30 + $0x38] sm:$0xff]   ;;  %6077 = vmatprep.subr.bf16.mxu0 %v6893_v17  ;;  %v528_v41 = vmul.f32 %v5864_v15, %v7182_v30 }
  0x3c   : > { %v1285_v18 = vrot.slane %v1209_v11, 1  ;;  %v1212_v19 = vld [vmem:[#allocation2 + $0x48] sm:$0x1]  ;;  %811 = vst [vmem:[#allocation2 + $0x58] sm:$0x1] %v810_v34  ;;  %v529_v42 = vmul.f32 %v5865_v16, %v7182_v30  ;;  %v671_v48 = vshrl.u32 %v624_v35, 16  ;;  %6078 = vmatpush3.bf16.msra.mxu0 %v6894_v29  ;;  %v5869_v60 = vunpack.c.h.bf16 %v5908_v37 }
  0x3d   : > { %v997_v22 = vrot.slane %v995_v10, 1  ;;  %v1289_v32 = vrot.slane %v1212_v19, 1  ;;  %6000 = vmatpush3.bf16.msra.mxu1 %v6882_v56  ;;  %v7356_v46 = vsel %vm7223_vm6, %v669_v33, %v806_v13  ;;  %v674_v49 = vshll.u32 %v624_v35, 16  ;;  %v6885_v50 = vld [vmem:[%s9131_s3 + $0x58] sm:$0xff]   ;;  %v815_v51 = vld [vmem:[#allocation2 + $0x68] sm:$0x1] }
  0x3e   : > { %1741 = vmatmul.mubr.bf16.gmra.mrb[4].mxu0 %v7261_v52  ;;  %v7343_v38 = vsel %vm1275_vm7, %v1285_v18, %v1286_v6  ;;  %v1211_v39 = vld [vmem:[#allocation2 + $0x40] sm:$0xfe]  ;;  %6001 = vmatprep.subr.bf16.mxu1 %v6883_v63  ;;  %808 = vst [vmem:[#allocation2 + $0x50] sm:$0xff] %v7356_v46  ;;  %v567_v53 = vadd.f32 %v7187_v31, %v528_v41  ;;  %v416_v47 = vsel %vm7175_vm4, 0, %v415_v36  ;;  %v5868_v56 = vunpack.c.l.bf16 %v5908_v37  ;;  %v6886_v58 = vld [vmem:[%s9131_s3 + $0x18] sm:$0xff]   ;;  %v6898_v10 = vld [vmem:[%s9131_s3 + $0x1c8] sm:$0xff]  }
  0x3f   : > { %v7346_v40 = vsel %vm950_vm8, %v993_v20, %v997_v22  ;;  %6449 = vmatprep.mubr.bf16.mxu1 %v7343_v38  ;;  %v1288_v43 = vrot.slane %v1211_v39, 1  ;;  %v568_v54 = vadd.f32 %v7187_v31, %v529_v42  ;;  %v673_v59 = vrot.slane %v671_v48, 7  ;;  %417 = vst [vmem:[#allocation2 + $0x88] sm:$0x1] %v416_v47  ;;  %v923_v61 = vld [vmem:[#allocation2 + $0x48] sm:$0x1]  ;;  %6079 = vmatprep.subr.bf16.mxu0 %v6898_v10 }
  0x40   : > { %1748 = vmatprep.mubr.bf16.mxu0 %v7346_v40  ;;  %v1000_v62 = vshrl.u32 %v7302_v45, 16  ;;  %v812_v63 = vld [vmem:[#allocation2 + $0x60] sm:$0xff]  ;;  %v599_v1 = vmax.f32 %v567_v53, 0.0  ;;  %v530_v3 = vmul.f32 %v5868_v56, %v7182_v30  ;;  %v1002_v4 = vshll.u32 %v7302_v45, 16  ;;  %v821_v18 = vld [vmem:[#allocation2 + $0x78] sm:$0x1] }
  0x41   : > { %v7368_v57 = vsel %vm1275_vm7, %v1288_v43, %v1289_v32  ;;  %v600_v2 = vmax.f32 %v568_v54, 0.0  ;;  %6002 = vmatpush3.bf16.msra.mxu1 %v6884_v44  ;;  %v676_v6 = vor.u32 %v674_v49, %v673_v59  ;;  %v816_v7 = vsel %vm7167_vm3, %v673_v59, %v815_v51  ;;  %v6887_v11 = vld [vmem:[%s9131_s3 + $0x60] sm:$0xff]   ;;  %v391_v28 = vld [vmem:[#allocation2 + $0x8] sm:$0x1]  ;;  %v818_v43 = vld [vmem:[#allocation2 + $0x70] sm:$0xff] }
  0x42   : > { %6450 = vmatmul.mubr.bf16.gmra.mrb[4].mxu1 %v7368_v57  ;;  %v531_v8 = vmul.f32 %v5869_v60, %v7182_v30  ;;  %v1007_v9 = vshll.u32 %v923_v61, 16  ;;  %6003 = vmatprep.subr.bf16.mxu1 %v6885_v50  ;;  %817 = vst [vmem:[#allocation2 + $0x68] sm:$0x1] %v816_v7  ;;  %v569_v13 = vadd.f32 %v7187_v31, %v530_v3  ;;  %v1004_v14 = vrot.slane %v1002_v4, 1  ;;  %v335_v15 = vld [vmem:[#allocation2] sm:$0x1] }
  0x43   : > { %v625_v12 = vpack.c.bf16 %v600_v2, %v599_v1  ;;  %v1214_v16 = vld [vmem:[#allocation2 + $0x58] sm:$0x1]  ;;  %v7389_v30 = vsel %vm7223_vm6, %v676_v6, %v812_v63  ;;  %v6888_v17 = vld [vmem:[%s9131_s3 + $0x20] sm:$0xff]   ;;  %v336_v22 = vsel %vm7167_vm3, 0, %v335_v15  ;;  %v6889_v41 = vld [vmem:[%s9131_s3 + $0x68] sm:$0xff]  }
  0x44   : > { %v570_v19 = vadd.f32 %v7187_v31, %v531_v8  ;;  %v1009_v20 = vrot.slane %v1007_v9, 1  ;;  %v1292_v29 = vrot.slane %v1214_v16, 1  ;;  %814 = vst [vmem:[#allocation2 + $0x60] sm:$0xff] %v7389_v30  ;;  %v601_v34 = vmax.f32 %v569_v13, 0.0  ;;  %337 = vst [vmem:[#allocation2] sm:$0x1] %v336_v22 }
  0x45   : > { %v678_v32 = vshrl.u32 %v625_v12, 16  ;;  %v681_v33 = vshll.u32 %v625_v12, 16  ;;  %6004 = vmatpush3.bf16.msra.mxu1 %v6886_v58  ;;  %v1213_v35 = vld [vmem:[#allocation2 + $0x50] sm:$0xfe]  ;;  %v1005_v37 = vor.u32 %v1004_v14, %v1000_v62  ;;  %v392_v31 = vsel %vm7175_vm4, 0, %v391_v28  ;;  %v6890_v44 = vld [vmem:[%s9131_s3 + $0x28] sm:$0xff]  }
  0x46   : > { %1749 = vmatmul.mubr.bf16.gmra.mrb[8].mxu0 %v7281_v26  ;;  %v602_v36 = vmax.f32 %v570_v19, 0.0  ;;  %v1291_v39 = vrot.slane %v1213_v35, 1  ;;  %6005 = vmatprep.subr.bf16.mxu1 %v6887_v11  ;;  %393 = vst [vmem:[#allocation2 + $0x8] sm:$0x1] %v392_v31  ;;  %v827_v54 = vld [vmem:[#allocation2 + $0x88] sm:$0x1] }
  0x47   : > { %v680_v42 = vrot.slane %v678_v32, 7  ;;  %v7408_v49 = vsel %vm950_vm8, %v1005_v37, %v1009_v20  ;;  %v6899_v47 = vld [vmem:[%s9131_s3 + $0x188] sm:$0xff]   ;;  %v925_v56 = vld [vmem:[#allocation2 + $0x58] sm:$0x1]  ;;  %v1012_v58 = vshrl.u32 %v7356_v46, 16  ;;  %v1014_v62 = vshll.u32 %v7356_v46, 16 }
  0x48   : > { %v626_v48 = vpack.c.bf16 %v602_v36, %v601_v34  ;;  %v7411_v50 = vsel %vm1275_vm7, %v1291_v39, %v1292_v29  ;;  %1756 = vmatprep.mubr.bf16.mxu0 %v7408_v49  ;;  %v1019_v63 = vshll.u32 %v925_v56, 16  ;;  %v6891_v3 = vld [vmem:[%s9131_s3 + $0x70] sm:$0xff]   ;;  %6080 = vmatpush3.bf16.msra.mxu0 %v6899_v47  ;;  %v824_v12 = vld [vmem:[#allocation2 + $0x80] sm:$0xff]  ;;  %v6895_v13 = vld [vmem:[%s9131_s3 + $0x78] sm:$0xff]   ;;  %v1026_v37 = vshll.u32 %v7389_v30, 16 }
  0x49   : > { %v683_v51 = vor.u32 %v681_v33, %v680_v42  ;;  %v822_v53 = vsel %vm7167_vm3, %v680_v42, %v821_v18  ;;  %6453 = vmatprep.mubr.bf16.mxu1 %v7411_v50  ;;  %v1216_v59 = vld [vmem:[#allocation2 + $0x68] sm:$0x1]  ;;  %6006 = vmatpush3.bf16.msra.mxu1 %v6888_v17  ;;  %v6892_v7 = vld [vmem:[%s9131_s3 + $0x30] sm:$0xff]   ;;  %v1016_v9 = vrot.slane %v1014_v62, 1  ;;  %v1024_v33 = vshrl.u32 %v7389_v30, 16  ;;  %v6896_v35 = vld [vmem:[%s9131_s3 + $0x38] sm:$0xff]  }
  0x4a   : > { %823 = vst [vmem:[#allocation2 + $0x78] sm:$0x1] %v822_v53  ;;  %v685_v60 = vshrl.u32 %v626_v48, 16  ;;  %v688_v61 = vshll.u32 %v626_v48, 16  ;;  %v1295_v1 = vrot.slane %v1216_v59, 1  ;;  %6007 = vmatprep.subr.bf16.mxu1 %v6889_v41  ;;  %v1021_v10 = vrot.slane %v1019_v63, 1 }
  0x4b   : > { %v7424_v2 = vsel %vm7223_vm6, %v683_v51, %v818_v43  ;;  %v1215_v4 = vld [vmem:[#allocation2 + $0x60] sm:$0xfe]  ;;  %v6901_v15 = vld [vmem:[%s9131_s3 + $0x1d0] sm:$0xff]   ;;  %v1017_v19 = vor.u32 %v1016_v9, %v1012_v58  ;;  %v927_v32 = vld [vmem:[#allocation2 + $0x68] sm:$0x1]  ;;  %v1028_v48 = vrot.slane %v1026_v37, 1 }
  0x4c   : > { %820 = vst [vmem:[#allocation2 + $0x70] sm:$0xff] %v7424_v2  ;;  %v687_v6 = vrot.slane %v685_v60, 7  ;;  %v7434_v8 = vld [vmem:[#allocation2] sm:$0xff]  ;;  %v1294_v11 = vrot.slane %v1215_v4, 1  ;;  %6081 = vmatprep.subr.bf16.mxu0 %v6901_v15  ;;  %v6902_v29 = vld [vmem:[%s9131_s3 + $0x190] sm:$0xff]   ;;  %v1031_v31 = vshll.u32 %v927_v32, 16 }
  0x4d   : > { %v954_v14 = vshll.u32 %v7434_v8, 16  ;;  %6008 = vmatpush3.bf16.msra.mxu1 %v6890_v44  ;;  %v915_v18 = vld [vmem:[#allocation2 + $0x8] sm:$0x1]  ;;  %v952_v22 = vshrl.u32 %v7434_v8, 16  ;;  %v7462_v36 = vsel %vm950_vm8, %v1017_v19, %v1021_v10  ;;  %v7469_v43 = vld [vmem:[%s9131_s3 + $0x80] sm:$0xff]   ;;  %6082 = vmatpush3.bf16.msra.mxu0 %v6902_v29  ;;  %v6904_v53 = vld [vmem:[%s9131_s3 + $0x1d8] sm:$0xff]   ;;  %v1029_v56 = vor.u32 %v1028_v48, %v1024_v33 }
  0x4e   : > { %1757 = vmatmul.mubr.bf16.gmra.mrb[12].mxu0 %v7302_v45  ;;  %v690_v16 = vor.u32 %v688_v61, %v687_v6  ;;  %v828_v17 = vsel %vm7167_vm3, %v687_v6, %v827_v54  ;;  %v7446_v20 = vsel %vm1275_vm7, %v1294_v11, %v1295_v1  ;;  %6009 = vmatprep.subr.bf16.mxu1 %v6891_v3  ;;  %v959_v28 = vshll.u32 %v915_v18, 16  ;;  %v6905_v58 = vld [vmem:[%s9131_s3 + $0x198] sm:$0xff]   ;;  %v6906_v63 = vld [vmem:[%s9131_s3 + $0x1e0] sm:$0xff]   ;;  %v6910_v19 = vld [vmem:[%s9131_s3 + $0x1a8] sm:$0xff]  }
  0x4f   : > { %829 = vst [vmem:[#allocation2 + $0x88] sm:$0x1] %v828_v17  ;;  %6454 = vmatmul.mubr.bf16.gmra.mrb[8].mxu1 %v7446_v20  ;;  %v956_v41 = vrot.slane %v954_v14, 1  ;;  %1764 = vmatprep.mubr.bf16.mxu0 %v7462_v36  ;;  %v1033_v51 = vrot.slane %v1031_v31, 1  ;;  %v1036_v60 = vshrl.u32 %v7424_v2, 16  ;;  %v1038_v61 = vshll.u32 %v7424_v2, 16 }
  0x50   : > { %v7456_v34 = vsel %vm7223_vm6, %v690_v16, %v824_v12  ;;  %v961_v42 = vrot.slane %v959_v28, 1  ;;  %6083 = vmatprep.subr.bf16.mxu0 %v6904_v53  ;;  %v6907_v9 = vld [vmem:[%s9131_s3 + $0x1a0] sm:$0xff]   ;;  %v6909_v16 = vld [vmem:[%s9131_s3 + $0x1e8] sm:$0xff]   ;;  %v6912_v37 = vld [vmem:[%s9131_s3 + $0x1b0] sm:$0xff]  }
  0x51   : > { %v1218_v39 = vld [vmem:[#allocation2 + $0x78] sm:$0x1]  ;;  %826 = vst [vmem:[#allocation2 + $0x80] sm:$0xff] %v7456_v34  ;;  %6010 = vmatpush3.bf16.msra.mxu1 %v6892_v7  ;;  %v957_v4 = vor.u32 %v956_v41, %v952_v22  ;;  %v7488_v6 = vsel %vm950_vm8, %v1029_v56, %v1033_v51  ;;  %6084 = vmatpush3.bf16.msra.mxu0 %v6905_v58  ;;  %v1040_v7 = vrot.slane %v1038_v61, 1  ;;  %v1048_v14 = vshrl.u32 %v7456_v34, 16  ;;  %v6919_v51 = vld [vmem:[%s9131_s3 + $0x100] sm:$0xff]  }
  0x52   : > { %v1298_v44 = vrot.slane %v1218_v39, 1  ;;  %6011 = vmatprep.subr.bf16.mxu1 %v6895_v13  ;;  %v929_v59 = vld [vmem:[#allocation2 + $0x78] sm:$0x1]  ;;  %6085 = vmatprep.subr.bf16.mxu0 %v6906_v63  ;;  %v1050_v22 = vshll.u32 %v7456_v34, 16  ;;  %v6903_v53 = vld [vmem:[%s9131_s3 + $0x90] sm:$0xff]  }
  0x53   : > { %v1217_v54 = vld [vmem:[#allocation2 + $0x70] sm:$0xfe]  ;;  %v1043_v62 = vshll.u32 %v929_v59, 16  ;;  %v1041_v13 = vor.u32 %v1040_v7, %v1036_v60  ;;  %v962_v17 = vsel %vm950_vm8, %v957_v4, %v961_v42  ;;  %v6914_v41 = vld [vmem:[%s9131_s3 + $0x1f8] sm:$0xff]   ;;  %v6900_v42 = vld [vmem:[%s9131_s3 + $0x88] sm:$0xff]  }
  0x54   : > { %v1297_v47 = vrot.slane %v1217_v54, 1  ;;  %v1052_v32 = vrot.slane %v1050_v22, 1  ;;  %v6915_v48 = vld [vmem:[%s9131_s3 + $0x1b8] sm:$0xff]   ;;  %v6922_v54 = vld [vmem:[%s9131_s3 + $0x108] sm:$0xff]   ;;  %v5909_v60 = vld [vmem:[%s7159_s30 + $0x40] sm:$0xff]  }
  0x55   : > { %6012 = vmatpush3.bf16.msra.mxu1 %v6896_v35  ;;  %v1045_v11 = vrot.slane %v1043_v62, 1  ;;  %6086 = vmatpush3.bf16.msra.mxu0 %v6907_v9  ;;  %v6911_v35 = vld [vmem:[%s9131_s3 + $0x1f0] sm:$0xff]   ;;  %v418_v56 = vld [vmem:[#allocation2 + $0x98] sm:$0x1]  ;;  %v5873_v61 = vunpack.c.h.bf16 %v5909_v60  ;;  %v421_v22 = vld [vmem:[#allocation2 + $0xa8] sm:$0x1] }
  0x56   : > { %1765 = vmatmul.mubr.bf16.gmra.mrb[16].mxu0 %v7356_v46  ;;  %v7485_v1 = vsel %vm1275_vm7, %v1297_v47, %v1298_v44  ;;  %v1220_v3 = vld [vmem:[#allocation2 + $0x88] sm:$0x1]  ;;  %6461 = vmatprep.subr.bf16.mxu1 %v7469_v43  ;;  %v1053_v31 = vor.u32 %v1052_v32, %v1048_v14  ;;  %v419_v59 = vsel %vm7175_vm4, 0, %v418_v56  ;;  %v6918_v62 = vld [vmem:[%s9131_s3 + $0xb8] sm:$0xff]   ;;  %v6926_v63 = vld [vmem:[%s9131_s3 + $0x110] sm:$0xff]  }
  0x57   : > { %6457 = vmatprep.mubr.bf16.mxu1 %v7485_v1  ;;  %v1301_v10 = vrot.slane %v1220_v3, 1  ;;  %1772 = vmatprep.mubr.bf16.mxu0 %v7488_v6  ;;  %v7502_v18 = vsel %vm950_vm8, %v1041_v13, %v1045_v11  ;;  %v931_v29 = vld [vmem:[#allocation2 + $0x88] sm:$0x1]  ;;  %420 = vst [vmem:[#allocation2 + $0x98] sm:$0x1] %v419_v59  ;;  %v6927_v9 = vld [vmem:[%s9131_s3 + $0xd0] sm:$0xff]  }
  0x58   : > { %v1219_v12 = vld [vmem:[#allocation2 + $0x80] sm:$0xfe]  ;;  %6087 = vmatprep.subr.bf16.mxu0 %v6909_v16  ;;  %v1055_v33 = vshll.u32 %v931_v29, 16  ;;  %v6923_v47 = vld [vmem:[%s9131_s3 + $0xc8] sm:$0xff]   ;;  %v7586_v3 = vld [vmem:[%s9129_s1] ss:$0 sm:$0xff] }
  0x59   : > { %v1300_v15 = vrot.slane %v1219_v12, 1  ;;  %6088 = vmatpush3.bf16.msra.mxu0 %v6910_v19  ;;  %v533_v7 = vmul.f32 %v7586_v3, %v5873_v61  ;;  %v7602_v11 = vld [vmem:[%s9130_s2] ss:$0 sm:$0xff]  ;;  %v6931_v16 = vld [vmem:[%s9131_s3 + $0xd8] sm:$0xff]   ;;  %v5910_v29 = vld [vmem:[%s7159_s30 + $0x48] sm:$0xff]  }
  0x5a   : > { %v1057_v39 = vrot.slane %v1055_v33, 1  ;;  %6089 = vmatprep.subr.bf16.mxu0 %v6911_v35  ;;  %v7610_v13 = vld [vmem:[%s9131_s3 + $0x200] sm:$0xff]   ;;  %v422_v33 = vsel %vm7175_vm4, 0, %v421_v22  ;;  %v5876_v35 = vunpack.c.l.bf16 %v5910_v29 }
  0x5b   : > { %v7509_v28 = vsel %vm1275_vm7, %v1300_v15, %v1301_v10  ;;  %v6930_v10 = vld [vmem:[%s9131_s3 + $0x118] sm:$0xff]   ;;  %v365_v19 = vld [vmem:[#allocation2 + $0xa0] sm:$0x1]  ;;  %423 = vst [vmem:[#allocation2 + $0xa8] sm:$0x1] %v422_v33 }
  0x5c   : > { %6458 = vmatmul.mubr.bf16.gmra.mrb[12].mxu1 %v7509_v28  ;;  %v7527_v44 = vsel %vm950_vm8, %v1053_v31, %v1057_v39  ;;  %v366_v32 = vsel %vm7167_vm3, 0, %v365_v19 }
  0x5d   : > { %2070 = vmatprep.mubr.bf16.mxu1 %v962_v17  ;;  %6090 = vmatpush3.bf16.msra.mxu0 %v6912_v37  ;;  %v5877_v37 = vunpack.c.h.bf16 %v5910_v29  ;;  %367 = vst [vmem:[#allocation2 + $0xa0] sm:$0x1] %v366_v32 }
  0x5e   : > { %1773 = vmatmul.mubr.bf16.gmra.mrb[20].mxu0 %v7389_v30  ;;  %6091 = vmatprep.subr.bf16.mxu0 %v6914_v41  ;;  %v833_v41 = vld [vmem:[#allocation2 + $0x98] sm:$0x1] }
  0x5f   : > { %1780 = vmatprep.mubr.bf16.mxu0 %v7502_v18 }
  0x61   : > { %6092 = vmatpush3.bf16.msra.mxu0 %v6915_v48  ;;  %v534_v48 = vmul.f32 %v7586_v3, %v5876_v35 }
  0x62   : > { %6157 = vmatprep.subr.bf16.mxu0 %v6919_v51  ;;  %v535_v51 = vmul.f32 %v7586_v3, %v5877_v37  ;;  %v839_v32 = vld [vmem:[#allocation2 + $0xa8] sm:$0x1] }
  0x64   : > { %2071 = vmatmul.mubr.bf16.vlgmr.msra.gmra.mrb[16].mxu1 %v7434_v8  ;;  %v6908_v8 = vld [vmem:[%s9131_s3 + $0x98] sm:$0xff]  }
  0x65   : > { %6462 = vmatpush3.bf16.msra.mxu1 %v7469_v43  ;;  %2078 = vmatprep.mubr.bf16.mxu1 %v7277_v24  ;;  %v6913_v24 = vld [vmem:[%s9131_s3 + $0xa0] sm:$0xff]   ;;  %v6916_v43 = vld [vmem:[%s9131_s3 + $0xa8] sm:$0xff]  }
  0x66   : > { %1781 = vmatmul.mubr.bf16.gmra.mrb[24].mxu0 %v7424_v2  ;;  %6463 = vmatprep.subr.bf16.mxu1 %v6900_v42 }
  0x67   : > { %1788 = vmatprep.mubr.bf16.mxu0 %v7527_v44 }
  0x69   : > { %6464 = vmatpush3.bf16.msra.mxu1 %v6900_v42  ;;  %v6934_v42 = vld [vmem:[%s9131_s3 + $0xe0] sm:$0xff]  }
  0x6a   : > { %6465 = vmatprep.subr.bf16.mxu1 %v6903_v53 }
  0x6c   : > { %2079 = vmatmul.mubr.bf16.gmra.mrb[20].mxu1 %v7241_v25  ;;  %v6920_v25 = vld [vmem:[%s9131_s3 + $0xc0] sm:$0xff]  }
  0x6d   : > { %2086 = vmatprep.mubr.bf16.mxu1 %v7326_v0  ;;  %6466 = vmatpush3.bf16.msra.mxu1 %v6903_v53  ;;  %v368_v53 = vld [vmem:[#allocation2 + $0xb0] sm:$0x1] }
  0x6e   : > { %1789 = vmatmul.mubr.bf16.gmra.mrb[28].mxu0 %v7456_v34  ;;  %6467 = vmatprep.subr.bf16.mxu1 %v6908_v8 }
  0x6f   : > { %2482 = vmatprep.mubr.bf16.mxu0 %v7326_v0  ;;  %v6917_v0 = vld [vmem:[%s9131_s3 + $0xb0] sm:$0xff]  }
  0x71   : > { %6468 = vmatpush3.bf16.msra.mxu1 %v6908_v8  ;;  %v424_v8 = vld [vmem:[#allocation2 + $0xb8] sm:$0x1] }
  0x72   : > { %6469 = vmatprep.subr.bf16.mxu1 %v6913_v24 }
  0x74   : > { %2087 = vmatmul.mubr.bf16.gmra.mrb[24].mxu1 %v7261_v52 }
  0x75   : > { %2094 = vmatprep.mubr.bf16.mxu1 %v7346_v40  ;;  %6470 = vmatpush3.bf16.msra.mxu1 %v6913_v24 }
  0x76   : > { %2483 = vmatmul.mubr.bf16.vlgmr.msra.gmra.mrb[32].mxu0 %v7261_v52  ;;  %6471 = vmatprep.subr.bf16.mxu1 %v6916_v43  ;;  %v362_v52 = vld [vmem:[#allocation2 + $0x90] sm:$0x1] }
  0x77   : > { %2490 = vmatprep.mubr.bf16.mxu0 %v7346_v40  ;;  %6158 = vmatpush3.bf16.msra.mxu0 %v6920_v25  ;;  %v363_v58 = vsel %vm7167_vm3, 0, %v362_v52  ;;  %v5872_v40 = vunpack.c.l.bf16 %v5909_v60  ;;  %v5911_v25 = vld [vmem:[%s7159_s30 + $0x50] sm:$0xff]  }
  0x78   : > { %6159 = vmatprep.subr.bf16.mxu0 %v6922_v54  ;;  %364 = vst [vmem:[#allocation2 + $0x90] sm:$0x1] %v363_v58  ;;  %v5880_v52 = vunpack.c.l.bf16 %v5911_v25  ;;  %v5881_v56 = vunpack.c.h.bf16 %v5911_v25 }
  0x79   : > { %6472 = vmatpush3.bf16.msra.mxu1 %v6916_v43  ;;  %v532_v4 = vmul.f32 %v7586_v3, %v5872_v40  ;;  %v369_v43 = vsel %vm7167_vm3, 0, %v368_v53 }
  0x7a   : > { %6473 = vmatprep.subr.bf16.mxu1 %v6917_v0  ;;  %370 = vst [vmem:[#allocation2 + $0xb0] sm:$0x1] %v369_v43  ;;  %v536_v61 = vmul.f32 %v7586_v3, %v5880_v52 }
  0x7b   : > { %6160 = vmatpush3.bf16.msra.mxu0 %v6923_v47  ;;  %v571_v12 = vadd.f32 %v7602_v11, %v532_v4  ;;  %v574_v47 = vadd.f32 %v7602_v11, %v535_v51  ;;  %v371_v4 = vld [vmem:[#allocation2 + $0xc0] sm:$0x1] }
  0x7c   : > { %2095 = vmatmul.mubr.bf16.gmra.mrb[28].mxu1 %v7281_v26  ;;  %6161 = vmatprep.subr.bf16.mxu0 %v6926_v63 }
  0x7d   : > { %2102 = vmatprep.mubr.bf16.mxu1 %v7408_v49  ;;  %6474 = vmatpush3.bf16.msra.mxu1 %v6917_v0  ;;  %v603_v14 = vmax.f32 %v571_v12, 0.0  ;;  %v573_v0 = vadd.f32 %v7602_v11, %v534_v48  ;;  %v606_v40 = vmax.f32 %v574_v47, 0.0  ;;  %v5912_v12 = vld [vmem:[%s7159_s30 + $0x58] sm:$0xff]  }
  0x7e   : > { %2491 = vmatmul.mubr.bf16.gmra.mrb[36].mxu0 %v7281_v26  ;;  %v572_v26 = vadd.f32 %v7602_v11, %v533_v7  ;;  %6475 = vmatprep.subr.bf16.mxu1 %v6918_v62  ;;  %v6937_v7 = vld [vmem:[%s9131_s3 + $0xe8] sm:$0xff]  }
  0x7f   : > { %2498 = vmatprep.mubr.bf16.mxu0 %v7408_v49  ;;  %6162 = vmatpush3.bf16.msra.mxu0 %v6927_v9  ;;  %v6933_v49 = vld [vmem:[%s9131_s3 + $0x120] sm:$0xff]   ;;  %v830_v54 = vld [vmem:[#allocation2 + $0x90] sm:$0xff]  ;;  %v605_v60 = vmax.f32 %v573_v0, 0.0 }
  0x80   : > { %v604_v15 = vmax.f32 %v572_v26, 0.0  ;;  %6163 = vmatprep.subr.bf16.mxu0 %v6930_v10  ;;  %v575_v10 = vadd.f32 %v7602_v11, %v536_v61  ;;  %v6939_v26 = vld [vmem:[%s9131_s3 + $0x130] sm:$0xff]  }
  0x81   : > { %6476 = vmatpush3.bf16.msra.mxu1 %v6918_v62  ;;  %v537_v62 = vmul.f32 %v7586_v3, %v5881_v56  ;;  %v628_v9 = vpack.c.bf16 %v606_v40, %v605_v60  ;;  %v6950_v60 = vld [vmem:[%s9131_s3 + $0x40] sm:$0xff]   ;;  %v374_v61 = vld [vmem:[#allocation2 + $0xd0] sm:$0x1] }
  0x82   : > { %v627_v17 = vpack.c.bf16 %v604_v15, %v603_v14  ;;  %6493 = vmatprep.subr.bf16.mxu1 %v7610_v13  ;;  %v372_v15 = vsel %vm7167_vm3, 0, %v371_v4  ;;  %v607_v29 = vmax.f32 %v575_v10, 0.0  ;;  %v375_v4 = vsel %vm7167_vm3, 0, %v374_v61  ;;  %v6924_v61 = vld [vmem:[%s9131_s3 + $0x208] sm:$0xff]  }
  0x83   : > { %6164 = vmatpush3.bf16.msra.mxu0 %v6931_v16  ;;  %v576_v14 = vadd.f32 %v7602_v11, %v537_v62  ;;  %v427_v16 = vld [vmem:[#allocation2 + $0xc8] sm:$0x1]  ;;  %v699_v19 = vshrl.u32 %v628_v9, 16  ;;  %v702_v22 = vshll.u32 %v628_v9, 16  ;;  %373 = vst [vmem:[#allocation2 + $0xc0] sm:$0x1] %v372_v15 }
  0x84   : > { %v692_v31 = vshrl.u32 %v627_v17, 16  ;;  %v695_v39 = vshll.u32 %v627_v17, 16  ;;  %2103 = vmatmul.mubr.bf16.gmra.mrb[32].mxu1 %v7302_v45  ;;  %6165 = vmatprep.subr.bf16.mxu0 %v6933_v49  ;;  %v5884_v49 = vunpack.c.l.bf16 %v5912_v12  ;;  %v5885_v17 = vunpack.c.h.bf16 %v5912_v12  ;;  %v842_v62 = vld [vmem:[#allocation2 + $0xb0] sm:$0xff]  ;;  %376 = vst [vmem:[#allocation2 + $0xd0] sm:$0x1] %v375_v4 }
  0x85   : > { %2110 = vmatprep.mubr.bf16.mxu1 %v7462_v36  ;;  %v608_v33 = vmax.f32 %v576_v14, 0.0  ;;  %v428_v35 = vsel %vm7175_vm4, 0, %v427_v16  ;;  %v5915_v4 = vld [vmem:[%s7159_s30 + $0x70] sm:$0xff]  }
  0x86   : > { %2499 = vmatmul.mubr.bf16.gmra.mrb[40].mxu0 %v7302_v45  ;;  %v694_v24 = vrot.slane %v692_v31, 7  ;;  %v425_v45 = vsel %vm7175_vm4, 0, %v424_v8  ;;  %v538_v37 = vmul.f32 %v7586_v3, %v5884_v49  ;;  %v539_v31 = vmul.f32 %v7586_v3, %v5885_v17  ;;  %429 = vst [vmem:[#allocation2 + $0xc8] sm:$0x1] %v428_v35  ;;  %v1204_v8 = vld [vmem:[#allocation2 + $0x8] sm:$0x1] }
  0x87   : > { %2506 = vmatprep.mubr.bf16.mxu0 %v7462_v36  ;;  %426 = vst [vmem:[#allocation2 + $0xb8] sm:$0x1] %v425_v45  ;;  %v6936_v36 = vld [vmem:[%s9131_s3 + $0x128] sm:$0xff]   ;;  %6166 = vmatpush3.bf16.msra.mxu0 %v6934_v42  ;;  %v836_v42 = vld [vmem:[#allocation2 + $0xa0] sm:$0xff]  ;;  %v629_v48 = vpack.c.bf16 %v608_v33, %v607_v29  ;;  %v6943_v45 = vld [vmem:[%s9131_s3 + $0xf8] sm:$0xff]   ;;  %v1277_v10 = vrot.slane %v1204_v8, 1 }
  0x88   : > { %v697_v58 = vor.u32 %v695_v39, %v694_v24  ;;  %v834_v59 = vsel %vm7167_vm3, %v694_v24, %v833_v41  ;;  %6167 = vmatprep.subr.bf16.mxu0 %v6936_v36  ;;  %v7671_v39 = vld [vmem:[#allocation2] sm:$0xfe]  ;;  %v701_v41 = vrot.slane %v699_v19, 7  ;;  %v577_v51 = vadd.f32 %v7602_v11, %v538_v37  ;;  %v433_v8 = vld [vmem:[#allocation2 + $0xe8] sm:$0x1] }
  0x89   : > { %835 = vst [vmem:[#allocation2 + $0x98] sm:$0x1] %v834_v59  ;;  %v578_v53 = vadd.f32 %v7602_v11, %v539_v31  ;;  %v706_v25 = vshrl.u32 %v629_v48, 16  ;;  %v5913_v36 = vld [vmem:[%s7159_s30 + $0x60] sm:$0xff]  }
  0x8a   : > { %v7649_v63 = vsel %vm7223_vm6, %v697_v58, %v830_v54  ;;  %v704_v24 = vor.u32 %v702_v22, %v701_v41  ;;  %v840_v43 = vsel %vm7167_vm3, %v701_v41, %v839_v32  ;;  %v709_v54 = vshll.u32 %v629_v48, 16  ;;  %v848_v32 = vld [vmem:[#allocation2 + $0xc0] sm:$0xff] }
  0x8b   : > { %832 = vst [vmem:[#allocation2 + $0x90] sm:$0xff] %v7649_v63  ;;  %6168 = vmatpush3.bf16.msra.mxu0 %v6937_v7  ;;  %841 = vst [vmem:[#allocation2 + $0xa8] sm:$0x1] %v840_v43  ;;  %v609_v0 = vmax.f32 %v577_v51, 0.0  ;;  %v610_v47 = vmax.f32 %v578_v53, 0.0  ;;  %v1276_v58 = vrot.slane %v7671_v39, 1  ;;  %v5888_v9 = vunpack.c.l.bf16 %v5913_v36 }
  0x8c   : > { %2111 = vmatmul.mubr.bf16.gmra.mrb[36].mxu1 %v7356_v46  ;;  %6169 = vmatprep.subr.bf16.mxu0 %v6939_v26  ;;  %v7688_v52 = vsel %vm7223_vm6, %v704_v24, %v836_v42  ;;  %v708_v59 = vrot.slane %v706_v25, 7  ;;  %v430_v7 = vld [vmem:[#allocation2 + $0xd8] sm:$0x1]  ;;  %v5889_v49 = vunpack.c.h.bf16 %v5913_v36  ;;  %v1062_v19 = vshll.u32 %v7649_v63, 16  ;;  %v377_v53 = vld [vmem:[#allocation2 + $0xe0] sm:$0x1] }
  0x8d   : > { %2118 = vmatprep.mubr.bf16.mxu1 %v7488_v6  ;;  %838 = vst [vmem:[#allocation2 + $0xa0] sm:$0xff] %v7688_v52  ;;  %v630_v40 = vpack.c.bf16 %v610_v47, %v609_v0  ;;  %v851_v15 = vld [vmem:[#allocation2 + $0xc8] sm:$0x1]  ;;  %v431_v16 = vsel %vm7175_vm4, 0, %v430_v7  ;;  %v540_v17 = vmul.f32 %v7586_v3, %v5888_v9  ;;  %v1278_v39 = vsel %vm1275_vm7, %v1276_v58, %v1277_v10  ;;  %v854_v9 = vld [vmem:[#allocation2 + $0xd0] sm:$0xff] }
  0x8e   : > { %2507 = vmatmul.mubr.bf16.gmra.mrb[44].mxu0 %v7356_v46  ;;  %v6940_v46 = vld [vmem:[%s9131_s3 + $0xf0] sm:$0xff]   ;;  %v845_v56 = vld [vmem:[#allocation2 + $0xb8] sm:$0x1]  ;;  %v711_v12 = vor.u32 %v709_v54, %v708_v59  ;;  %432 = vst [vmem:[#allocation2 + $0xd8] sm:$0x1] %v431_v16  ;;  %v541_v33 = vmul.f32 %v7586_v3, %v5889_v49  ;;  %v1064_v42 = vrot.slane %v1062_v19, 1 }
  0x8f   : > { %2514 = vmatprep.mubr.bf16.mxu0 %v7488_v6  ;;  %v6942_v6 = vld [vmem:[%s9131_s3 + $0x138] sm:$0xff]   ;;  %6170 = vmatpush3.bf16.msra.mxu0 %v6940_v46  ;;  %v846_v26 = vsel %vm7167_vm3, %v708_v59, %v845_v56  ;;  %v713_v14 = vshrl.u32 %v630_v40, 16  ;;  %v579_v35 = vadd.f32 %v7602_v11, %v540_v17  ;;  %v1060_v46 = vshrl.u32 %v7649_v63, 16  ;;  %v5914_v43 = vld [vmem:[%s7159_s30 + $0x68] sm:$0xff]   ;;  %v6925_v16 = vld [vmem:[%s9131_s3 + $0x210] sm:$0xff]  }
  0x90   : > { %6171 = vmatprep.subr.bf16.mxu0 %v6942_v6  ;;  %847 = vst [vmem:[#allocation2 + $0xb8] sm:$0x1] %v846_v26  ;;  %v933_v29 = vld [vmem:[#allocation2 + $0x98] sm:$0x1]  ;;  %v580_v41 = vadd.f32 %v7602_v11, %v541_v33  ;;  %v434_v25 = vsel %vm7175_vm4, 0, %v433_v8  ;;  %v5893_v56 = vunpack.c.h.bf16 %v5914_v43  ;;  %v5896_v26 = vunpack.c.l.bf16 %v5915_v4 }
  0x91   : > { %v715_v22 = vrot.slane %v713_v14, 7  ;;  %v611_v6 = vmax.f32 %v579_v35, 0.0  ;;  %v1067_v48 = vshll.u32 %v933_v29, 16  ;;  %435 = vst [vmem:[#allocation2 + $0xe8] sm:$0x1] %v434_v25  ;;  %v1065_v0 = vor.u32 %v1064_v42, %v1060_v46 }
  0x92   : > { %v612_v24 = vmax.f32 %v580_v41, 0.0  ;;  %v1074_v14 = vshll.u32 %v7688_v52, 16  ;;  %v935_v29 = vld [vmem:[#allocation2 + $0xa8] sm:$0x1]  ;;  %v383_v25 = vld [vmem:[#allocation2 + $0x100] sm:$0x1] }
  0x93   : > { %6172 = vmatpush3.bf16.msra.mxu0 %v6943_v45  ;;  %v852_v31 = vsel %vm7167_vm3, %v715_v22, %v851_v15  ;;  %v378_v45 = vsel %vm7167_vm3, 0, %v377_v53  ;;  %v1069_v47 = vrot.slane %v1067_v48, 1 }
  0x94   : > { %2119 = vmatmul.mubr.bf16.gmra.mrb[40].mxu1 %v7389_v30  ;;  %6237 = vmatprep.subr.bf16.mxu0 %v6950_v60  ;;  %853 = vst [vmem:[#allocation2 + $0xc8] sm:$0x1] %v852_v31  ;;  %v631_v54 = vpack.c.bf16 %v612_v24, %v611_v6  ;;  %379 = vst [vmem:[#allocation2 + $0xe0] sm:$0x1] %v378_v45  ;;  %v1076_v31 = vrot.slane %v1074_v14, 1  ;;  %v5916_v24 = vld [vmem:[%s7159_s30 + $0x78] sm:$0xff]  }
  0x95   : > { %2126 = vmatprep.mubr.bf16.mxu1 %v7502_v18  ;;  %v857_v59 = vld [vmem:[#allocation2 + $0xd8] sm:$0x1]  ;;  %v7740_v7 = vsel %vm950_vm8, %v1065_v0, %v1069_v47  ;;  %v5901_v0 = vunpack.c.h.bf16 %v5916_v24 }
  0x96   : > { %2515 = vmatmul.mubr.bf16.gmra.mrb[48].mxu0 %v7389_v30  ;;  %v716_v30 = vshll.u32 %v630_v40, 16  ;;  %v720_v36 = vshrl.u32 %v631_v54, 16  ;;  %v723_v58 = vshll.u32 %v631_v54, 16  ;;  %v543_v40 = vmul.f32 %v7586_v3, %v5893_v56 }
  0x97   : > { %2522 = vmatprep.mubr.bf16.mxu0 %v7502_v18  ;;  %v7710_v18 = vsel %vm7223_vm6, %v711_v12, %v842_v62  ;;  %v5900_v54 = vunpack.c.l.bf16 %v5916_v24  ;;  %v384_v56 = vsel %vm7167_vm3, 0, %v383_v25 }
  0x98   : > { %844 = vst [vmem:[#allocation2 + $0xb0] sm:$0xff] %v7710_v18  ;;  %v718_v37 = vor.u32 %v716_v30, %v715_v22  ;;  %v722_v62 = vrot.slane %v720_v36, 7  ;;  %v582_v12 = vadd.f32 %v7602_v11, %v543_v40  ;;  %v436_v22 = vld [vmem:[#allocation2 + $0xf8] sm:$0x1]  ;;  %v863_v48 = vld [vmem:[#allocation2 + $0xe8] sm:$0x1] }
  0x99   : > { %v1086_v36 = vshll.u32 %v7710_v18, 16  ;;  %385 = vst [vmem:[#allocation2 + $0x100] sm:$0x1] %v384_v56  ;;  %v6929_v40 = vld [vmem:[%s9131_s3 + $0x220] sm:$0xff]  }
  0x9a   : > { %v7722_v51 = vsel %vm7223_vm6, %v718_v37, %v848_v32  ;;  %v725_v15 = vor.u32 %v723_v58, %v722_v62  ;;  %v858_v30 = vsel %vm7167_vm3, %v722_v62, %v857_v59  ;;  %v614_v17 = vmax.f32 %v582_v12, 0.0  ;;  %v6928_v37 = vld [vmem:[%s9131_s3 + $0x218] sm:$0xff]  }
  0x9b   : > { %850 = vst [vmem:[#allocation2 + $0xc0] sm:$0xff] %v7722_v51  ;;  %859 = vst [vmem:[#allocation2 + $0xd8] sm:$0x1] %v858_v30  ;;  %v1072_v32 = vshrl.u32 %v7688_v52, 16  ;;  %v860_v47 = vld [vmem:[#allocation2 + $0xe0] sm:$0xff] }
  0x9c   : > { %2127 = vmatmul.mubr.bf16.gmra.mrb[44].mxu1 %v7424_v2  ;;  %v7758_v19 = vsel %vm7223_vm6, %v725_v15, %v854_v9  ;;  %v547_v9 = vmul.f32 %v7586_v3, %v5901_v0  ;;  %v6932_v15 = vld [vmem:[%s9131_s3 + $0x228] sm:$0xff]   ;;  %v937_v30 = vld [vmem:[#allocation2 + $0xb8] sm:$0x1] }
  0x9d   : > { %6477 = vmatprep.mubr.bf16.mxu1 %v1278_v39  ;;  %856 = vst [vmem:[#allocation2 + $0xd0] sm:$0xff] %v7758_v19  ;;  %v437_v39 = vsel %vm7175_vm4, 0, %v436_v22 }
  0x9e   : > { %2523 = vmatmul.mubr.bf16.gmra.mrb[52].mxu0 %v7424_v2  ;;  %v5892_v2 = vunpack.c.l.bf16 %v5914_v43  ;;  %438 = vst [vmem:[#allocation2 + $0xf8] sm:$0x1] %v437_v39  ;;  %v1079_v43 = vshll.u32 %v935_v29, 16 }
  0x9f   : > { %2530 = vmatprep.mubr.bf16.mxu0 %v7527_v44 }
  0xa0   : > { %v542_v60 = vmul.f32 %v7586_v3, %v5892_v2  ;;  %v1081_v12 = vrot.slane %v1079_v43, 1 }
  0xa2   : > { %v581_v10 = vadd.f32 %v7602_v11, %v542_v60  ;;  %v439_v60 = vld [vmem:[#allocation2 + $0x108] sm:$0x1] }
  0xa3   : > { %v440_v62 = vsel %vm7175_vm4, 0, %v439_v60 }
  0xa4   : > { %6478 = vmatmul.mubr.bf16.vlgmr.msra.gmra.mrb[0].mxu1 %v7274_v21  ;;  %v613_v49 = vmax.f32 %v581_v10, 0.0  ;;  %v5897_v21 = vunpack.c.h.bf16 %v5915_v4  ;;  %v546_v4 = vmul.f32 %v7586_v3, %v5900_v54  ;;  %v1077_v10 = vor.u32 %v1076_v31, %v1072_v32  ;;  %441 = vst [vmem:[#allocation2 + $0x108] sm:$0x1] %v440_v62 }
  0xa5   : > { %6494 = vmatpush3.bf16.msra.mxu1 %v7610_v13  ;;  %6481 = vmatprep.mubr.bf16.mxu1 %v7310_v55  ;;  %v380_v13 = vld [vmem:[#allocation2 + $0xf0] sm:$0x1]  ;;  %v1091_v32 = vshll.u32 %v937_v30, 16  ;;  %v1096_v54 = vshrl.u32 %v7722_v51, 16 }
  0xa6   : > { %2531 = vmatmul.mubr.bf16.gmra.mrb[56].mxu0 %v7456_v34  ;;  %v544_v34 = vmul.f32 %v7586_v3, %v5896_v26  ;;  %6495 = vmatprep.subr.bf16.mxu1 %v6924_v61  ;;  %v632_v33 = vpack.c.bf16 %v614_v17, %v613_v49  ;;  %v381_v35 = vsel %vm7167_vm3, 0, %v380_v13  ;;  %v545_v46 = vmul.f32 %v7586_v3, %v5897_v21  ;;  %v869_v17 = vld [vmem:[#allocation2 + $0xf8] sm:$0x1]  ;;  %v6951_v3 = vld [vmem:[%s9131_s3] sm:$0xff]  }
  0xa7   : > { %2538 = vmatprep.mubr.bf16.mxu0 %v7740_v7  ;;  %382 = vst [vmem:[#allocation2 + $0xf0] sm:$0x1] %v381_v35  ;;  %v1084_v26 = vshrl.u32 %v7710_v18, 16  ;;  %v585_v21 = vadd.f32 %v7602_v11, %v546_v4  ;;  %v1088_v13 = vrot.slane %v1086_v36, 1  ;;  %v7804_v29 = vsel %vm950_vm8, %v1077_v10, %v1081_v12  ;;  %v941_v10 = vld [vmem:[#allocation2 + $0xd8] sm:$0x1] }
  0xa8   : > { %v583_v41 = vadd.f32 %v7602_v11, %v544_v34  ;;  %v727_v6 = vshrl.u32 %v632_v33, 16  ;;  %v730_v42 = vshll.u32 %v632_v33, 16  ;;  %v584_v53 = vadd.f32 %v7602_v11, %v545_v46 }
  0xa9   : > { %6496 = vmatpush3.bf16.msra.mxu1 %v6924_v61  ;;  %v586_v34 = vadd.f32 %v7602_v11, %v547_v9  ;;  %v617_v35 = vmax.f32 %v585_v21, 0.0  ;;  %v1115_v30 = vshll.u32 %v941_v10, 16 }
  0xaa   : > { %6497 = vmatprep.subr.bf16.mxu1 %v6925_v16  ;;  %v615_v8 = vmax.f32 %v583_v41, 0.0  ;;  %v729_v45 = vrot.slane %v727_v6, 7  ;;  %v616_v2 = vmax.f32 %v584_v53, 0.0  ;;  %v6935_v41 = vld [vmem:[%s9131_s3 + $0x230] sm:$0xff]   ;;  %v939_v53 = vld [vmem:[#allocation2 + $0xc8] sm:$0x1] }
  0xab   : > { %v618_v31 = vmax.f32 %v586_v34, 0.0  ;;  %v875_v25 = vld [vmem:[#allocation2 + $0x108] sm:$0x1]  ;;  %v1103_v36 = vshll.u32 %v939_v53, 16 }
  0xac   : > { %6482 = vmatmul.mubr.bf16.gmra.mrb[4].mxu1 %v7343_v38  ;;  %v732_v58 = vor.u32 %v730_v42, %v729_v45  ;;  %v864_v59 = vsel %vm7167_vm3, %v729_v45, %v863_v48  ;;  %v633_v61 = vpack.c.bf16 %v616_v2, %v615_v8  ;;  %v1089_v42 = vor.u32 %v1088_v13, %v1084_v26  ;;  %v6955_v8 = vld [vmem:[%s9131_s3 + $0x8] sm:$0xff]   ;;  %v6938_v45 = vld [vmem:[%s9131_s3 + $0x238] sm:$0xff]   ;;  %v872_v2 = vld [vmem:[#allocation2 + $0x100] sm:$0xff] }
  0xad   : > { %6498 = vmatpush3.bf16.msra.mxu1 %v6925_v16  ;;  %6485 = vmatprep.mubr.bf16.mxu1 %v7368_v57  ;;  %865 = vst [vmem:[#allocation2 + $0xe8] sm:$0x1] %v864_v59  ;;  %v634_v46 = vpack.c.bf16 %v618_v31, %v617_v35  ;;  %v1093_v48 = vrot.slane %v1091_v32, 1  ;;  %v1105_v9 = vrot.slane %v1103_v36, 1  ;;  %v1108_v26 = vshrl.u32 %v7758_v19, 16  ;;  %v6969_v31 = vld [vmem:[%s9131_s3 + $0x28] sm:$0xff]  }
  0xae   : > { %2539 = vmatmul.mubr.bf16.gmra.mrb[60].mxu0 %v7649_v63  ;;  %6499 = vmatprep.subr.bf16.mxu1 %v6928_v37  ;;  %v7792_v14 = vsel %vm7223_vm6, %v732_v58, %v860_v47  ;;  %v734_v16 = vshrl.u32 %v633_v61, 16  ;;  %v737_v49 = vshll.u32 %v633_v61, 16  ;;  %v866_v33 = vld [vmem:[#allocation2 + $0xf0] sm:$0xff]  ;;  %v6962_v61 = vld [vmem:[%s9131_s3 + $0x58] sm:$0xff]  }
  0xaf   : > { %3021 = vmatprep.mubr.bf16.mxu0 %v7740_v7  ;;  %862 = vst [vmem:[#allocation2 + $0xe0] sm:$0xff] %v7792_v14  ;;  %v741_v24 = vshrl.u32 %v634_v46, 16  ;;  %v744_v43 = vshll.u32 %v634_v46, 16  ;;  %v7832_v56 = vsel %vm950_vm8, %v1089_v42, %v1093_v48  ;;  %v6958_v58 = vld [vmem:[%s9131_s3 + $0x50] sm:$0xff]   ;;  %v1122_v21 = vshll.u32 %v7792_v14, 16 }
  0xb0   : > { %v736_v22 = vrot.slane %v734_v16, 7  ;;  %v6963_v16 = vld [vmem:[%s9131_s3 + $0x18] sm:$0xff]   ;;  %v1120_v13 = vshrl.u32 %v7792_v14, 16  ;;  %v6972_v48 = vld [vmem:[%s9131_s3 + $0x30] sm:$0xff]  }
  0xb1   : > { %6500 = vmatpush3.bf16.msra.mxu1 %v6928_v37  ;;  %v6954_v37 = vld [vmem:[%s9131_s3 + $0x48] sm:$0xff]   ;;  %v743_v0 = vrot.slane %v741_v24, 7  ;;  %v1222_v46 = vld [vmem:[#allocation2 + $0x98] sm:$0x1] }
  0xb2   : > { %6501 = vmatprep.subr.bf16.mxu1 %v6929_v40  ;;  %v739_v39 = vor.u32 %v737_v49, %v736_v22  ;;  %v870_v11 = vsel %vm7167_vm3, %v736_v22, %v869_v17  ;;  %v6965_v49 = vld [vmem:[%s9131_s3 + $0x60] sm:$0xff]   ;;  %v6945_v17 = vld [vmem:[%s9131_s3 + $0x150] sm:$0xff]   ;;  %v6968_v22 = vld [vmem:[%s9131_s3 + $0x68] sm:$0xff]  }
  0xb3   : > { %871 = vst [vmem:[#allocation2 + $0xf8] sm:$0x1] %v870_v11  ;;  %v746_v59 = vor.u32 %v744_v43, %v743_v0  ;;  %v876_v60 = vsel %vm7167_vm3, %v743_v0, %v875_v25  ;;  %v6949_v43 = vld [vmem:[%s9131_s3 + $0x170] sm:$0xff]  }
  0xb4   : > { %6486 = vmatmul.mubr.bf16.gmra.mrb[8].mxu1 %v7411_v50  ;;  %v7821_v6 = vsel %vm7223_vm6, %v739_v39, %v866_v33  ;;  %877 = vst [vmem:[#allocation2 + $0x108] sm:$0x1] %v876_v60  ;;  %v943_v34 = vld [vmem:[#allocation2 + $0xe8] sm:$0x1]  ;;  %v1124_v33 = vrot.slane %v1122_v21, 1  ;;  %v6947_v39 = vld [vmem:[%s9131_s3 + $0x160] sm:$0xff]  }
  0xb5   : > { %6502 = vmatpush3.bf16.msra.mxu1 %v6929_v40  ;;  %6489 = vmatprep.mubr.bf16.mxu1 %v7446_v20  ;;  %868 = vst [vmem:[#allocation2 + $0xf0] sm:$0xff] %v7821_v6  ;;  %v6959_v40 = vld [vmem:[%s9131_s3 + $0x10] sm:$0xff]   ;;  %v7850_v62 = vsel %vm7223_vm6, %v746_v59, %v872_v2  ;;  %v1127_v35 = vshll.u32 %v943_v34, 16  ;;  %v1134_v11 = vshll.u32 %v7821_v6, 16  ;;  %v1132_v42 = vshrl.u32 %v7821_v6, 16  ;;  %v6952_v59 = vld [vmem:[%s9131_s3 + $0x178] sm:$0xff]  }
  0xb6   : > { %3022 = vmatmul.mubr.bf16.vlgmr.msra.gmra.mrb[64].mxu0 %v7649_v63  ;;  %6503 = vmatprep.subr.bf16.mxu1 %v6932_v15  ;;  %v1098_v63 = vshll.u32 %v7722_v51, 16  ;;  %874 = vst [vmem:[#allocation2 + $0x100] sm:$0xff] %v7850_v62  ;;  %v1146_v2 = vshll.u32 %v7850_v62, 16  ;;  %v1223_v60 = vld [vmem:[#allocation2 + $0xa0] sm:$0xfe] }
  0xb7   : > { %3029 = vmatprep.mubr.bf16.mxu0 %v7804_v29  ;;  %6238 = vmatpush3.bf16.msra.mxu0 %v6951_v3  ;;  %v386_v21 = vld [vmem:[#allocation2 + $0x110] sm:$0x1]  ;;  %v442_v34 = vld [vmem:[#allocation2 + $0x118] sm:$0x1] }
  0xb8   : > { %6239 = vmatprep.subr.bf16.mxu0 %v6954_v37  ;;  %v1100_v47 = vrot.slane %v1098_v63, 1  ;;  %v6971_v37 = vld [vmem:[%s9131_s3 + $0x70] sm:$0xff]  }
  0xb9   : > { %6504 = vmatpush3.bf16.msra.mxu1 %v6932_v15  ;;  %v1221_v63 = vld [vmem:[#allocation2 + $0x90] sm:$0xfe] }
  0xba   : > { %6505 = vmatprep.subr.bf16.mxu1 %v6935_v41  ;;  %v1101_v4 = vor.u32 %v1100_v47, %v1096_v54  ;;  %v1303_v25 = vrot.slane %v1221_v63, 1  ;;  %v1304_v54 = vrot.slane %v1222_v46, 1  ;;  %v6960_v46 = vld [vmem:[%s9131_s3 + $0x98] sm:$0xff]   ;;  %v1231_v63 = vld [vmem:[#allocation2 + $0xe0] sm:$0xfe] }
  0xbb   : > { %6240 = vmatpush3.bf16.msra.mxu0 %v6955_v8  ;;  %v1136_v8 = vrot.slane %v1134_v11, 1  ;;  %v947_v36 = vld [vmem:[#allocation2 + $0x108] sm:$0x1] }
  0xbc   : > { %6490 = vmatmul.mubr.bf16.gmra.mrb[12].mxu1 %v7485_v1  ;;  %6241 = vmatprep.subr.bf16.mxu0 %v6958_v58  ;;  %v7862_v12 = vsel %vm950_vm8, %v1101_v4, %v1105_v9  ;;  %v7931_v58 = vsel %vm1275_vm7, %v1303_v25, %v1304_v54  ;;  %v1144_v9 = vshrl.u32 %v7850_v62, 16  ;;  %v1151_v10 = vshll.u32 %v947_v36, 16  ;;  %v7017_v36 = vld [vmem:[#allocation2 + $0x80] sm:$0xff] }
  0xbd   : > { %6506 = vmatpush3.bf16.msra.mxu1 %v6935_v41  ;;  %6509 = vmatprep.mubr.bf16.mxu1 %v7310_v55  ;;  %v1110_v55 = vshll.u32 %v7758_v19, 16  ;;  %v945_v41 = vld [vmem:[#allocation2 + $0xf8] sm:$0x1]  ;;  %v1137_v0 = vor.u32 %v1136_v8, %v1132_v42  ;;  %v1232_v42 = vld [vmem:[#allocation2 + $0xe8] sm:$0x1] }
  0xbe   : > { %3030 = vmatmul.mubr.bf16.gmra.mrb[68].mxu0 %v7688_v52  ;;  %6507 = vmatprep.subr.bf16.mxu1 %v6938_v45  ;;  %v6941_v52 = vld [vmem:[%s9131_s3 + $0x140] sm:$0xff]   ;;  %v1139_v24 = vshll.u32 %v945_v41, 16  ;;  %v1234_v8 = vld [vmem:[#allocation2 + $0xf8] sm:$0x1] }
  0xbf   : > { %3037 = vmatprep.mubr.bf16.mxu0 %v7832_v56  ;;  %6242 = vmatpush3.bf16.msra.mxu0 %v6959_v40  ;;  %v1112_v15 = vrot.slane %v1110_v55, 1  ;;  %v1224_v40 = vld [vmem:[#allocation2 + $0xa8] sm:$0x1]  ;;  %v1148_v55 = vrot.slane %v1146_v2, 1  ;;  %v1322_v54 = vrot.slane %v1234_v8, 1  ;;  %v7003_v8 = vld [vmem:[%s9134_s6 + $0x38] sm:$0xff]  }
  0xc0   : > { %6243 = vmatprep.subr.bf16.mxu0 %v6962_v61  ;;  %v1141_v47 = vrot.slane %v1139_v24, 1  ;;  %v1225_v61 = vld [vmem:[#allocation2 + $0xb0] sm:$0xfe]  ;;  %v1318_v24 = vrot.slane %v1231_v63, 1  ;;  %v1236_v2 = vld [vmem:[#allocation2 + $0x108] sm:$0x1] }
  0xc1   : > { %6508 = vmatpush3.bf16.msra.mxu1 %v6938_v45  ;;  %v1113_v3 = vor.u32 %v1112_v15, %v1108_v26  ;;  %v6974_v45 = vld [vmem:[%s9131_s3 + $0x78] sm:$0xff]   ;;  %v1306_v26 = vrot.slane %v1223_v60, 1  ;;  %v1307_v15 = vrot.slane %v1224_v40, 1  ;;  %v1325_v60 = vrot.slane %v1236_v2, 1  ;;  %v6967_v40 = vld [vmem:[%s9131_s3 + $0xb0] sm:$0xff]  }
  0xc2   : > { %6525 = vmatprep.subr.bf16.mxu1 %v6941_v52  ;;  %v7937_v4 = vsel %vm950_vm8, %v1137_v0, %v1141_v47  ;;  %v1235_v47 = vld [vmem:[#allocation2 + $0x100] sm:$0xfe]  ;;  %v6990_v2 = vld [vmem:[%s9131_s3 + $0x1f8] sm:$0xff]  }
  0xc3   : > { %6244 = vmatpush3.bf16.msra.mxu0 %v6963_v16  ;;  %v1309_v16 = vrot.slane %v1225_v61, 1 }
  0xc4   : > { %6510 = vmatmul.mubr.bf16.vlgmr.msra.gmra.mrb[0].mxu1 %v7343_v38  ;;  %v6966_v38 = vld [vmem:[%s9131_s3 + $0x20] sm:$0xff]   ;;  %6245 = vmatprep.subr.bf16.mxu0 %v6965_v49 }
  0xc5   : > { %6526 = vmatpush3.bf16.msra.mxu1 %v6941_v52  ;;  %6513 = vmatprep.mubr.bf16.mxu1 %v7368_v57  ;;  %v6946_v57 = vld [vmem:[%s9131_s3 + $0x158] sm:$0xff]  }
  0xc6   : > { %3038 = vmatmul.mubr.bf16.gmra.mrb[72].mxu0 %v7710_v18  ;;  %6527 = vmatprep.subr.bf16.mxu1 %v6944_v5  ;;  %v1117_v18 = vrot.slane %v1115_v30, 1  ;;  %v1226_v52 = vld [vmem:[#allocation2 + $0xb8] sm:$0x1]  ;;  %v6953_v30 = vld [vmem:[%s9131_s3 + $0x80] sm:$0xff]  }
  0xc7   : > { %3045 = vmatprep.mubr.bf16.mxu0 %v7862_v12  ;;  %6246 = vmatpush3.bf16.msra.mxu0 %v6966_v38  ;;  %v1310_v49 = vrot.slane %v1226_v52, 1  ;;  %v1153_v38 = vrot.slane %v1151_v10, 1  ;;  %v6970_v52 = vld [vmem:[%s9131_s3 + $0xb8] sm:$0xff]   ;;  %v6973_v10 = vld [vmem:[%s9131_s3 + $0x1c0] sm:$0xff]  }
  0xc8   : > { %v7890_v32 = vsel %vm950_vm8, %v1113_v3, %v1117_v18  ;;  %6247 = vmatprep.subr.bf16.mxu0 %v6968_v22  ;;  %v6956_v3 = vld [vmem:[%s9131_s3 + $0x88] sm:$0xff]   ;;  %v443_v22 = vsel %vm7175_vm4, 0, %v442_v34 }
  0xc9   : > { %6528 = vmatpush3.bf16.msra.mxu1 %v6944_v5  ;;  %v7943_v5 = vld [vmem:[%s9134_s6] sm:$0xff]   ;;  %v1228_v18 = vld [vmem:[#allocation2 + $0xc8] sm:$0x1]  ;;  %444 = vst [vmem:[#allocation2 + $0x118] sm:$0x1] %v443_v22  ;;  %v8064_v22 = vld [vmem:[#allocation2 + $0xb0] sm:$0xff] }
  0xca   : > { %6529 = vmatprep.subr.bf16.mxu1 %v6945_v17 }
  0xcb   : > { %6248 = vmatpush3.bf16.msra.mxu0 %v6969_v31  ;;  %v1229_v31 = vld [vmem:[#allocation2 + $0xd0] sm:$0xfe] }
  0xcc   : > { %6514 = vmatmul.mubr.bf16.gmra.mrb[4].mxu1 %v7411_v50  ;;  %v1125_v50 = vor.u32 %v1124_v33, %v1120_v13  ;;  %6249 = vmatprep.subr.bf16.mxu0 %v6971_v37  ;;  %v387_v13 = vsel %vm7167_vm3, 0, %v386_v21  ;;  %v7964_v33 = vsel %vm1275_vm7, %v1309_v16, %v1310_v49  ;;  %v1230_v37 = vld [vmem:[#allocation2 + $0xd8] sm:$0x1] }
  0xcd   : > { %6530 = vmatpush3.bf16.msra.mxu1 %v6945_v17  ;;  %6517 = vmatprep.mubr.bf16.mxu1 %v7446_v20  ;;  %v6948_v20 = vld [vmem:[%s9131_s3 + $0x168] sm:$0xff]   ;;  %v1149_v17 = vor.u32 %v1148_v55, %v1144_v9  ;;  %388 = vst [vmem:[#allocation2 + $0x110] sm:$0x1] %v387_v13  ;;  %v1316_v11 = vrot.slane %v1230_v37, 1  ;;  %v6995_v9 = vld [vmem:[%s9134_s6 + $0x10] sm:$0xff]   ;;  %v6997_v55 = vld [vmem:[%s9134_s6 + $0x18] sm:$0xff]  }
  0xce   : > { %3046 = vmatmul.mubr.bf16.gmra.mrb[76].mxu0 %v7722_v51  ;;  %6531 = vmatprep.subr.bf16.mxu1 %v6946_v57  ;;  %v1129_v51 = vrot.slane %v1127_v35, 1  ;;  %v1227_v35 = vld [vmem:[#allocation2 + $0xc0] sm:$0xfe]  ;;  %v7000_v13 = vld [vmem:[%s9134_s6 + $0x28] sm:$0xff]  }
  0xcf   : > { %3053 = vmatprep.mubr.bf16.mxu0 %v7890_v32  ;;  %6250 = vmatpush3.bf16.msra.mxu0 %v6972_v48  ;;  %v1312_v27 = vrot.slane %v1227_v35, 1  ;;  %v1233_v48 = vld [vmem:[#allocation2 + $0xf0] sm:$0xfe]  ;;  %v6982_v35 = vld [vmem:[%s9131_s3 + $0x198] sm:$0xff]   ;;  %v6983_v37 = vld [vmem:[%s9131_s3 + $0x1e0] sm:$0xff]  }
  0xd0   : > { %v7914_v53 = vsel %vm950_vm8, %v1125_v50, %v1129_v51  ;;  %6251 = vmatprep.subr.bf16.mxu0 %v6974_v45  ;;  %v1313_v50 = vrot.slane %v1228_v18, 1  ;;  %v1315_v51 = vrot.slane %v1229_v31, 1  ;;  %v6961_v45 = vld [vmem:[%s9131_s3 + $0xa0] sm:$0xff]   ;;  %v1321_v25 = vrot.slane %v1233_v48, 1  ;;  %v6981_v18 = vld [vmem:[%s9131_s3 + $0x1d8] sm:$0xff]   ;;  %v7001_v31 = vld [vmem:[%s9134_s6 + $0x30] sm:$0xff]  }
  0xd1   : > { %6532 = vmatpush3.bf16.msra.mxu1 %v6946_v57  ;;  %v7957_v57 = vsel %vm1275_vm7, %v1306_v26, %v1307_v15  ;;  %v8036_v26 = vld [vmem:[#allocation2 + $0xa0] sm:$0xff] }
  0xd2   : > { %6533 = vmatprep.subr.bf16.mxu1 %v6947_v39  ;;  %v7983_v41 = vsel %vm1275_vm7, %v1315_v51, %v1316_v11  ;;  %v7999_v0 = vsel %vm1275_vm7, %v1321_v25, %v1322_v54  ;;  %v6998_v15 = vld [vmem:[%s9134_s6 + $0x20] sm:$0xff]   ;;  %v6988_v54 = vld [vmem:[%s9131_s3 + $0x1b0] sm:$0xff]  }
  0xd3   : > { %v8089_v48 = vld [vmem:[#allocation2 + $0xc0] sm:$0xff] }
  0xd4   : > { %6518 = vmatmul.mubr.bf16.gmra.mrb[8].mxu1 %v7485_v1  ;;  %v6976_v1 = vld [vmem:[%s9131_s3 + $0x38] sm:$0xff]  }
  0xd5   : > { %6534 = vmatpush3.bf16.msra.mxu1 %v6947_v39  ;;  %6521 = vmatprep.mubr.bf16.mxu1 %v7509_v28  ;;  %v7967_v39 = vsel %vm950_vm8, %v1149_v17, %v1153_v38  ;;  %v6980_v17 = vld [vmem:[%s9131_s3 + $0x190] sm:$0xff]  }
  0xd6   : > { %3054 = vmatmul.mubr.bf16.gmra.mrb[80].mxu0 %v7758_v19  ;;  %6535 = vmatprep.subr.bf16.mxu1 %v6948_v20 }
  0xd7   : > { %3061 = vmatprep.mubr.bf16.mxu0 %v7914_v53  ;;  %6252 = vmatpush3.bf16.msra.mxu0 %v6976_v1 }
  0xd8   : > { %6621 = vmatprep.subr.bf16.mxu0 %v7943_v5 }
  0xd9   : > { %6536 = vmatpush3.bf16.msra.mxu1 %v6948_v20  ;;  %v7977_v20 = vsel %vm1275_vm7, %v1312_v27, %v1313_v50  ;;  %v6984_v50 = vld [vmem:[%s9131_s3 + $0x1a0] sm:$0xff]  }
  0xda   : > { %6537 = vmatprep.subr.bf16.mxu1 %v6949_v43 }
  0xdc   : > { %6522 = vmatmul.mubr.bf16.gmra.mrb[12].mxu1 %v7931_v58 }
  0xdd   : > { %6538 = vmatpush3.bf16.msra.mxu1 %v6949_v43  ;;  %6541 = vmatprep.mubr.bf16.mxu1 %v7931_v58  ;;  %v1319_v43 = vrot.slane %v1232_v42, 1 }
  0xde   : > { %3062 = vmatmul.mubr.bf16.gmra.mrb[84].mxu0 %v7792_v14  ;;  %6539 = vmatprep.subr.bf16.mxu1 %v6952_v59 }
  0xdf   : > { %3069 = vmatprep.mubr.bf16.mxu0 %v7937_v4  ;;  %v7993_v1 = vsel %vm1275_vm7, %v1318_v24, %v1319_v43  ;;  %v6986_v24 = vld [vmem:[%s9131_s3 + $0x1a8] sm:$0xff]   ;;  %v6987_v43 = vld [vmem:[%s9131_s3 + $0x1f0] sm:$0xff]  }
  0xe1   : > { %6540 = vmatpush3.bf16.msra.mxu1 %v6952_v59  ;;  %v1324_v59 = vrot.slane %v1235_v47, 1 }
  0xe2   : > { %6557 = vmatprep.subr.bf16.mxu1 %v6953_v30 }
  0xe3   : > { %v8012_v61 = vsel %vm1275_vm7, %v1324_v59, %v1325_v60  ;;  %v8116_v59 = vld [vmem:[%s9134_s6] sm:$0xff]   ;;  %v7038_v60 = vmov 0.0  }
  0xe4   : > { %6542 = vmatmul.mubr.bf16.vlgmr.msra.gmra.mrb[48].mxu1 %v7957_v57  ;;  %1381 = vst [vmem:[#allocation4 + $0xc0] sm:$0x1] %v7038_v60  ;;  %1366 = vst [vmem:[#allocation4] sm:$0xff] %v7038_v60 }
  0xe5   : > { %6558 = vmatpush3.bf16.msra.mxu1 %v6953_v30  ;;  %6545 = vmatprep.mubr.bf16.mxu1 %v7964_v33  ;;  %v6978_v30 = vld [vmem:[%s9131_s3 + $0x188] sm:$0xff]   ;;  %1367 = vst [vmem:[#allocation4 + $0x8] sm:$0xff] %v7038_v60  ;;  %1368 = vst [vmem:[#allocation4 + $0x10] sm:$0xff] %v7038_v60 }
  0xe6   : > { %3070 = vmatmul.mubr.bf16.gmra.mrb[88].mxu0 %v7821_v6  ;;  %6559 = vmatprep.subr.bf16.mxu1 %v6956_v3  ;;  %1370 = vst [vmem:[#allocation4 + $0x198] sm:$0xff] %v7038_v60  ;;  %1372 = vst [vmem:[#allocation4 + $0x1a8] sm:$0xff] %v7038_v60 }
  0xe7   : > { %3077 = vmatprep.mubr.bf16.mxu0 %v7967_v39  ;;  %1374 = vst [vmem:[#allocation4 + $0x18] sm:$0x1] %v7038_v60  ;;  %1375 = vst [vmem:[#allocation4 + $0x30] sm:$0x1] %v7038_v60 }
  0xe8   : > { %1376 = vst [vmem:[#allocation4 + $0x48] sm:$0x1] %v7038_v60  ;;  %1377 = vst [vmem:[#allocation4 + $0x60] sm:$0x1] %v7038_v60 }
  0xe9   : > { %6560 = vmatpush3.bf16.msra.mxu1 %v6956_v3  ;;  %1378 = vst [vmem:[#allocation4 + $0x78] sm:$0x1] %v7038_v60  ;;  %1379 = vst [vmem:[#allocation4 + $0x90] sm:$0x1] %v7038_v60 }
  0xea   : > { %6561 = vmatprep.subr.bf16.mxu1 %v6957_v23  ;;  %1380 = vst [vmem:[#allocation4 + $0xa8] sm:$0x1] %v7038_v60  ;;  %1382 = vst [vmem:[#allocation4 + $0xd8] sm:$0x1] %v7038_v60 }
  0xeb   : > { %1383 = vst [vmem:[#allocation4 + $0xf0] sm:$0x1] %v7038_v60  ;;  %1384 = vst [vmem:[#allocation4 + $0x108] sm:$0x1] %v7038_v60 }
  0xec   : > { %6546 = vmatmul.mubr.bf16.gmra.mrb[52].mxu1 %v7977_v20  ;;  %1385 = vst [vmem:[#allocation4 + $0x120] sm:$0x1] %v7038_v60  ;;  %1386 = vst [vmem:[#allocation4 + $0x138] sm:$0x1] %v7038_v60 }
  0xed   : > { %6562 = vmatpush3.bf16.msra.mxu1 %v6957_v23  ;;  %6549 = vmatprep.mubr.bf16.mxu1 %v7983_v41  ;;  %1387 = vst [vmem:[#allocation4 + $0x150] sm:$0x1] %v7038_v60  ;;  %1388 = vst [vmem:[#allocation4 + $0x168] sm:$0x1] %v7038_v60 }
  0xee   : > { %3078 = vmatmul.mubr.bf16.gmra.mrb[92].mxu0 %v7850_v62  ;;  %6563 = vmatprep.subr.bf16.mxu1 %v6960_v46  ;;  %v6964_v62 = vld [vmem:[%s9131_s3 + $0xa8] sm:$0xff]   ;;  %1389 = vst [vmem:[#allocation4 + $0x180] sm:$0x1] %v7038_v60  ;;  %1392 = vst [vmem:[#allocation4 + $0x29] sm:$0x1] %v7038_v60 }
  0xef   : > { %3359 = vmatprep.mubr.bf16.mxu0 %v7527_v44  ;;  %v6993_v44 = vld [vmem:[%s9134_s6 + $0x8] sm:$0xff]   ;;  %1393 = vst [vmem:[#allocation4 + $0x41] sm:$0x1] %v7038_v60  ;;  %1394 = vst [vmem:[#allocation4 + $0x59] sm:$0x1] %v7038_v60 }
  0xf0   : > { %1395 = vst [vmem:[#allocation4 + $0x71] sm:$0x1] %v7038_v60  ;;  %1396 = vst [vmem:[#allocation4 + $0x89] sm:$0x1] %v7038_v60 }
  0xf1   : > { %6564 = vmatpush3.bf16.msra.mxu1 %v6960_v46  ;;  %v6985_v46 = vld [vmem:[%s9131_s3 + $0x1e8] sm:$0xff]   ;;  %1397 = vst [vmem:[#allocation4 + $0xa1] sm:$0x1] %v7038_v60  ;;  %1398 = vst [vmem:[#allocation4 + $0xb9] sm:$0x1] %v7038_v60 }
  0xf2   : > { %6565 = vmatprep.subr.bf16.mxu1 %v6961_v45  ;;  %1399 = vst [vmem:[#allocation4 + $0xd1] sm:$0x1] %v7038_v60  ;;  %1400 = vst [vmem:[#allocation4 + $0xe9] sm:$0x1] %v7038_v60 }
  0xf3   : > { %1401 = vst [vmem:[#allocation4 + $0x101] sm:$0x1] %v7038_v60  ;;  %1402 = vst [vmem:[#allocation4 + $0x119] sm:$0x1] %v7038_v60 }
  0xf4   : > { %6550 = vmatmul.mubr.bf16.gmra.mrb[56].mxu1 %v7993_v1  ;;  %1403 = vst [vmem:[#allocation4 + $0x131] sm:$0x1] %v7038_v60  ;;  %1404 = vst [vmem:[#allocation4 + $0x149] sm:$0x1] %v7038_v60 }
  0xf5   : > { %6566 = vmatpush3.bf16.msra.mxu1 %v6961_v45  ;;  %6553 = vmatprep.mubr.bf16.mxu1 %v7999_v0  ;;  %1405 = vst [vmem:[#allocation4 + $0x161] sm:$0x1] %v7038_v60  ;;  %1406 = vst [vmem:[#allocation4 + $0x179] sm:$0x1] %v7038_v60 }
  0xf6   : > { %3360 = vmatmul.mubr.bf16.vlgmr.msra.gmra.mrb[96].mxu0 %v7017_v36  ;;  %6567 = vmatprep.subr.bf16.mxu1 %v6964_v62  ;;  %1407 = vst [vmem:[#allocation4 + $0x191] sm:$0x1] %v7038_v60  ;;  %1373 = vst [vmem:[#allocation4] sm:$0x1] %v7038_v60 }
  0xf7   : > { %3367 = vmatprep.mubr.bf16.mxu0 %v7740_v7  ;;  %6622 = vmatpush3.bf16.msra.mxu0 %v7943_v5  ;;  %v7018_v7 = vld [vmem:[#allocation2 + $0x90] sm:$0xff]  ;;  %v6975_v5 = vld [vmem:[%s9131_s3 + $0x180] sm:$0xff]   ;;  %1390 = vst [vmem:[#allocation4 + $0x198] sm:$0x1] %v7038_v60  ;;  %1391 = vst [vmem:[#allocation4 + $0x11] sm:$0x1] %v7038_v60 }
  0xf8   : > { %6623 = vmatprep.subr.bf16.mxu0 %v6993_v44  ;;  %1408 = vst [vmem:[#allocation4 + $0x1a9] sm:$0x1] %v7038_v60 }
  0xf9   : > { %6568 = vmatpush3.bf16.msra.mxu1 %v6964_v62 }
  0xfa   : > { %6569 = vmatprep.subr.bf16.mxu1 %v6967_v40 }
  0xfb   : > { %6624 = vmatpush3.bf16.msra.mxu0 %v6993_v44 }
  0xfc   : > { %6554 = vmatmul.mubr.bf16.gmra.mrb[60].mxu1 %v8012_v61  ;;  %6625 = vmatprep.subr.bf16.mxu0 %v6995_v9 }
  0xfd   : > { %6570 = vmatpush3.bf16.msra.mxu1 %v6967_v40  ;;  %6573 = vmatprep.mubr.bf16.mxu1 %v7509_v28  ;;  %v6977_v28 = vld [vmem:[%s9131_s3 + $0x1c8] sm:$0xff]   ;;  %v6992_v40 = vld [vmem:[%s9131_s3 + $0x200] sm:$0xff]  }
  0xfe   : > { %3368 = vmatmul.mubr.bf16.gmra.mrb[100].mxu0 %v7018_v7  ;;  %6571 = vmatprep.subr.bf16.mxu1 %v6970_v52 }
  0xff   : > { %3375 = vmatprep.mubr.bf16.mxu0 %v7804_v29  ;;  %6626 = vmatpush3.bf16.msra.mxu0 %v6995_v9 }
 0x100   : > { %6627 = vmatprep.subr.bf16.mxu0 %v6997_v55 }
 0x101   : > { %6572 = vmatpush3.bf16.msra.mxu1 %v6970_v52 }
 0x102   : > { %6317 = vmatprep.subr.bf16.mxu1 %v6973_v10 }
 0x103   : > { %6628 = vmatpush3.bf16.msra.mxu0 %v6997_v55  ;;  %v6994_v55 = vld [vmem:[%s9131_s3 + $0x208] sm:$0xff]  }
 0x104   : > { %6574 = vmatmul.mubr.bf16.vlgmr.msra.gmra.mrb[48].mxu1 %v7931_v58  ;;  %v6979_v58 = vld [vmem:[%s9131_s3 + $0x1d0] sm:$0xff]   ;;  %6629 = vmatprep.subr.bf16.mxu0 %v6998_v15 }
 0x105   : > { %6318 = vmatpush3.bf16.msra.mxu1 %v6975_v5  ;;  %6577 = vmatprep.mubr.bf16.mxu1 %v7957_v57 }
 0x106   : > { %3376 = vmatmul.mubr.bf16.gmra.mrb[104].mxu0 %v8036_v26  ;;  %6319 = vmatprep.subr.bf16.mxu1 %v6977_v28  ;;  %v6996_v28 = vld [vmem:[%s9131_s3 + $0x210] sm:$0xff]  }
 0x107   : > { %3383 = vmatprep.mubr.bf16.mxu0 %v7832_v56  ;;  %6630 = vmatpush3.bf16.msra.mxu0 %v6998_v15  ;;  %v4416_v15 = vld [vmem:[%s8142_s22] sm:$0xff] }
 0x108   : > { %6631 = vmatprep.subr.bf16.mxu0 %v7000_v13 }
 0x109   : > { %v5933_v16 = vpop.f32.mrb[0].mxu0  ;;  %6320 = vmatpush3.bf16.msra.mxu1 %v6978_v30  ;;  %v4417_v30 = vld [vmem:[%s8142_s22 + $0x8] sm:$0xff] }
 0x10a   : > { %v5934_v49 = vpop.f32.mrb[1].mxu0  ;;  %6321 = vmatprep.subr.bf16.mxu1 %v6979_v58 }
 0x10b   : > { %v8053_v38 = vadd.f32 %v5934_v49, %v5933_v16  ;;  %v5936_v3 = vpop.f32.mrb[2].mxu0  ;;  %6632 = vmatpush3.bf16.msra.mxu0 %v7000_v13  ;;  %v4432_v49 = vpack.c.bf16 %v4417_v30, %v4416_v15  ;;  %v7002_v13 = vld [vmem:[%s9131_s3 + $0x220] sm:$0xff]   ;;  %v7009_v15 = vld [vmem:[%s9134_s6 + $0x10] sm:$0xff]  }
 0x10c   : > { %v5937_v21 = vpop.f32.mrb[3].mxu0  ;;  %6578 = vmatmul.mubr.bf16.gmra.mrb[52].mxu1 %v7964_v33  ;;  %6633 = vmatprep.subr.bf16.mxu0 %v7001_v31  ;;  %v7022_v30 = vld [vmem:[#allocation2 + $0xd0] sm:$0xff] }
 0x10d   : > { %v8058_v34 = vadd.f32 %v5937_v21, %v5936_v3  ;;  %6322 = vmatpush3.bf16.msra.mxu1 %v6980_v17  ;;  %6581 = vmatprep.mubr.bf16.mxu1 %v7977_v20  ;;  %v4419_v21 = vld [vmem:[%s8142_s22 + $0x18] sm:$0xff] }
 0x10e   : > { %3384 = vmatmul.mubr.bf16.gmra.mrb[108].mxu0 %v8064_v22  ;;  %6323 = vmatprep.subr.bf16.mxu1 %v6981_v18  ;;  %v4418_v18 = vld [vmem:[%s8142_s22 + $0x10] sm:$0xff] }
 0x10f   : > { %3391 = vmatprep.mubr.bf16.mxu0 %v7862_v12  ;;  %6634 = vmatpush3.bf16.msra.mxu0 %v7001_v31  ;;  %v4420_v31 = vld [vmem:[%s8142_s22 + $0x20] sm:$0xff] }
 0x110   : > { %6635 = vmatprep.subr.bf16.mxu0 %v7003_v8 }
 0x111   : > { %v5939_v23 = vpop.f32.mrb[4].mxu0  ;;  %6324 = vmatpush3.bf16.msra.mxu1 %v6982_v35 }
 0x112   : > { %v5940_v27 = vpop.f32.mrb[5].mxu0  ;;  %6325 = vmatprep.subr.bf16.mxu1 %v6983_v37  ;;  %v4421_v37 = vld [vmem:[%s8142_s22 + $0x28] sm:$0xff] }
 0x113   : > { %v8081_v51 = vadd.f32 %v5940_v27, %v5939_v23  ;;  %v5942_v11 = vpop.f32.mrb[6].mxu0  ;;  %6636 = vmatpush3.bf16.msra.mxu0 %v7003_v8  ;;  %v4433_v23 = vpack.c.bf16 %v4419_v21, %v4418_v18  ;;  %v7004_v27 = vld [vmem:[%s9131_s3 + $0x228] sm:$0xff]   ;;  %v4422_v8 = vld [vmem:[%s8142_s22 + $0x30] sm:$0xff] }
 0x114   : > { %v5943_v63 = vpop.f32.mrb[7].mxu0  ;;  %6582 = vmatmul.mubr.bf16.gmra.mrb[56].mxu1 %v7983_v41  ;;  %6653 = vmatprep.subr.bf16.mxu0 %v8116_v59 }
 0x115   : > { %v8086_v42 = vadd.f32 %v5943_v63, %v5942_v11  ;;  %6326 = vmatpush3.bf16.msra.mxu1 %v6984_v50  ;;  %6585 = vmatprep.mubr.bf16.mxu1 %v7993_v1  ;;  %v4434_v50 = vpack.c.bf16 %v4421_v37, %v4420_v31  ;;  %v7008_v63 = vld [vmem:[%s9134_s6 + $0x8] sm:$0xff]  }
 0x116   : > { %3392 = vmatmul.mubr.bf16.gmra.mrb[112].mxu0 %v8089_v48  ;;  %6327 = vmatprep.subr.bf16.mxu1 %v6985_v46 }
 0x117   : > { %3399 = vmatprep.mubr.bf16.mxu0 %v7890_v32 }
 0x119   : > { %v5945_v45 = vpop.f32.mrb[8].mxu0  ;;  %6328 = vmatpush3.bf16.msra.mxu1 %v6986_v24  ;;  %v4423_v24 = vld [vmem:[%s8142_s22 + $0x38] sm:$0xff] }
 0x11a   : > { %v5946_v25 = vpop.f32.mrb[9].mxu0  ;;  %6329 = vmatprep.subr.bf16.mxu1 %v6987_v43  ;;  %v7005_v43 = vld [vmem:[%s9131_s3 + $0x230] sm:$0xff]  }
 0x11b   : > { %v8106_v62 = vadd.f32 %v5946_v25, %v5945_v45  ;;  %v5948_v47 = vpop.f32.mrb[10].mxu0  ;;  %v4424_v25 = vld [vmem:[%s8142_s22 + $0x40] sm:$0xff] }
 0x11c   : > { %v5949_v36 = vpop.f32.mrb[11].mxu0  ;;  %6586 = vmatmul.mubr.bf16.gmra.mrb[60].mxu1 %v7999_v0 }
 0x11d   : > { %v8111_v44 = vadd.f32 %v5949_v36, %v5948_v47  ;;  %6330 = vmatpush3.bf16.msra.mxu1 %v6988_v54  ;;  %3770 = vmatprep.mubr.bf16.mxu1 %v7804_v29  ;;  %v4425_v54 = vld [vmem:[%s8142_s22 + $0x48] sm:$0xff] }
 0x11e   : > { %3400 = vmatmul.mubr.bf16.gmra.mrb[116].mxu0 %v7758_v19  ;;  %v6991_v19 = vld [vmem:[%s9131_s3 + $0x1b8] sm:$0xff]   ;;  %6331 = vmatprep.subr.bf16.mxu1 %v6990_v2  ;;  %v4435_v2 = vpack.c.bf16 %v4423_v24, %v4422_v8  ;;  %v7011_v8 = vld [vmem:[%s9134_s6 + $0x20] sm:$0xff]  }
 0x11f   : > { %3407 = vmatprep.mubr.bf16.mxu0 %v7914_v53  ;;  %v7023_v24 = vld [vmem:[#allocation2 + $0xe0] sm:$0xff] }
 0x121   : > { %v5951_v52 = vpop.f32.mrb[12].mxu0  ;;  %6332 = vmatpush3.bf16.msra.mxu1 %v6991_v19 }
 0x122   : > { %v5952_v9 = vpop.f32.mrb[13].mxu0  ;;  %6589 = vmatprep.subr.bf16.mxu1 %v6992_v40 }
 0x123   : > { %v8130_v7 = vadd.f32 %v5952_v9, %v5951_v52  ;;  %v5954_v29 = vpop.f32.mrb[14].mxu0 }
 0x124   : > { %v5955_v10 = vpop.f32.mrb[15].mxu0  ;;  %3771 = vmatmul.mubr.bf16.vlgmr.msra.gmra.mrb[64].mxu1 %v8036_v26 }
 0x125   : > { %v8135_v5 = vadd.f32 %v5955_v10, %v5954_v29  ;;  %6590 = vmatpush3.bf16.msra.mxu1 %v6992_v40  ;;  %3778 = vmatprep.mubr.bf16.mxu1 %v7832_v56  ;;  %v6999_v56 = vld [vmem:[%s9131_s3 + $0x218] sm:$0xff]   ;;  %v4436_v29 = vpack.c.bf16 %v4425_v54, %v4424_v25  ;;  %v5784_v25 = vld [vmem:[%s8142_s22 + $0x80] sm:$0xff]  ;;  %v5785_v54 = vld [vmem:[%s8142_s22 + $0x88] sm:$0xff] }
 0x126   : > { %3408 = vmatmul.mubr.bf16.gmra.mrb[120].mxu0 %v7792_v14  ;;  %6591 = vmatprep.subr.bf16.mxu1 %v6994_v55 }
 0x127   : > { %3415 = vmatprep.mubr.bf16.mxu0 %v7937_v4 }
 0x129   : > { %v5957_v58 = vpop.f32.mrb[16].mxu0  ;;  %6592 = vmatpush3.bf16.msra.mxu1 %v6994_v55 }
 0x12a   : > { %v5958_v16 = vpop.f32.mrb[17].mxu0  ;;  %6593 = vmatprep.subr.bf16.mxu1 %v6996_v28 }
 0x12b   : > { %v8153_v26 = vadd.f32 %v5958_v16, %v5957_v58  ;;  %v5960_v14 = vpop.f32.mrb[18].mxu0  ;;  %v4427_v16 = vld [vmem:[%s8142_s22 + $0x58] sm:$0xff] }
 0x12c   : > { %v5961_v17 = vpop.f32.mrb[19].mxu0  ;;  %3779 = vmatmul.mubr.bf16.gmra.mrb[68].mxu1 %v8064_v22 }
 0x12d   : > { %v8158_v3 = vadd.f32 %v5961_v17, %v5960_v14  ;;  %3786 = vmatprep.mubr.bf16.mxu1 %v7862_v12  ;;  %6594 = vmatpush3.bf16.msra.mxu1 %v6996_v28  ;;  %v7010_v14 = vld [vmem:[%s9134_s6 + $0x18] sm:$0xff]  }
 0x12e   : > { %3416 = vmatmul.mubr.bf16.gmra.mrb[124].mxu0 %v7821_v6  ;;  %6595 = vmatprep.subr.bf16.mxu1 %v6999_v56 }
 0x12f   : > { %6637 = vmatprep.mubr.msk.bf16.mxu0 %vm4440_vm9, %v4432_v49  ;;  %v4429_v49 = vld [vmem:[%s8142_s22 + $0x68] sm:$0xff] }
 0x131   : > { %v5963_v35 = vpop.f32.mrb[20].mxu0  ;;  %6596 = vmatpush3.bf16.msra.mxu1 %v6999_v56  ;;  %v4428_v56 = vld [vmem:[%s8142_s22 + $0x60] sm:$0xff] }
 0x132   : > { %v5964_v22 = vpop.f32.mrb[21].mxu0  ;;  %6597 = vmatprep.subr.bf16.mxu1 %v7002_v13 }
 0x133   : > { %v8171_v6 = vadd.f32 %v5964_v22, %v5963_v35  ;;  %v5966_v12 = vpop.f32.mrb[22].mxu0 }
 0x134   : > { %v5967_v11 = vpop.f32.mrb[23].mxu0  ;;  %3787 = vmatmul.mubr.bf16.gmra.mrb[72].mxu1 %v8089_v48 }
 0x135   : > { %v8176_v46 = vadd.f32 %v5967_v11, %v5966_v12  ;;  %3794 = vmatprep.mubr.bf16.mxu1 %v7890_v32  ;;  %6598 = vmatpush3.bf16.msra.mxu1 %v7002_v13 }
 0x136   : > { %6638 = vmatmul.mubr.msk.bf16.vlgmr.msra.gmra.mrb[128].mxu0 %vm4440_vm9, %v4433_v23  ;;  %6599 = vmatprep.subr.bf16.mxu1 %v7004_v27  ;;  %v4438_v23 = vpack.c.bf16 %v4429_v49, %v4428_v56 }
 0x137   : > { %6641 = vmatprep.mubr.msk.bf16.mxu0 %vm4440_vm9, %v4434_v50  ;;  %v6013_v45 = vpop.f32.mrb[16].mxu1  ;;  %6654 = vmatpush3.bf16.msra.mxu0 %v8116_v59  ;;  %v7007_v59 = vld [vmem:[%s9131_s3 + $0x238] sm:$0xff]  }
 0x138   : > { %v6014_v47 = vpop.f32.mrb[17].mxu1  ;;  %6655 = vmatprep.subr.bf16.mxu0 %v7008_v63 }
 0x139   : > { %v5969_v48 = vpop.f32.mrb[24].mxu0  ;;  %v6015_v32 = vadd.f32 %v6014_v47, %v6013_v45  ;;  %v6016_v60 = vpop.f32.mrb[18].mxu1  ;;  %6600 = vmatpush3.bf16.msra.mxu1 %v7004_v27  ;;  %v4431_v45 = vld [vmem:[%s8142_s22 + $0x78] sm:$0xff] }
 0x13a   : > { %v5970_v36 = vpop.f32.mrb[25].mxu0  ;;  %v6017_v52 = vpop.f32.mrb[19].mxu1  ;;  %6601 = vmatprep.subr.bf16.mxu1 %v7005_v43 }
 0x13b   : > { %v8193_v19 = vadd.f32 %v5970_v36, %v5969_v48  ;;  %v5972_v40 = vpop.f32.mrb[26].mxu0  ;;  %v8199_v55 = vadd.f32 %v6015_v32, %v8053_v38  ;;  %v6018_v10 = vadd.f32 %v6017_v52, %v6016_v60  ;;  %6656 = vmatpush3.bf16.msra.mxu0 %v7008_v63  ;;  %v4426_v38 = vld [vmem:[%s8142_s22 + $0x50] sm:$0xff]  ;;  %v949_v36 = vld [vmem:[#allocation2 + $0x118] sm:$0x1] }
 0x13c   : > { %v5973_v9 = vpop.f32.mrb[27].mxu0  ;;  %3795 = vmatmul.mubr.bf16.gmra.mrb[76].mxu1 %v7022_v30  ;;  %6657 = vmatprep.subr.bf16.mxu0 %v7009_v15  ;;  %v4437_v13 = vpack.c.bf16 %v4427_v16, %v4426_v38  ;;  %v8226_v63 = vld [vmem:[#allocation2 + $0x110] sm:$0xff]  ;;  %v1163_v38 = vshll.u32 %v949_v36, 16 }
 0x13d   : > { %v8201_v28 = vadd.f32 %v5973_v9, %v5972_v40  ;;  %v8208_v58 = vadd.f32 %v6018_v10, %v8058_v34  ;;  %3802 = vmatprep.mubr.bf16.mxu1 %v7914_v53  ;;  %6602 = vmatpush3.bf16.msra.mxu1 %v7005_v43  ;;  %v1158_v48 = vshll.u32 %v8226_v63, 16 }
 0x13e   : > { %6642 = vmatmul.mubr.msk.bf16.gmra.mrb[132].mxu0 %vm4440_vm9, %v4435_v2  ;;  %6603 = vmatprep.subr.bf16.mxu1 %v7007_v59 }
 0x13f   : > { %6645 = vmatprep.mubr.msk.bf16.mxu0 %vm4440_vm9, %v4436_v29  ;;  %v6019_v17 = vpop.f32.mrb[20].mxu1  ;;  %6658 = vmatpush3.bf16.msra.mxu0 %v7009_v15  ;;  %v1156_v15 = vshrl.u32 %v8226_v63, 16  ;;  %v1160_v30 = vrot.slane %v1158_v48, 1 }
 0x140   : > { %v6020_v21 = vpop.f32.mrb[21].mxu1  ;;  %6659 = vmatprep.subr.bf16.mxu0 %v7010_v14 }
 0x141   : > { %v5975_v18 = vpop.f32.mrb[28].mxu0  ;;  %v6021_v53 = vadd.f32 %v6020_v21, %v6019_v17  ;;  %v6022_v35 = vpop.f32.mrb[22].mxu1  ;;  %6604 = vmatpush3.bf16.msra.mxu1 %v7007_v59  ;;  %v5117_v59 = vpack.c.bf16 %v5785_v54, %v5784_v25  ;;  %v7013_v17 = vld [vmem:[%s9134_s6 + $0x30] sm:$0xff]  }
 0x142   : > { %v5976_v34 = vpop.f32.mrb[29].mxu0  ;;  %v6023_v22 = vpop.f32.mrb[23].mxu1  ;;  %v7024_v21 = vld [vmem:[#allocation2 + $0xf0] sm:$0xff] }
 0x143   : > { %v8219_v31 = vadd.f32 %v5976_v34, %v5975_v18  ;;  %v5978_v37 = vpop.f32.mrb[30].mxu0  ;;  %v8222_v27 = vadd.f32 %v6021_v53, %v8081_v51  ;;  %v6024_v50 = vadd.f32 %v6023_v22, %v6022_v35  ;;  %v4430_v51 = vld [vmem:[%s8142_s22 + $0x70] sm:$0xff]  ;;  %6660 = vmatpush3.bf16.msra.mxu0 %v7010_v14  ;;  %v1165_v53 = vrot.slane %v1163_v38, 1  ;;  %v5791_v38 = vld [vmem:[%s8142_s22 + $0xb8] sm:$0xff] }
 0x144   : > { %v5979_v12 = vpop.f32.mrb[31].mxu0  ;;  %3803 = vmatmul.mubr.bf16.gmra.mrb[80].mxu1 %v7023_v24  ;;  %6661 = vmatprep.subr.bf16.mxu0 %v7011_v8 }
 0x145   : > { %v8224_v11 = vadd.f32 %v5979_v12, %v5978_v37  ;;  %v8233_v43 = vadd.f32 %v6024_v50, %v8086_v42  ;;  %3810 = vmatprep.mubr.bf16.mxu1 %v7937_v4  ;;  %v7012_v42 = vld [vmem:[%s9134_s6 + $0x28] sm:$0xff]   ;;  %v4439_v4 = vpack.c.bf16 %v4431_v45, %v4430_v51  ;;  %v7014_v37 = vld [vmem:[%s9134_s6 + $0x38] sm:$0xff]   ;;  %v5786_v51 = vld [vmem:[%s8142_s22 + $0x90] sm:$0xff] }
 0x146   : > { %6646 = vmatmul.mubr.msk.bf16.gmra.mrb[136].mxu0 %vm4440_vm9, %v4437_v13  ;;  %v1161_v13 = vor.u32 %v1160_v30, %v1156_v15  ;;  %v5787_v45 = vld [vmem:[%s8142_s22 + $0x98] sm:$0xff] }
 0x147   : > { %6649 = vmatprep.mubr.msk.bf16.mxu0 %vm4440_vm9, %v4438_v23  ;;  %v6025_v47 = vpop.f32.mrb[24].mxu1  ;;  %6662 = vmatpush3.bf16.msra.mxu0 %v7011_v8 }
 0x148   : > { %v6026_v32 = vpop.f32.mrb[25].mxu1  ;;  %6663 = vmatprep.subr.bf16.mxu0 %v7012_v42  ;;  %v1166_v8 = vsel %vm950_vm8, %v1161_v13, %v1165_v53 }
 0x149   : > { %v6093_v2 = vpop.f32.mrb[32].mxu0  ;;  %v6027_v40 = vadd.f32 %v6026_v32, %v6025_v47  ;;  %v6028_v52 = vpop.f32.mrb[26].mxu1  ;;  %v5788_v47 = vld [vmem:[%s8142_s22 + $0xa0] sm:$0xff] }
 0x14a   : > { %v6094_v60 = vpop.f32.mrb[33].mxu0  ;;  %v6029_v10 = vpop.f32.mrb[27].mxu1 }
 0x14b   : > { %v6095_v9 = vadd.f32 %v6094_v60, %v6093_v2  ;;  %v6096_v29 = vpop.f32.mrb[34].mxu0  ;;  %v8247_v14 = vadd.f32 %v6027_v40, %v8106_v62  ;;  %v6030_v56 = vadd.f32 %v6029_v10, %v6028_v52  ;;  %6664 = vmatpush3.bf16.msra.mxu0 %v7012_v42  ;;  %v5789_v2 = vld [vmem:[%s8142_s22 + $0xa8] sm:$0xff]  ;;  %v7025_v42 = vld [vmem:[#allocation2 + $0x100] sm:$0xff]  ;;  %v5118_v60 = vpack.c.bf16 %v5787_v45, %v5786_v51 }
 0x14c   : > { %v6097_v16 = vpop.f32.mrb[35].mxu0  ;;  %3811 = vmatmul.mubr.bf16.gmra.mrb[84].mxu1 %v7024_v21  ;;  %6665 = vmatprep.subr.bf16.mxu0 %v7013_v17  ;;  %v5793_v21 = vld [vmem:[%s8142_s22 + $0xc8] sm:$0xff]  ;;  %v5796_v51 = vld [vmem:[%s8142_s22 + $0xe0] sm:$0xff] }
 0x14d   : > { %v6098_v49 = vadd.f32 %v6097_v16, %v6096_v29  ;;  %v8253_v18 = vadd.f32 %v8199_v55, %v6095_v9  ;;  %v6706_v34 = vadd.f32 %v6030_v56, %v8111_v44  ;;  %3818 = vmatprep.mubr.bf16.mxu1 %v7967_v39  ;;  %v5797_v45 = vld [vmem:[%s8142_s22 + $0xe8] sm:$0xff] }
 0x14e   : > { %6650 = vmatmul.mubr.msk.bf16.gmra.mrb[140].mxu0 %vm4440_vm9, %v4439_v4 }
 0x14f   : > { %6669 = vmatprep.mubr.msk.bf16.mxu0 %vm4440_vm9, %v5117_v59  ;;  %v8260_v62 = vadd.f32 %v8208_v58, %v6098_v49  ;;  %v6031_v55 = vpop.f32.mrb[28].mxu1  ;;  %6666 = vmatpush3.bf16.msra.mxu0 %v7013_v17  ;;  %v5792_v17 = vld [vmem:[%s8142_s22 + $0xc0] sm:$0xff] }
 0x150   : > { %v6032_v44 = vpop.f32.mrb[29].mxu1  ;;  %6667 = vmatprep.subr.bf16.mxu0 %v7014_v37 }
 0x151   : > { %v6099_v35 = vpop.f32.mrb[36].mxu0  ;;  %v6033_v23 = vadd.f32 %v6032_v44, %v6031_v55  ;;  %v6034_v22 = vpop.f32.mrb[30].mxu1 }
 0x152   : > { %v6100_v39 = vpop.f32.mrb[37].mxu0  ;;  %v6035_v50 = vpop.f32.mrb[31].mxu1 }
 0x153   : > { %v6101_v58 = vadd.f32 %v6100_v39, %v6099_v35  ;;  %v6102_v12 = vpop.f32.mrb[38].mxu0  ;;  %v6697_v48 = vadd.f32 %v6033_v23, %v8130_v7  ;;  %v6036_v25 = vadd.f32 %v6035_v50, %v6034_v22  ;;  %6668 = vmatpush3.bf16.msra.mxu0 %v7014_v37  ;;  %v5119_v7 = vpack.c.bf16 %v5789_v2, %v5788_v47 }
 0x154   : > { %v6103_v24 = vpop.f32.mrb[39].mxu0  ;;  %3819 = vmatmul.mubr.bf16.gmra.mrb[88].mxu1 %v7025_v42  ;;  %v5121_v37 = vpack.c.bf16 %v5793_v21, %v5792_v17  ;;  %v5123_v42 = vpack.c.bf16 %v5797_v45, %v5796_v51 }
 0x155   : > { %v6104_v54 = vadd.f32 %v6103_v24, %v6102_v12  ;;  %v8272_v36 = vadd.f32 %v8222_v27, %v6101_v58  ;;  %v6703_v32 = vadd.f32 %v6036_v25, %v8135_v5  ;;  %3826 = vmatprep.mubr.bf16.mxu1 %v1166_v8  ;;  %v5794_v12 = vld [vmem:[%s8142_s22 + $0xd0] sm:$0xff] }
 0x156   : > { %6670 = vmatmul.mubr.msk.bf16.vlgmr.msra.gmra.mrb[144].mxu0 %vm4440_vm9, %v5118_v60 }
 0x157   : > { %v8276_v4 = vadd.f32 %v8233_v43, %v6104_v54  ;;  %v6037_v40 = vpop.f32.mrb[32].mxu1  ;;  %6673 = vmatprep.mubr.msk.bf16.mxu0 %vm4440_vm9, %v5119_v7  ;;  %v5790_v43 = vld [vmem:[%s8142_s22 + $0xb0] sm:$0xff] }
 0x158   : > { %v6038_v9 = vpop.f32.mrb[33].mxu1  ;;  %v5120_v55 = vpack.c.bf16 %v5791_v38, %v5790_v43 }
 0x159   : > { %v6105_v52 = vpop.f32.mrb[40].mxu0  ;;  %v6039_v29 = vadd.f32 %v6038_v9, %v6037_v40  ;;  %v6040_v59 = vpop.f32.mrb[34].mxu1 }
 0x15a   : > { %v6106_v27 = vpop.f32.mrb[41].mxu0  ;;  %v6041_v5 = vpop.f32.mrb[35].mxu1 }
 0x15b   : > { %v6107_v10 = vadd.f32 %v6106_v27, %v6105_v52  ;;  %v6108_v15 = vpop.f32.mrb[42].mxu0  ;;  %v6712_v16 = vadd.f32 %v6039_v29, %v8153_v26  ;;  %v6042_v56 = vadd.f32 %v6041_v5, %v6040_v59  ;;  %v5799_v29 = vld [vmem:[%s8142_s22 + $0xf8] sm:$0xff] }
 0x15c   : > { %v6109_v30 = vpop.f32.mrb[43].mxu0  ;;  %3827 = vmatmul.mubr.bf16.gmra.mrb[92].mxu1 %v8226_v63 }
 0x15d   : > { %v6110_v49 = vadd.f32 %v6109_v30, %v6108_v15  ;;  %v8286_v13 = vadd.f32 %v8247_v14, %v6107_v10  ;;  %v6718_v53 = vadd.f32 %v6042_v56, %v8158_v3  ;;  %6605 = vmatprep.mubr.bf16.mxu1 %v7957_v57 }
 0x15e   : > { %6674 = vmatmul.mubr.msk.bf16.gmra.mrb[148].mxu0 %vm4440_vm9, %v5120_v55 }
 0x15f   : > { %v8291_v35 = vadd.f32 %v6706_v34, %v6110_v49  ;;  %v6043_v26 = vpop.f32.mrb[36].mxu1  ;;  %6677 = vmatprep.mubr.msk.bf16.mxu0 %vm4440_vm9, %v5121_v37  ;;  %v5795_v34 = vld [vmem:[%s8142_s22 + $0xd8] sm:$0xff] }
 0x160   : > { %v6044_v39 = vpop.f32.mrb[37].mxu1  ;;  %v5122_v47 = vpack.c.bf16 %v5795_v34, %v5794_v12 }
 0x161   : > { %v6111_v44 = vpop.f32.mrb[44].mxu0  ;;  %v6045_v14 = vadd.f32 %v6044_v39, %v6043_v26  ;;  %v6046_v22 = vpop.f32.mrb[38].mxu1  ;;  %v1237_v26 = vld [vmem:[#allocation2 + $0x110] sm:$0xfe] }
 0x162   : > { %v6112_v23 = vpop.f32.mrb[45].mxu0  ;;  %v6047_v3 = vpop.f32.mrb[39].mxu1 }
 0x163   : > { %v6113_v58 = vadd.f32 %v6112_v23, %v6111_v44  ;;  %v6114_v63 = vpop.f32.mrb[46].mxu0  ;;  %v6709_v50 = vadd.f32 %v6045_v14, %v8171_v6  ;;  %v6048_v8 = vadd.f32 %v6047_v3, %v6046_v22  ;;  %v1327_v14 = vrot.slane %v1237_v26, 1 }
 0x164   : > { %v6115_v57 = vpop.f32.mrb[47].mxu0  ;;  %6606 = vmatmul.mubr.bf16.vlgmr.msra.gmra.mrb[48].mxu1 %v7964_v33 }
 0x165   : > { %v6116_v24 = vadd.f32 %v6115_v57, %v6114_v63  ;;  %v8300_v25 = vadd.f32 %v6697_v48, %v6113_v58  ;;  %v6715_v54 = vadd.f32 %v6048_v8, %v8176_v46  ;;  %6609 = vmatprep.mubr.bf16.mxu1 %v7977_v20  ;;  %v5798_v20 = vld [vmem:[%s8142_s22 + $0xf0] sm:$0xff] }
 0x166   : > { %6678 = vmatmul.mubr.msk.bf16.gmra.mrb[152].mxu0 %vm4440_vm9, %v5122_v47  ;;  %v5124_v30 = vpack.c.bf16 %v5799_v29, %v5798_v20 }
 0x167   : > { %v8305_v2 = vadd.f32 %v6703_v32, %v6116_v24  ;;  %v6049_v60 = vpop.f32.mrb[40].mxu1  ;;  %6681 = vmatprep.mubr.msk.bf16.mxu0 %vm4440_vm9, %v5123_v42 }
 0x168   : > { %v6050_v7 = vpop.f32.mrb[41].mxu1 }
 0x169   : > { %v6117_v6 = vpop.f32.mrb[48].mxu0  ;;  %v6051_v52 = vadd.f32 %v6050_v7, %v6049_v60  ;;  %v6052_v9 = vpop.f32.mrb[42].mxu1 }
 0x16a   : > { %v6118_v40 = vpop.f32.mrb[49].mxu0  ;;  %v6053_v33 = vpop.f32.mrb[43].mxu1 }
 0x16b   : > { %v6119_v48 = vadd.f32 %v6118_v40, %v6117_v6  ;;  %v6120_v27 = vpop.f32.mrb[50].mxu0  ;;  %v6724_v32 = vadd.f32 %v6051_v52, %v8193_v19  ;;  %v6054_v59 = vadd.f32 %v6053_v33, %v6052_v9 }
 0x16c   : > { %v6121_v46 = vpop.f32.mrb[51].mxu0  ;;  %6610 = vmatmul.mubr.bf16.gmra.mrb[52].mxu1 %v7983_v41  ;;  %v1238_v41 = vld [vmem:[#allocation2 + $0x118] sm:$0x1] }
 0x16d   : > { %v6122_v10 = vadd.f32 %v6121_v46, %v6120_v27  ;;  %v8312_v15 = vadd.f32 %v6712_v16, %v6119_v48  ;;  %v6730_v5 = vadd.f32 %v6054_v59, %v8201_v28  ;;  %6613 = vmatprep.mubr.bf16.mxu1 %v7993_v1  ;;  %v1328_v22 = vrot.slane %v1238_v41, 1 }
 0x16e   : > { %6682 = vmatmul.mubr.msk.bf16.gmra.mrb[156].mxu0 %vm4440_vm9, %v5124_v30 }
 0x16f   : > { %v8317_v43 = vadd.f32 %v6718_v53, %v6122_v10  ;;  %v6055_v38 = vpop.f32.mrb[44].mxu1  ;;  %v1329_v57 = vsel %vm1275_vm7, %v1327_v14, %v1328_v22 }
 0x170   : > { %v6056_v49 = vpop.f32.mrb[45].mxu1 }
 0x171   : > { %v6123_v56 = vpop.f32.mrb[52].mxu0  ;;  %v6057_v21 = vadd.f32 %v6056_v49, %v6055_v38  ;;  %v6058_v55 = vpop.f32.mrb[46].mxu1 }
 0x172   : > { %v6124_v17 = vpop.f32.mrb[53].mxu0  ;;  %v6059_v16 = vpop.f32.mrb[47].mxu1 }
 0x173   : > { %v6125_v19 = vadd.f32 %v6124_v17, %v6123_v56  ;;  %v6126_v37 = vpop.f32.mrb[54].mxu0  ;;  %v6721_v28 = vadd.f32 %v6057_v21, %v8219_v31  ;;  %v6060_v1 = vadd.f32 %v6059_v16, %v6058_v55 }
 0x174   : > { %v6127_v44 = vpop.f32.mrb[55].mxu0  ;;  %6614 = vmatmul.mubr.bf16.gmra.mrb[56].mxu1 %v7999_v0 }
 0x175   : > { %v6128_v39 = vadd.f32 %v6127_v44, %v6126_v37  ;;  %v8321_v53 = vadd.f32 %v6709_v50, %v6125_v19  ;;  %v6727_v23 = vadd.f32 %v6060_v1, %v8224_v11  ;;  %6617 = vmatprep.mubr.bf16.mxu1 %v8012_v61 }
 0x177   : > { %v8326_v58 = vadd.f32 %v6715_v54, %v6128_v39 }
 0x179   : > { %v6129_v63 = vpop.f32.mrb[56].mxu0 }
 0x17a   : > { %v6130_v3 = vpop.f32.mrb[57].mxu0 }
 0x17b   : > { %v6131_v12 = vadd.f32 %v6130_v3, %v6129_v63  ;;  %v6132_v31 = vpop.f32.mrb[58].mxu0 }
 0x17c   : > { %v6133_v34 = vpop.f32.mrb[59].mxu0  ;;  %6618 = vmatmul.mubr.bf16.gmra.mrb[60].mxu1 %v1329_v57 }
 0x17d   : > { %v6134_v8 = vadd.f32 %v6133_v34, %v6132_v31  ;;  %v8329_v50 = vadd.f32 %v6724_v32, %v6131_v12  ;;  %v8348_v32 = vld [vmem:[%s9132_s4] ss:$0 sm:$0xff] }
 0x17f   : > { %v8331_v0 = vadd.f32 %v6730_v5, %v6134_v8 }
 0x181   : > { %v6135_v11 = vpop.f32.mrb[60].mxu0 }
 0x182   : > { %v6136_v24 = vpop.f32.mrb[61].mxu0 }
 0x183   : > { %v6137_v61 = vadd.f32 %v6136_v24, %v6135_v11  ;;  %v6138_v51 = vpop.f32.mrb[62].mxu0 }
 0x184   : > { %v6139_v45 = vpop.f32.mrb[63].mxu0 }
 0x185   : > { %v6140_v54 = vadd.f32 %v6139_v45, %v6138_v51  ;;  %v8333_v47 = vadd.f32 %v6721_v28, %v6137_v61 }
 0x187   : > { %v8335_v42 = vadd.f32 %v6727_v23, %v6140_v54 }
 0x189   : > { %v6173_v60 = vpop.f32.mrb[64].mxu0 }
 0x18a   : > { %v6174_v6 = vpop.f32.mrb[65].mxu0 }
 0x18b   : > { %v8337_v7 = vadd.f32 %v6174_v6, %v6173_v60  ;;  %v6176_v40 = vpop.f32.mrb[66].mxu0 }
 0x18c   : > { %v6177_v52 = vpop.f32.mrb[67].mxu0 }
 0x18d   : > { %v8339_v9 = vadd.f32 %v6177_v52, %v6176_v40 }
 0x191   : > { %v6179_v48 = vpop.f32.mrb[68].mxu0 }
 0x192   : > { %v6180_v27 = vpop.f32.mrb[69].mxu0 }
 0x193   : > { %v8341_v33 = vadd.f32 %v6180_v27, %v6179_v48  ;;  %v6182_v46 = vpop.f32.mrb[70].mxu0 }
 0x194   : > { %v6183_v20 = vpop.f32.mrb[71].mxu0 }
 0x195   : > { %v8343_v29 = vadd.f32 %v6183_v20, %v6182_v46 }
 0x197   : > { %v6511_v59 = vpop.f32.mrb[0].mxu1 }
 0x198   : > { %v6687_v5 = vadd.f32 %v8272_v36, %v6511_v59  ;;  %v2581_v30 = vpop.f32.mrb[1].mxu1 }
 0x199   : > { %v6185_v10 = vpop.f32.mrb[72].mxu0  ;;  %v6690_v56 = vadd.f32 %v8253_v18, %v2581_v30  ;;  %v6512_v49 = vpop.f32.mrb[2].mxu1 }
 0x19a   : > { %v6186_v38 = vpop.f32.mrb[73].mxu0  ;;  %v2668_v55 = vadd.f32 %v6687_v5, %v8348_v32  ;;  %v6693_v19 = vadd.f32 %v8276_v4, %v6512_v49  ;;  %v2584_v37 = vpop.f32.mrb[3].mxu1 }
 0x19b   : > { %v8352_v17 = vadd.f32 %v6186_v38, %v6185_v10  ;;  %v6188_v21 = vpop.f32.mrb[74].mxu0  ;;  %v2666_v26 = vadd.f32 %v6690_v56, %v8348_v32  ;;  %v6696_v41 = vadd.f32 %v8260_v62, %v2584_v37 }
 0x19c   : > { %v6189_v16 = vpop.f32.mrb[75].mxu0  ;;  %2685 = vst [vmem:[#allocation4 + $0x31] sm:$0xff] %v2668_v55  ;;  %v2669_v36 = vadd.f32 %v6693_v19, %v8348_v32 }
 0x19d   : > { %v8358_v44 = vadd.f32 %v6189_v16, %v6188_v21  ;;  %2683 = vst [vmem:[#allocation4 + $0x19] sm:$0xff] %v2666_v26  ;;  %v2667_v18 = vadd.f32 %v6696_v41, %v8348_v32 }
 0x19e   : > { %2686 = vst [vmem:[#allocation4 + $0x39] sm:$0xff] %v2669_v36 }
 0x19f   : > { %2684 = vst [vmem:[#allocation4 + $0x21] sm:$0xff] %v2667_v18  ;;  %v6515_v28 = vpop.f32.mrb[4].mxu1 }
 0x1a0   : > { %v6699_v4 = vadd.f32 %v8300_v25, %v6515_v28  ;;  %v2597_v39 = vpop.f32.mrb[5].mxu1 }
 0x1a1   : > { %v6191_v1 = vpop.f32.mrb[76].mxu0  ;;  %v6702_v14 = vadd.f32 %v8286_v13, %v2597_v39  ;;  %v6516_v22 = vpop.f32.mrb[6].mxu1 }
 0x1a2   : > { %v6192_v23 = vpop.f32.mrb[77].mxu0  ;;  %v2672_v3 = vadd.f32 %v6699_v4, %v8348_v32  ;;  %v6705_v57 = vadd.f32 %v8305_v2, %v6516_v22  ;;  %v2600_v12 = vpop.f32.mrb[7].mxu1 }
 0x1a3   : > { %v8364_v62 = vadd.f32 %v6192_v23, %v6191_v1  ;;  %v6194_v63 = vpop.f32.mrb[78].mxu0  ;;  %v2670_v34 = vadd.f32 %v6702_v14, %v8348_v32  ;;  %v6708_v8 = vadd.f32 %v8291_v35, %v2600_v12 }
 0x1a4   : > { %v6195_v31 = vpop.f32.mrb[79].mxu0  ;;  %2689 = vst [vmem:[#allocation4 + $0x61] sm:$0xff] %v2672_v3  ;;  %v2673_v25 = vadd.f32 %v6705_v57, %v8348_v32 }
 0x1a5   : > { %v8370_v11 = vadd.f32 %v6195_v31, %v6194_v63  ;;  %2687 = vst [vmem:[#allocation4 + $0x49] sm:$0xff] %v2670_v34  ;;  %v2671_v13 = vadd.f32 %v6708_v8, %v8348_v32  ;;  %v3984_v8 = vld [vmem:[#allocation4 + $0x18] sm:$0xff] }
 0x1a6   : > { %2690 = vst [vmem:[#allocation4 + $0x69] sm:$0xff] %v2673_v25  ;;  %v3981_v25 = vld [vmem:[#allocation4] sm:$0xff] }
 0x1a7   : > { %2688 = vst [vmem:[#allocation4 + $0x51] sm:$0xff] %v2671_v13  ;;  %v6519_v24 = vpop.f32.mrb[8].mxu1 }
 0x1a8   : > { %v6711_v2 = vadd.f32 %v8321_v53, %v6519_v24  ;;  %v2613_v51 = vpop.f32.mrb[9].mxu1  ;;  %v4033_v24 = vld [vmem:[#allocation4 + $0x38] sm:$0xff] }
 0x1a9   : > { %v6197_v61 = vpop.f32.mrb[80].mxu0  ;;  %v6714_v54 = vadd.f32 %v8312_v15, %v2613_v51  ;;  %v6520_v60 = vpop.f32.mrb[10].mxu1 }
 0x1aa   : > { %v6198_v45 = vpop.f32.mrb[81].mxu0  ;;  %v2676_v40 = vadd.f32 %v6711_v2, %v8348_v32  ;;  %v6717_v52 = vadd.f32 %v8326_v58, %v6520_v60  ;;  %v2616_v48 = vpop.f32.mrb[11].mxu1  ;;  %v4005_v60 = vmul.f32 0.27406862, %v3981_v25  ;;  %v4104_v25 = vld [vmem:[#allocation4 + $0x40] sm:$0x3] }
 0x1ab   : > { %v8376_v35 = vadd.f32 %v6198_v45, %v6197_v61  ;;  %v6200_v6 = vpop.f32.mrb[82].mxu0  ;;  %v2674_v46 = vadd.f32 %v6714_v54, %v8348_v32  ;;  %v6720_v20 = vadd.f32 %v8317_v43, %v2616_v48  ;;  %v4032_v45 = vld [vmem:[#allocation4 + $0x30] sm:$0xff]  ;;  %v4057_v48 = vmul.f32 0.45186275, %v4033_v24 }
 0x1ac   : > { %v6201_v27 = vpop.f32.mrb[83].mxu0  ;;  %2693 = vst [vmem:[#allocation4 + $0x91] sm:$0xff] %v2676_v40  ;;  %v2677_v53 = vadd.f32 %v6717_v52, %v8348_v32 }
 0x1ad   : > { %v8382_v59 = vadd.f32 %v6201_v27, %v6200_v6  ;;  %2691 = vst [vmem:[#allocation4 + $0x79] sm:$0xff] %v2674_v46  ;;  %v2675_v15 = vadd.f32 %v6720_v20, %v8348_v32  ;;  %v4053_v6 = vmul.f32 0.45186275, %v3984_v8  ;;  %v4056_v27 = vmul.f32 0.45186275, %v4032_v45  ;;  %v8414_v46 = vld [vmem:[#allocation4 + $0x48] sm:$0xff] }
 0x1ae   : > { %2694 = vst [vmem:[#allocation4 + $0x99] sm:$0xff] %v2677_v53  ;;  %v8409_v54 = vld [vmem:[#allocation4 + $0x50] sm:$0xff]  ;;  %v4008_v53 = vmul.f32 0.27406862, %v3984_v8 }
 0x1af   : > { %2692 = vst [vmem:[#allocation4 + $0x81] sm:$0xff] %v2675_v15  ;;  %v6523_v10 = vpop.f32.mrb[12].mxu1  ;;  %v8417_v15 = vmul.f32 0.27406862, %v8409_v54 }
 0x1b0   : > { %v6723_v58 = vadd.f32 %v8333_v47, %v6523_v10  ;;  %v2629_v30 = vpop.f32.mrb[13].mxu1  ;;  %v4077_v10 = vadd.f32 %v4053_v6, %v4005_v60 }
 0x1b1   : > { %v6203_v5 = vpop.f32.mrb[84].mxu0  ;;  %v6726_v56 = vadd.f32 %v8329_v50, %v2629_v30  ;;  %v6524_v49 = vpop.f32.mrb[14].mxu1  ;;  %v3983_v30 = vld [vmem:[#allocation4 + $0x10] sm:$0x3] }
 0x1b2   : > { %v6204_v38 = vpop.f32.mrb[85].mxu0  ;;  %v2680_v55 = vadd.f32 %v6723_v58, %v8348_v32  ;;  %v6729_v19 = vadd.f32 %v8335_v42, %v6524_v49  ;;  %v2632_v37 = vpop.f32.mrb[15].mxu1  ;;  %v3986_v58 = vld [vmem:[#allocation4 + $0x28] sm:$0x3]  ;;  %v8422_v49 = vmul.f32 0.27406862, %v8414_v46 }
 0x1b3   : > { %v8388_v43 = vadd.f32 %v6204_v38, %v6203_v5  ;;  %v6206_v21 = vpop.f32.mrb[86].mxu0  ;;  %v2678_v26 = vadd.f32 %v6726_v56, %v8348_v32  ;;  %v6732_v41 = vadd.f32 %v8331_v0, %v2632_v37  ;;  %v8419_v5 = vmul.f32 0.27406862, %v4033_v24 }
 0x1b4   : > { %v6207_v16 = vpop.f32.mrb[87].mxu0  ;;  %2697 = vst [vmem:[#allocation4 + $0xc1] sm:$0xff] %v2680_v55  ;;  %v2681_v47 = vadd.f32 %v6729_v19, %v8348_v32  ;;  %v8424_v19 = vmul.f32 0.27406862, %v4032_v45 }
 0x1b5   : > { %v8394_v36 = vadd.f32 %v6207_v16, %v6206_v21  ;;  %2695 = vst [vmem:[#allocation4 + $0xa9] sm:$0xff] %v2678_v26  ;;  %v2679_v50 = vadd.f32 %v6732_v41, %v8348_v32  ;;  %v3985_v32 = vld [vmem:[#allocation4 + $0x20] sm:$0xff]  ;;  %v4031_v16 = vld [vmem:[#allocation4 + $0x28] sm:$0x3] }
 0x1b6   : > { %2698 = vst [vmem:[#allocation4 + $0xc9] sm:$0xff] %v2681_v47  ;;  %v4054_v61 = vmul.f32 0.45186275, %v3985_v32  ;;  %v4009_v52 = vmul.f32 0.27406862, %v3985_v32  ;;  %v4080_v47 = vadd.f32 %v4056_v27, %v4008_v53 }
 0x1b7   : > { %2696 = vst [vmem:[#allocation4 + $0xb1] sm:$0xff] %v2679_v50  ;;  %v4034_v21 = vld [vmem:[#allocation4 + $0x40] sm:$0x3] }
 0x1b8   : > { %v4151_v37 = vadd.f32 %v8419_v5, %v4054_v61 }
 0x1b9   : > { %v6209_v18 = vpop.f32.mrb[88].mxu0 }
 0x1ba   : > { %v6210_v28 = vpop.f32.mrb[89].mxu0  ;;  %v8440_v60 = vmul.f32 0.27406862, %v4151_v37 }
 0x1bb   : > { %v8398_v1 = vadd.f32 %v6210_v28, %v6209_v18  ;;  %v6212_v42 = vpop.f32.mrb[90].mxu0  ;;  %v4107_v18 = vld [vmem:[#allocation4 + $0x58] sm:$0x3]  ;;  %v4150_v28 = vadd.f32 %v8424_v19, %v4077_v10  ;;  %v8449_v10 = vld [vmem:[#allocation4 + $0x60] sm:$0xff] }
 0x1bc   : > { %v6213_v4 = vpop.f32.mrb[91].mxu0 }
 0x1bd   : > { %v8400_v39 = vadd.f32 %v6213_v4, %v6212_v42  ;;  %v4010_v42 = vmul.f32 0.27406862, %v3986_v58  ;;  %v4058_v4 = vmul.f32 0.45186275, %v4034_v21 }
 0x1bf   : > { %v4082_v8 = vadd.f32 %v4058_v4, %v4010_v42 }
 0x1c1   : > { %v6215_v23 = vpop.f32.mrb[92].mxu0 }
 0x1c2   : > { %v6216_v0 = vpop.f32.mrb[93].mxu0 }
 0x1c3   : > { %v8402_v14 = vadd.f32 %v6216_v0, %v6215_v23  ;;  %v6218_v22 = vpop.f32.mrb[94].mxu0  ;;  %v4153_v0 = vadd.f32 %v8422_v49, %v4080_v47 }
 0x1c4   : > { %v6219_v63 = vpop.f32.mrb[95].mxu0 }
 0x1c5   : > { %v8404_v3 = vadd.f32 %v6219_v63, %v6218_v22  ;;  %v4007_v22 = vmul.f32 0.27406862, %v3983_v30  ;;  %v4055_v63 = vmul.f32 0.45186275, %v4031_v16  ;;  %v4193_v61 = vmul.f32 0.45186275, %v4153_v0 }
 0x1c6   : > { %v4176_v58 = vmul.f32 0.27406862, %v4153_v0  ;;  %v8459_v16 = vld [vmem:[#allocation4 + $0x78] sm:$0xff] }
 0x1c7   : > { %v4244_v21 = vrot.slane %v4193_v61, 1 }
 0x1c8   : > { %v4349_v42 = vrot.slane %v4176_v58, 2 }
 0x1c9   : > { %v6253_v57 = vpop.f32.mrb[96].mxu0 }
 0x1ca   : > { %v6254_v12 = vpop.f32.mrb[97].mxu0 }
 0x1cb   : > { %v6255_v31 = vadd.f32 %v6254_v12, %v6253_v57  ;;  %v6256_v34 = vpop.f32.mrb[98].mxu0  ;;  %v8436_v57 = vmul.f32 0.45186275, %v4151_v37 }
 0x1cc   : > { %v6257_v13 = vpop.f32.mrb[99].mxu0 }
 0x1cd   : > { %v8407_v2 = vadd.f32 %v6255_v31, %v8337_v7  ;;  %v6258_v51 = vadd.f32 %v6257_v13, %v6256_v34  ;;  %v4190_v34 = vmul.f32 0.45186275, %v4150_v28  ;;  %v4240_v6 = vrot.slane %v8436_v57, 1 }
 0x1cf   : > { %v8412_v40 = vadd.f32 %v6258_v51, %v8339_v9  ;;  %v4081_v9 = vadd.f32 %v4057_v48, %v4009_v52  ;;  %v4174_v51 = vmul.f32 0.27406862, %v4150_v28  ;;  %v8443_v48 = vld [vmem:[#allocation4 + $0x68] sm:$0xff] }
 0x1d1   : > { %v6259_v20 = vpop.f32.mrb[100].mxu0  ;;  %v4154_v50 = vadd.f32 %v8417_v15, %v4081_v9  ;;  %v4344_v0 = vrot.slane %v4174_v51, 2 }
 0x1d2   : > { %v6260_v7 = vpop.f32.mrb[101].mxu0 }
 0x1d3   : > { %v6261_v38 = vadd.f32 %v6260_v7, %v6259_v20  ;;  %v6262_v56 = vpop.f32.mrb[102].mxu0  ;;  %v8438_v12 = vmul.f32 0.45186275, %v4154_v50  ;;  %v4128_v7 = vmul.f32 0.27406862, %v4104_v25 }
 0x1d4   : > { %v6263_v55 = vpop.f32.mrb[103].mxu0  ;;  %v8451_v30 = vmul.f32 0.27406862, %v4154_v50 }
 0x1d5   : > { %v8428_v26 = vadd.f32 %v6261_v38, %v8341_v33  ;;  %v6264_v41 = vadd.f32 %v6263_v55, %v6262_v56  ;;  %v4131_v33 = vmul.f32 0.27406862, %v4107_v18  ;;  %v4245_v53 = vrot.slane %v8438_v12, 1  ;;  %v8453_v56 = vld [vmem:[#allocation4 + $0x80] sm:$0xff] }
 0x1d6   : > { %v4239_v38 = vrot.slane %v4190_v34, 1  ;;  %v4062_v18 = vmul.f32 0.45186275, %v8449_v10  ;;  %v4350_v4 = vrot.slane %v8451_v30, 2 }
 0x1d7   : > { %v8433_v23 = vadd.f32 %v6264_v41, %v8343_v29  ;;  %v4079_v29 = vadd.f32 %v4055_v63, %v4007_v22  ;;  %v4155_v52 = vadd.f32 %v4131_v33, %v4082_v8  ;;  %v4246_v47 = vsel %vm1275_vm7, %v4244_v21, %v4245_v53 }
 0x1d8   : > { %v4241_v50 = vsel %vm1275_vm7, %v4239_v38, %v4240_v6  ;;  %v4345_v22 = vrot.slane %v8440_v60, 2  ;;  %v4297_v8 = vadd.f32 %v4246_v47, %v4176_v58  ;;  %v4040_v38 = vld [vmem:[#allocation4 + $0x70] sm:$0x3] }
 0x1d9   : > { %v6265_v32 = vpop.f32.mrb[104].mxu0  ;;  %v4152_v55 = vadd.f32 %v4128_v7, %v4079_v29  ;;  %v4195_v37 = vmul.f32 0.45186275, %v4155_v52  ;;  %v4295_v25 = vadd.f32 %v4241_v50, %v4174_v51  ;;  %v3992_v7 = vld [vmem:[#allocation4 + $0x58] sm:$0x3] }
 0x1da   : > { %v6266_v31 = vpop.f32.mrb[105].mxu0  ;;  %v4312_v21 = vmul.f32 0.27406862, %v4155_v52  ;;  %v4059_v51 = vmul.f32 0.45186275, %v8414_v46 }
 0x1db   : > { %v6267_v13 = vadd.f32 %v6266_v31, %v6265_v32  ;;  %v6268_v24 = vpop.f32.mrb[106].mxu0  ;;  %v4192_v32 = vmul.f32 0.45186275, %v4152_v55  ;;  %v8473_v31 = vmul.f32 0.27406862, %v8459_v16 }
 0x1dc   : > { %v6269_v45 = vpop.f32.mrb[107].mxu0  ;;  %v4016_v52 = vmul.f32 0.27406862, %v3992_v7  ;;  %v4064_v50 = vmul.f32 0.45186275, %v4040_v38  ;;  %v8517_v7 = vld [vmem:[#allocation4 + $0xb0] sm:$0xff] }
 0x1dd   : > { %v8446_v27 = vadd.f32 %v6267_v13, %v8352_v17  ;;  %v6270_v20 = vadd.f32 %v6269_v45, %v6268_v24  ;;  %v4063_v17 = vmul.f32 0.45186275, %v8443_v48  ;;  %v4247_v13 = vrot.slane %v4195_v37, 1  ;;  %v8492_v37 = vld [vmem:[#allocation4 + $0xa8] sm:$0xff]  ;;  %v4037_v46 = vld [vmem:[#allocation4 + $0x58] sm:$0x3] }
 0x1de   : > { %v4060_v24 = vmul.f32 0.45186275, %v8409_v54  ;;  %v4086_v45 = vadd.f32 %v8422_v49, %v4062_v18  ;;  %v4242_v54 = vrot.slane %v4192_v32, 1  ;;  %v4083_v32 = vadd.f32 %v8424_v19, %v4059_v51 }
 0x1df   : > { %v8456_v9 = vadd.f32 %v6270_v20, %v8358_v44  ;;  %v8467_v44 = vmul.f32 0.27406862, %v8453_v56  ;;  %v4087_v12 = vadd.f32 %v8417_v15, %v4063_v17  ;;  %v4346_v15 = vsel %vm4343_vm10, %v4344_v0, %v4345_v22  ;;  %v4113_v17 = vld [vmem:[#allocation4 + $0x88] sm:$0x3] }
 0x1e0   : > { %v4159_v49 = vadd.f32 %v8473_v31, %v4086_v45  ;;  %v4084_v47 = vadd.f32 %v8419_v5, %v4060_v24  ;;  %v4311_v0 = vmul.f32 0.27406862, %v4152_v55  ;;  %v8507_v5 = vmul.f32 0.27406862, %v8492_v37  ;;  %v3989_v45 = vld [vmem:[#allocation4 + $0x40] sm:$0x3] }
 0x1e1   : > { %v6271_v41 = vpop.f32.mrb[108].mxu0  ;;  %v4160_v20 = vadd.f32 %v8467_v44, %v4087_v12  ;;  %v8504_v12 = vmul.f32 0.27406862, %v8443_v48  ;;  %v4243_v55 = vsel %vm1275_vm7, %v4240_v6, %v4242_v54  ;;  %v4088_v48 = vadd.f32 %v4064_v50, %v4016_v52 }
 0x1e2   : > { %v6272_v28 = vpop.f32.mrb[109].mxu0  ;;  %v4061_v51 = vmul.f32 0.45186275, %v4037_v46  ;;  %v4180_v57 = vmul.f32 0.27406862, %v4159_v49  ;;  %v4296_v50 = vadd.f32 %v4243_v55, %v8440_v60 }
 0x1e3   : > { %v6273_v63 = vadd.f32 %v6272_v28, %v6271_v41  ;;  %v6274_v33 = vpop.f32.mrb[110].mxu0  ;;  %v4248_v41 = vsel %vm1275_vm7, %v4245_v53, %v4247_v13  ;;  %v8498_v28 = vadd.f32 %v4346_v15, %v4295_v25  ;;  %v4137_v53 = vmul.f32 0.27406862, %v4113_v17  ;;  %v4110_v46 = vld [vmem:[#allocation4 + $0x70] sm:$0x3] }
 0x1e4   : > { %v6275_v34 = vpop.f32.mrb[111].mxu0  ;;  %v4199_v25 = vmul.f32 0.45186275, %v4159_v49  ;;  %v4157_v19 = vadd.f32 %v8504_v12, %v4084_v47  ;;  %v8527_v17 = vmul.f32 0.27406862, %v4160_v20 }
 0x1e5   : > { %v8477_v61 = vadd.f32 %v6273_v63, %v8364_v62  ;;  %v6276_v29 = vadd.f32 %v6275_v34, %v6274_v33  ;;  %v4351_v62 = vsel %vm4343_vm10, %v4349_v42, %v4350_v4  ;;  %v8500_v42 = vmul.f32 0.45186275, %v4160_v20 }
 0x1e6   : > { %v4352_v33 = vrot.slane %v4312_v21, 2  ;;  %v4161_v54 = vadd.f32 %v4137_v53, %v4088_v48  ;;  %v4013_v47 = vmul.f32 0.27406862, %v3989_v45  ;;  %v8530_v52 = vmul.f32 0.27406862, %v8517_v7  ;;  %v8545_v53 = vld [vmem:[#allocation4 + $0x98] sm:$0xff] }
 0x1e7   : > { %v8486_v58 = vadd.f32 %v6276_v29, %v8370_v11  ;;  %v8496_v11 = vadd.f32 %v4351_v62, %v4297_v8  ;;  %v4298_v8 = vadd.f32 %v4248_v41, %v8451_v30  ;;  %v8514_v29 = vmul.f32 0.27406862, %v8449_v10 }
 0x1e8   : > { %v4255_v21 = vrot.slane %v8500_v42, 1  ;;  %v4347_v62 = vrot.slane %v4311_v0, 2  ;;  %v4254_v41 = vrot.slane %v4199_v25, 1  ;;  %v8536_v49 = vmul.f32 0.45186275, %v4157_v19 }
 0x1e9   : > { %v6277_v18 = vpop.f32.mrb[112].mxu0  ;;  %v4156_v6 = vadd.f32 %v8514_v29, %v4083_v32  ;;  %v8543_v20 = vmul.f32 0.27406862, %v4157_v19  ;;  %v4044_v32 = vld [vmem:[#allocation4 + $0x90] sm:$0xff]  ;;  %v4134_v48 = vmul.f32 0.27406862, %v4110_v46 }
 0x1ea   : > { %v6278_v63 = vpop.f32.mrb[113].mxu0 }
 0x1eb   : > { %v6279_v34 = vadd.f32 %v6278_v63, %v6277_v18  ;;  %v6280_v13 = vpop.f32.mrb[114].mxu0  ;;  %v4085_v63 = vadd.f32 %v4061_v51, %v4013_v47  ;;  %v4178_v55 = vmul.f32 0.27406862, %v4156_v6  ;;  %v8552_v51 = vmul.f32 0.27406862, %v4161_v54 }
 0x1ec   : > { %v6281_v24 = vpop.f32.mrb[115].mxu0 }
 0x1ed   : > { %v8520_v38 = vadd.f32 %v6279_v34, %v8376_v35  ;;  %v6282_v15 = vadd.f32 %v6281_v24, %v6280_v13  ;;  %v4353_v35 = vsel %vm4343_vm10, %v4350_v4, %v4352_v33  ;;  %v4348_v4 = vsel %vm4343_vm10, %v4345_v22, %v4347_v62 }
 0x1ee   : > { %v8538_v0 = vadd.f32 %v4353_v35, %v4298_v8  ;;  %v4359_v33 = vrot.slane %v4180_v57, 2  ;;  %v4196_v34 = vmul.f32 0.45186275, %v4156_v6  ;;  %v4201_v13 = vmul.f32 0.45186275, %v4161_v54 }
 0x1ef   : > { %v8525_v10 = vadd.f32 %v6282_v15, %v8382_v59  ;;  %v4256_v59 = vsel %vm1275_vm7, %v4254_v41, %v4255_v21  ;;  %v9139_v24 = vrot.slane %v8527_v17, 2  ;;  %v9138_v15 = vrot.slane %v8536_v49, 1 }
 0x1f0   : > { %v4301_v45 = vadd.f32 %v4256_v59, %v4180_v57  ;;  %v4068_v41 = vmul.f32 0.45186275, %v4044_v32  ;;  %v9137_v62 = vrot.slane %v8543_v20, 2  ;;  %v4158_v47 = vadd.f32 %v4134_v48, %v4085_v63  ;;  %v4046_v59 = vld [vmem:[#allocation4 + $0xa0] sm:$0x3] }
 0x1f1   : > { %v6283_v18 = vpop.f32.mrb[116].mxu0  ;;  %v4249_v35 = vrot.slane %v4196_v34, 1  ;;  %v4065_v6 = vmul.f32 0.45186275, %v8459_v16  ;;  %v8563_v46 = vadd.f32 %v4348_v4, %v4296_v50  ;;  %v4354_v54 = vrot.slane %v4178_v55, 2 }
 0x1f2   : > { %v6284_v30 = vpop.f32.mrb[117].mxu0  ;;  %v4362_v34 = vrot.slane %v8552_v51, 2  ;;  %v4066_v16 = vmul.f32 0.45186275, %v8453_v56  ;;  %v8581_v48 = vmul.f32 0.27406862, %v4158_v47 }
 0x1f3   : > { %v6285_v8 = vadd.f32 %v6284_v30, %v6283_v18  ;;  %v6286_v25 = vpop.f32.mrb[118].mxu0  ;;  %v4257_v18 = vrot.slane %v4201_v13, 1  ;;  %v4069_v30 = vmul.f32 0.45186275, %v8545_v53  ;;  %v4251_v63 = vsel %vm1275_vm7, %v4249_v35, %v9138_v15 }
 0x1f4   : > { %v6287_v19 = vpop.f32.mrb[119].mxu0  ;;  %v4092_v13 = vadd.f32 %v8473_v31, %v4068_v41  ;;  %v4043_v41 = vld [vmem:[#allocation4 + $0x88] sm:$0x3]  ;;  %v4299_v15 = vadd.f32 %v4251_v63, %v4178_v55  ;;  %v8603_v63 = vmul.f32 0.27406862, %v8545_v53 }
 0x1f5   : > { %v8555_v60 = vadd.f32 %v6285_v8, %v8388_v43  ;;  %v6288_v22 = vadd.f32 %v6287_v19, %v6286_v25  ;;  %v4361_v43 = vsel %vm4343_vm10, %v4359_v33, %v9139_v24  ;;  %v4356_v33 = vsel %vm4343_vm10, %v4354_v54, %v9137_v62  ;;  %v4119_v24 = vld [vmem:[#allocation4 + $0xb8] sm:$0x3] }
 0x1f6   : > { %v8574_v4 = vadd.f32 %v4361_v43, %v4301_v45  ;;  %v8579_v25 = vmul.f32 0.45186275, %v4158_v47  ;;  %v4258_v31 = vsel %vm1275_vm7, %v4255_v21, %v4257_v18  ;;  %v4093_v56 = vadd.f32 %v8467_v44, %v4069_v30 }
 0x1f7   : > { %9147 = vst [vmem:[#allocation5_spill] sm:$0xff] %v8555_v60  ;;  %v8561_v57 = vadd.f32 %v6288_v22, %v8394_v36  ;;  %v3998_v36 = vld [vmem:[#allocation4 + $0x88] sm:$0x3]  ;;  %v6333_v8 = vpop.f32.mrb[64].mxu1  ;;  %v4165_v51 = vadd.f32 %v4092_v13, %v8507_v5  ;;  %v4089_v45 = vadd.f32 %v8514_v29, %v4065_v6  ;;  %v8589_v47 = vmul.f32 0.27406862, %v4044_v32 }
 0x1f8   : > { %v6334_v19 = vpop.f32.mrb[65].mxu1  ;;  %v4166_v42 = vadd.f32 %v4093_v56, %v8530_v52  ;;  %v4090_v21 = vadd.f32 %v8504_v12, %v4066_v16  ;;  %v4022_v44 = vmul.f32 0.27406862, %v3998_v36  ;;  %v4070_v18 = vmul.f32 0.45186275, %v4046_v59 }
 0x1f9   : > { %9148 = vst [vmem:[#allocation6_spill] sm:$0xff] %v8561_v57  ;;  %v6289_v50 = vpop.f32.mrb[120].mxu0  ;;  %v6335_v35 = vadd.f32 %v6334_v19, %v6333_v8  ;;  %v6336_v43 = vpop.f32.mrb[66].mxu1  ;;  %v4302_v32 = vadd.f32 %v4258_v31, %v8527_v17  ;;  %v8600_v55 = vmul.f32 0.27406862, %v4165_v51  ;;  %v4162_v8 = vadd.f32 %v8589_v47, %v4089_v45 }
 0x1fa   : > { %v6290_v22 = vpop.f32.mrb[121].mxu0  ;;  %v6337_v57 = vpop.f32.mrb[67].mxu1  ;;  %v3995_v12 = vld [vmem:[#allocation4 + $0x70] sm:$0x3]  ;;  %v4116_v16 = vld [vmem:[#allocation4 + $0xa0] sm:$0x3]  ;;  %v4163_v53 = vadd.f32 %v8603_v63, %v4090_v21 }
 0x1fb   : > { %v6291_v54 = vadd.f32 %v6290_v22, %v6289_v50  ;;  %v6292_v62 = vpop.f32.mrb[122].mxu0  ;;  %v6338_v30 = vadd.f32 %v6337_v57, %v6336_v43  ;;  %v8597_v13 = vadd.f32 %v8407_v2, %v6335_v35  ;;  %v4143_v57 = vmul.f32 0.27406862, %v4119_v24 }
 0x1fc   : > { %v6293_v60 = vpop.f32.mrb[123].mxu0  ;;  %v4252_v2 = vrot.slane %v8579_v25, 1  ;;  %v4205_v36 = vmul.f32 0.45186275, %v4165_v51  ;;  %v9149_v22 = vrot.slane %v8527_v17, 2  ;;  %v4094_v24 = vadd.f32 %v4070_v18, %v4022_v44 }
 0x1fd   : > { %v8594_v29 = vadd.f32 %v6291_v54, %v8398_v1  ;;  %v6294_v6 = vadd.f32 %v6293_v60, %v6292_v62  ;;  %v4067_v1 = vmul.f32 0.45186275, %v4043_v41  ;;  %v8610_v60 = vadd.f32 %v8412_v40, %v6338_v30 }
 0x1fe   : > { %v8613_v62 = vmul.f32 0.27406862, %v4166_v42  ;;  %v8619_v31 = vmul.f32 0.45186275, %v4166_v42  ;;  %v4019_v56 = vmul.f32 0.27406862, %v3995_v12  ;;  %v8621_v41 = vadd.f32 %v4356_v33, %v4299_v15 }
 0x1ff   : > { %v8607_v59 = vadd.f32 %v6294_v6, %v8400_v39  ;;  %v6339_v50 = vpop.f32.mrb[68].mxu1  ;;  %v4363_v39 = vsel %vm4343_vm10, %v9149_v22, %v4362_v34  ;;  %v4357_v25 = vrot.slane %v8581_v48, 2  ;;  %v4369_v51 = vrot.slane %v8600_v55, 2 }
 0x200   : > { %v6340_v45 = vpop.f32.mrb[69].mxu1  ;;  %v8625_v35 = vmul.f32 0.45186275, %v4162_v8  ;;  %v4167_v30 = vadd.f32 %v4143_v57, %v4094_v24  ;;  %v4091_v34 = vadd.f32 %v4067_v1, %v4019_v56  ;;  %v8627_v44 = vadd.f32 %v4363_v39, %v4302_v32 }
 0x201   : > { %v6295_v19 = vpop.f32.mrb[124].mxu0  ;;  %v6341_v43 = vadd.f32 %v6340_v45, %v6339_v50  ;;  %v6342_v54 = vpop.f32.mrb[70].mxu1  ;;  %v9150_v18 = vrot.slane %v8536_v49, 1  ;;  %v8632_v33 = vmul.f32 0.45186275, %v4163_v53  ;;  %v4264_v1 = vrot.slane %v4205_v36, 1 }
 0x202   : > { %v6296_v40 = vpop.f32.mrb[125].mxu0  ;;  %v6343_v42 = vpop.f32.mrb[71].mxu1  ;;  %v4140_v48 = vmul.f32 0.27406862, %v4116_v16  ;;  %v4265_v32 = vrot.slane %v8619_v31, 1  ;;  %v4370_v39 = vrot.slane %v8613_v62, 2 }
 0x203   : > { %v6297_v21 = vadd.f32 %v6296_v40, %v6295_v19  ;;  %v6298_v17 = vpop.f32.mrb[126].mxu0  ;;  %v4253_v15 = vsel %vm1275_vm7, %v9150_v18, %v4252_v2  ;;  %v6344_v12 = vadd.f32 %v6343_v42, %v6342_v54  ;;  %v4049_v19 = vld [vmem:[#allocation4 + $0xb8] sm:$0x3]  ;;  %v8638_v57 = vadd.f32 %v8428_v26, %v6341_v43  ;;  %v4001_v26 = vld [vmem:[#allocation4 + $0xa0] sm:$0x3] }
 0x204   : > { %v6299_v6 = vpop.f32.mrb[127].mxu0  ;;  %v8642_v49 = vmul.f32 0.27406862, %v4162_v8  ;;  %v4207_v16 = vmul.f32 0.45186275, %v4167_v30  ;;  %v8652_v24 = vadd.f32 %v4140_v48, %v4091_v34  ;;  %v9151_v31 = vrot.slane %v8543_v20, 2 }
 0x205   : > { %v8635_v22 = vadd.f32 %v6297_v21, %v8402_v14  ;;  %v6300_v50 = vadd.f32 %v6299_v6, %v6298_v17  ;;  %v8650_v14 = vld [vmem:[%s9135_s7] ss:$0 sm:$0xff]  ;;  %v8655_v36 = vadd.f32 %v8433_v23, %v6344_v12  ;;  %v8660_v56 = vmul.f32 0.27406862, %v4163_v53  ;;  %v4122_v34 = vld [vmem:[#allocation4 + $0xd0] sm:$0x3] }
 0x206   : > { %v4358_v8 = vsel %vm4343_vm10, %v9151_v31, %v4357_v25  ;;  %v4073_v45 = vmul.f32 0.45186275, %v4049_v19  ;;  %v4300_v54 = vadd.f32 %v4253_v15, %v8543_v20  ;;  %v4259_v21 = vrot.slane %v8625_v35, 1  ;;  %v8678_v20 = vld [vmem:[#allocation4 + $0xc8] sm:$0xff] }
 0x207   : > { %v8645_v2 = vadd.f32 %v6300_v50, %v8404_v3  ;;  %v4072_v3 = vmul.f32 0.45186275, %v8517_v7  ;;  %v6345_v40 = vpop.f32.mrb[72].mxu1  ;;  %v4260_v17 = vrot.slane %v8632_v33, 1  ;;  %v8666_v23 = vmul.f32 0.27406862, %v4167_v30 }
 0x208   : > { %v6346_v42 = vpop.f32.mrb[73].mxu1  ;;  %v4266_v6 = vsel %vm1275_vm7, %v4264_v1, %v4265_v32  ;;  %v4071_v7 = vmul.f32 0.45186275, %v8492_v37  ;;  %v4025_v18 = vmul.f32 0.27406862, %v4001_v26  ;;  %v4267_v48 = vrot.slane %v4207_v16, 1 }
 0x209   : > { %v6639_v43 = vpop.f32.mrb[128].mxu0  ;;  %v6347_v35 = vadd.f32 %v6346_v42, %v6345_v40  ;;  %v6348_v30 = vpop.f32.mrb[74].mxu1  ;;  %v4204_v12 = vmul.f32 0.45186275, %v8652_v24  ;;  %v4096_v26 = vadd.f32 %v8603_v63, %v4072_v3  ;;  %v4146_v63 = vmul.f32 0.27406862, %v4122_v34 }
 0x20a   : > { %v4580_v25 = vadd.f32 %v6639_v43, %v8650_v14  ;;  %v4571_v53 = vpop.f32.mrb[129].mxu0  ;;  %v6349_v50 = vpop.f32.mrb[75].mxu1  ;;  %v4097_v31 = vadd.f32 %v4073_v45, %v4025_v18 }
 0x20b   : > { %v4572_v15 = vadd.f32 %v8650_v14, %v4571_v53  ;;  %v6640_v33 = vpop.f32.mrb[130].mxu0  ;;  %v6350_v40 = vadd.f32 %v6349_v50, %v6348_v30  ;;  %v4120_v53 = vld [vmem:[#allocation4 + $0xc0] sm:$0xff]  ;;  %v8688_v16 = vadd.f32 %v8446_v27, %v6347_v35  ;;  %v4262_v45 = vrot.slane %v4204_v12, 1 }
 0x20c   : > { %v4636_v37 = vadd.f32 %v4580_v25, %v8496_v11  ;;  %v4583_v19 = vadd.f32 %v6640_v33, %v8650_v14  ;;  %v4574_v1 = vpop.f32.mrb[131].mxu0  ;;  %v4095_v25 = vadd.f32 %v8589_v47, %v4071_v7  ;;  %v4145_v33 = vmul.f32 0.27406862, %v8678_v20 }
 0x20d   : > { %v4634_v43 = vadd.f32 %v4572_v15, %v8498_v28  ;;  %v4575_v42 = vadd.f32 %v8650_v14, %v4574_v1  ;;  %v4261_v28 = vsel %vm1275_vm7, %v4259_v21, %v4260_v17  ;;  %v8698_v18 = vadd.f32 %v8456_v9, %v6350_v40 }
 0x20e   : > { %4652 = vst [vmem:[%s8676_s16 + $0x10] sm:$0xff] %v4636_v37  ;;  %v4637_v11 = vadd.f32 %v4583_v19, %v8538_v0  ;;  %v4268_v27 = vsel %vm1275_vm7, %v4265_v32, %v4267_v48  ;;  %v8702_v35 = vmul.f32 0.27406862, %v4120_v53  ;;  %v4169_v0 = vadd.f32 %v4145_v33, %v4096_v26 }
 0x20f   : > { %4650 = vst [vmem:[%s8676_s16] sm:$0xff] %v4634_v43  ;;  %v4635_v3 = vadd.f32 %v4575_v42, %v8563_v46  ;;  %v8704_v30 = vadd.f32 %v4146_v63, %v4097_v31  ;;  %v6351_v47 = vpop.f32.mrb[76].mxu1  ;;  %v4405_v7 = vadd.f32 %v4358_v8, %v4300_v54  ;;  %v4305_v46 = vadd.f32 %v4266_v6, %v8600_v55 }
 0x210   : > { %4653 = vst [vmem:[%s8676_s16 + $0x18] sm:$0xff] %v4637_v11  ;;  %v4365_v21 = vrot.slane %v8660_v56, 2  ;;  %v4372_v15 = vrot.slane %v8666_v23, 2  ;;  %v6352_v9 = vpop.f32.mrb[77].mxu1  ;;  %v4303_v32 = vadd.f32 %v4261_v28, %v8642_v49  ;;  %v4315_v48 = vmul.f32 0.27406862, %v8652_v24 }
 0x211   : > { %4651 = vst [vmem:[%s8676_s16 + $0x8] sm:$0xff] %v4635_v3  ;;  %v6643_v34 = vpop.f32.mrb[132].mxu0  ;;  %v4168_v37 = vadd.f32 %v8702_v35, %v4095_v25  ;;  %v6353_v19 = vadd.f32 %v6352_v9, %v6351_v47  ;;  %v6354_v1 = vpop.f32.mrb[78].mxu1  ;;  %v4306_v6 = vadd.f32 %v4268_v27, %v8613_v62  ;;  %v4263_v23 = vsel %vm1275_vm7, %v4260_v17, %v4262_v45 }
 0x212   : > { %v4596_v12 = vadd.f32 %v6643_v34, %v8650_v14  ;;  %v4587_v50 = vpop.f32.mrb[133].mxu0  ;;  %v6355_v26 = vpop.f32.mrb[79].mxu1  ;;  %v4209_v24 = vmul.f32 0.45186275, %v4169_v0  ;;  %v4210_v42 = vmul.f32 0.45186275, %v8704_v30  ;;  %v4304_v45 = vadd.f32 %v4263_v23, %v8660_v56 }
 0x213   : > { %v4588_v8 = vadd.f32 %v8650_v14, %v4587_v50  ;;  %v6644_v54 = vpop.f32.mrb[134].mxu0  ;;  %v6356_v53 = vadd.f32 %v6355_v26, %v6354_v1  ;;  %v8723_v33 = vadd.f32 %v8477_v61, %v6353_v19  ;;  %v4367_v63 = vrot.slane %v4315_v48, 2 }
 0x214   : > { %v4640_v31 = vadd.f32 %v4596_v12, %v8574_v4  ;;  %v4599_v40 = vadd.f32 %v6644_v54, %v8650_v14  ;;  %v4590_v43 = vpop.f32.mrb[135].mxu0  ;;  %v4364_v4 = vrot.slane %v8642_v49, 2  ;;  %v4208_v3 = vmul.f32 0.45186275, %v4168_v37 }
 0x215   : > { %v4638_v11 = vadd.f32 %v4588_v8, %v8621_v41  ;;  %v4591_v25 = vadd.f32 %v8650_v14, %v4590_v43  ;;  %v4371_v41 = vsel %vm4343_vm10, %v4369_v51, %v4370_v39  ;;  %v8736_v61 = vadd.f32 %v8486_v58, %v6356_v53 }
 0x216   : > { %4656 = vst [vmem:[%s8676_s16 + $0x30] sm:$0xff] %v4640_v31  ;;  %v4641_v17 = vadd.f32 %v4599_v40, %v8627_v44  ;;  %v4366_v44 = vsel %vm4343_vm10, %v4364_v4, %v4365_v21  ;;  %v4373_v49 = vsel %vm4343_vm10, %v4370_v39, %v4372_v15  ;;  %v4270_v27 = vrot.slane %v4209_v24, 1 }
 0x217   : > { %4654 = vst [vmem:[%s8676_s16 + $0x20] sm:$0xff] %v4638_v11  ;;  %v4639_v28 = vadd.f32 %v4591_v25, %v4405_v7  ;;  %v4272_v47 = vrot.slane %v4210_v42, 1  ;;  %v6357_v34 = vpop.f32.mrb[80].mxu1  ;;  %v4410_v7 = vadd.f32 %v4371_v41, %v4305_v46  ;;  %v4408_v9 = vadd.f32 %v4366_v44, %v4303_v32 }
 0x218   : > { %4657 = vst [vmem:[%s8676_s16 + $0x38] sm:$0xff] %v4641_v17  ;;  %v4411_v51 = vadd.f32 %v4373_v49, %v4306_v6  ;;  %v4186_v12 = vmul.f32 0.27406862, %v4168_v37  ;;  %v6358_v56 = vpop.f32.mrb[81].mxu1  ;;  %v4368_v48 = vsel %vm4343_vm10, %v4365_v21, %v4367_v63  ;;  %v4187_v19 = vmul.f32 0.27406862, %v4169_v0 }
 0x219   : > { %4655 = vst [vmem:[%s8676_s16 + $0x28] sm:$0xff] %v4639_v28  ;;  %v6647_v55 = vpop.f32.mrb[136].mxu0  ;;  %v4269_v1 = vrot.slane %v4208_v3, 1  ;;  %v6359_v62 = vadd.f32 %v6358_v56, %v6357_v34  ;;  %v6360_v39 = vpop.f32.mrb[82].mxu1  ;;  %v4409_v46 = vadd.f32 %v4368_v48, %v4304_v45  ;;  %v4317_v32 = vmul.f32 0.27406862, %v8704_v30 }
 0x21a   : > { %v4612_v58 = vadd.f32 %v6647_v55, %v8650_v14  ;;  %v4603_v50 = vpop.f32.mrb[137].mxu0  ;;  %v6361_v54 = vpop.f32.mrb[83].mxu1  ;;  %v4273_v0 = vsel %vm1275_vm7, %v4270_v27, %v4272_v47  ;;  %v4375_v24 = vrot.slane %v4187_v19, 2  ;;  %v4374_v17 = vrot.slane %v4186_v12, 2  ;;  %v9152_v56 = vld [vmem:[#allocation5_spill] sm:$0xff]  ;;  %v9153_v48 = vld [vmem:[#allocation6_spill] sm:$0xff] }
 0x21b   : > { %v4604_v15 = vadd.f32 %v8650_v14, %v4603_v50  ;;  %v6648_v8 = vpop.f32.mrb[138].mxu0  ;;  %v4271_v21 = vsel %vm1275_vm7, %v4269_v1, %v4270_v27  ;;  %v6362_v26 = vadd.f32 %v6361_v54, %v6360_v39  ;;  %v8753_v43 = vadd.f32 %v8520_v38, %v6359_v62 }
 0x21c   : > { %v4644_v37 = vadd.f32 %v4612_v58, %v4410_v7  ;;  %v4615_v6 = vadd.f32 %v6648_v8, %v8650_v14  ;;  %v4606_v23 = vpop.f32.mrb[139].mxu0  ;;  %v4307_v53 = vadd.f32 %v4271_v21, %v4186_v12  ;;  %v4377_v11 = vrot.slane %v4317_v32, 2 }
 0x21d   : > { %v4642_v31 = vadd.f32 %v4604_v15, %v4408_v9  ;;  %v4607_v40 = vadd.f32 %v8650_v14, %v4606_v23  ;;  %v8758_v25 = vadd.f32 %v8525_v10, %v6362_v26  ;;  %v4308_v4 = vadd.f32 %v4273_v0, %v4187_v19 }
 0x21e   : > { %4660 = vst [vmem:[%s8676_s16 + $0x50] sm:$0xff] %v4644_v37  ;;  %v4645_v30 = vadd.f32 %v4615_v6, %v4411_v51  ;;  %v4376_v38 = vsel %vm4343_vm10, %v4374_v17, %v4375_v24  ;;  %v4378_v47 = vsel %vm4343_vm10, %v4375_v24, %v4377_v11  ;;  %v4050_v17 = vld [vmem:[#allocation4 + $0xc0] sm:$0xff] }
 0x21f   : > { %4658 = vst [vmem:[%s8676_s16 + $0x40] sm:$0xff] %v4642_v31  ;;  %v4643_v42 = vadd.f32 %v4607_v40, %v4409_v46  ;;  %v6363_v63 = vpop.f32.mrb[84].mxu1  ;;  %v4412_v49 = vadd.f32 %v4376_v38, %v4307_v53  ;;  %v4413_v7 = vadd.f32 %v4378_v47, %v4308_v4  ;;  %v4004_v38 = vld [vmem:[#allocation4 + $0xb8] sm:$0x3] }
 0x220   : > { %4661 = vst [vmem:[%s8676_s16 + $0x58] sm:$0xff] %v4645_v30  ;;  %v6364_v28 = vpop.f32.mrb[85].mxu1 }
 0x221   : > { %4659 = vst [vmem:[%s8676_s16 + $0x48] sm:$0xff] %v4643_v42  ;;  %v8762_v3 = vpop.f32.mrb[140].mxu0  ;;  %v6365_v45 = vadd.f32 %v6364_v28, %v6363_v63  ;;  %v6366_v44 = vpop.f32.mrb[86].mxu1  ;;  %v4052_v28 = vld [vmem:[#allocation4 + $0xd0] sm:$0x3] }
 0x222   : > { %v4619_v41 = vpop.f32.mrb[141].mxu0  ;;  %v6367_v34 = vpop.f32.mrb[87].mxu1 }
 0x223   : > { %v4620_v27 = vadd.f32 %v8650_v14, %v4619_v41  ;;  %v8766_v10 = vpop.f32.mrb[142].mxu0  ;;  %v6368_v9 = vadd.f32 %v6367_v34, %v6366_v44  ;;  %v8771_v58 = vadd.f32 %v9152_v56, %v6365_v45 }
 0x224   : > { %v4622_v55 = vpop.f32.mrb[143].mxu0 }
 0x225   : > { %v4646_v51 = vadd.f32 %v4620_v27, %v4412_v49  ;;  %v4623_v12 = vadd.f32 %v8650_v14, %v4622_v55  ;;  %v8775_v19 = vadd.f32 %v9153_v48, %v6368_v9  ;;  %v4074_v49 = vmul.f32 0.45186275, %v4050_v17 }
 0x226   : > { %v4075_v27 = vmul.f32 0.45186275, %v8678_v20  ;;  %v4076_v55 = vmul.f32 0.45186275, %v4052_v28  ;;  %v4028_v9 = vmul.f32 0.27406862, %v4004_v38 }
 0x227   : > { %4662 = vst [vmem:[%s8676_s16 + $0x60] sm:$0xff] %v4646_v51  ;;  %v4647_v50 = vadd.f32 %v4623_v12, %v4413_v7  ;;  %v6369_v1 = vpop.f32.mrb[88].mxu1  ;;  %v4668_v20 = vld [vmem:[#allocation4 + $0xc8] sm:$0xff]  ;;  %v4669_v12 = vld [vmem:[#allocation4 + $0xd0] sm:$0x3] }
 0x228   : > { %v6370_v62 = vpop.f32.mrb[89].mxu1 }
 0x229   : > { %4663 = vst [vmem:[%s8676_s16 + $0x68] sm:$0xff] %v4647_v50  ;;  %v6371_v39 = vadd.f32 %v6370_v62, %v6369_v1  ;;  %v6372_v15 = vpop.f32.mrb[90].mxu1  ;;  %v8781_v54 = vpop.f32.mrb[144].mxu0  ;;  %v4809_v1 = vld [vmem:[#allocation4 + $0x198] sm:$0xff] }
 0x22a   : > { %v6373_v8 = vpop.f32.mrb[91].mxu1  ;;  %v8783_v37 = vpop.f32.mrb[145].mxu0  ;;  %v8844_v28 = vadd.f32 %v8781_v54, %v8650_v14 }
 0x22b   : > { %v6374_v46 = vadd.f32 %v6373_v8, %v6372_v15  ;;  %v8779_v32 = vadd.f32 %v8594_v29, %v6371_v39  ;;  %v8788_v23 = vpop.f32.mrb[146].mxu0  ;;  %v8818_v39 = vadd.f32 %v4075_v27, %v8530_v52  ;;  %v8820_v15 = vadd.f32 %v4076_v55, %v4028_v9  ;;  %v7027_v52 = vld [vmem:[#allocation4 + $0x8] sm:$0xff] }
 0x22c   : > { %v8790_v0 = vpop.f32.mrb[147].mxu0  ;;  %v8822_v8 = vmul.f32 0.27406862, %v4668_v20 }
 0x22d   : > { %v8786_v6 = vadd.f32 %v8607_v59, %v6374_v46  ;;  %v8824_v46 = vmul.f32 0.27406862, %v4669_v12 }
 0x22f   : > { %v6375_v21 = vpop.f32.mrb[92].mxu1 }
 0x230   : > { %v6376_v26 = vpop.f32.mrb[93].mxu1 }
 0x231   : > { %v6377_v31 = vadd.f32 %v6376_v26, %v6375_v21  ;;  %v6378_v40 = vpop.f32.mrb[94].mxu1  ;;  %v6675_v42 = vpop.f32.mrb[148].mxu0  ;;  %v8830_v26 = vadd.f32 %v8762_v3, %v8650_v14 }
 0x232   : > { %v6379_v30 = vpop.f32.mrb[95].mxu1  ;;  %v5270_v11 = vpop.f32.mrb[149].mxu0 }
 0x233   : > { %v6380_v24 = vadd.f32 %v6379_v30, %v6378_v40  ;;  %v8793_v29 = vadd.f32 %v8635_v22, %v6377_v31  ;;  %v8798_v59 = vpop.f32.mrb[150].mxu0  ;;  %v8833_v40 = vmul.f32 0.27406862, %v4809_v1  ;;  %v8835_v30 = vmul.f32 0.27406862, %v7027_v52 }
 0x234   : > { %v8800_v63 = vpop.f32.mrb[151].mxu0 }
 0x235   : > { %v8796_v53 = vadd.f32 %v8645_v2, %v6380_v24  ;;  %v8808_v2 = vld [vmem:[%s9132_s4] ss:$0 sm:$0xff]  ;;  %v8839_v24 = vadd.f32 %v8766_v10, %v8650_v14  ;;  %v8854_v10 = vadd.f32 %v8788_v23, %v8650_v14 }
 0x237   : > { %v6607_v4 = vpop.f32.mrb[48].mxu1 }
 0x238   : > { %v6735_v41 = vadd.f32 %v8638_v57, %v6607_v4  ;;  %v3869_v45 = vpop.f32.mrb[49].mxu1 }
 0x239   : > { %v6738_v44 = vadd.f32 %v8597_v13, %v3869_v45  ;;  %v6608_v22 = vpop.f32.mrb[50].mxu1  ;;  %v6679_v56 = vpop.f32.mrb[152].mxu0 }
 0x23a   : > { %v3950_v47 = vadd.f32 %v8808_v2, %v6735_v41  ;;  %v6741_v34 = vadd.f32 %v8655_v36, %v6608_v22  ;;  %v3872_v7 = vpop.f32.mrb[51].mxu1  ;;  %v5286_v48 = vpop.f32.mrb[153].mxu0  ;;  %v4098_v36 = vadd.f32 %v4074_v49, %v8507_v5  ;;  %v8866_v22 = vadd.f32 %v8650_v14, %v5270_v11 }
 0x23b   : > { %v3948_v57 = vadd.f32 %v8808_v2, %v6738_v44  ;;  %v6744_v13 = vadd.f32 %v8610_v60, %v3872_v7  ;;  %v6680_v62 = vpop.f32.mrb[154].mxu0  ;;  %v8880_v7 = vadd.f32 %v8650_v14, %v8800_v63 }
 0x23c   : > { %3967 = vst [vmem:[#allocation4 + $0xf1] sm:$0xff] %v3950_v47  ;;  %v3951_v51 = vadd.f32 %v8808_v2, %v6741_v34  ;;  %v8826_v21 = vpop.f32.mrb[155].mxu0  ;;  %v8891_v20 = vadd.f32 %v6680_v62, %v8650_v14 }
 0x23d   : > { %3965 = vst [vmem:[#allocation4 + $0xd9] sm:$0xff] %v3948_v57  ;;  %v3949_v50 = vadd.f32 %v8808_v2, %v6744_v13 }
 0x23e   : > { %3968 = vst [vmem:[#allocation4 + $0xf9] sm:$0xff] %v3951_v51  ;;  %v8888_v51 = vadd.f32 %v8650_v14, %v5286_v48 }
 0x23f   : > { %3966 = vst [vmem:[#allocation4 + $0xe1] sm:$0xff] %v3949_v50  ;;  %v6611_v60 = vpop.f32.mrb[52].mxu1 }
 0x240   : > { %v6747_v5 = vadd.f32 %v8723_v33, %v6611_v60  ;;  %v3885_v31 = vpop.f32.mrb[53].mxu1  ;;  %v8848_v33 = vadd.f32 %v8650_v14, %v8783_v37  ;;  %v8863_v37 = vadd.f32 %v6675_v42, %v8650_v14 }
 0x241   : > { %v6750_v17 = vadd.f32 %v8688_v16, %v3885_v31  ;;  %v6612_v4 = vpop.f32.mrb[54].mxu1  ;;  %v8858_v16 = vadd.f32 %v8650_v14, %v8790_v0  ;;  %v8873_v0 = vadd.f32 %v8798_v59, %v8650_v14  ;;  %v8875_v47 = vpop.f32.mrb[156].mxu0  ;;  %v8885_v59 = vadd.f32 %v6679_v56, %v8650_v14 }
 0x242   : > { %v3954_v3 = vadd.f32 %v8808_v2, %v6747_v5  ;;  %v6753_v38 = vadd.f32 %v8736_v61, %v6612_v4  ;;  %v3888_v41 = vpop.f32.mrb[55].mxu1  ;;  %v8882_v55 = vpop.f32.mrb[157].mxu0 }
 0x243   : > { %v3952_v54 = vadd.f32 %v8808_v2, %v6750_v17  ;;  %v6756_v45 = vadd.f32 %v8698_v18, %v3888_v41  ;;  %v4718_v44 = vld [vmem:[#allocation4 + $0xf0] sm:$0xff]  ;;  %v8893_v12 = vpop.f32.mrb[158].mxu0 }
 0x244   : > { %v4123_v61 = vld [vmem:[#allocation4 + $0xd8] sm:$0xff]  ;;  %3971 = vst [vmem:[#allocation4 + $0x121] sm:$0xff] %v3954_v3  ;;  %v3955_v23 = vadd.f32 %v8808_v2, %v6753_v38  ;;  %v4742_v49 = vmul.f32 0.45186275, %v4718_v44  ;;  %v8869_v27 = vmul.f32 0.27406862, %v4718_v44 }
 0x245   : > { %v4147_v18 = vmul.f32 0.27406862, %v4123_v61  ;;  %3969 = vst [vmem:[#allocation4 + $0x109] sm:$0xff] %v3952_v54  ;;  %v3953_v42 = vadd.f32 %v8808_v2, %v6756_v45  ;;  %v4719_v34 = vld [vmem:[#allocation4 + $0xf8] sm:$0xff]  ;;  %v4739_v11 = vmul.f32 0.45186275, %v4123_v61 }
 0x246   : > { %v4124_v9 = vld [vmem:[#allocation4 + $0xe0] sm:$0xff]  ;;  %v4125_v57 = vld [vmem:[#allocation4 + $0xe8] sm:$0x3]  ;;  %3972 = vst [vmem:[#allocation4 + $0x129] sm:$0xff] %v3955_v23  ;;  %v4743_v13 = vmul.f32 0.45186275, %v4719_v34 }
 0x247   : > { %v4171_v50 = vadd.f32 %v4147_v18, %v4098_v36  ;;  %v4148_v63 = vmul.f32 0.27406862, %v4124_v9  ;;  %v4149_v1 = vmul.f32 0.27406862, %v4125_v57  ;;  %3970 = vst [vmem:[#allocation4 + $0x111] sm:$0xff] %v3953_v42  ;;  %v6615_v60 = vpop.f32.mrb[56].mxu1  ;;  %v4766_v5 = vadd.f32 %v4742_v49, %v4147_v18 }
 0x248   : > { %v8895_v31 = vpop.f32.mrb[159].mxu0  ;;  %v6759_v52 = vadd.f32 %v8771_v58, %v6615_v60  ;;  %v3901_v56 = vpop.f32.mrb[57].mxu1  ;;  %v4740_v17 = vmul.f32 0.45186275, %v4124_v9  ;;  %v4763_v48 = vadd.f32 %v4739_v11, %v8702_v35  ;;  %v8899_v4 = vmul.f32 0.27406862, %v4719_v34 }
 0x249   : > { %v4188_v14 = vmul.f32 0.27406862, %v4171_v50  ;;  %v4211_v62 = vmul.f32 0.45186275, %v4171_v50  ;;  %v4172_v3 = vadd.f32 %v4148_v63, %v8818_v39  ;;  %v4173_v36 = vadd.f32 %v4149_v1, %v8820_v15  ;;  %v6616_v38 = vpop.f32.mrb[58].mxu1 }
 0x24a   : > { %v3958_v41 = vadd.f32 %v8808_v2, %v6759_v52  ;;  %v6762_v54 = vadd.f32 %v8753_v43, %v3901_v56  ;;  %v6765_v45 = vadd.f32 %v8775_v19, %v6616_v38  ;;  %v3904_v58 = vpop.f32.mrb[59].mxu1  ;;  %v4767_v44 = vadd.f32 %v4743_v13, %v4148_v63 }
 0x24b   : > { %v4274_v61 = vrot.slane %v4211_v62, 1  ;;  %v4379_v23 = vrot.slane %v4188_v14, 2  ;;  %v4189_v35 = vmul.f32 0.27406862, %v4172_v3  ;;  %v4212_v49 = vmul.f32 0.45186275, %v4172_v3 }
 0x24c   : > { %v4213_v18 = vmul.f32 0.45186275, %v4173_v36  ;;  %v4318_v42 = vmul.f32 0.27406862, %v4173_v36  ;;  %3975 = vst [vmem:[#allocation4 + $0x151] sm:$0xff] %v3958_v41  ;;  %v3956_v39 = vadd.f32 %v8808_v2, %v6762_v54  ;;  %v3959_v15 = vadd.f32 %v8808_v2, %v6765_v45  ;;  %v8908_v34 = vld [vmem:[#allocation4 + $0x108] sm:$0xff] }
 0x24d   : > { %v4275_v11 = vrot.slane %v4212_v49, 1  ;;  %v4380_v9 = vrot.slane %v4189_v35, 2  ;;  %v6768_v43 = vadd.f32 %v8758_v25, %v3904_v58  ;;  %v8912_v19 = vmul.f32 0.27406862, %v8908_v34 }
 0x24e   : > { %v4277_v57 = vrot.slane %v4213_v18, 1  ;;  %v4382_v13 = vrot.slane %v4318_v42, 2  ;;  %3973 = vst [vmem:[#allocation4 + $0x139] sm:$0xff] %v3956_v39  ;;  %3976 = vst [vmem:[#allocation4 + $0x159] sm:$0xff] %v3959_v15  ;;  %v8914_v50 = vld [vmem:[#allocation4 + $0x110] sm:$0xff]  ;;  %v4764_v63 = vadd.f32 %v4740_v17, %v8822_v8  ;;  %v4836_v1 = vadd.f32 %v8869_v27, %v4763_v48 }
 0x24f   : > { %v4276_v60 = vsel %vm1275_vm7, %v4274_v61, %v4275_v11  ;;  %v4381_v52 = vsel %vm4343_vm10, %v4379_v23, %v4380_v9  ;;  %v3957_v56 = vadd.f32 %v8808_v2, %v6768_v43  ;;  %v8922_v25 = vmul.f32 0.27406862, %v8914_v50  ;;  %v6619_v62 = vpop.f32.mrb[60].mxu1  ;;  %v4672_v42 = vld [vmem:[#allocation4 + $0xe8] sm:$0x3] }
 0x250   : > { %v4278_v3 = vsel %vm1275_vm7, %v4275_v11, %v4277_v57  ;;  %v4309_v36 = vadd.f32 %v4276_v60, %v4188_v14  ;;  %v4383_v38 = vsel %vm4343_vm10, %v4380_v9, %v4382_v13  ;;  %v4839_v41 = vadd.f32 %v8912_v19, %v4766_v5  ;;  %v3917_v8 = vpop.f32.mrb[61].mxu1  ;;  %v4720_v14 = vld [vmem:[#allocation4 + $0x100] sm:$0x3] }
 0x251   : > { %v4310_v17 = vadd.f32 %v4278_v3, %v4189_v35  ;;  %3974 = vst [vmem:[#allocation4 + $0x141] sm:$0xff] %v3957_v56  ;;  %v4840_v48 = vadd.f32 %v8922_v25, %v4767_v44  ;;  %v4837_v54 = vadd.f32 %v8899_v4, %v4764_v63  ;;  %v4860_v45 = vmul.f32 0.27406862, %v4836_v1  ;;  %v6620_v58 = vpop.f32.mrb[62].mxu1 }
 0x252   : > { %v4414_v61 = vadd.f32 %v4381_v52, %v4309_v36  ;;  %v4862_v23 = vmul.f32 0.27406862, %v4839_v41  ;;  %v4879_v49 = vmul.f32 0.45186275, %v4839_v41  ;;  %v4876_v18 = vmul.f32 0.45186275, %v4836_v1 }
 0x253   : > { %v4415_v39 = vadd.f32 %v4383_v38, %v4310_v17  ;;  %v8929_v15 = vmul.f32 0.27406862, %v4840_v48  ;;  %v8931_v5 = vmul.f32 0.45186275, %v4840_v48  ;;  %v8933_v35 = vmul.f32 0.27406862, %v4837_v54 }
 0x254   : > { %v4648_v44 = vadd.f32 %v8830_v26, %v4414_v61  ;;  %v4929_v11 = vrot.slane %v4879_v49, 1  ;;  %v5033_v9 = vrot.slane %v4862_v23, 2  ;;  %v8936_v43 = vmul.f32 0.45186275, %v4837_v54  ;;  %v3920_v57 = vpop.f32.mrb[63].mxu1 }
 0x255   : > { %v4649_v13 = vadd.f32 %v8839_v24, %v4415_v39  ;;  %v4930_v63 = vrot.slane %v8931_v5, 1  ;;  %v5034_v1 = vrot.slane %v8929_v15, 2  ;;  %v4924_v60 = vrot.slane %v4876_v18, 1  ;;  %v4717_v52 = vld [vmem:[#allocation4 + $0xe8] sm:$0x3] }
 0x256   : > { %4664 = vst [vmem:[%s8676_s16 + $0x70] sm:$0xff] %v4648_v44  ;;  %v9140_v56 = vrot.slane %v8936_v43, 1  ;;  %v5028_v3 = vrot.slane %v4860_v45, 2  ;;  %v5029_v26 = vrot.slane %v8933_v35, 2  ;;  %v6771_v36 = vadd.f32 %v8793_v29, %v6619_v62  ;;  %v4793_v38 = vld [vmem:[#allocation4 + $0x118] sm:$0x3] }
 0x257   : > { %4665 = vst [vmem:[%s8676_s16 + $0x78] sm:$0xff] %v4649_v13  ;;  %v4931_v24 = vsel %vm1275_vm7, %v4929_v11, %v4930_v63  ;;  %v5035_v41 = vsel %vm4343_vm10, %v5033_v9, %v5034_v1  ;;  %v4696_v17 = vmul.f32 0.27406862, %v4672_v42  ;;  %v4744_v48 = vmul.f32 0.45186275, %v4720_v14  ;;  %v4724_v9 = vld [vmem:[#allocation4 + $0x120] sm:$0xff] }
 0x258   : > { %v4790_v54 = vld [vmem:[#allocation4 + $0x100] sm:$0x3]  ;;  %v4982_v61 = vadd.f32 %v4931_v24, %v4862_v23  ;;  %v4926_v49 = vsel %vm1275_vm7, %v4924_v60, %v9140_v56  ;;  %v5030_v29 = vsel %vm4343_vm10, %v5028_v3, %v5029_v26  ;;  %v3962_v62 = vadd.f32 %v8808_v2, %v6771_v36  ;;  %v4725_v36 = vld [vmem:[#allocation4 + $0x128] sm:$0xff] }
 0x259   : > { %v4980_v18 = vadd.f32 %v4926_v49, %v4860_v45  ;;  %v4768_v39 = vadd.f32 %v4744_v48, %v4696_v17  ;;  %v4817_v44 = vmul.f32 0.27406862, %v4793_v38  ;;  %v6774_v11 = vadd.f32 %v8779_v32, %v3917_v8  ;;  %v8963_v45 = vld [vmem:[#allocation4 + $0x138] sm:$0xff] }
 0x25a   : > { %v5086_v42 = vadd.f32 %v5035_v41, %v4982_v61  ;;  %3979 = vst [vmem:[#allocation4 + $0x181] sm:$0xff] %v3962_v62  ;;  %v4741_v14 = vmul.f32 0.45186275, %v4717_v52  ;;  %v4814_v23 = vmul.f32 0.27406862, %v4790_v54  ;;  %v6777_v13 = vadd.f32 %v8796_v53, %v6620_v58  ;;  %v8968_v41 = vld [vmem:[#allocation4 + $0x140] sm:$0xff] }
 0x25b   : > { %v5084_v24 = vadd.f32 %v5030_v29, %v4980_v18  ;;  %v4841_v60 = vadd.f32 %v4817_v44, %v4768_v39  ;;  %v3960_v56 = vadd.f32 %v8808_v2, %v6774_v11  ;;  %v6780_v3 = vadd.f32 %v8786_v6, %v3920_v57 }
 0x25c   : > { %v5319_v38 = vadd.f32 %v8844_v28, %v5086_v42  ;;  %v4765_v32 = vadd.f32 %v4741_v14, %v8824_v46  ;;  %v3963_v8 = vadd.f32 %v8808_v2, %v6777_v13  ;;  %v4748_v52 = vmul.f32 0.45186275, %v4724_v9 }
 0x25d   : > { %v5317_v53 = vadd.f32 %v8848_v33, %v5084_v24  ;;  %v4881_v58 = vmul.f32 0.45186275, %v4841_v60  ;;  %v4997_v17 = vmul.f32 0.27406862, %v4841_v60  ;;  %3977 = vst [vmem:[#allocation4 + $0x169] sm:$0xff] %v3960_v56  ;;  %v3961_v6 = vadd.f32 %v8808_v2, %v6780_v3 }
 0x25e   : > { %5819 = vst [vmem:[%s8676_s16 + $0x90] sm:$0xff] %v5319_v38  ;;  %v4838_v57 = vadd.f32 %v4814_v23, %v4765_v32  ;;  %3980 = vst [vmem:[#allocation4 + $0x189] sm:$0xff] %v3963_v8  ;;  %v4749_v48 = vmul.f32 0.45186275, %v4725_v36  ;;  %v4772_v28 = vadd.f32 %v8912_v19, %v4748_v52  ;;  %v8975_v46 = vmul.f32 0.27406862, %v8963_v45 }
 0x25f   : > { %5817 = vst [vmem:[%s8676_s16 + $0x80] sm:$0xff] %v5317_v53  ;;  %v4932_v54 = vrot.slane %v4881_v58, 1  ;;  %v5036_v61 = vrot.slane %v4997_v17, 2  ;;  %3978 = vst [vmem:[#allocation4 + $0x171] sm:$0xff] %v3961_v6  ;;  %v8979_v33 = vmul.f32 0.27406862, %v8968_v41 }
 0x260   : > { %v4745_v56 = vmul.f32 0.45186275, %v8908_v34  ;;  %v4878_v49 = vmul.f32 0.45186275, %v4838_v57  ;;  %v4996_v2 = vmul.f32 0.27406862, %v4838_v57  ;;  %v4773_v29 = vadd.f32 %v8922_v25, %v4749_v48 }
 0x261   : > { %v4845_v62 = vadd.f32 %v8975_v46, %v4772_v28  ;;  %v4933_v19 = vsel %vm1275_vm7, %v4930_v63, %v4932_v54  ;;  %v5037_v18 = vsel %vm4343_vm10, %v5034_v1, %v5036_v61  ;;  %v4746_v39 = vmul.f32 0.45186275, %v8914_v50  ;;  %v4726_v60 = vld [vmem:[#allocation4 + $0x130] sm:$0x3]  ;;  %v4799_v53 = vld [vmem:[#allocation4 + $0x148] sm:$0x3] }
 0x262   : > { %v4769_v44 = vadd.f32 %v8869_v27, %v4745_v56  ;;  %v4983_v34 = vadd.f32 %v4933_v19, %v8929_v15  ;;  %v4927_v11 = vrot.slane %v4878_v49, 1  ;;  %v5031_v42 = vrot.slane %v4996_v2, 2  ;;  %v4678_v15 = vld [vmem:[#allocation4 + $0x118] sm:$0x3]  ;;  %v4796_v2 = vld [vmem:[#allocation4 + $0x130] sm:$0x3] }
 0x263   : > { %v4846_v25 = vadd.f32 %v8979_v33, %v4773_v29  ;;  %v4866_v14 = vmul.f32 0.27406862, %v4845_v62  ;;  %v4885_v23 = vmul.f32 0.45186275, %v4845_v62  ;;  %v4770_v5 = vadd.f32 %v8899_v4, %v4746_v39  ;;  %v4723_v54 = vld [vmem:[#allocation4 + $0x118] sm:$0x3] }
 0x264   : > { %v8995_v13 = vmul.f32 0.27406862, %v4724_v9  ;;  %v5087_v63 = vadd.f32 %v5037_v18, %v4983_v34  ;;  %v9154_v24 = vrot.slane %v8936_v43, 1  ;;  %v5032_v27 = vsel %vm4343_vm10, %v5029_v26, %v5031_v42  ;;  %v4675_v26 = vld [vmem:[#allocation4 + $0x100] sm:$0x3]  ;;  %v9016_v39 = vld [vmem:[#allocation4 + $0x150] sm:$0xff] }
 0x265   : > { %v9003_v50 = vmul.f32 0.27406862, %v4846_v25  ;;  %v4886_v38 = vmul.f32 0.45186275, %v4846_v25  ;;  %v4939_v4 = vrot.slane %v4885_v23, 1  ;;  %v5043_v9 = vrot.slane %v4866_v14, 2 }
 0x266   : > { %v4928_v1 = vsel %vm1275_vm7, %v9154_v24, %v4927_v11  ;;  %v5320_v32 = vadd.f32 %v8854_v10, %v5087_v63  ;;  %v9008_v8 = vmul.f32 0.27406862, %v4725_v36  ;;  %v4842_v52 = vadd.f32 %v8995_v13, %v4769_v44  ;;  %v4731_v25 = vld [vmem:[#allocation4 + $0x158] sm:$0xff]  ;;  %v9019_v24 = vld [vmem:[#allocation4 + $0x168] sm:$0xff] }
 0x267   : > { %v4981_v3 = vadd.f32 %v4928_v1, %v8933_v35  ;;  %v5044_v43 = vrot.slane %v9003_v50, 2  ;;  %v4940_v17 = vrot.slane %v4886_v38, 1  ;;  %v4702_v6 = vmul.f32 0.27406862, %v4678_v15  ;;  %v9021_v1 = vld [vmem:[#allocation4 + $0x170] sm:$0xff] }
 0x268   : > { %v4750_v57 = vmul.f32 0.45186275, %v4726_v60  ;;  %5820 = vst [vmem:[%s8676_s16 + $0x98] sm:$0xff] %v5320_v32  ;;  %v4843_v48 = vadd.f32 %v9008_v8, %v4770_v5  ;;  %v4864_v28 = vmul.f32 0.27406862, %v4842_v52 }
 0x269   : > { %v5085_v58 = vadd.f32 %v5032_v27, %v4981_v3  ;;  %v5045_v35 = vsel %vm4343_vm10, %v5043_v9, %v5044_v43  ;;  %v4882_v10 = vmul.f32 0.45186275, %v4842_v52  ;;  %v4941_v61 = vsel %vm1275_vm7, %v4939_v4, %v4940_v17 }
 0x26a   : > { %v4774_v56 = vadd.f32 %v4750_v57, %v4702_v6  ;;  %v4823_v49 = vmul.f32 0.27406862, %v4799_v53  ;;  %v4986_v29 = vadd.f32 %v4941_v61, %v4866_v14  ;;  %v4865_v62 = vmul.f32 0.27406862, %v4843_v48 }
 0x26b   : > { %v5318_v36 = vadd.f32 %v8858_v16, %v5085_v58  ;;  %v4883_v19 = vmul.f32 0.45186275, %v4843_v48  ;;  %v4934_v18 = vrot.slane %v4882_v10, 1  ;;  %v5038_v44 = vrot.slane %v4864_v28, 2 }
 0x26c   : > { %v4847_v34 = vadd.f32 %v4823_v49, %v4774_v56  ;;  %v4699_v11 = vmul.f32 0.27406862, %v4675_v26  ;;  %v4747_v42 = vmul.f32 0.45186275, %v4723_v54  ;;  %v5090_v23 = vadd.f32 %v5045_v35, %v4986_v29 }
 0x26d   : > { %5818 = vst [vmem:[%s8676_s16 + $0x88] sm:$0xff] %v5318_v36  ;;  %v4935_v5 = vrot.slane %v4883_v19, 1  ;;  %v5039_v16 = vrot.slane %v4865_v62, 2  ;;  %v4820_v63 = vmul.f32 0.27406862, %v4796_v2 }
 0x26e   : > { %v4887_v14 = vmul.f32 0.45186275, %v4847_v34  ;;  %v4999_v27 = vmul.f32 0.27406862, %v4847_v34  ;;  %v4771_v15 = vadd.f32 %v4747_v42, %v4699_v11  ;;  %v4754_v60 = vmul.f32 0.45186275, %v9016_v39 }
 0x26f   : > { %v5323_v3 = vadd.f32 %v8863_v37, %v5090_v23  ;;  %v4936_v38 = vsel %vm1275_vm7, %v4934_v18, %v4935_v5  ;;  %v5040_v4 = vsel %vm4343_vm10, %v5038_v44, %v5039_v16  ;;  %v4755_v9 = vmul.f32 0.45186275, %v4731_v25  ;;  %v4684_v11 = vld [vmem:[#allocation4 + $0x148] sm:$0x3] }
 0x270   : > { %v4984_v32 = vadd.f32 %v4936_v38, %v4864_v28  ;;  %v4942_v52 = vrot.slane %v4887_v14, 1  ;;  %v5046_v53 = vrot.slane %v4999_v27, 2  ;;  %v4844_v26 = vadd.f32 %v4820_v63, %v4771_v15  ;;  %v4805_v63 = vld [vmem:[#allocation4 + $0x178] sm:$0x3]  ;;  %v4681_v14 = vld [vmem:[#allocation4 + $0x130] sm:$0x3] }
 0x271   : > { %5823 = vst [vmem:[%s8676_s16 + $0xb0] sm:$0xff] %v5323_v3  ;;  %v4778_v58 = vadd.f32 %v8975_v46, %v4754_v60  ;;  %v4779_v6 = vadd.f32 %v8979_v33, %v4755_v9  ;;  %v9031_v57 = vmul.f32 0.27406862, %v9019_v24  ;;  %v9034_v35 = vmul.f32 0.27406862, %v9021_v1 }
 0x272   : > { %v5088_v37 = vadd.f32 %v5040_v4, %v4984_v32  ;;  %v4943_v48 = vsel %vm1275_vm7, %v4940_v17, %v4942_v52  ;;  %v5047_v28 = vsel %vm4343_vm10, %v5044_v43, %v5046_v53  ;;  %v4884_v10 = vmul.f32 0.45186275, %v4844_v26  ;;  %v4732_v43 = vld [vmem:[#allocation4 + $0x160] sm:$0x3]  ;;  %v4729_v27 = vld [vmem:[#allocation4 + $0x148] sm:$0x3] }
 0x273   : > { %v4987_v54 = vadd.f32 %v4943_v48, %v9003_v50  ;;  %v4998_v36 = vmul.f32 0.27406862, %v4844_v26  ;;  %v4851_v46 = vadd.f32 %v9031_v57, %v4778_v58  ;;  %v4852_v33 = vadd.f32 %v9034_v35, %v4779_v6  ;;  %v4802_v38 = vld [vmem:[#allocation4 + $0x160] sm:$0x3] }
 0x274   : > { %v5321_v61 = vadd.f32 %v8866_v22, %v5088_v37  ;;  %v4937_v56 = vrot.slane %v4884_v10, 1  ;;  %v4751_v49 = vmul.f32 0.45186275, %v8963_v45  ;;  %v4752_v2 = vmul.f32 0.45186275, %v8968_v41  ;;  %v9067_v6 = vld [vmem:[#allocation4 + $0x180] sm:$0xff] }
 0x275   : > { %v5091_v29 = vadd.f32 %v5047_v28, %v4987_v54  ;;  %v5041_v17 = vrot.slane %v4998_v36, 2  ;;  %v4870_v19 = vmul.f32 0.27406862, %v4851_v46  ;;  %v9044_v18 = vmul.f32 0.27406862, %v4852_v33 }
 0x276   : > { %5821 = vst [vmem:[%s8676_s16 + $0xa0] sm:$0xff] %v5321_v61  ;;  %v4938_v50 = vsel %vm1275_vm7, %v4935_v5, %v4937_v56  ;;  %v4891_v44 = vmul.f32 0.45186275, %v4851_v46  ;;  %v9048_v34 = vmul.f32 0.45186275, %v4852_v33  ;;  %v4775_v22 = vadd.f32 %v8995_v13, %v4751_v49  ;;  %v4737_v61 = vld [vmem:[#allocation4 + $0x188] sm:$0xff] }
 0x277   : > { %v5324_v45 = vadd.f32 %v8873_v0, %v5091_v29  ;;  %v4985_v42 = vadd.f32 %v4938_v50, %v4865_v62  ;;  %v5042_v41 = vsel %vm4343_vm10, %v5039_v16, %v5041_v17  ;;  %v5053_v23 = vrot.slane %v4870_v19, 2  ;;  %v9075_v17 = vld [vmem:[%s9135_s7] ss:$0 sm:$0xff] }
 0x278   : > { %v4949_v15 = vrot.slane %v4891_v44, 1  ;;  %v4950_v60 = vrot.slane %v9048_v34, 1  ;;  %v5054_v5 = vrot.slane %v9044_v18, 2  ;;  %v4776_v3 = vadd.f32 %v9008_v8, %v4752_v2 }
 0x279   : > { %5824 = vst [vmem:[%s8676_s16 + $0xb8] sm:$0xff] %v5324_v45  ;;  %v5089_v13 = vadd.f32 %v5042_v41, %v4985_v42  ;;  %v9058_v4 = vmul.f32 0.27406862, %v9016_v39  ;;  %v9060_v0 = vmul.f32 0.27406862, %v4731_v25 }
 0x27a   : > { %v4708_v62 = vmul.f32 0.27406862, %v4684_v11  ;;  %v4951_v16 = vsel %vm1275_vm7, %v4949_v15, %v4950_v60  ;;  %v5055_v9 = vsel %vm4343_vm10, %v5053_v23, %v5054_v5  ;;  %v4756_v32 = vmul.f32 0.45186275, %v4732_v43 }
 0x27b   : > { %v4829_v52 = vmul.f32 0.27406862, %v4805_v63  ;;  %v5322_v53 = vadd.f32 %v8880_v7, %v5089_v13  ;;  %v4990_v26 = vadd.f32 %v4951_v16, %v4870_v19  ;;  %v4848_v8 = vadd.f32 %v9058_v4, %v4775_v22 }
 0x27c   : > { %v4849_v58 = vadd.f32 %v9060_v0, %v4776_v3  ;;  %v4780_v39 = vadd.f32 %v4756_v32, %v4708_v62  ;;  %v4705_v37 = vmul.f32 0.27406862, %v4681_v14  ;;  %v4753_v25 = vmul.f32 0.45186275, %v4729_v27 }
 0x27d   : > { %v4826_v48 = vmul.f32 0.27406862, %v4802_v38  ;;  %5822 = vst [vmem:[%s8676_s16 + $0xa8] sm:$0xff] %v5322_v53  ;;  %v5094_v28 = vadd.f32 %v5055_v9, %v4990_v26  ;;  %v4868_v10 = vmul.f32 0.27406862, %v4848_v8  ;;  %v5290_v19 = vadd.f32 %v9075_v17, %v8826_v21 }
 0x27e   : > { %v4869_v54 = vmul.f32 0.27406862, %v4849_v58  ;;  %v4888_v36 = vmul.f32 0.45186275, %v4848_v8  ;;  %v4889_v46 = vmul.f32 0.45186275, %v4849_v58  ;;  %v4853_v33 = vadd.f32 %v4829_v52, %v4780_v39 }
 0x27f   : > { %v4777_v7 = vadd.f32 %v4753_v25, %v4705_v37  ;;  %v4760_v56 = vmul.f32 0.45186275, %v9067_v6  ;;  %v5327_v49 = vadd.f32 %v8885_v59, %v5094_v28  ;;  %v5048_v22 = vrot.slane %v4868_v10, 2  ;;  %v4738_v58 = vld [vmem:[#allocation4 + $0x190] sm:$0x3] }
 0x280   : > { %v4944_v2 = vrot.slane %v4888_v36, 1  ;;  %v5049_v29 = vrot.slane %v4869_v54, 2  ;;  %v4945_v43 = vrot.slane %v4889_v46, 1  ;;  %v4893_v50 = vmul.f32 0.45186275, %v4853_v33 }
 0x281   : > { %v5001_v44 = vmul.f32 0.27406862, %v4853_v33  ;;  %v4850_v34 = vadd.f32 %v4826_v48, %v4777_v7  ;;  %5827 = vst [vmem:[%s8676_s16 + $0xd0] sm:$0xff] %v5327_v49  ;;  %v4761_v11 = vmul.f32 0.45186275, %v4737_v61  ;;  %v4784_v45 = vadd.f32 %v9031_v57, %v4760_v56 }
 0x282   : > { %v4757_v59 = vmul.f32 0.45186275, %v9019_v24  ;;  %v4946_v42 = vsel %vm1275_vm7, %v4944_v2, %v4945_v43  ;;  %v4952_v41 = vrot.slane %v4893_v50, 1  ;;  %v5050_v3 = vsel %vm4343_vm10, %v5048_v22, %v5049_v29  ;;  %v4735_v2 = vld [vmem:[#allocation4 + $0x178] sm:$0x3] }
 0x283   : > { %v5056_v23 = vrot.slane %v5001_v44, 2  ;;  %v4890_v63 = vmul.f32 0.45186275, %v4850_v34  ;;  %v4988_v14 = vadd.f32 %v4946_v42, %v4868_v10  ;;  %v5000_v27 = vmul.f32 0.27406862, %v4850_v34 }
 0x284   : > { %v4785_v21 = vadd.f32 %v9034_v35, %v4761_v11  ;;  %v4857_v15 = vadd.f32 %v8833_v40, %v4784_v45  ;;  %v4953_v38 = vsel %vm1275_vm7, %v4950_v60, %v4952_v41  ;;  %v4758_v57 = vmul.f32 0.45186275, %v9021_v1  ;;  %v4690_v1 = vld [vmem:[#allocation4 + $0x178] sm:$0x3]  ;;  %v4808_v22 = vld [vmem:[#allocation4 + $0x190] sm:$0x3] }
 0x285   : > { %v4947_v13 = vrot.slane %v4890_v63, 1  ;;  %v5092_v62 = vadd.f32 %v5050_v3, %v4988_v14  ;;  %v4991_v24 = vadd.f32 %v4953_v38, %v9044_v18  ;;  %v5051_v16 = vrot.slane %v5000_v27, 2  ;;  %v4811_v18 = vld [vmem:[#allocation4 + $0x1a8] sm:$0x3] }
 0x286   : > { %v4858_v9 = vadd.f32 %v8835_v30, %v4785_v21  ;;  %v5057_v32 = vsel %vm4343_vm10, %v5054_v5, %v5056_v23  ;;  %v4874_v52 = vmul.f32 0.27406862, %v4857_v15  ;;  %v4897_v40 = vmul.f32 0.45186275, %v4857_v15 }
 0x287   : > { %v4948_v35 = vsel %vm1275_vm7, %v4945_v43, %v4947_v13  ;;  %v5325_v53 = vadd.f32 %v8888_v51, %v5092_v62  ;;  %v5095_v26 = vadd.f32 %v5057_v32, %v4991_v24  ;;  %v4781_v8 = vadd.f32 %v9058_v4, %v4757_v59  ;;  %v4687_v4 = vld [vmem:[#allocation4 + $0x160] sm:$0x3] }
 0x288   : > { %v4989_v60 = vadd.f32 %v4948_v35, %v4869_v54  ;;  %v5052_v39 = vsel %vm4343_vm10, %v5049_v29, %v5051_v16  ;;  %v9095_v30 = vmul.f32 0.27406862, %v4858_v9  ;;  %v4898_v37 = vmul.f32 0.45186275, %v4858_v9 }
 0x289   : > { %v4959_v5 = vrot.slane %v4897_v40, 1  ;;  %5825 = vst [vmem:[%s8676_s16 + $0xc0] sm:$0xff] %v5325_v53  ;;  %v5328_v25 = vadd.f32 %v8891_v20, %v5095_v26  ;;  %v4782_v51 = vadd.f32 %v9060_v0, %v4758_v57  ;;  %v4830_v28 = vmul.f32 0.27406862, %v9067_v6 }
 0x28a   : > { %v5093_v48 = vadd.f32 %v5052_v39, %v4989_v60  ;;  %v4960_v10 = vrot.slane %v4898_v37, 1  ;;  %v5064_v54 = vrot.slane %v9095_v30, 2  ;;  %v4831_v36 = vmul.f32 0.27406862, %v4737_v61 }
 0x28b   : > { %v4714_v46 = vmul.f32 0.27406862, %v4690_v1  ;;  %5828 = vst [vmem:[%s8676_s16 + $0xd8] sm:$0xff] %v5328_v25  ;;  %v4854_v7 = vadd.f32 %v4830_v28, %v4781_v8  ;;  %v4762_v56 = vmul.f32 0.45186275, %v4738_v58  ;;  %v5063_v29 = vrot.slane %v4874_v52, 2 }
 0x28c   : > { %v5326_v33 = vadd.f32 %v5290_v19, %v5093_v48  ;;  %v4835_v49 = vmul.f32 0.27406862, %v4811_v18  ;;  %v4961_v20 = vsel %vm1275_vm7, %v4959_v5, %v4960_v10  ;;  %v4855_v43 = vadd.f32 %v4831_v36, %v4782_v51 }
 0x28d   : > { %v4711_v0 = vmul.f32 0.27406862, %v4687_v4  ;;  %v4994_v6 = vadd.f32 %v4961_v20, %v4874_v52  ;;  %v4872_v50 = vmul.f32 0.27406862, %v4854_v7  ;;  %v4894_v44 = vmul.f32 0.45186275, %v4854_v7 }
 0x28e   : > { %5826 = vst [vmem:[%s8676_s16 + $0xc8] sm:$0xff] %v5326_v33  ;;  %v4786_v34 = vadd.f32 %v4762_v56, %v4714_v46  ;;  %v5065_v61 = vsel %vm4343_vm10, %v5063_v29, %v5064_v54  ;;  %v4873_v11 = vmul.f32 0.27406862, %v4855_v43  ;;  %v4895_v45 = vmul.f32 0.45186275, %v4855_v43 }
 0x28f   : > { %v4759_v19 = vmul.f32 0.45186275, %v4735_v2  ;;  %v5098_v59 = vadd.f32 %v5065_v61, %v4994_v6  ;;  %v5311_v42 = vadd.f32 %v9075_v17, %v8875_v47  ;;  %v4954_v41 = vrot.slane %v4894_v44, 1 }
 0x290   : > { %v4859_v23 = vadd.f32 %v4835_v49, %v4786_v34  ;;  %v4955_v63 = vrot.slane %v4895_v45, 1  ;;  %v5059_v14 = vrot.slane %v4873_v11, 2  ;;  %v4832_v21 = vmul.f32 0.27406862, %v4808_v22 }
 0x291   : > { %v4783_v27 = vadd.f32 %v4759_v19, %v4711_v0  ;;  %v5331_v15 = vadd.f32 %v5311_v42, %v5098_v59  ;;  %v5058_v57 = vrot.slane %v4872_v50, 2  ;;  %v5303_v40 = vadd.f32 %v9075_v17, %v8882_v55 }
 0x292   : > { %v4899_v3 = vmul.f32 0.45186275, %v4859_v23  ;;  %v5003_v38 = vmul.f32 0.27406862, %v4859_v23  ;;  %v4956_v13 = vsel %vm1275_vm7, %v4954_v41, %v4955_v63  ;;  %v5314_v39 = vadd.f32 %v9075_v17, %v8893_v12 }
 0x293   : > { %v4856_v62 = vadd.f32 %v4832_v21, %v4783_v27  ;;  %5831 = vst [vmem:[%s8676_s16 + $0xf0] sm:$0xff] %v5331_v15  ;;  %v4992_v24 = vadd.f32 %v4956_v13, %v4872_v50  ;;  %v5060_v47 = vsel %vm4343_vm10, %v5058_v57, %v5059_v14 }
 0x294   : > { %v4962_v16 = vrot.slane %v4899_v3, 1  ;;  %v5066_v9 = vrot.slane %v5003_v38, 2 }
 0x295   : > { %v4896_v32 = vmul.f32 0.45186275, %v4856_v62  ;;  %v5002_v35 = vmul.f32 0.27406862, %v4856_v62  ;;  %v5096_v52 = vadd.f32 %v5060_v47, %v4992_v24 }
 0x296   : > { %v4963_v53 = vsel %vm1275_vm7, %v4960_v10, %v4962_v16  ;;  %v5067_v58 = vsel %vm4343_vm10, %v5064_v54, %v5066_v9 }
 0x297   : > { %v4995_v26 = vadd.f32 %v4963_v53, %v9095_v30  ;;  %v4957_v60 = vrot.slane %v4896_v32, 1  ;;  %v5061_v8 = vrot.slane %v5002_v35, 2  ;;  %v5329_v1 = vadd.f32 %v5303_v40, %v5096_v52 }
 0x298   : > { %v5306_v30 = vadd.f32 %v9075_v17, %v8895_v31 }
 0x299   : > { %v5099_v18 = vadd.f32 %v5067_v58, %v4995_v26  ;;  %v4958_v37 = vsel %vm1275_vm7, %v4955_v63, %v4957_v60  ;;  %5829 = vst [vmem:[%s8676_s16 + $0xe0] sm:$0xff] %v5329_v1  ;;  %v5062_v25 = vsel %vm4343_vm10, %v5059_v14, %v5061_v8 }
 0x29a   : > { %v4993_v5 = vadd.f32 %v4958_v37, %v4873_v11 }
 0x29b   : > { %v5332_v55 = vadd.f32 %v5314_v39, %v5099_v18 }
 0x29c   : > { %v5097_v48 = vadd.f32 %v5062_v25, %v4993_v5 }
 0x29d   : > { %5832 = vst [vmem:[%s8676_s16 + $0xf8] sm:$0xff] %v5332_v55 }
 0x29e   : > { %v5330_v51 = vadd.f32 %v5306_v30, %v5097_v48 }
 0x2a0   : > { %5830 = vst [vmem:[%s8676_s16 + $0xe8] sm:$0xff] %v5330_v51 }
 0x2a1 PF: > { %s18_s27 = sadd.s32 1, %s7035_s27  }
 0x2a2   : > { %p15_p4 = scmp.ge.s32.totalorder %s18_s27, 4  }
 0x2a4   :  { %17 = sbr.rel (!%p15_p4) target bundleno = 1 (0x1), region = 102 }

</bundles_post_ra>
